<compile_context>
chip_gen: v7x
topology: tpu7x:2x2x1
jax: 0.10.0
libtpu: 0.0.40
codegen_flags: <defaults>
</compile_context>

<pallas_src>
import functools

import numpy as np
import jax
import jax.numpy as jnp
from jax import lax
from jax.experimental import pallas as pl
from jax.experimental.pallas import tpu as pltpu


# ----------------------------- small helpers ---------------------------------

def _cdiv(a, b):
    return (a + b - 1) // b


def _round_up(x, m):
    return _cdiv(x, m) * m


def _num_batch_shards():
    """>=2 batch grid steps on dual-TensorCore chips (v7x); 1 on single-TC v5e/v6e."""
    try:
        kind = jax.devices()[0].device_kind.lower().replace(" ", "")
    except Exception:
        return 1
    return 2 if ("v7" in kind or "tpu7" in kind) else 1


# ------------------------ fused-weight builders (init-time) -------------------

def _conv_band(w, L):
    """Conv1d weight (C_out, C_in, K), stride 1, padding K//2, as a dense banded matrix
    B of shape (C_in*L, C_out*L) so that  y = x @ B  with activations laid out as rows
    whose columns are indexed (c*L + l):  B[ci*L+m, co*L+l] = w[co, ci, m-l+K//2]."""
    C_out, C_in, K = w.shape
    P = K // 2
    m = jnp.arange(L)[:, None]
    l = jnp.arange(L)[None, :]
    k = m - l + P                                          # (L, L) tap index
    valid = ((k >= 0) & (k < K)).astype(w.dtype)
    band = w[:, :, jnp.clip(k, 0, K - 1)] * valid[None, None]   # (C_out, C_in, L, L)
    return jnp.transpose(band, (1, 2, 0, 3)).reshape(C_in * L, C_out * L)


def _res1x1_band(wr, L):
    """1x1 residual conv weight (C_out, C_in) as a (C_in*L, C_out*L) matrix."""
    return jnp.kron(wr.T, jnp.eye(L, dtype=wr.dtype))


def _upsample_band(C, L):
    """nn.Upsample(scale_factor=2, mode='linear', align_corners=False) over length L,
    per channel, as a (C*L, C*2L) matrix (exact 0.25/0.75/1.0 coefficients)."""
    u = np.zeros((L, 2 * L), np.float32)
    for l in range(L):
        if l == 0:
            u[0, 0] = 1.0                                  # left edge clamp
        else:
            u[l, 2 * l] = 0.75
            u[l - 1, 2 * l] = 0.25
        if l == L - 1:
            u[L - 1, 2 * L - 1] = 1.0                      # right edge clamp
        else:
            u[l, 2 * l + 1] = 0.75
            u[l + 1, 2 * l + 1] = 0.25
    return jnp.asarray(np.kron(np.eye(C, dtype=np.float32), u))


def _chan_row(v, L):
    """Per-channel vector (C,) -> (1, C*L) row matching the (c*L + l) column layout."""
    return jnp.repeat(v, L)[None, :]


# ------------------------------ fused generator kernel ------------------------

def _generator_kernel(*refs, plan, eps, mxu_dtype):
    """Whole generator forward for one batch block.

    refs = (z_ref, *weight_refs, out_ref).  Activations are (B_blk, C*L) tiles; every
    layer is a single MXU matmul plus elementwise/reduction work -- no in-kernel
    reshapes, transposes or im2col."""
    z_ref, w_refs, o_ref = refs[0], refs[1:-1], refs[-1]
    w_it = iter(w_refs)

    def nxt():
        return next(w_it)[...]

    def mm(a, w):                                          # MXU matmul, f32 accumulate
        return jnp.dot(a.astype(mxu_dtype), w.astype(mxu_dtype),
                       preferred_element_type=jnp.float32)

    def group_norm(h, g_row, be_row):                      # GroupNorm(1, C): per-sample
        inv_n = 1.0 / h.shape[-1]                          # stats over all C*L lanes
        mean = jnp.sum(h, axis=-1, keepdims=True) * inv_n
        c = h - mean                                       # two-pass variance
        var = jnp.sum(c * c, axis=-1, keepdims=True) * inv_n
        return c * lax.rsqrt(var + eps) * g_row + be_row

    def lrelu(v):
        return jnp.maximum(v, 0.2 * v)

    # initial Linear: output columns are already ordered (c*L0 + l), i.e. the
    # Rearrange('b (c l) -> b c l') is a no-op in this layout.
    x = mm(z_ref[...], nxt()) + nxt()

    for kind in plan:
        if kind == "upsample":
            x = mm(x, nxt())                               # exact linear-interp matrix
        else:                                              # fused ResBlock
            w1, b1, g1, be1 = nxt(), nxt(), nxt(), nxt()
            w2, b2, g2, be2 = nxt(), nxt(), nxt(), nxt()
            if kind == "resblock_res":
                r = mm(x, nxt()) + nxt()                   # 1x1 residual conv
            else:
                r = x                                      # identity residual
            h = lrelu(group_norm(mm(x, w1) + b1, g1, be1))
            h = group_norm(mm(h, w2) + b2, g2, be2)
            x = lrelu(h + r)

    # final Conv1d(K=7, padding=3) + tanh, lane-dense (B_blk, C_out*L) store
    o_ref[...] = jnp.tanh(mm(x, nxt()) + nxt()).astype(o_ref.dtype)


def generator_forward(params, z, *, mxu_dtype=jnp.float32):
    """z: (N, latent_dim) -> (N, out_channels, sequence_length); one pallas_call."""
    fused = params["fused"]
    flat, is_mat, plan = fused["flat"], fused["is_mat"], fused["plan"]
    if mxu_dtype != jnp.float32:                           # bf16 MXU operands
        flat = tuple(a.astype(mxu_dtype) if m else a for a, m in zip(flat, is_mat))

    N, latent = z.shape
    c_out, seq_len = fused["out_channels"], fused["seq_len"]
    out_cols = c_out * seq_len

    # Batch blocking: each grid step processes B_blk samples, padded up to a multiple
    # of 8 sublanes (no divisor-of-N cliffs).  The batch axis is "parallel": >=2 steps
    # feed both TensorCores on v7x; on single-TC v5e/v6e the grid collapses.
    per = min(_cdiv(N, _num_batch_shards()), 256)
    grid_n = _cdiv(N, per)
    B_blk = _round_up(per, 8)
    zp = jnp.pad(z, ((0, grid_n * per - N), (0, 0))).reshape(grid_n, per, latent)
    zp = jnp.pad(zp, ((0, 0), (0, B_blk - per), (0, 0))).reshape(grid_n * B_blk, latent)

    kernel = functools.partial(_generator_kernel, plan=plan, eps=1e-5,
                               mxu_dtype=mxu_dtype)
    out = pl.pallas_call(
        kernel,
        out_shape=jax.ShapeDtypeStruct((grid_n * B_blk, out_cols), jnp.float32),
        grid=(grid_n,),
        in_specs=[pl.BlockSpec((B_blk, latent), lambda i: (i, 0))]
                 + [pl.BlockSpec(a.shape, lambda i: (0, 0)) for a in flat],
        out_specs=pl.BlockSpec((B_blk, out_cols), lambda i: (i, 0)),
        compiler_params=pltpu.CompilerParams(
            dimension_semantics=("parallel",),
            vmem_limit_bytes=48 * 1024 * 1024),
    )(zp, *flat)

    out = out.reshape(grid_n, B_blk, out_cols)[:, :per].reshape(grid_n * per, out_cols)
    return out[:N].reshape(N, c_out, seq_len)


# ------------------------------ parameter construction ------------------------

def _spectral_normalize(w, n_iters=30):
    """Eval-time equivalent of torch spectral_norm: divide by the largest singular
    value of the (C_out, C_in*K) reshape (power iteration).  Weight preprocessing done
    once at init, never inside the kernel."""
    mat = w.reshape(w.shape[0], -1)
    v = jnp.ones((mat.shape[1],), w.dtype) / jnp.sqrt(mat.shape[1])
    u = None
    for _ in range(n_iters):
        u = mat @ v
        u = u / (jnp.linalg.norm(u) + 1e-12)
        v = mat.T @ u
        v = v / (jnp.linalg.norm(v) + 1e-12)
    sigma = u @ (mat @ v)
    return w / sigma


def _build_fused(p):
    """Precompute every fused operand the kernel consumes, in kernel-consumption order."""
    seq_len = p["sequence_length"]
    # TODO(synk): sequence_length=1440 needs an L-tiled (halo) im2col kernel; the dense
    # banded-weight formulation below is only sized for the short configs.
    assert seq_len in (24, 48, 96), "fused kernel supports sequence_length in (24,48,96)"

    flat, is_mat, plan = [], [], []

    def add(a, is_matmul_operand):
        flat.append(a.astype(jnp.float32))
        is_mat.append(is_matmul_operand)

    add(p["lin_w"].T, True)                                # (latent, c0*isl)
    add(p["lin_b"][None, :], False)

    L, C = p["isl"], p["c0"]

    def add_resblock(rp, L):
        has_res = rp["wr"] is not None
        plan.append("resblock_res" if has_res else "resblock")
        add(_conv_band(rp["w1"], L), True)
        add(_chan_row(rp["b1"], L), False)
        add(_chan_row(rp["g1"], L), False)
        add(_chan_row(rp["be1"], L), False)
        add(_conv_band(rp["w2"], L), True)
        add(_chan_row(rp["b2"], L), False)
        add(_chan_row(rp["g2"], L), False)
        add(_chan_row(rp["be2"], L), False)
        if has_res:
            add(_res1x1_band(rp["wr"], L), True)
            add(_chan_row(rp["br"], L), False)
        return rp["w1"].shape[0]                           # C_out

    for kind, lp in p["layers"]:
        if kind == "resblock":
            C = add_resblock(lp, L)
        else:
            plan.append("upsample")
            add(_upsample_band(C, L), True)
            L *= 2

    add_resblock(p["final_res"], L)
    add(_conv_band(p["final_w"], L), True)
    add(_chan_row(p["final_b"], L), False)
    assert L == seq_len

    return dict(flat=tuple(flat), is_mat=tuple(is_mat), plan=tuple(plan),
                out_channels=p["final_w"].shape[0], seq_len=seq_len)


def init_generator_params(key, latent_dim=16, out_channels=1, dim_base=4,
                          sequence_length=24):
    assert sequence_length in (24, 48, 96, 1440)
    isl = 90 if sequence_length == 1440 else 6
    c0 = dim_base * 8

    def split():
        nonlocal key
        key, sub = jax.random.split(key)
        return sub

    def conv_w(co, ci, k, scale=0.2):
        return jax.random.normal(split(), (co, ci, k), jnp.float32) * scale

    def vec(c, scale=0.1):
        return jax.random.normal(split(), (c,), jnp.float32) * scale

    def resblock_params(ci, co, k=3):
        p = dict(
            w1=_spectral_normalize(conv_w(co, ci, k)), b1=vec(co),
            w2=_spectral_normalize(conv_w(co, co, k)), b2=vec(co),
            g1=1.0 + vec(co), be1=vec(co),
            g2=1.0 + vec(co), be2=vec(co),
        )
        if ci != co:
            p["wr"] = conv_w(co, ci, 1)[..., 0]            # residual 1x1 weight
            p["br"] = vec(co)
        else:
            p["wr"], p["br"] = None, None                  # identity residual
        return p

    params = dict(
        c0=c0, isl=isl, sequence_length=sequence_length,
        lin_w=jax.random.normal(split(), (c0 * isl, latent_dim), jnp.float32) * 0.1,
        lin_b=vec(c0 * isl),
        layers=[],
        final_res=resblock_params(dim_base, dim_base),
        final_w=conv_w(out_channels, dim_base, 7),
        final_b=vec(out_channels),
    )
    in_out = [(dim_base * 8, dim_base * 8), (dim_base * 8, dim_base * 4),
              (dim_base * 4, dim_base * 4), (dim_base * 4, dim_base * 2),
              (dim_base * 2, dim_base)]
    seq = isl
    for ci, co in in_out:
        params["layers"].append(("resblock", resblock_params(ci, co)))
        if seq < sequence_length:
            params["layers"].append(("upsample", None))
            seq *= 2
    assert seq == sequence_length

    params["fused"] = _build_fused(params)                 # fused operands built ONCE
    return params


# ------------------------------- pure-JAX reference ----------------------------

def _conv1d_ref(x, w, b, padding):
    out = lax.conv_general_dilated(x, w, (1,), [(padding, padding)],
                                   dimension_numbers=("NCH", "OIH", "NCH"))
    return out + b[None, :, None]


def _gn_ref(x, gamma, beta, eps=1e-5):
    mean = jnp.mean(x, axis=(1, 2), keepdims=True)
    var = jnp.mean((x - mean) ** 2, axis=(1, 2), keepdims=True)
    return (x - mean) * lax.rsqrt(var + eps) * gamma[None, :, None] + beta[None, :, None]


def _lrelu_ref(x):
    return jnp.where(x >= 0, x, 0.2 * x)


def _upsample_linear_ref(x):
    xl = jnp.concatenate([x[..., :1], x[..., :-1]], axis=-1)
    xr = jnp.concatenate([x[..., 1:], x[..., -1:]], axis=-1)
    even = 0.25 * xl + 0.75 * x
    odd = 0.75 * x + 0.25 * xr
    N, C, L = x.shape
    return jnp.stack([even, odd], axis=-1).reshape(N, C, 2 * L)


def _resblock_ref(x, p, eps=1e-5):
    k = p["w1"].shape[-1]
    h = _conv1d_ref(x, p["w1"], p["b1"], padding=k // 2)
    h = _lrelu_ref(_gn_ref(h, p["g1"], p["be1"], eps))
    h = _conv1d_ref(h, p["w2"], p["b2"], padding=k // 2)
    h = _gn_ref(h, p["g2"], p["be2"], eps)
    r = x if p["wr"] is None else _conv1d_ref(x, p["wr"][:, :, None], p["br"], padding=0)
    return _lrelu_ref(h + r)


def generator_reference(params, z):
    h = z @ params["lin_w"].T + params["lin_b"][None, :]
    x = h.reshape(z.shape[0], params["c0"], params["isl"])
    for kind, p in params["layers"]:
        x = _resblock_ref(x, p) if kind == "resblock" else _upsample_linear_ref(x)
    x = _resblock_ref(x, params["final_res"])
    x = _conv1d_ref(x, params["final_w"], params["final_b"],
                    padding=params["final_w"].shape[-1] // 2)
    return jnp.tanh(x)


# ------------------------------------ demo -------------------------------------

if __name__ == "__main__":
    key = jax.random.PRNGKey(0)
    pkey, zkey = jax.random.split(key)

    # small shapes consistent with the module:
    # batch=2, latent_dim=16, dim_base=4 (channels 32 -> 4), sequence_length=24 (isl=6)
    params = init_generator_params(pkey, latent_dim=16, out_channels=1,
                                   dim_base=4, sequence_length=24)
    z = jax.random.normal(zkey, (2, 16), jnp.float32)

    out = jax.block_until_ready(generator_forward(params, z))
    ref = jax.block_until_ready(generator_reference(params, z))

    assert out.shape == (2, 1, 24), out.shape
    assert bool(jnp.all(jnp.isfinite(out)))
    assert jnp.allclose(out, ref, atol=1e-3, rtol=1e-3), \
        float(jnp.max(jnp.abs(out - ref)))

    # bf16 MXU fast path (native MXU dtype); GN / lrelu / tanh stay f32.
    out_bf16 = jax.block_until_ready(
        generator_forward(params, z, mxu_dtype=jnp.bfloat16))
    assert out_bf16.shape == (2, 1, 24)
    assert bool(jnp.all(jnp.isfinite(out_bf16)))
    assert jnp.allclose(out_bf16, ref, atol=1e-1, rtol=1e-1), \
        float(jnp.max(jnp.abs(out_bf16 - ref)))

    print("KERNEL_OK")
</pallas_src>

<mosaic_0001>
module attributes {stable_mosaic.version = 11 : i64} {
  func.func @_generator_kernel(%arg0: i32, %arg1: memref<8x16xf32, #tpu.memory_space<vmem>>, %arg2: memref<16x192xf32, #tpu.memory_space<vmem>>, %arg3: memref<1x192xf32, #tpu.memory_space<vmem>>, %arg4: memref<192x192xf32, #tpu.memory_space<vmem>>, %arg5: memref<1x192xf32, #tpu.memory_space<vmem>>, %arg6: memref<1x192xf32, #tpu.memory_space<vmem>>, %arg7: memref<1x192xf32, #tpu.memory_space<vmem>>, %arg8: memref<192x192xf32, #tpu.memory_space<vmem>>, %arg9: memref<1x192xf32, #tpu.memory_space<vmem>>, %arg10: memref<1x192xf32, #tpu.memory_space<vmem>>, %arg11: memref<1x192xf32, #tpu.memory_space<vmem>>, %arg12: memref<192x384xf32, #tpu.memory_space<vmem>>, %arg13: memref<384x192xf32, #tpu.memory_space<vmem>>, %arg14: memref<1x192xf32, #tpu.memory_space<vmem>>, %arg15: memref<1x192xf32, #tpu.memory_space<vmem>>, %arg16: memref<1x192xf32, #tpu.memory_space<vmem>>, %arg17: memref<192x192xf32, #tpu.memory_space<vmem>>, %arg18: memref<1x192xf32, #tpu.memory_space<vmem>>, %arg19: memref<1x192xf32, #tpu.memory_space<vmem>>, %arg20: memref<1x192xf32, #tpu.memory_space<vmem>>, %arg21: memref<384x192xf32, #tpu.memory_space<vmem>>, %arg22: memref<1x192xf32, #tpu.memory_space<vmem>>, %arg23: memref<192x384xf32, #tpu.memory_space<vmem>>, %arg24: memref<384x384xf32, #tpu.memory_space<vmem>>, %arg25: memref<1x384xf32, #tpu.memory_space<vmem>>, %arg26: memref<1x384xf32, #tpu.memory_space<vmem>>, %arg27: memref<1x384xf32, #tpu.memory_space<vmem>>, %arg28: memref<384x384xf32, #tpu.memory_space<vmem>>, %arg29: memref<1x384xf32, #tpu.memory_space<vmem>>, %arg30: memref<1x384xf32, #tpu.memory_space<vmem>>, %arg31: memref<1x384xf32, #tpu.memory_space<vmem>>, %arg32: memref<384x192xf32, #tpu.memory_space<vmem>>, %arg33: memref<1x192xf32, #tpu.memory_space<vmem>>, %arg34: memref<1x192xf32, #tpu.memory_space<vmem>>, %arg35: memref<1x192xf32, #tpu.memory_space<vmem>>, %arg36: memref<192x192xf32, #tpu.memory_space<vmem>>, %arg37: memref<1x192xf32, #tpu.memory_space<vmem>>, %arg38: memref<1x192xf32, #tpu.memory_space<vmem>>, %arg39: memref<1x192xf32, #tpu.memory_space<vmem>>, %arg40: memref<384x192xf32, #tpu.memory_space<vmem>>, %arg41: memref<1x192xf32, #tpu.memory_space<vmem>>, %arg42: memref<192x96xf32, #tpu.memory_space<vmem>>, %arg43: memref<1x96xf32, #tpu.memory_space<vmem>>, %arg44: memref<1x96xf32, #tpu.memory_space<vmem>>, %arg45: memref<1x96xf32, #tpu.memory_space<vmem>>, %arg46: memref<96x96xf32, #tpu.memory_space<vmem>>, %arg47: memref<1x96xf32, #tpu.memory_space<vmem>>, %arg48: memref<1x96xf32, #tpu.memory_space<vmem>>, %arg49: memref<1x96xf32, #tpu.memory_space<vmem>>, %arg50: memref<192x96xf32, #tpu.memory_space<vmem>>, %arg51: memref<1x96xf32, #tpu.memory_space<vmem>>, %arg52: memref<96x96xf32, #tpu.memory_space<vmem>>, %arg53: memref<1x96xf32, #tpu.memory_space<vmem>>, %arg54: memref<1x96xf32, #tpu.memory_space<vmem>>, %arg55: memref<1x96xf32, #tpu.memory_space<vmem>>, %arg56: memref<96x96xf32, #tpu.memory_space<vmem>>, %arg57: memref<1x96xf32, #tpu.memory_space<vmem>>, %arg58: memref<1x96xf32, #tpu.memory_space<vmem>>, %arg59: memref<1x96xf32, #tpu.memory_space<vmem>>, %arg60: memref<96x24xf32, #tpu.memory_space<vmem>>, %arg61: memref<1x24xf32, #tpu.memory_space<vmem>>, %arg62: memref<8x24xf32, #tpu.memory_space<vmem>>) attributes {dimension_semantics = [#tpu.dimension_semantics<parallel>], iteration_bounds = array<i64: 1>, scalar_prefetch = 0 : i64, scratch_operands = 0 : i64, tpu.core_type = #tpu.core_type<tc>, window_params = [{transform_indices = @transform_0, window_bounds = array<i64: 8, 16>}, {pipeline_mode = #tpu.pipeline_mode<synchronous>, transform_indices = @transform_1, window_bounds = array<i64: 16, 192>}, {pipeline_mode = #tpu.pipeline_mode<synchronous>, transform_indices = @transform_2, window_bounds = array<i64: 1, 192>}, {pipeline_mode = #tpu.pipeline_mode<synchronous>, transform_indices = @transform_3, window_bounds = array<i64: 192, 192>}, {pipeline_mode = #tpu.pipeline_mode<synchronous>, transform_indices = @transform_4, window_bounds = array<i64: 1, 192>}, {pipeline_mode = #tpu.pipeline_mode<synchronous>, transform_indices = @transform_5, window_bounds = array<i64: 1, 192>}, {pipeline_mode = #tpu.pipeline_mode<synchronous>, transform_indices = @transform_6, window_bounds = array<i64: 1, 192>}, {pipeline_mode = #tpu.pipeline_mode<synchronous>, transform_indices = @transform_7, window_bounds = array<i64: 192, 192>}, {pipeline_mode = #tpu.pipeline_mode<synchronous>, transform_indices = @transform_8, window_bounds = array<i64: 1, 192>}, {pipeline_mode = #tpu.pipeline_mode<synchronous>, transform_indices = @transform_9, window_bounds = array<i64: 1, 192>}, {pipeline_mode = #tpu.pipeline_mode<synchronous>, transform_indices = @transform_10, window_bounds = array<i64: 1, 192>}, {pipeline_mode = #tpu.pipeline_mode<synchronous>, transform_indices = @transform_11, window_bounds = array<i64: 192, 384>}, {pipeline_mode = #tpu.pipeline_mode<synchronous>, transform_indices = @transform_12, window_bounds = array<i64: 384, 192>}, {pipeline_mode = #tpu.pipeline_mode<synchronous>, transform_indices = @transform_13, window_bounds = array<i64: 1, 192>}, {pipeline_mode = #tpu.pipeline_mode<synchronous>, transform_indices = @transform_14, window_bounds = array<i64: 1, 192>}, {pipeline_mode = #tpu.pipeline_mode<synchronous>, transform_indices = @transform_15, window_bounds = array<i64: 1, 192>}, {pipeline_mode = #tpu.pipeline_mode<synchronous>, transform_indices = @transform_16, window_bounds = array<i64: 192, 192>}, {pipeline_mode = #tpu.pipeline_mode<synchronous>, transform_indices = @transform_17, window_bounds = array<i64: 1, 192>}, {pipeline_mode = #tpu.pipeline_mode<synchronous>, transform_indices = @transform_18, window_bounds = array<i64: 1, 192>}, {pipeline_mode = #tpu.pipeline_mode<synchronous>, transform_indices = @transform_19, window_bounds = array<i64: 1, 192>}, {pipeline_mode = #tpu.pipeline_mode<synchronous>, transform_indices = @transform_20, window_bounds = array<i64: 384, 192>}, {pipeline_mode = #tpu.pipeline_mode<synchronous>, transform_indices = @transform_21, window_bounds = array<i64: 1, 192>}, {pipeline_mode = #tpu.pipeline_mode<synchronous>, transform_indices = @transform_22, window_bounds = array<i64: 192, 384>}, {pipeline_mode = #tpu.pipeline_mode<synchronous>, transform_indices = @transform_23, window_bounds = array<i64: 384, 384>}, {pipeline_mode = #tpu.pipeline_mode<synchronous>, transform_indices = @transform_24, window_bounds = array<i64: 1, 384>}, {pipeline_mode = #tpu.pipeline_mode<synchronous>, transform_indices = @transform_25, window_bounds = array<i64: 1, 384>}, {pipeline_mode = #tpu.pipeline_mode<synchronous>, transform_indices = @transform_26, window_bounds = array<i64: 1, 384>}, {pipeline_mode = #tpu.pipeline_mode<synchronous>, transform_indices = @transform_27, window_bounds = array<i64: 384, 384>}, {pipeline_mode = #tpu.pipeline_mode<synchronous>, transform_indices = @transform_28, window_bounds = array<i64: 1, 384>}, {pipeline_mode = #tpu.pipeline_mode<synchronous>, transform_indices = @transform_29, window_bounds = array<i64: 1, 384>}, {pipeline_mode = #tpu.pipeline_mode<synchronous>, transform_indices = @transform_30, window_bounds = array<i64: 1, 384>}, {pipeline_mode = #tpu.pipeline_mode<synchronous>, transform_indices = @transform_31, window_bounds = array<i64: 384, 192>}, {pipeline_mode = #tpu.pipeline_mode<synchronous>, transform_indices = @transform_32, window_bounds = array<i64: 1, 192>}, {pipeline_mode = #tpu.pipeline_mode<synchronous>, transform_indices = @transform_33, window_bounds = array<i64: 1, 192>}, {pipeline_mode = #tpu.pipeline_mode<synchronous>, transform_indices = @transform_34, window_bounds = array<i64: 1, 192>}, {pipeline_mode = #tpu.pipeline_mode<synchronous>, transform_indices = @transform_35, window_bounds = array<i64: 192, 192>}, {pipeline_mode = #tpu.pipeline_mode<synchronous>, transform_indices = @transform_36, window_bounds = array<i64: 1, 192>}, {pipeline_mode = #tpu.pipeline_mode<synchronous>, transform_indices = @transform_37, window_bounds = array<i64: 1, 192>}, {pipeline_mode = #tpu.pipeline_mode<synchronous>, transform_indices = @transform_38, window_bounds = array<i64: 1, 192>}, {pipeline_mode = #tpu.pipeline_mode<synchronous>, transform_indices = @transform_39, window_bounds = array<i64: 384, 192>}, {pipeline_mode = #tpu.pipeline_mode<synchronous>, transform_indices = @transform_40, window_bounds = array<i64: 1, 192>}, {pipeline_mode = #tpu.pipeline_mode<synchronous>, transform_indices = @transform_41, window_bounds = array<i64: 192, 96>}, {pipeline_mode = #tpu.pipeline_mode<synchronous>, transform_indices = @transform_42, window_bounds = array<i64: 1, 96>}, {pipeline_mode = #tpu.pipeline_mode<synchronous>, transform_indices = @transform_43, window_bounds = array<i64: 1, 96>}, {pipeline_mode = #tpu.pipeline_mode<synchronous>, transform_indices = @transform_44, window_bounds = array<i64: 1, 96>}, {pipeline_mode = #tpu.pipeline_mode<synchronous>, transform_indices = @transform_45, window_bounds = array<i64: 96, 96>}, {pipeline_mode = #tpu.pipeline_mode<synchronous>, transform_indices = @transform_46, window_bounds = array<i64: 1, 96>}, {pipeline_mode = #tpu.pipeline_mode<synchronous>, transform_indices = @transform_47, window_bounds = array<i64: 1, 96>}, {pipeline_mode = #tpu.pipeline_mode<synchronous>, transform_indices = @transform_48, window_bounds = array<i64: 1, 96>}, {pipeline_mode = #tpu.pipeline_mode<synchronous>, transform_indices = @transform_49, window_bounds = array<i64: 192, 96>}, {pipeline_mode = #tpu.pipeline_mode<synchronous>, transform_indices = @transform_50, window_bounds = array<i64: 1, 96>}, {pipeline_mode = #tpu.pipeline_mode<synchronous>, transform_indices = @transform_51, window_bounds = array<i64: 96, 96>}, {pipeline_mode = #tpu.pipeline_mode<synchronous>, transform_indices = @transform_52, window_bounds = array<i64: 1, 96>}, {pipeline_mode = #tpu.pipeline_mode<synchronous>, transform_indices = @transform_53, window_bounds = array<i64: 1, 96>}, {pipeline_mode = #tpu.pipeline_mode<synchronous>, transform_indices = @transform_54, window_bounds = array<i64: 1, 96>}, {pipeline_mode = #tpu.pipeline_mode<synchronous>, transform_indices = @transform_55, window_bounds = array<i64: 96, 96>}, {pipeline_mode = #tpu.pipeline_mode<synchronous>, transform_indices = @transform_56, window_bounds = array<i64: 1, 96>}, {pipeline_mode = #tpu.pipeline_mode<synchronous>, transform_indices = @transform_57, window_bounds = array<i64: 1, 96>}, {pipeline_mode = #tpu.pipeline_mode<synchronous>, transform_indices = @transform_58, window_bounds = array<i64: 1, 96>}, {pipeline_mode = #tpu.pipeline_mode<synchronous>, transform_indices = @transform_59, window_bounds = array<i64: 96, 24>}, {pipeline_mode = #tpu.pipeline_mode<synchronous>, transform_indices = @transform_60, window_bounds = array<i64: 1, 24>}, {transform_indices = @transform_61, window_bounds = array<i64: 8, 24>}]} {
    %c0 = arith.constant 0 : index
    %c0_0 = arith.constant 0 : index
    %0 = vector.load %arg1[%c0, %c0_0] : memref<8x16xf32, #tpu.memory_space<vmem>>, vector<8x16xf32>
    %c0_1 = arith.constant 0 : index
    %c0_2 = arith.constant 0 : index
    %1 = vector.load %arg2[%c0_1, %c0_2] : memref<16x192xf32, #tpu.memory_space<vmem>>, vector<16x192xf32>
    %cst = arith.constant dense<0.000000e+00> : vector<8x192xf32>
    %2 = tpu.matmul %0, %1, %cst {dimension_numbers = #tpu.dot_dimension_numbers<[1], [0], [0], [1], [0, 0, 1, 1], [], []>} : vector<8x16xf32>, vector<16x192xf32>, vector<8x192xf32> -> vector<8x192xf32>
    %c0_3 = arith.constant 0 : index
    %c0_4 = arith.constant 0 : index
    %3 = vector.load %arg3[%c0_3, %c0_4] : memref<1x192xf32, #tpu.memory_space<vmem>>, vector<1x192xf32>
    %4 = vector.broadcast %3 : vector<1x192xf32> to vector<8x192xf32>
    %5 = arith.addf %2, %4 : vector<8x192xf32>
    %c0_5 = arith.constant 0 : index
    %c0_6 = arith.constant 0 : index
    %6 = vector.load %arg4[%c0_5, %c0_6] : memref<192x192xf32, #tpu.memory_space<vmem>>, vector<192x192xf32>
    %c0_7 = arith.constant 0 : index
    %c0_8 = arith.constant 0 : index
    %7 = vector.load %arg5[%c0_7, %c0_8] : memref<1x192xf32, #tpu.memory_space<vmem>>, vector<1x192xf32>
    %c0_9 = arith.constant 0 : index
    %c0_10 = arith.constant 0 : index
    %8 = vector.load %arg6[%c0_9, %c0_10] : memref<1x192xf32, #tpu.memory_space<vmem>>, vector<1x192xf32>
    %c0_11 = arith.constant 0 : index
    %c0_12 = arith.constant 0 : index
    %9 = vector.load %arg7[%c0_11, %c0_12] : memref<1x192xf32, #tpu.memory_space<vmem>>, vector<1x192xf32>
    %c0_13 = arith.constant 0 : index
    %c0_14 = arith.constant 0 : index
    %10 = vector.load %arg8[%c0_13, %c0_14] : memref<192x192xf32, #tpu.memory_space<vmem>>, vector<192x192xf32>
    %c0_15 = arith.constant 0 : index
    %c0_16 = arith.constant 0 : index
    %11 = vector.load %arg9[%c0_15, %c0_16] : memref<1x192xf32, #tpu.memory_space<vmem>>, vector<1x192xf32>
    %c0_17 = arith.constant 0 : index
    %c0_18 = arith.constant 0 : index
    %12 = vector.load %arg10[%c0_17, %c0_18] : memref<1x192xf32, #tpu.memory_space<vmem>>, vector<1x192xf32>
    %c0_19 = arith.constant 0 : index
    %c0_20 = arith.constant 0 : index
    %13 = vector.load %arg11[%c0_19, %c0_20] : memref<1x192xf32, #tpu.memory_space<vmem>>, vector<1x192xf32>
    %cst_21 = arith.constant dense<0.000000e+00> : vector<8x192xf32>
    %14 = tpu.matmul %5, %6, %cst_21 {dimension_numbers = #tpu.dot_dimension_numbers<[1], [0], [0], [1], [0, 0, 1, 1], [], []>} : vector<8x192xf32>, vector<192x192xf32>, vector<8x192xf32> -> vector<8x192xf32>
    %15 = vector.broadcast %7 : vector<1x192xf32> to vector<8x192xf32>
    %16 = arith.addf %14, %15 : vector<8x192xf32>
    %cst_22 = arith.constant dense<0.000000e+00> : vector<8xf32>
    %17 = vector.multi_reduction <add>, %16, %cst_22 [1] : vector<8x192xf32> to vector<8xf32>
    %18 = vector.shape_cast %17 : vector<8xf32> to vector<8x1xf32>
    %cst_23 = arith.constant 0.00520833349 : f32
    %19 = vector.broadcast %cst_23 : f32 to vector<8x1xf32>
    %20 = arith.mulf %18, %19 : vector<8x1xf32>
    %21 = vector.broadcast %20 : vector<8x1xf32> to vector<8x192xf32>
    %22 = arith.subf %16, %21 : vector<8x192xf32>
    %23 = arith.mulf %22, %22 : vector<8x192xf32>
    %cst_24 = arith.constant dense<0.000000e+00> : vector<8xf32>
    %24 = vector.multi_reduction <add>, %23, %cst_24 [1] : vector<8x192xf32> to vector<8xf32>
    %25 = vector.shape_cast %24 : vector<8xf32> to vector<8x1xf32>
    %cst_25 = arith.constant 0.00520833349 : f32
    %26 = vector.broadcast %cst_25 : f32 to vector<8x1xf32>
    %27 = arith.mulf %25, %26 : vector<8x1xf32>
    %cst_26 = arith.constant 9.99999974E-6 : f32
    %28 = vector.broadcast %cst_26 : f32 to vector<8x1xf32>
    %29 = arith.addf %27, %28 : vector<8x1xf32>
    %30 = math.rsqrt %29 : vector<8x1xf32>
    %31 = vector.broadcast %30 : vector<8x1xf32> to vector<8x192xf32>
    %32 = arith.mulf %22, %31 : vector<8x192xf32>
    %33 = vector.broadcast %8 : vector<1x192xf32> to vector<8x192xf32>
    %34 = arith.mulf %32, %33 : vector<8x192xf32>
    %35 = vector.broadcast %9 : vector<1x192xf32> to vector<8x192xf32>
    %36 = arith.addf %34, %35 : vector<8x192xf32>
    %cst_27 = arith.constant 2.000000e-01 : f32
    %37 = vector.broadcast %cst_27 : f32 to vector<8x192xf32>
    %38 = arith.mulf %37, %36 : vector<8x192xf32>
    %39 = arith.maximumf %36, %38 : vector<8x192xf32>
    %cst_28 = arith.constant dense<0.000000e+00> : vector<8x192xf32>
    %40 = tpu.matmul %39, %10, %cst_28 {dimension_numbers = #tpu.dot_dimension_numbers<[1], [0], [0], [1], [0, 0, 1, 1], [], []>} : vector<8x192xf32>, vector<192x192xf32>, vector<8x192xf32> -> vector<8x192xf32>
    %41 = vector.broadcast %11 : vector<1x192xf32> to vector<8x192xf32>
    %42 = arith.addf %40, %41 : vector<8x192xf32>
    %cst_29 = arith.constant dense<0.000000e+00> : vector<8xf32>
    %43 = vector.multi_reduction <add>, %42, %cst_29 [1] : vector<8x192xf32> to vector<8xf32>
    %44 = vector.shape_cast %43 : vector<8xf32> to vector<8x1xf32>
    %cst_30 = arith.constant 0.00520833349 : f32
    %45 = vector.broadcast %cst_30 : f32 to vector<8x1xf32>
    %46 = arith.mulf %44, %45 : vector<8x1xf32>
    %47 = vector.broadcast %46 : vector<8x1xf32> to vector<8x192xf32>
    %48 = arith.subf %42, %47 : vector<8x192xf32>
    %49 = arith.mulf %48, %48 : vector<8x192xf32>
    %cst_31 = arith.constant dense<0.000000e+00> : vector<8xf32>
    %50 = vector.multi_reduction <add>, %49, %cst_31 [1] : vector<8x192xf32> to vector<8xf32>
    %51 = vector.shape_cast %50 : vector<8xf32> to vector<8x1xf32>
    %cst_32 = arith.constant 0.00520833349 : f32
    %52 = vector.broadcast %cst_32 : f32 to vector<8x1xf32>
    %53 = arith.mulf %51, %52 : vector<8x1xf32>
    %cst_33 = arith.constant 9.99999974E-6 : f32
    %54 = vector.broadcast %cst_33 : f32 to vector<8x1xf32>
    %55 = arith.addf %53, %54 : vector<8x1xf32>
    %56 = math.rsqrt %55 : vector<8x1xf32>
    %57 = vector.broadcast %56 : vector<8x1xf32> to vector<8x192xf32>
    %58 = arith.mulf %48, %57 : vector<8x192xf32>
    %59 = vector.broadcast %12 : vector<1x192xf32> to vector<8x192xf32>
    %60 = arith.mulf %58, %59 : vector<8x192xf32>
    %61 = vector.broadcast %13 : vector<1x192xf32> to vector<8x192xf32>
    %62 = arith.addf %60, %61 : vector<8x192xf32>
    %63 = arith.addf %62, %5 : vector<8x192xf32>
    %cst_34 = arith.constant 2.000000e-01 : f32
    %64 = vector.broadcast %cst_34 : f32 to vector<8x192xf32>
    %65 = arith.mulf %64, %63 : vector<8x192xf32>
    %66 = arith.maximumf %63, %65 : vector<8x192xf32>
    %c0_35 = arith.constant 0 : index
    %c0_36 = arith.constant 0 : index
    %67 = vector.load %arg12[%c0_35, %c0_36] : memref<192x384xf32, #tpu.memory_space<vmem>>, vector<192x384xf32>
    %cst_37 = arith.constant dense<0.000000e+00> : vector<8x384xf32>
    %68 = tpu.matmul %66, %67, %cst_37 {dimension_numbers = #tpu.dot_dimension_numbers<[1], [0], [0], [1], [0, 0, 1, 1], [], []>} : vector<8x192xf32>, vector<192x384xf32>, vector<8x384xf32> -> vector<8x384xf32>
    %c0_38 = arith.constant 0 : index
    %c0_39 = arith.constant 0 : index
    %69 = vector.load %arg13[%c0_38, %c0_39] : memref<384x192xf32, #tpu.memory_space<vmem>>, vector<384x192xf32>
    %c0_40 = arith.constant 0 : index
    %c0_41 = arith.constant 0 : index
    %70 = vector.load %arg14[%c0_40, %c0_41] : memref<1x192xf32, #tpu.memory_space<vmem>>, vector<1x192xf32>
    %c0_42 = arith.constant 0 : index
    %c0_43 = arith.constant 0 : index
    %71 = vector.load %arg15[%c0_42, %c0_43] : memref<1x192xf32, #tpu.memory_space<vmem>>, vector<1x192xf32>
    %c0_44 = arith.constant 0 : index
    %c0_45 = arith.constant 0 : index
    %72 = vector.load %arg16[%c0_44, %c0_45] : memref<1x192xf32, #tpu.memory_space<vmem>>, vector<1x192xf32>
    %c0_46 = arith.constant 0 : index
    %c0_47 = arith.constant 0 : index
    %73 = vector.load %arg17[%c0_46, %c0_47] : memref<192x192xf32, #tpu.memory_space<vmem>>, vector<192x192xf32>
    %c0_48 = arith.constant 0 : index
    %c0_49 = arith.constant 0 : index
    %74 = vector.load %arg18[%c0_48, %c0_49] : memref<1x192xf32, #tpu.memory_space<vmem>>, vector<1x192xf32>
    %c0_50 = arith.constant 0 : index
    %c0_51 = arith.constant 0 : index
    %75 = vector.load %arg19[%c0_50, %c0_51] : memref<1x192xf32, #tpu.memory_space<vmem>>, vector<1x192xf32>
    %c0_52 = arith.constant 0 : index
    %c0_53 = arith.constant 0 : index
    %76 = vector.load %arg20[%c0_52, %c0_53] : memref<1x192xf32, #tpu.memory_space<vmem>>, vector<1x192xf32>
    %c0_54 = arith.constant 0 : index
    %c0_55 = arith.constant 0 : index
    %77 = vector.load %arg21[%c0_54, %c0_55] : memref<384x192xf32, #tpu.memory_space<vmem>>, vector<384x192xf32>
    %cst_56 = arith.constant dense<0.000000e+00> : vector<8x192xf32>
    %78 = tpu.matmul %68, %77, %cst_56 {dimension_numbers = #tpu.dot_dimension_numbers<[1], [0], [0], [1], [0, 0, 1, 1], [], []>} : vector<8x384xf32>, vector<384x192xf32>, vector<8x192xf32> -> vector<8x192xf32>
    %c0_57 = arith.constant 0 : index
    %c0_58 = arith.constant 0 : index
    %79 = vector.load %arg22[%c0_57, %c0_58] : memref<1x192xf32, #tpu.memory_space<vmem>>, vector<1x192xf32>
    %80 = vector.broadcast %79 : vector<1x192xf32> to vector<8x192xf32>
    %81 = arith.addf %78, %80 : vector<8x192xf32>
    %cst_59 = arith.constant dense<0.000000e+00> : vector<8x192xf32>
    %82 = tpu.matmul %68, %69, %cst_59 {dimension_numbers = #tpu.dot_dimension_numbers<[1], [0], [0], [1], [0, 0, 1, 1], [], []>} : vector<8x384xf32>, vector<384x192xf32>, vector<8x192xf32> -> vector<8x192xf32>
    %83 = vector.broadcast %70 : vector<1x192xf32> to vector<8x192xf32>
    %84 = arith.addf %82, %83 : vector<8x192xf32>
    %cst_60 = arith.constant dense<0.000000e+00> : vector<8xf32>
    %85 = vector.multi_reduction <add>, %84, %cst_60 [1] : vector<8x192xf32> to vector<8xf32>
    %86 = vector.shape_cast %85 : vector<8xf32> to vector<8x1xf32>
    %cst_61 = arith.constant 0.00520833349 : f32
    %87 = vector.broadcast %cst_61 : f32 to vector<8x1xf32>
    %88 = arith.mulf %86, %87 : vector<8x1xf32>
    %89 = vector.broadcast %88 : vector<8x1xf32> to vector<8x192xf32>
    %90 = arith.subf %84, %89 : vector<8x192xf32>
    %91 = arith.mulf %90, %90 : vector<8x192xf32>
    %cst_62 = arith.constant dense<0.000000e+00> : vector<8xf32>
    %92 = vector.multi_reduction <add>, %91, %cst_62 [1] : vector<8x192xf32> to vector<8xf32>
    %93 = vector.shape_cast %92 : vector<8xf32> to vector<8x1xf32>
    %cst_63 = arith.constant 0.00520833349 : f32
    %94 = vector.broadcast %cst_63 : f32 to vector<8x1xf32>
    %95 = arith.mulf %93, %94 : vector<8x1xf32>
    %cst_64 = arith.constant 9.99999974E-6 : f32
    %96 = vector.broadcast %cst_64 : f32 to vector<8x1xf32>
    %97 = arith.addf %95, %96 : vector<8x1xf32>
    %98 = math.rsqrt %97 : vector<8x1xf32>
    %99 = vector.broadcast %98 : vector<8x1xf32> to vector<8x192xf32>
    %100 = arith.mulf %90, %99 : vector<8x192xf32>
    %101 = vector.broadcast %71 : vector<1x192xf32> to vector<8x192xf32>
    %102 = arith.mulf %100, %101 : vector<8x192xf32>
    %103 = vector.broadcast %72 : vector<1x192xf32> to vector<8x192xf32>
    %104 = arith.addf %102, %103 : vector<8x192xf32>
    %cst_65 = arith.constant 2.000000e-01 : f32
    %105 = vector.broadcast %cst_65 : f32 to vector<8x192xf32>
    %106 = arith.mulf %105, %104 : vector<8x192xf32>
    %107 = arith.maximumf %104, %106 : vector<8x192xf32>
    %cst_66 = arith.constant dense<0.000000e+00> : vector<8x192xf32>
    %108 = tpu.matmul %107, %73, %cst_66 {dimension_numbers = #tpu.dot_dimension_numbers<[1], [0], [0], [1], [0, 0, 1, 1], [], []>} : vector<8x192xf32>, vector<192x192xf32>, vector<8x192xf32> -> vector<8x192xf32>
    %109 = vector.broadcast %74 : vector<1x192xf32> to vector<8x192xf32>
    %110 = arith.addf %108, %109 : vector<8x192xf32>
    %cst_67 = arith.constant dense<0.000000e+00> : vector<8xf32>
    %111 = vector.multi_reduction <add>, %110, %cst_67 [1] : vector<8x192xf32> to vector<8xf32>
    %112 = vector.shape_cast %111 : vector<8xf32> to vector<8x1xf32>
    %cst_68 = arith.constant 0.00520833349 : f32
    %113 = vector.broadcast %cst_68 : f32 to vector<8x1xf32>
    %114 = arith.mulf %112, %113 : vector<8x1xf32>
    %115 = vector.broadcast %114 : vector<8x1xf32> to vector<8x192xf32>
    %116 = arith.subf %110, %115 : vector<8x192xf32>
    %117 = arith.mulf %116, %116 : vector<8x192xf32>
    %cst_69 = arith.constant dense<0.000000e+00> : vector<8xf32>
    %118 = vector.multi_reduction <add>, %117, %cst_69 [1] : vector<8x192xf32> to vector<8xf32>
    %119 = vector.shape_cast %118 : vector<8xf32> to vector<8x1xf32>
    %cst_70 = arith.constant 0.00520833349 : f32
    %120 = vector.broadcast %cst_70 : f32 to vector<8x1xf32>
    %121 = arith.mulf %119, %120 : vector<8x1xf32>
    %cst_71 = arith.constant 9.99999974E-6 : f32
    %122 = vector.broadcast %cst_71 : f32 to vector<8x1xf32>
    %123 = arith.addf %121, %122 : vector<8x1xf32>
    %124 = math.rsqrt %123 : vector<8x1xf32>
    %125 = vector.broadcast %124 : vector<8x1xf32> to vector<8x192xf32>
    %126 = arith.mulf %116, %125 : vector<8x192xf32>
    %127 = vector.broadcast %75 : vector<1x192xf32> to vector<8x192xf32>
    %128 = arith.mulf %126, %127 : vector<8x192xf32>
    %129 = vector.broadcast %76 : vector<1x192xf32> to vector<8x192xf32>
    %130 = arith.addf %128, %129 : vector<8x192xf32>
    %131 = arith.addf %130, %81 : vector<8x192xf32>
    %cst_72 = arith.constant 2.000000e-01 : f32
    %132 = vector.broadcast %cst_72 : f32 to vector<8x192xf32>
    %133 = arith.mulf %132, %131 : vector<8x192xf32>
    %134 = arith.maximumf %131, %133 : vector<8x192xf32>
    %c0_73 = arith.constant 0 : index
    %c0_74 = arith.constant 0 : index
    %135 = vector.load %arg23[%c0_73, %c0_74] : memref<192x384xf32, #tpu.memory_space<vmem>>, vector<192x384xf32>
    %cst_75 = arith.constant dense<0.000000e+00> : vector<8x384xf32>
    %136 = tpu.matmul %134, %135, %cst_75 {dimension_numbers = #tpu.dot_dimension_numbers<[1], [0], [0], [1], [0, 0, 1, 1], [], []>} : vector<8x192xf32>, vector<192x384xf32>, vector<8x384xf32> -> vector<8x384xf32>
    %c0_76 = arith.constant 0 : index
    %c0_77 = arith.constant 0 : index
    %137 = vector.load %arg24[%c0_76, %c0_77] : memref<384x384xf32, #tpu.memory_space<vmem>>, vector<384x384xf32>
    %c0_78 = arith.constant 0 : index
    %c0_79 = arith.constant 0 : index
    %138 = vector.load %arg25[%c0_78, %c0_79] : memref<1x384xf32, #tpu.memory_space<vmem>>, vector<1x384xf32>
    %c0_80 = arith.constant 0 : index
    %c0_81 = arith.constant 0 : index
    %139 = vector.load %arg26[%c0_80, %c0_81] : memref<1x384xf32, #tpu.memory_space<vmem>>, vector<1x384xf32>
    %c0_82 = arith.constant 0 : index
    %c0_83 = arith.constant 0 : index
    %140 = vector.load %arg27[%c0_82, %c0_83] : memref<1x384xf32, #tpu.memory_space<vmem>>, vector<1x384xf32>
    %c0_84 = arith.constant 0 : index
    %c0_85 = arith.constant 0 : index
    %141 = vector.load %arg28[%c0_84, %c0_85] : memref<384x384xf32, #tpu.memory_space<vmem>>, vector<384x384xf32>
    %c0_86 = arith.constant 0 : index
    %c0_87 = arith.constant 0 : index
    %142 = vector.load %arg29[%c0_86, %c0_87] : memref<1x384xf32, #tpu.memory_space<vmem>>, vector<1x384xf32>
    %c0_88 = arith.constant 0 : index
    %c0_89 = arith.constant 0 : index
    %143 = vector.load %arg30[%c0_88, %c0_89] : memref<1x384xf32, #tpu.memory_space<vmem>>, vector<1x384xf32>
    %c0_90 = arith.constant 0 : index
    %c0_91 = arith.constant 0 : index
    %144 = vector.load %arg31[%c0_90, %c0_91] : memref<1x384xf32, #tpu.memory_space<vmem>>, vector<1x384xf32>
    %cst_92 = arith.constant dense<0.000000e+00> : vector<8x384xf32>
    %145 = tpu.matmul %136, %137, %cst_92 {dimension_numbers = #tpu.dot_dimension_numbers<[1], [0], [0], [1], [0, 0, 1, 1], [], []>} : vector<8x384xf32>, vector<384x384xf32>, vector<8x384xf32> -> vector<8x384xf32>
    %146 = vector.broadcast %138 : vector<1x384xf32> to vector<8x384xf32>
    %147 = arith.addf %145, %146 : vector<8x384xf32>
    %cst_93 = arith.constant dense<0.000000e+00> : vector<8xf32>
    %148 = vector.multi_reduction <add>, %147, %cst_93 [1] : vector<8x384xf32> to vector<8xf32>
    %149 = vector.shape_cast %148 : vector<8xf32> to vector<8x1xf32>
    %cst_94 = arith.constant 0.00260416674 : f32
    %150 = vector.broadcast %cst_94 : f32 to vector<8x1xf32>
    %151 = arith.mulf %149, %150 : vector<8x1xf32>
    %152 = vector.broadcast %151 : vector<8x1xf32> to vector<8x384xf32>
    %153 = arith.subf %147, %152 : vector<8x384xf32>
    %154 = arith.mulf %153, %153 : vector<8x384xf32>
    %cst_95 = arith.constant dense<0.000000e+00> : vector<8xf32>
    %155 = vector.multi_reduction <add>, %154, %cst_95 [1] : vector<8x384xf32> to vector<8xf32>
    %156 = vector.shape_cast %155 : vector<8xf32> to vector<8x1xf32>
    %cst_96 = arith.constant 0.00260416674 : f32
    %157 = vector.broadcast %cst_96 : f32 to vector<8x1xf32>
    %158 = arith.mulf %156, %157 : vector<8x1xf32>
    %cst_97 = arith.constant 9.99999974E-6 : f32
    %159 = vector.broadcast %cst_97 : f32 to vector<8x1xf32>
    %160 = arith.addf %158, %159 : vector<8x1xf32>
    %161 = math.rsqrt %160 : vector<8x1xf32>
    %162 = vector.broadcast %161 : vector<8x1xf32> to vector<8x384xf32>
    %163 = arith.mulf %153, %162 : vector<8x384xf32>
    %164 = vector.broadcast %139 : vector<1x384xf32> to vector<8x384xf32>
    %165 = arith.mulf %163, %164 : vector<8x384xf32>
    %166 = vector.broadcast %140 : vector<1x384xf32> to vector<8x384xf32>
    %167 = arith.addf %165, %166 : vector<8x384xf32>
    %cst_98 = arith.constant 2.000000e-01 : f32
    %168 = vector.broadcast %cst_98 : f32 to vector<8x384xf32>
    %169 = arith.mulf %168, %167 : vector<8x384xf32>
    %170 = arith.maximumf %167, %169 : vector<8x384xf32>
    %cst_99 = arith.constant dense<0.000000e+00> : vector<8x384xf32>
    %171 = tpu.matmul %170, %141, %cst_99 {dimension_numbers = #tpu.dot_dimension_numbers<[1], [0], [0], [1], [0, 0, 1, 1], [], []>} : vector<8x384xf32>, vector<384x384xf32>, vector<8x384xf32> -> vector<8x384xf32>
    %172 = vector.broadcast %142 : vector<1x384xf32> to vector<8x384xf32>
    %173 = arith.addf %171, %172 : vector<8x384xf32>
    %cst_100 = arith.constant dense<0.000000e+00> : vector<8xf32>
    %174 = vector.multi_reduction <add>, %173, %cst_100 [1] : vector<8x384xf32> to vector<8xf32>
    %175 = vector.shape_cast %174 : vector<8xf32> to vector<8x1xf32>
    %cst_101 = arith.constant 0.00260416674 : f32
    %176 = vector.broadcast %cst_101 : f32 to vector<8x1xf32>
    %177 = arith.mulf %175, %176 : vector<8x1xf32>
    %178 = vector.broadcast %177 : vector<8x1xf32> to vector<8x384xf32>
    %179 = arith.subf %173, %178 : vector<8x384xf32>
    %180 = arith.mulf %179, %179 : vector<8x384xf32>
    %cst_102 = arith.constant dense<0.000000e+00> : vector<8xf32>
    %181 = vector.multi_reduction <add>, %180, %cst_102 [1] : vector<8x384xf32> to vector<8xf32>
    %182 = vector.shape_cast %181 : vector<8xf32> to vector<8x1xf32>
    %cst_103 = arith.constant 0.00260416674 : f32
    %183 = vector.broadcast %cst_103 : f32 to vector<8x1xf32>
    %184 = arith.mulf %182, %183 : vector<8x1xf32>
    %cst_104 = arith.constant 9.99999974E-6 : f32
    %185 = vector.broadcast %cst_104 : f32 to vector<8x1xf32>
    %186 = arith.addf %184, %185 : vector<8x1xf32>
    %187 = math.rsqrt %186 : vector<8x1xf32>
    %188 = vector.broadcast %187 : vector<8x1xf32> to vector<8x384xf32>
    %189 = arith.mulf %179, %188 : vector<8x384xf32>
    %190 = vector.broadcast %143 : vector<1x384xf32> to vector<8x384xf32>
    %191 = arith.mulf %189, %190 : vector<8x384xf32>
    %192 = vector.broadcast %144 : vector<1x384xf32> to vector<8x384xf32>
    %193 = arith.addf %191, %192 : vector<8x384xf32>
    %194 = arith.addf %193, %136 : vector<8x384xf32>
    %cst_105 = arith.constant 2.000000e-01 : f32
    %195 = vector.broadcast %cst_105 : f32 to vector<8x384xf32>
    %196 = arith.mulf %195, %194 : vector<8x384xf32>
    %197 = arith.maximumf %194, %196 : vector<8x384xf32>
    %c0_106 = arith.constant 0 : index
    %c0_107 = arith.constant 0 : index
    %198 = vector.load %arg32[%c0_106, %c0_107] : memref<384x192xf32, #tpu.memory_space<vmem>>, vector<384x192xf32>
    %c0_108 = arith.constant 0 : index
    %c0_109 = arith.constant 0 : index
    %199 = vector.load %arg33[%c0_108, %c0_109] : memref<1x192xf32, #tpu.memory_space<vmem>>, vector<1x192xf32>
    %c0_110 = arith.constant 0 : index
    %c0_111 = arith.constant 0 : index
    %200 = vector.load %arg34[%c0_110, %c0_111] : memref<1x192xf32, #tpu.memory_space<vmem>>, vector<1x192xf32>
    %c0_112 = arith.constant 0 : index
    %c0_113 = arith.constant 0 : index
    %201 = vector.load %arg35[%c0_112, %c0_113] : memref<1x192xf32, #tpu.memory_space<vmem>>, vector<1x192xf32>
    %c0_114 = arith.constant 0 : index
    %c0_115 = arith.constant 0 : index
    %202 = vector.load %arg36[%c0_114, %c0_115] : memref<192x192xf32, #tpu.memory_space<vmem>>, vector<192x192xf32>
    %c0_116 = arith.constant 0 : index
    %c0_117 = arith.constant 0 : index
    %203 = vector.load %arg37[%c0_116, %c0_117] : memref<1x192xf32, #tpu.memory_space<vmem>>, vector<1x192xf32>
    %c0_118 = arith.constant 0 : index
    %c0_119 = arith.constant 0 : index
    %204 = vector.load %arg38[%c0_118, %c0_119] : memref<1x192xf32, #tpu.memory_space<vmem>>, vector<1x192xf32>
    %c0_120 = arith.constant 0 : index
    %c0_121 = arith.constant 0 : index
    %205 = vector.load %arg39[%c0_120, %c0_121] : memref<1x192xf32, #tpu.memory_space<vmem>>, vector<1x192xf32>
    %c0_122 = arith.constant 0 : index
    %c0_123 = arith.constant 0 : index
    %206 = vector.load %arg40[%c0_122, %c0_123] : memref<384x192xf32, #tpu.memory_space<vmem>>, vector<384x192xf32>
    %cst_124 = arith.constant dense<0.000000e+00> : vector<8x192xf32>
    %207 = tpu.matmul %197, %206, %cst_124 {dimension_numbers = #tpu.dot_dimension_numbers<[1], [0], [0], [1], [0, 0, 1, 1], [], []>} : vector<8x384xf32>, vector<384x192xf32>, vector<8x192xf32> -> vector<8x192xf32>
    %c0_125 = arith.constant 0 : index
    %c0_126 = arith.constant 0 : index
    %208 = vector.load %arg41[%c0_125, %c0_126] : memref<1x192xf32, #tpu.memory_space<vmem>>, vector<1x192xf32>
    %209 = vector.broadcast %208 : vector<1x192xf32> to vector<8x192xf32>
    %210 = arith.addf %207, %209 : vector<8x192xf32>
    %cst_127 = arith.constant dense<0.000000e+00> : vector<8x192xf32>
    %211 = tpu.matmul %197, %198, %cst_127 {dimension_numbers = #tpu.dot_dimension_numbers<[1], [0], [0], [1], [0, 0, 1, 1], [], []>} : vector<8x384xf32>, vector<384x192xf32>, vector<8x192xf32> -> vector<8x192xf32>
    %212 = vector.broadcast %199 : vector<1x192xf32> to vector<8x192xf32>
    %213 = arith.addf %211, %212 : vector<8x192xf32>
    %cst_128 = arith.constant dense<0.000000e+00> : vector<8xf32>
    %214 = vector.multi_reduction <add>, %213, %cst_128 [1] : vector<8x192xf32> to vector<8xf32>
    %215 = vector.shape_cast %214 : vector<8xf32> to vector<8x1xf32>
    %cst_129 = arith.constant 0.00520833349 : f32
    %216 = vector.broadcast %cst_129 : f32 to vector<8x1xf32>
    %217 = arith.mulf %215, %216 : vector<8x1xf32>
    %218 = vector.broadcast %217 : vector<8x1xf32> to vector<8x192xf32>
    %219 = arith.subf %213, %218 : vector<8x192xf32>
    %220 = arith.mulf %219, %219 : vector<8x192xf32>
    %cst_130 = arith.constant dense<0.000000e+00> : vector<8xf32>
    %221 = vector.multi_reduction <add>, %220, %cst_130 [1] : vector<8x192xf32> to vector<8xf32>
    %222 = vector.shape_cast %221 : vector<8xf32> to vector<8x1xf32>
    %cst_131 = arith.constant 0.00520833349 : f32
    %223 = vector.broadcast %cst_131 : f32 to vector<8x1xf32>
    %224 = arith.mulf %222, %223 : vector<8x1xf32>
    %cst_132 = arith.constant 9.99999974E-6 : f32
    %225 = vector.broadcast %cst_132 : f32 to vector<8x1xf32>
    %226 = arith.addf %224, %225 : vector<8x1xf32>
    %227 = math.rsqrt %226 : vector<8x1xf32>
    %228 = vector.broadcast %227 : vector<8x1xf32> to vector<8x192xf32>
    %229 = arith.mulf %219, %228 : vector<8x192xf32>
    %230 = vector.broadcast %200 : vector<1x192xf32> to vector<8x192xf32>
    %231 = arith.mulf %229, %230 : vector<8x192xf32>
    %232 = vector.broadcast %201 : vector<1x192xf32> to vector<8x192xf32>
    %233 = arith.addf %231, %232 : vector<8x192xf32>
    %cst_133 = arith.constant 2.000000e-01 : f32
    %234 = vector.broadcast %cst_133 : f32 to vector<8x192xf32>
    %235 = arith.mulf %234, %233 : vector<8x192xf32>
    %236 = arith.maximumf %233, %235 : vector<8x192xf32>
    %cst_134 = arith.constant dense<0.000000e+00> : vector<8x192xf32>
    %237 = tpu.matmul %236, %202, %cst_134 {dimension_numbers = #tpu.dot_dimension_numbers<[1], [0], [0], [1], [0, 0, 1, 1], [], []>} : vector<8x192xf32>, vector<192x192xf32>, vector<8x192xf32> -> vector<8x192xf32>
    %238 = vector.broadcast %203 : vector<1x192xf32> to vector<8x192xf32>
    %239 = arith.addf %237, %238 : vector<8x192xf32>
    %cst_135 = arith.constant dense<0.000000e+00> : vector<8xf32>
    %240 = vector.multi_reduction <add>, %239, %cst_135 [1] : vector<8x192xf32> to vector<8xf32>
    %241 = vector.shape_cast %240 : vector<8xf32> to vector<8x1xf32>
    %cst_136 = arith.constant 0.00520833349 : f32
    %242 = vector.broadcast %cst_136 : f32 to vector<8x1xf32>
    %243 = arith.mulf %241, %242 : vector<8x1xf32>
    %244 = vector.broadcast %243 : vector<8x1xf32> to vector<8x192xf32>
    %245 = arith.subf %239, %244 : vector<8x192xf32>
    %246 = arith.mulf %245, %245 : vector<8x192xf32>
    %cst_137 = arith.constant dense<0.000000e+00> : vector<8xf32>
    %247 = vector.multi_reduction <add>, %246, %cst_137 [1] : vector<8x192xf32> to vector<8xf32>
    %248 = vector.shape_cast %247 : vector<8xf32> to vector<8x1xf32>
    %cst_138 = arith.constant 0.00520833349 : f32
    %249 = vector.broadcast %cst_138 : f32 to vector<8x1xf32>
    %250 = arith.mulf %248, %249 : vector<8x1xf32>
    %cst_139 = arith.constant 9.99999974E-6 : f32
    %251 = vector.broadcast %cst_139 : f32 to vector<8x1xf32>
    %252 = arith.addf %250, %251 : vector<8x1xf32>
    %253 = math.rsqrt %252 : vector<8x1xf32>
    %254 = vector.broadcast %253 : vector<8x1xf32> to vector<8x192xf32>
    %255 = arith.mulf %245, %254 : vector<8x192xf32>
    %256 = vector.broadcast %204 : vector<1x192xf32> to vector<8x192xf32>
    %257 = arith.mulf %255, %256 : vector<8x192xf32>
    %258 = vector.broadcast %205 : vector<1x192xf32> to vector<8x192xf32>
    %259 = arith.addf %257, %258 : vector<8x192xf32>
    %260 = arith.addf %259, %210 : vector<8x192xf32>
    %cst_140 = arith.constant 2.000000e-01 : f32
    %261 = vector.broadcast %cst_140 : f32 to vector<8x192xf32>
    %262 = arith.mulf %261, %260 : vector<8x192xf32>
    %263 = arith.maximumf %260, %262 : vector<8x192xf32>
    %c0_141 = arith.constant 0 : index
    %c0_142 = arith.constant 0 : index
    %264 = vector.load %arg42[%c0_141, %c0_142] : memref<192x96xf32, #tpu.memory_space<vmem>>, vector<192x96xf32>
    %c0_143 = arith.constant 0 : index
    %c0_144 = arith.constant 0 : index
    %265 = vector.load %arg43[%c0_143, %c0_144] : memref<1x96xf32, #tpu.memory_space<vmem>>, vector<1x96xf32>
    %c0_145 = arith.constant 0 : index
    %c0_146 = arith.constant 0 : index
    %266 = vector.load %arg44[%c0_145, %c0_146] : memref<1x96xf32, #tpu.memory_space<vmem>>, vector<1x96xf32>
    %c0_147 = arith.constant 0 : index
    %c0_148 = arith.constant 0 : index
    %267 = vector.load %arg45[%c0_147, %c0_148] : memref<1x96xf32, #tpu.memory_space<vmem>>, vector<1x96xf32>
    %c0_149 = arith.constant 0 : index
    %c0_150 = arith.constant 0 : index
    %268 = vector.load %arg46[%c0_149, %c0_150] : memref<96x96xf32, #tpu.memory_space<vmem>>, vector<96x96xf32>
    %c0_151 = arith.constant 0 : index
    %c0_152 = arith.constant 0 : index
    %269 = vector.load %arg47[%c0_151, %c0_152] : memref<1x96xf32, #tpu.memory_space<vmem>>, vector<1x96xf32>
    %c0_153 = arith.constant 0 : index
    %c0_154 = arith.constant 0 : index
    %270 = vector.load %arg48[%c0_153, %c0_154] : memref<1x96xf32, #tpu.memory_space<vmem>>, vector<1x96xf32>
    %c0_155 = arith.constant 0 : index
    %c0_156 = arith.constant 0 : index
    %271 = vector.load %arg49[%c0_155, %c0_156] : memref<1x96xf32, #tpu.memory_space<vmem>>, vector<1x96xf32>
    %c0_157 = arith.constant 0 : index
    %c0_158 = arith.constant 0 : index
    %272 = vector.load %arg50[%c0_157, %c0_158] : memref<192x96xf32, #tpu.memory_space<vmem>>, vector<192x96xf32>
    %cst_159 = arith.constant dense<0.000000e+00> : vector<8x96xf32>
    %273 = tpu.matmul %263, %272, %cst_159 {dimension_numbers = #tpu.dot_dimension_numbers<[1], [0], [0], [1], [0, 0, 1, 1], [], []>} : vector<8x192xf32>, vector<192x96xf32>, vector<8x96xf32> -> vector<8x96xf32>
    %c0_160 = arith.constant 0 : index
    %c0_161 = arith.constant 0 : index
    %274 = vector.load %arg51[%c0_160, %c0_161] : memref<1x96xf32, #tpu.memory_space<vmem>>, vector<1x96xf32>
    %275 = vector.broadcast %274 : vector<1x96xf32> to vector<8x96xf32>
    %276 = arith.addf %273, %275 : vector<8x96xf32>
    %cst_162 = arith.constant dense<0.000000e+00> : vector<8x96xf32>
    %277 = tpu.matmul %263, %264, %cst_162 {dimension_numbers = #tpu.dot_dimension_numbers<[1], [0], [0], [1], [0, 0, 1, 1], [], []>} : vector<8x192xf32>, vector<192x96xf32>, vector<8x96xf32> -> vector<8x96xf32>
    %278 = vector.broadcast %265 : vector<1x96xf32> to vector<8x96xf32>
    %279 = arith.addf %277, %278 : vector<8x96xf32>
    %cst_163 = arith.constant dense<0.000000e+00> : vector<8xf32>
    %280 = vector.multi_reduction <add>, %279, %cst_163 [1] : vector<8x96xf32> to vector<8xf32>
    %281 = vector.shape_cast %280 : vector<8xf32> to vector<8x1xf32>
    %cst_164 = arith.constant 0.010416667 : f32
    %282 = vector.broadcast %cst_164 : f32 to vector<8x1xf32>
    %283 = arith.mulf %281, %282 : vector<8x1xf32>
    %284 = vector.broadcast %283 : vector<8x1xf32> to vector<8x96xf32>
    %285 = arith.subf %279, %284 : vector<8x96xf32>
    %286 = arith.mulf %285, %285 : vector<8x96xf32>
    %cst_165 = arith.constant dense<0.000000e+00> : vector<8xf32>
    %287 = vector.multi_reduction <add>, %286, %cst_165 [1] : vector<8x96xf32> to vector<8xf32>
    %288 = vector.shape_cast %287 : vector<8xf32> to vector<8x1xf32>
    %cst_166 = arith.constant 0.010416667 : f32
    %289 = vector.broadcast %cst_166 : f32 to vector<8x1xf32>
    %290 = arith.mulf %288, %289 : vector<8x1xf32>
    %cst_167 = arith.constant 9.99999974E-6 : f32
    %291 = vector.broadcast %cst_167 : f32 to vector<8x1xf32>
    %292 = arith.addf %290, %291 : vector<8x1xf32>
    %293 = math.rsqrt %292 : vector<8x1xf32>
    %294 = vector.broadcast %293 : vector<8x1xf32> to vector<8x96xf32>
    %295 = arith.mulf %285, %294 : vector<8x96xf32>
    %296 = vector.broadcast %266 : vector<1x96xf32> to vector<8x96xf32>
    %297 = arith.mulf %295, %296 : vector<8x96xf32>
    %298 = vector.broadcast %267 : vector<1x96xf32> to vector<8x96xf32>
    %299 = arith.addf %297, %298 : vector<8x96xf32>
    %cst_168 = arith.constant 2.000000e-01 : f32
    %300 = vector.broadcast %cst_168 : f32 to vector<8x96xf32>
    %301 = arith.mulf %300, %299 : vector<8x96xf32>
    %302 = arith.maximumf %299, %301 : vector<8x96xf32>
    %cst_169 = arith.constant dense<0.000000e+00> : vector<8x96xf32>
    %303 = tpu.matmul %302, %268, %cst_169 {dimension_numbers = #tpu.dot_dimension_numbers<[1], [0], [0], [1], [0, 0, 1, 1], [], []>} : vector<8x96xf32>, vector<96x96xf32>, vector<8x96xf32> -> vector<8x96xf32>
    %304 = vector.broadcast %269 : vector<1x96xf32> to vector<8x96xf32>
    %305 = arith.addf %303, %304 : vector<8x96xf32>
    %cst_170 = arith.constant dense<0.000000e+00> : vector<8xf32>
    %306 = vector.multi_reduction <add>, %305, %cst_170 [1] : vector<8x96xf32> to vector<8xf32>
    %307 = vector.shape_cast %306 : vector<8xf32> to vector<8x1xf32>
    %cst_171 = arith.constant 0.010416667 : f32
    %308 = vector.broadcast %cst_171 : f32 to vector<8x1xf32>
    %309 = arith.mulf %307, %308 : vector<8x1xf32>
    %310 = vector.broadcast %309 : vector<8x1xf32> to vector<8x96xf32>
    %311 = arith.subf %305, %310 : vector<8x96xf32>
    %312 = arith.mulf %311, %311 : vector<8x96xf32>
    %cst_172 = arith.constant dense<0.000000e+00> : vector<8xf32>
    %313 = vector.multi_reduction <add>, %312, %cst_172 [1] : vector<8x96xf32> to vector<8xf32>
    %314 = vector.shape_cast %313 : vector<8xf32> to vector<8x1xf32>
    %cst_173 = arith.constant 0.010416667 : f32
    %315 = vector.broadcast %cst_173 : f32 to vector<8x1xf32>
    %316 = arith.mulf %314, %315 : vector<8x1xf32>
    %cst_174 = arith.constant 9.99999974E-6 : f32
    %317 = vector.broadcast %cst_174 : f32 to vector<8x1xf32>
    %318 = arith.addf %316, %317 : vector<8x1xf32>
    %319 = math.rsqrt %318 : vector<8x1xf32>
    %320 = vector.broadcast %319 : vector<8x1xf32> to vector<8x96xf32>
    %321 = arith.mulf %311, %320 : vector<8x96xf32>
    %322 = vector.broadcast %270 : vector<1x96xf32> to vector<8x96xf32>
    %323 = arith.mulf %321, %322 : vector<8x96xf32>
    %324 = vector.broadcast %271 : vector<1x96xf32> to vector<8x96xf32>
    %325 = arith.addf %323, %324 : vector<8x96xf32>
    %326 = arith.addf %325, %276 : vector<8x96xf32>
    %cst_175 = arith.constant 2.000000e-01 : f32
    %327 = vector.broadcast %cst_175 : f32 to vector<8x96xf32>
    %328 = arith.mulf %327, %326 : vector<8x96xf32>
    %329 = arith.maximumf %326, %328 : vector<8x96xf32>
    %c0_176 = arith.constant 0 : index
    %c0_177 = arith.constant 0 : index
    %330 = vector.load %arg52[%c0_176, %c0_177] : memref<96x96xf32, #tpu.memory_space<vmem>>, vector<96x96xf32>
    %c0_178 = arith.constant 0 : index
    %c0_179 = arith.constant 0 : index
    %331 = vector.load %arg53[%c0_178, %c0_179] : memref<1x96xf32, #tpu.memory_space<vmem>>, vector<1x96xf32>
    %c0_180 = arith.constant 0 : index
    %c0_181 = arith.constant 0 : index
    %332 = vector.load %arg54[%c0_180, %c0_181] : memref<1x96xf32, #tpu.memory_space<vmem>>, vector<1x96xf32>
    %c0_182 = arith.constant 0 : index
    %c0_183 = arith.constant 0 : index
    %333 = vector.load %arg55[%c0_182, %c0_183] : memref<1x96xf32, #tpu.memory_space<vmem>>, vector<1x96xf32>
    %c0_184 = arith.constant 0 : index
    %c0_185 = arith.constant 0 : index
    %334 = vector.load %arg56[%c0_184, %c0_185] : memref<96x96xf32, #tpu.memory_space<vmem>>, vector<96x96xf32>
    %c0_186 = arith.constant 0 : index
    %c0_187 = arith.constant 0 : index
    %335 = vector.load %arg57[%c0_186, %c0_187] : memref<1x96xf32, #tpu.memory_space<vmem>>, vector<1x96xf32>
    %c0_188 = arith.constant 0 : index
    %c0_189 = arith.constant 0 : index
    %336 = vector.load %arg58[%c0_188, %c0_189] : memref<1x96xf32, #tpu.memory_space<vmem>>, vector<1x96xf32>
    %c0_190 = arith.constant 0 : index
    %c0_191 = arith.constant 0 : index
    %337 = vector.load %arg59[%c0_190, %c0_191] : memref<1x96xf32, #tpu.memory_space<vmem>>, vector<1x96xf32>
    %cst_192 = arith.constant dense<0.000000e+00> : vector<8x96xf32>
    %338 = tpu.matmul %329, %330, %cst_192 {dimension_numbers = #tpu.dot_dimension_numbers<[1], [0], [0], [1], [0, 0, 1, 1], [], []>} : vector<8x96xf32>, vector<96x96xf32>, vector<8x96xf32> -> vector<8x96xf32>
    %339 = vector.broadcast %331 : vector<1x96xf32> to vector<8x96xf32>
    %340 = arith.addf %338, %339 : vector<8x96xf32>
    %cst_193 = arith.constant dense<0.000000e+00> : vector<8xf32>
    %341 = vector.multi_reduction <add>, %340, %cst_193 [1] : vector<8x96xf32> to vector<8xf32>
    %342 = vector.shape_cast %341 : vector<8xf32> to vector<8x1xf32>
    %cst_194 = arith.constant 0.010416667 : f32
    %343 = vector.broadcast %cst_194 : f32 to vector<8x1xf32>
    %344 = arith.mulf %342, %343 : vector<8x1xf32>
    %345 = vector.broadcast %344 : vector<8x1xf32> to vector<8x96xf32>
    %346 = arith.subf %340, %345 : vector<8x96xf32>
    %347 = arith.mulf %346, %346 : vector<8x96xf32>
    %cst_195 = arith.constant dense<0.000000e+00> : vector<8xf32>
    %348 = vector.multi_reduction <add>, %347, %cst_195 [1] : vector<8x96xf32> to vector<8xf32>
    %349 = vector.shape_cast %348 : vector<8xf32> to vector<8x1xf32>
    %cst_196 = arith.constant 0.010416667 : f32
    %350 = vector.broadcast %cst_196 : f32 to vector<8x1xf32>
    %351 = arith.mulf %349, %350 : vector<8x1xf32>
    %cst_197 = arith.constant 9.99999974E-6 : f32
    %352 = vector.broadcast %cst_197 : f32 to vector<8x1xf32>
    %353 = arith.addf %351, %352 : vector<8x1xf32>
    %354 = math.rsqrt %353 : vector<8x1xf32>
    %355 = vector.broadcast %354 : vector<8x1xf32> to vector<8x96xf32>
    %356 = arith.mulf %346, %355 : vector<8x96xf32>
    %357 = vector.broadcast %332 : vector<1x96xf32> to vector<8x96xf32>
    %358 = arith.mulf %356, %357 : vector<8x96xf32>
    %359 = vector.broadcast %333 : vector<1x96xf32> to vector<8x96xf32>
    %360 = arith.addf %358, %359 : vector<8x96xf32>
    %cst_198 = arith.constant 2.000000e-01 : f32
    %361 = vector.broadcast %cst_198 : f32 to vector<8x96xf32>
    %362 = arith.mulf %361, %360 : vector<8x96xf32>
    %363 = arith.maximumf %360, %362 : vector<8x96xf32>
    %cst_199 = arith.constant dense<0.000000e+00> : vector<8x96xf32>
    %364 = tpu.matmul %363, %334, %cst_199 {dimension_numbers = #tpu.dot_dimension_numbers<[1], [0], [0], [1], [0, 0, 1, 1], [], []>} : vector<8x96xf32>, vector<96x96xf32>, vector<8x96xf32> -> vector<8x96xf32>
    %365 = vector.broadcast %335 : vector<1x96xf32> to vector<8x96xf32>
    %366 = arith.addf %364, %365 : vector<8x96xf32>
    %cst_200 = arith.constant dense<0.000000e+00> : vector<8xf32>
    %367 = vector.multi_reduction <add>, %366, %cst_200 [1] : vector<8x96xf32> to vector<8xf32>
    %368 = vector.shape_cast %367 : vector<8xf32> to vector<8x1xf32>
    %cst_201 = arith.constant 0.010416667 : f32
    %369 = vector.broadcast %cst_201 : f32 to vector<8x1xf32>
    %370 = arith.mulf %368, %369 : vector<8x1xf32>
    %371 = vector.broadcast %370 : vector<8x1xf32> to vector<8x96xf32>
    %372 = arith.subf %366, %371 : vector<8x96xf32>
    %373 = arith.mulf %372, %372 : vector<8x96xf32>
    %cst_202 = arith.constant dense<0.000000e+00> : vector<8xf32>
    %374 = vector.multi_reduction <add>, %373, %cst_202 [1] : vector<8x96xf32> to vector<8xf32>
    %375 = vector.shape_cast %374 : vector<8xf32> to vector<8x1xf32>
    %cst_203 = arith.constant 0.010416667 : f32
    %376 = vector.broadcast %cst_203 : f32 to vector<8x1xf32>
    %377 = arith.mulf %375, %376 : vector<8x1xf32>
    %cst_204 = arith.constant 9.99999974E-6 : f32
    %378 = vector.broadcast %cst_204 : f32 to vector<8x1xf32>
    %379 = arith.addf %377, %378 : vector<8x1xf32>
    %380 = math.rsqrt %379 : vector<8x1xf32>
    %381 = vector.broadcast %380 : vector<8x1xf32> to vector<8x96xf32>
    %382 = arith.mulf %372, %381 : vector<8x96xf32>
    %383 = vector.broadcast %336 : vector<1x96xf32> to vector<8x96xf32>
    %384 = arith.mulf %382, %383 : vector<8x96xf32>
    %385 = vector.broadcast %337 : vector<1x96xf32> to vector<8x96xf32>
    %386 = arith.addf %384, %385 : vector<8x96xf32>
    %387 = arith.addf %386, %329 : vector<8x96xf32>
    %cst_205 = arith.constant 2.000000e-01 : f32
    %388 = vector.broadcast %cst_205 : f32 to vector<8x96xf32>
    %389 = arith.mulf %388, %387 : vector<8x96xf32>
    %390 = arith.maximumf %387, %389 : vector<8x96xf32>
    %c0_206 = arith.constant 0 : index
    %c0_207 = arith.constant 0 : index
    %391 = vector.load %arg60[%c0_206, %c0_207] : memref<96x24xf32, #tpu.memory_space<vmem>>, vector<96x24xf32>
    %cst_208 = arith.constant dense<0.000000e+00> : vector<8x24xf32>
    %392 = tpu.matmul %390, %391, %cst_208 {dimension_numbers = #tpu.dot_dimension_numbers<[1], [0], [0], [1], [0, 0, 1, 1], [], []>} : vector<8x96xf32>, vector<96x24xf32>, vector<8x24xf32> -> vector<8x24xf32>
    %c0_209 = arith.constant 0 : index
    %c0_210 = arith.constant 0 : index
    %393 = vector.load %arg61[%c0_209, %c0_210] : memref<1x24xf32, #tpu.memory_space<vmem>>, vector<1x24xf32>
    %394 = vector.broadcast %393 : vector<1x24xf32> to vector<8x24xf32>
    %395 = arith.addf %392, %394 : vector<8x24xf32>
    %396 = math.tanh %395 : vector<8x24xf32>
    %c0_211 = arith.constant 0 : index
    %c0_212 = arith.constant 0 : index
    %397 = vector.load %arg62[%c0_211, %c0_212] : memref<8x24xf32, #tpu.memory_space<vmem>>, vector<8x24xf32>
    tpu.vector_store %arg62[%c0_211, %c0_212], %396 {strides = array<i32>} : memref<8x24xf32, #tpu.memory_space<vmem>>, vector<8x24xf32>,
    return
  }
  func.func @transform_0(%arg0: i32) -> (i32, i32) {
    %c0_i32 = arith.constant 0 : i32
    %c0_i32_0 = arith.constant 0 : i32
    return %arg0, %c0_i32 : i32, i32
  }
  func.func @transform_1(%arg0: i32) -> (i32, i32) {
    %c0_i32 = arith.constant 0 : i32
    %c0_i32_0 = arith.constant 0 : i32
    %c0_i32_1 = arith.constant 0 : i32
    return %c0_i32, %c0_i32_0 : i32, i32
  }
  func.func @transform_2(%arg0: i32) -> (i32, i32) {
    %c0_i32 = arith.constant 0 : i32
    %c0_i32_0 = arith.constant 0 : i32
    %c0_i32_1 = arith.constant 0 : i32
    return %c0_i32, %c0_i32_0 : i32, i32
  }
  func.func @transform_3(%arg0: i32) -> (i32, i32) {
    %c0_i32 = arith.constant 0 : i32
    %c0_i32_0 = arith.constant 0 : i32
    %c0_i32_1 = arith.constant 0 : i32
    return %c0_i32, %c0_i32_0 : i32, i32
  }
  func.func @transform_4(%arg0: i32) -> (i32, i32) {
    %c0_i32 = arith.constant 0 : i32
    %c0_i32_0 = arith.constant 0 : i32
    %c0_i32_1 = arith.constant 0 : i32
    return %c0_i32, %c0_i32_0 : i32, i32
  }
  func.func @transform_5(%arg0: i32) -> (i32, i32) {
    %c0_i32 = arith.constant 0 : i32
    %c0_i32_0 = arith.constant 0 : i32
    %c0_i32_1 = arith.constant 0 : i32
    return %c0_i32, %c0_i32_0 : i32, i32
  }
  func.func @transform_6(%arg0: i32) -> (i32, i32) {
    %c0_i32 = arith.constant 0 : i32
    %c0_i32_0 = arith.constant 0 : i32
    %c0_i32_1 = arith.constant 0 : i32
    return %c0_i32, %c0_i32_0 : i32, i32
  }
  func.func @transform_7(%arg0: i32) -> (i32, i32) {
    %c0_i32 = arith.constant 0 : i32
    %c0_i32_0 = arith.constant 0 : i32
    %c0_i32_1 = arith.constant 0 : i32
    return %c0_i32, %c0_i32_0 : i32, i32
  }
  func.func @transform_8(%arg0: i32) -> (i32, i32) {
    %c0_i32 = arith.constant 0 : i32
    %c0_i32_0 = arith.constant 0 : i32
    %c0_i32_1 = arith.constant 0 : i32
    return %c0_i32, %c0_i32_0 : i32, i32
  }
  func.func @transform_9(%arg0: i32) -> (i32, i32) {
    %c0_i32 = arith.constant 0 : i32
    %c0_i32_0 = arith.constant 0 : i32
    %c0_i32_1 = arith.constant 0 : i32
    return %c0_i32, %c0_i32_0 : i32, i32
  }
  func.func @transform_10(%arg0: i32) -> (i32, i32) {
    %c0_i32 = arith.constant 0 : i32
    %c0_i32_0 = arith.constant 0 : i32
    %c0_i32_1 = arith.constant 0 : i32
    return %c0_i32, %c0_i32_0 : i32, i32
  }
  func.func @transform_11(%arg0: i32) -> (i32, i32) {
    %c0_i32 = arith.constant 0 : i32
    %c0_i32_0 = arith.constant 0 : i32
    %c0_i32_1 = arith.constant 0 : i32
    return %c0_i32, %c0_i32_0 : i32, i32
  }
  func.func @transform_12(%arg0: i32) -> (i32, i32) {
    %c0_i32 = arith.constant 0 : i32
    %c0_i32_0 = arith.constant 0 : i32
    %c0_i32_1 = arith.constant 0 : i32
    return %c0_i32, %c0_i32_0 : i32, i32
  }
  func.func @transform_13(%arg0: i32) -> (i32, i32) {
    %c0_i32 = arith.constant 0 : i32
    %c0_i32_0 = arith.constant 0 : i32
    %c0_i32_1 = arith.constant 0 : i32
    return %c0_i32, %c0_i32_0 : i32, i32
  }
  func.func @transform_14(%arg0: i32) -> (i32, i32) {
    %c0_i32 = arith.constant 0 : i32
    %c0_i32_0 = arith.constant 0 : i32
    %c0_i32_1 = arith.constant 0 : i32
    return %c0_i32, %c0_i32_0 : i32, i32
  }
  func.func @transform_15(%arg0: i32) -> (i32, i32) {
    %c0_i32 = arith.constant 0 : i32
    %c0_i32_0 = arith.constant 0 : i32
    %c0_i32_1 = arith.constant 0 : i32
    return %c0_i32, %c0_i32_0 : i32, i32
  }
  func.func @transform_16(%arg0: i32) -> (i32, i32) {
    %c0_i32 = arith.constant 0 : i32
    %c0_i32_0 = arith.constant 0 : i32
    %c0_i32_1 = arith.constant 0 : i32
    return %c0_i32, %c0_i32_0 : i32, i32
  }
  func.func @transform_17(%arg0: i32) -> (i32, i32) {
    %c0_i32 = arith.constant 0 : i32
    %c0_i32_0 = arith.constant 0 : i32
    %c0_i32_1 = arith.constant 0 : i32
    return %c0_i32, %c0_i32_0 : i32, i32
  }
  func.func @transform_18(%arg0: i32) -> (i32, i32) {
    %c0_i32 = arith.constant 0 : i32
    %c0_i32_0 = arith.constant 0 : i32
    %c0_i32_1 = arith.constant 0 : i32
    return %c0_i32, %c0_i32_0 : i32, i32
  }
  func.func @transform_19(%arg0: i32) -> (i32, i32) {
    %c0_i32 = arith.constant 0 : i32
    %c0_i32_0 = arith.constant 0 : i32
    %c0_i32_1 = arith.constant 0 : i32
    return %c0_i32, %c0_i32_0 : i32, i32
  }
  func.func @transform_20(%arg0: i32) -> (i32, i32) {
    %c0_i32 = arith.constant 0 : i32
    %c0_i32_0 = arith.constant 0 : i32
    %c0_i32_1 = arith.constant 0 : i32
    return %c0_i32, %c0_i32_0 : i32, i32
  }
  func.func @transform_21(%arg0: i32) -> (i32, i32) {
    %c0_i32 = arith.constant 0 : i32
    %c0_i32_0 = arith.constant 0 : i32
    %c0_i32_1 = arith.constant 0 : i32
    return %c0_i32, %c0_i32_0 : i32, i32
  }
  func.func @transform_22(%arg0: i32) -> (i32, i32) {
    %c0_i32 = arith.constant 0 : i32
    %c0_i32_0 = arith.constant 0 : i32
    %c0_i32_1 = arith.constant 0 : i32
    return %c0_i32, %c0_i32_0 : i32, i32
  }
  func.func @transform_23(%arg0: i32) -> (i32, i32) {
    %c0_i32 = arith.constant 0 : i32
    %c0_i32_0 = arith.constant 0 : i32
    %c0_i32_1 = arith.constant 0 : i32
    return %c0_i32, %c0_i32_0 : i32, i32
  }
  func.func @transform_24(%arg0: i32) -> (i32, i32) {
    %c0_i32 = arith.constant 0 : i32
    %c0_i32_0 = arith.constant 0 : i32
    %c0_i32_1 = arith.constant 0 : i32
    return %c0_i32, %c0_i32_0 : i32, i32
  }
  func.func @transform_25(%arg0: i32) -> (i32, i32) {
    %c0_i32 = arith.constant 0 : i32
    %c0_i32_0 = arith.constant 0 : i32
    %c0_i32_1 = arith.constant 0 : i32
    return %c0_i32, %c0_i32_0 : i32, i32
  }
  func.func @transform_26(%arg0: i32) -> (i32, i32) {
    %c0_i32 = arith.constant 0 : i32
    %c0_i32_0 = arith.constant 0 : i32
    %c0_i32_1 = arith.constant 0 : i32
    return %c0_i32, %c0_i32_0 : i32, i32
  }
  func.func @transform_27(%arg0: i32) -> (i32, i32) {
    %c0_i32 = arith.constant 0 : i32
    %c0_i32_0 = arith.constant 0 : i32
    %c0_i32_1 = arith.constant 0 : i32
    return %c0_i32, %c0_i32_0 : i32, i32
  }
  func.func @transform_28(%arg0: i32) -> (i32, i32) {
    %c0_i32 = arith.constant 0 : i32
    %c0_i32_0 = arith.constant 0 : i32
    %c0_i32_1 = arith.constant 0 : i32
    return %c0_i32, %c0_i32_0 : i32, i32
  }
  func.func @transform_29(%arg0: i32) -> (i32, i32) {
    %c0_i32 = arith.constant 0 : i32
    %c0_i32_0 = arith.constant 0 : i32
    %c0_i32_1 = arith.constant 0 : i32
    return %c0_i32, %c0_i32_0 : i32, i32
  }
  func.func @transform_30(%arg0: i32) -> (i32, i32) {
    %c0_i32 = arith.constant 0 : i32
    %c0_i32_0 = arith.constant 0 : i32
    %c0_i32_1 = arith.constant 0 : i32
    return %c0_i32, %c0_i32_0 : i32, i32
  }
  func.func @transform_31(%arg0: i32) -> (i32, i32) {
    %c0_i32 = arith.constant 0 : i32
    %c0_i32_0 = arith.constant 0 : i32
    %c0_i32_1 = arith.constant 0 : i32
    return %c0_i32, %c0_i32_0 : i32, i32
  }
  func.func @transform_32(%arg0: i32) -> (i32, i32) {
    %c0_i32 = arith.constant 0 : i32
    %c0_i32_0 = arith.constant 0 : i32
    %c0_i32_1 = arith.constant 0 : i32
    return %c0_i32, %c0_i32_0 : i32, i32
  }
  func.func @transform_33(%arg0: i32) -> (i32, i32) {
    %c0_i32 = arith.constant 0 : i32
    %c0_i32_0 = arith.constant 0 : i32
    %c0_i32_1 = arith.constant 0 : i32
    return %c0_i32, %c0_i32_0 : i32, i32
  }
  func.func @transform_34(%arg0: i32) -> (i32, i32) {
    %c0_i32 = arith.constant 0 : i32
    %c0_i32_0 = arith.constant 0 : i32
    %c0_i32_1 = arith.constant 0 : i32
    return %c0_i32, %c0_i32_0 : i32, i32
  }
  func.func @transform_35(%arg0: i32) -> (i32, i32) {
    %c0_i32 = arith.constant 0 : i32
    %c0_i32_0 = arith.constant 0 : i32
    %c0_i32_1 = arith.constant 0 : i32
    return %c0_i32, %c0_i32_0 : i32, i32
  }
  func.func @transform_36(%arg0: i32) -> (i32, i32) {
    %c0_i32 = arith.constant 0 : i32
    %c0_i32_0 = arith.constant 0 : i32
    %c0_i32_1 = arith.constant 0 : i32
    return %c0_i32, %c0_i32_0 : i32, i32
  }
  func.func @transform_37(%arg0: i32) -> (i32, i32) {
    %c0_i32 = arith.constant 0 : i32
    %c0_i32_0 = arith.constant 0 : i32
    %c0_i32_1 = arith.constant 0 : i32
    return %c0_i32, %c0_i32_0 : i32, i32
  }
  func.func @transform_38(%arg0: i32) -> (i32, i32) {
    %c0_i32 = arith.constant 0 : i32
    %c0_i32_0 = arith.constant 0 : i32
    %c0_i32_1 = arith.constant 0 : i32
    return %c0_i32, %c0_i32_0 : i32, i32
  }
  func.func @transform_39(%arg0: i32) -> (i32, i32) {
    %c0_i32 = arith.constant 0 : i32
    %c0_i32_0 = arith.constant 0 : i32
    %c0_i32_1 = arith.constant 0 : i32
    return %c0_i32, %c0_i32_0 : i32, i32
  }
  func.func @transform_40(%arg0: i32) -> (i32, i32) {
    %c0_i32 = arith.constant 0 : i32
    %c0_i32_0 = arith.constant 0 : i32
    %c0_i32_1 = arith.constant 0 : i32
    return %c0_i32, %c0_i32_0 : i32, i32
  }
  func.func @transform_41(%arg0: i32) -> (i32, i32) {
    %c0_i32 = arith.constant 0 : i32
    %c0_i32_0 = arith.constant 0 : i32
    %c0_i32_1 = arith.constant 0 : i32
    return %c0_i32, %c0_i32_0 : i32, i32
  }
  func.func @transform_42(%arg0: i32) -> (i32, i32) {
    %c0_i32 = arith.constant 0 : i32
    %c0_i32_0 = arith.constant 0 : i32
    %c0_i32_1 = arith.constant 0 : i32
    return %c0_i32, %c0_i32_0 : i32, i32
  }
  func.func @transform_43(%arg0: i32) -> (i32, i32) {
    %c0_i32 = arith.constant 0 : i32
    %c0_i32_0 = arith.constant 0 : i32
    %c0_i32_1 = arith.constant 0 : i32
    return %c0_i32, %c0_i32_0 : i32, i32
  }
  func.func @transform_44(%arg0: i32) -> (i32, i32) {
    %c0_i32 = arith.constant 0 : i32
    %c0_i32_0 = arith.constant 0 : i32
    %c0_i32_1 = arith.constant 0 : i32
    return %c0_i32, %c0_i32_0 : i32, i32
  }
  func.func @transform_45(%arg0: i32) -> (i32, i32) {
    %c0_i32 = arith.constant 0 : i32
    %c0_i32_0 = arith.constant 0 : i32
    %c0_i32_1 = arith.constant 0 : i32
    return %c0_i32, %c0_i32_0 : i32, i32
  }
  func.func @transform_46(%arg0: i32) -> (i32, i32) {
    %c0_i32 = arith.constant 0 : i32
    %c0_i32_0 = arith.constant 0 : i32
    %c0_i32_1 = arith.constant 0 : i32
    return %c0_i32, %c0_i32_0 : i32, i32
  }
  func.func @transform_47(%arg0: i32) -> (i32, i32) {
    %c0_i32 = arith.constant 0 : i32
    %c0_i32_0 = arith.constant 0 : i32
    %c0_i32_1 = arith.constant 0 : i32
    return %c0_i32, %c0_i32_0 : i32, i32
  }
  func.func @transform_48(%arg0: i32) -> (i32, i32) {
    %c0_i32 = arith.constant 0 : i32
    %c0_i32_0 = arith.constant 0 : i32
    %c0_i32_1 = arith.constant 0 : i32
    return %c0_i32, %c0_i32_0 : i32, i32
  }
  func.func @transform_49(%arg0: i32) -> (i32, i32) {
    %c0_i32 = arith.constant 0 : i32
    %c0_i32_0 = arith.constant 0 : i32
    %c0_i32_1 = arith.constant 0 : i32
    return %c0_i32, %c0_i32_0 : i32, i32
  }
  func.func @transform_50(%arg0: i32) -> (i32, i32) {
    %c0_i32 = arith.constant 0 : i32
    %c0_i32_0 = arith.constant 0 : i32
    %c0_i32_1 = arith.constant 0 : i32
    return %c0_i32, %c0_i32_0 : i32, i32
  }
  func.func @transform_51(%arg0: i32) -> (i32, i32) {
    %c0_i32 = arith.constant 0 : i32
    %c0_i32_0 = arith.constant 0 : i32
    %c0_i32_1 = arith.constant 0 : i32
    return %c0_i32, %c0_i32_0 : i32, i32
  }
  func.func @transform_52(%arg0: i32) -> (i32, i32) {
    %c0_i32 = arith.constant 0 : i32
    %c0_i32_0 = arith.constant 0 : i32
    %c0_i32_1 = arith.constant 0 : i32
    return %c0_i32, %c0_i32_0 : i32, i32
  }
  func.func @transform_53(%arg0: i32) -> (i32, i32) {
    %c0_i32 = arith.constant 0 : i32
    %c0_i32_0 = arith.constant 0 : i32
    %c0_i32_1 = arith.constant 0 : i32
    return %c0_i32, %c0_i32_0 : i32, i32
  }
  func.func @transform_54(%arg0: i32) -> (i32, i32) {
    %c0_i32 = arith.constant 0 : i32
    %c0_i32_0 = arith.constant 0 : i32
    %c0_i32_1 = arith.constant 0 : i32
    return %c0_i32, %c0_i32_0 : i32, i32
  }
  func.func @transform_55(%arg0: i32) -> (i32, i32) {
    %c0_i32 = arith.constant 0 : i32
    %c0_i32_0 = arith.constant 0 : i32
    %c0_i32_1 = arith.constant 0 : i32
    return %c0_i32, %c0_i32_0 : i32, i32
  }
  func.func @transform_56(%arg0: i32) -> (i32, i32) {
    %c0_i32 = arith.constant 0 : i32
    %c0_i32_0 = arith.constant 0 : i32
    %c0_i32_1 = arith.constant 0 : i32
    return %c0_i32, %c0_i32_0 : i32, i32
  }
  func.func @transform_57(%arg0: i32) -> (i32, i32) {
    %c0_i32 = arith.constant 0 : i32
    %c0_i32_0 = arith.constant 0 : i32
    %c0_i32_1 = arith.constant 0 : i32
    return %c0_i32, %c0_i32_0 : i32, i32
  }
  func.func @transform_58(%arg0: i32) -> (i32, i32) {
    %c0_i32 = arith.constant 0 : i32
    %c0_i32_0 = arith.constant 0 : i32
    %c0_i32_1 = arith.constant 0 : i32
    return %c0_i32, %c0_i32_0 : i32, i32
  }
  func.func @transform_59(%arg0: i32) -> (i32, i32) {
    %c0_i32 = arith.constant 0 : i32
    %c0_i32_0 = arith.constant 0 : i32
    %c0_i32_1 = arith.constant 0 : i32
    return %c0_i32, %c0_i32_0 : i32, i32
  }
  func.func @transform_60(%arg0: i32) -> (i32, i32) {
    %c0_i32 = arith.constant 0 : i32
    %c0_i32_0 = arith.constant 0 : i32
    %c0_i32_1 = arith.constant 0 : i32
    return %c0_i32, %c0_i32_0 : i32, i32
  }
  func.func @transform_61(%arg0: i32) -> (i32, i32) {
    %c0_i32 = arith.constant 0 : i32
    %c0_i32_0 = arith.constant 0 : i32
    return %arg0, %c0_i32 : i32, i32
  }
}

</mosaic_0001>

<bundles_post_ra>
// kernel: tpu_custom_call.1
= control target key start
LH: loop header
LB: loop body
LE: loop exit
PB: predicated region body
PF: predicated region fallthrough
CT: control target
= control target key end

     0   :  { %s7903_s6 = smov 1   ;;  %s7904_s10 = smov 2   ;;  %s9867_s0 = inlined_call_operand.smem [shape: u32[62], index: -1, kind: input, shape index: {}] }
   0x1   :  { %s8029_s5 = sld [smem:[%s9867_s0]]   ;;  %s7905_s14 = smov 3  }
   0x2   :  { %s8034_s9 = sld [smem:[%s9867_s0 + %s7903_s6]]   ;;  %s7906_s18 = smov 4  }
   0x3   :  { %s8039_s13 = sld [smem:[%s9867_s0 + %s7904_s10]]   ;;  %s7907_s22 = smov 5  }
   0x4   :  { %s8044_s17 = sld [smem:[%s9867_s0 + %s7905_s14]]   ;;  %s7908_s26 = smov 6  }
   0x5   :  { %s8049_s21 = sld [smem:[%s9867_s0 + %s7906_s18]]   ;;  %s7909_s30 = smov 7  }
   0x6   :  { %s8054_s25 = sld [smem:[%s9867_s0 + %s7907_s22]]   ;;  %s7910_s4 = smov 8  }
   0x7   :  { %9911 = sst [smem:[#allocation104_spill]] %s8029_s5  ;;  %s7911_s10 = smov 9  }
   0x8   :  { %s8059_s29 = sld [smem:[%s9867_s0 + %s7908_s26]]   ;;  %s7912_s15 = smov 10  }
   0x9   :  { %9912 = sst [smem:[#allocation105_spill]] %s8039_s13  ;;  %s7913_s20 = smov 11  }
   0xa   :  { %s8064_s3 = sld [smem:[%s9867_s0 + %s7909_s30]]   ;;  %s7914_s26 = smov 12  }
   0xb   :  { %9913 = sst [smem:[#allocation106_spill]] %s8049_s21  ;;  %s7915_s1 = smov 13  }
   0xc   :  { %s8069_s8 = sld [smem:[%s9867_s0 + %s7910_s4]]   ;;  %s7916_s7 = smov 14  }
   0xd   :  { %s8074_s14 = sld [smem:[%s9867_s0 + %s7911_s10]]   ;;  %s7918_s22 = smov 16  }
   0xe   :  { %9914 = sst [smem:[#allocation107_spill]] %s8059_s29  ;;  %s7919_s28 = smov 17  }
   0xf   :  { %s8079_s19 = sld [smem:[%s9867_s0 + %s7912_s15]]   ;;  %s7917_s15 = smov 15  }
  0x10   :  { %s8084_s24 = sld [smem:[%s9867_s0 + %s7913_s20]]  }
  0x11   :  { %s8089_s30 = sld [smem:[%s9867_s0 + %s7914_s26]]  }
  0x12   :  { %9915 = sst [smem:[#allocation108_spill]] %s8069_s8 }
  0x13   :  { %s8094_s6 = sld [smem:[%s9867_s0 + %s7915_s1]]  }
  0x14   :  { %s8099_s12 = sld [smem:[%s9867_s0 + %s7916_s7]]   ;;  %s7920_s7 = smov 18  }
  0x15   :  { %9916 = sst [smem:[#allocation109_spill]] %s8079_s19 }
  0x16   :  { %9917 = sst [smem:[#allocation110_spill]] %s8084_s24 }
  0x17   :  { %9918 = sst [smem:[#allocation111_spill]] %s8089_s30 }
  0x18   :  { %s8104_s20 = sld [smem:[%s9867_s0 + %s7917_s15]]   ;;  %s7921_s15 = smov 19  }
  0x19   :  { %s8109_s27 = sld [smem:[%s9867_s0 + %s7918_s22]]   ;;  %s7922_s22 = smov 20  }
  0x1a   :  { %9919 = sst [smem:[#allocation112_spill]] %s8099_s12 }
  0x1b   :  { %s8114_s4 = sld [smem:[%s9867_s0 + %s7919_s28]]   ;;  %s7923_s28 = smov 21  }
  0x1c   :  { %s8119_s30 = sld [smem:[%s9867_s0 + %s7920_s7]]   ;;  %s7924_s7 = smov 22  }
  0x1d   :  { %s8124_s24 = sld [smem:[%s9867_s0 + %s7921_s15]]   ;;  %s7925_s15 = smov 23  }
  0x1e   :  { %s8134_s12 = sld [smem:[%s9867_s0 + %s7923_s28]]   ;;  %s7927_s28 = smov 25  }
  0x1f   :  { %9920 = sst [smem:[#allocation113_spill]] %s8109_s27 }
  0x20   :  { %s8129_s27 = sld [smem:[%s9867_s0 + %s7922_s22]]   ;;  %s7926_s22 = smov 24  }
  0x21   :  { %s8144_s19 = sld [smem:[%s9867_s0 + %s7925_s15]]   ;;  %s7929_s15 = smov 27  }
  0x22   :  { %9921 = sst [smem:[#allocation114_spill]] %s8119_s30 }
  0x23   :  { %s8139_s30 = sld [smem:[%s9867_s0 + %s7924_s7]]   ;;  %s7928_s7 = smov 26  }
  0x24   :  { %9923 = sst [smem:[#allocation116_spill]] %s8134_s12 }
  0x25   :  { %s8154_s12 = sld [smem:[%s9867_s0 + %s7927_s28]]   ;;  %s7931_s28 = smov 29  }
  0x26   :  { %9922 = sst [smem:[#allocation115_spill]] %s8129_s27 }
  0x27   :  { %9925 = sst [smem:[#allocation118_spill]] %s8144_s19 }
  0x28   :  { %s8149_s27 = sld [smem:[%s9867_s0 + %s7926_s22]]   ;;  %s7930_s22 = smov 28  }
  0x29   :  { %9924 = sst [smem:[#allocation117_spill]] %s8139_s30 }
  0x2a   :  { %s8159_s30 = sld [smem:[%s9867_s0 + %s7928_s7]]   ;;  %s7932_s7 = smov 30  }
  0x2b   :  { %9926 = sst [smem:[#allocation119_spill]] %s8154_s12 }
  0x2c   :  { %s8164_s19 = sld [smem:[%s9867_s0 + %s7929_s15]]   ;;  %s7933_s15 = smov 31  }
  0x2d   :  { %s8169_s8 = sld [smem:[%s9867_s0 + %s7930_s22]]   ;;  %s7934_s22 = smov 32  }
  0x2e   :  { %s8174_s12 = sld [smem:[%s9867_s0 + %s7931_s28]]   ;;  %s7935_s28 = smov 33  }
  0x2f   :  { %s8179_s29 = sld [smem:[%s9867_s0 + %s7932_s7]]   ;;  %s7936_s7 = smov 34  }
  0x30   :  { %s8194_s21 = sld [smem:[%s9867_s0 + %s7935_s28]]   ;;  %s7939_s28 = smov 37  }
  0x32   :  { %9927 = sst [smem:[#allocation120_spill]] %s8164_s19 }
  0x33   :  { %9928 = sst [smem:[#allocation121_spill]] %s8169_s8 }
  0x34   :  { %s8184_s19 = sld [smem:[%s9867_s0 + %s7933_s15]]   ;;  %s7937_s15 = smov 35  }
  0x35   :  { %9929 = sst [smem:[#allocation122_spill]] %s8179_s29 }
  0x36   :  { %s8189_s8 = sld [smem:[%s9867_s0 + %s7934_s22]]   ;;  %s7938_s22 = smov 36  }
  0x37   :  { %9931 = sst [smem:[#allocation124_spill]] %s8194_s21 }
  0x38   :  { %s8199_s29 = sld [smem:[%s9867_s0 + %s7936_s7]]   ;;  %s7940_s7 = smov 38  }
  0x39   :  { %s8209_s13 = sld [smem:[%s9867_s0 + %s7938_s22]]   ;;  %s7942_s22 = smov 40  }
  0x3a   :  { %9930 = sst [smem:[#allocation123_spill]] %s8184_s19 }
  0x3b   :  { %s8204_s19 = sld [smem:[%s9867_s0 + %s7937_s15]]   ;;  %s7941_s15 = smov 39  }
  0x3c   :  { %s8214_s21 = sld [smem:[%s9867_s0 + %s7939_s28]]   ;;  %s7943_s28 = smov 41  }
  0x3d   :  { %s8219_s5 = sld [smem:[%s9867_s0 + %s7940_s7]]   ;;  %s7944_s7 = smov 42  }
  0x3f   :  { %9933 = sst [smem:[#allocation126_spill]] %s8209_s13 }
  0x40   :  { %s8229_s13 = sld [smem:[%s9867_s0 + %s7942_s22]]   ;;  %s7946_s22 = smov 44  }
  0x41   :  { %9932 = sst [smem:[#allocation125_spill]] %s8204_s19 }
  0x42   :  { %9934 = sst [smem:[#allocation127_spill]] %s8214_s21 }
  0x43   :  { %9935 = sst [smem:[#allocation128_spill]] %s8219_s5 }
  0x44   :  { %s8224_s19 = sld [smem:[%s9867_s0 + %s7941_s15]]   ;;  %s7945_s15 = smov 43  }
  0x45   :  { %s8234_s21 = sld [smem:[%s9867_s0 + %s7943_s28]]   ;;  %s7947_s28 = smov 45  }
  0x46   :  { %9937 = sst [smem:[#allocation130_spill]] %s8229_s13 }
  0x47   :  { %s8239_s5 = sld [smem:[%s9867_s0 + %s7944_s7]]   ;;  %s7948_s7 = smov 46  }
  0x48   :  { %s8249_s13 = sld [smem:[%s9867_s0 + %s7946_s22]]   ;;  %s7950_s22 = smov 48  }
  0x4a   :  { %9936 = sst [smem:[#allocation129_spill]] %s8224_s19 }
  0x4b   :  { %9938 = sst [smem:[#allocation131_spill]] %s8234_s21 }
  0x4c   :  { %s8244_s19 = sld [smem:[%s9867_s0 + %s7945_s15]]   ;;  %s7949_s15 = smov 47  }
  0x4d   :  { %9939 = sst [smem:[#allocation132_spill]] %s8239_s5 }
  0x4e   :  { %9941 = sst [smem:[#allocation134_spill]] %s8249_s13 }
  0x4f   :  { %s8254_s21 = sld [smem:[%s9867_s0 + %s7947_s28]]   ;;  %s7951_s28 = smov 49  }
  0x50   :  { %s8259_s5 = sld [smem:[%s9867_s0 + %s7948_s7]]   ;;  %s7952_s7 = smov 50  }
  0x51   :  { %s8269_s13 = sld [smem:[%s9867_s0 + %s7950_s22]]   ;;  %s7954_s22 = smov 52  }
  0x52   :  { %9940 = sst [smem:[#allocation133_spill]] %s8244_s19 }
  0x53   :  { %s8264_s19 = sld [smem:[%s9867_s0 + %s7949_s15]]   ;;  %s7953_s15 = smov 51  }
  0x55   :  { %9942 = sst [smem:[#allocation135_spill]] %s8254_s21 }
  0x56   :  { %9943 = sst [smem:[#allocation136_spill]] %s8259_s5 }
  0x57   :  { %9945 = sst [smem:[#allocation138_spill]] %s8269_s13 }
  0x58   :  { %s8274_s21 = sld [smem:[%s9867_s0 + %s7951_s28]]   ;;  %s7955_s28 = smov 53  }
  0x59   :  { %9944 = sst [smem:[#allocation137_spill]] %s8264_s19 }
  0x5a   :  { %s8279_s5 = sld [smem:[%s9867_s0 + %s7952_s7]]   ;;  %s7956_s7 = smov 54  }
  0x5b   :  { %s8284_s19 = sld [smem:[%s9867_s0 + %s7953_s15]]   ;;  %s7957_s15 = smov 55  }
  0x5c   :  { %s8289_s13 = sld [smem:[%s9867_s0 + %s7954_s22]]   ;;  %s7958_s22 = smov 56  }
  0x5e   :  { %9946 = sst [smem:[#allocation139_spill]] %s8274_s21 }
  0x5f   :  { %s8294_s21 = sld [smem:[%s9867_s0 + %s7955_s28]]   ;;  %s7959_s28 = smov 57  }
  0x60   :  { %9947 = sst [smem:[#allocation140_spill]] %s8279_s5 }
  0x61   :  { %9948 = sst [smem:[#allocation141_spill]] %s8284_s19 }
  0x62   :  { %9949 = sst [smem:[#allocation142_spill]] %s8289_s13 }
  0x63   :  { %s8299_s5 = sld [smem:[%s9867_s0 + %s7956_s7]]   ;;  %s7960_s7 = smov 58  }
  0x64   :  { %s8304_s19 = sld [smem:[%s9867_s0 + %s7957_s15]]   ;;  %s7961_s15 = smov 59  }
  0x65   :  { %9950 = sst [smem:[#allocation143_spill]] %s8294_s21 }
  0x66   :  { %s8309_s13 = sld [smem:[%s9867_s0 + %s7958_s22]]   ;;  %s7962_s22 = smov 60  }
  0x67   :  { %s8314_s21 = sld [smem:[%s9867_s0 + %s7959_s28]]   ;;  %s7963_s28 = smov 61  }
  0x69   :  { %9951 = sst [smem:[#allocation144_spill]] %s8299_s5 }
  0x6a   :  { %9952 = sst [smem:[#allocation145_spill]] %s8304_s19 }
  0x6b   :  { %s8319_s5 = sld [smem:[%s9867_s0 + %s7960_s7]]  }
  0x6c   :  { %9953 = sst [smem:[#allocation146_spill]] %s8309_s13 }
  0x6d   :  { %9954 = sst [smem:[#allocation147_spill]] %s8314_s21 }
  0x6e   :  { %s8324_s19 = sld [smem:[%s9867_s0 + %s7961_s15]]  }
  0x6f   :  { %s8329_s13 = sld [smem:[%s9867_s0 + %s7962_s22]]  }
  0x70   :  { %s8334_s21 = sld [smem:[%s9867_s0 + %s7963_s28]]  }
  0x71   :  { %128 = vsyncpa [#allocation3], 0 }
  0x72   :  { %129 = vsyncpa [#allocation6], 0 }
  0x73   :  { %130 = vsyncpa [#allocation9], 0 }
  0x74   :  { %131 = vsyncpa [#allocation12], 0 }
  0x75   :  { %132 = vsyncpa [#allocation15], 0 }
  0x76   :  { %133 = vsyncpa [#allocation18], 0 }
  0x77   :  { %134 = vsyncpa [#allocation21], 0 }
  0x78   :  { %135 = vsyncpa [#allocation24], 0 }
  0x79   :  { %136 = vsyncpa [#allocation27], 0 }
  0x7a   :  { %137 = vsyncpa [#allocation30], 0 }
  0x7b   :  { %138 = vsyncpa [#allocation33], 0 }
  0x7c   :  { %139 = vsyncpa [#allocation36], 0 }
  0x7d   :  { %140 = vsyncpa [#allocation39], 0 }
  0x7e   :  { %141 = vsyncpa [#allocation42], 0 }
  0x7f   :  { %142 = vsyncpa [#allocation45], 0 }
  0x80   :  { %143 = vsyncpa [#allocation48], 0 }
  0x81   :  { %144 = vsyncpa [#allocation51], 0 }
  0x82   :  { %145 = vsyncpa [#allocation54], 0 }
  0x83   :  { %146 = vsyncpa [#allocation57], 0 }
  0x84   :  { %147 = vsyncpa [#allocation60], 0 }
  0x85   :  { %148 = vsyncpa [#allocation63], 0 }
  0x86   :  { %149 = vsyncpa [#allocation66], 0 }
  0x87   :  { %150 = vsyncpa [#allocation69], 0 }
  0x88   :  { %151 = vsyncpa [#allocation72], 0 }
  0x89   :  { %152 = vsyncpa [#allocation75], 0 }
  0x8a   :  { %153 = vsyncpa [#allocation4], 0  ;;  %s7964_s0 = smov [#allocation5]   ;;  %s6751_s10 = scalar_lea.hbm %s8034_s9, 512 }
  0x8b   :  { %s169_s7 = sshll.u32 %s7964_s0, 4  ;;  %p6752_p0 = scmp.ne.s32.totalorder %s8034_s9, %s6751_s10  ;;  %s170_s7 = int_to_ptr.vmem [resolvable:$true] %s169_s7 }
  0x8c   :  { %p6755_p1 = scmp.lt.u32.totalorder %s6751_s10, %s8034_s9 }
  0x8e   :  { %p6757_p2 = pnand %p6755_p1, %p6752_p0 }
  0x90   :  { %6760 = shalt.err (!%p6757_p2)
}
  0x91   :  { %s6761_s11 = scalar_lea.vmem %s170_s7, 512  ;;  %p6766_p4 = scmp.lt.s32.totalorder %s170_s7, %s170_s7 }
  0x92   :  { %p6762_p3 = scmp.ne.s32.totalorder %s170_s7, %s6761_s11  ;;  %p6767_p5 = scmp.lt.s32.totalorder %s6761_s11, %s6761_s11 }
  0x94   :  { %p6768_p6 = por %p6767_p5, %p6766_p4 }
  0x96   :  { %p6769_p7 = pnand %p6768_p6, %p6762_p3 }
  0x98   :  { %6772 = shalt.err (!%p6769_p7)
}
  0x99   :  { %s7965_s15 = smov 256   ;;  %s7966_s16 = smov 16  }
  0x9a   :  { %175 = dma.hbm_to_vmem [thread:$0]  %s8034_s9, 512, %s170_s7, [#allocation6], %s7965_s15, %s7965_s15, %s7966_s16  }
  0x9b   :  { %s7967_s18 = smov [#allocation8]   ;;  %s7968_s23 = smov [#allocation11]  }
  0x9c   :  { %s191_s22 = sshll.u32 %s7967_s18, 4  ;;  %s214_s26 = sshll.u32 %s7968_s23, 4  ;;  %s192_s22 = int_to_ptr.vmem [resolvable:$true] %s191_s22  ;;  %s215_s26 = int_to_ptr.vmem [resolvable:$true] %s214_s26 }
  0x9d   :  { %s6773_s28 = scalar_lea.hbm %s8044_s17, 6144 }
  0x9e   :  { %p6774_p8 = scmp.ne.s32.totalorder %s8044_s17, %s6773_s28  ;;  %p6777_p9 = scmp.lt.u32.totalorder %s6773_s28, %s8044_s17 }
  0xa0   :  { %p6779_p10 = pnand %p6777_p9, %p6774_p8 }
  0xa2   :  { %6782 = shalt.err (!%p6779_p10)
}
  0xa3   :  { %s6783_s1 = scalar_lea.vmem %s192_s22, 6144  ;;  %p6788_p12 = scmp.lt.s32.totalorder %s192_s22, %s192_s22 }
  0xa4   :  { %p6784_p11 = scmp.ne.s32.totalorder %s192_s22, %s6783_s1  ;;  %p6789_p13 = scmp.lt.s32.totalorder %s6783_s1, %s6783_s1 }
  0xa6   :  { %p6790_p0 = por %p6789_p13, %p6788_p12 }
  0xa8   :  { %p6791_p1 = pnand %p6790_p0, %p6784_p11 }
  0xaa   :  { %6794 = shalt.err (!%p6791_p1)
}
  0xab   :  { %197 = dma.hbm_to_vmem [thread:$0]  %s8044_s17, 6144, %s192_s22, [#allocation9], %s7965_s15, %s7965_s15, %s7966_s16  }
  0xac   :  { %s6795_s9 = scalar_lea.hbm %s8054_s25, 32 }
  0xad   :  { %p6796_p2 = scmp.ne.s32.totalorder %s8054_s25, %s6795_s9  ;;  %p6799_p3 = scmp.lt.u32.totalorder %s6795_s9, %s8054_s25 }
  0xaf   :  { %p6801_p4 = pnand %p6799_p3, %p6796_p2 }
  0xb1   :  { %6804 = shalt.err (!%p6801_p4)
}
  0xb2   :  { %s6805_s2 = scalar_lea.vmem %s215_s26, 32  ;;  %p6810_p6 = scmp.lt.s32.totalorder %s215_s26, %s215_s26 }
  0xb3   :  { %p6806_p5 = scmp.ne.s32.totalorder %s215_s26, %s6805_s2  ;;  %p6811_p7 = scmp.lt.s32.totalorder %s6805_s2, %s6805_s2 }
  0xb5   :  { %p6812_p8 = por %p6811_p7, %p6810_p6 }
  0xb7   :  { %p6813_p9 = pnand %p6812_p8, %p6806_p5 }
  0xb9   :  { %6816 = shalt.err (!%p6813_p9)
}
  0xba   :  { %217 = dma.hbm_to_vmem [thread:$0]  %s8054_s25, 32, %s215_s26, [#allocation12]  }
  0xbb   :  { %s7969_s0 = smov [#allocation14]   ;;  %s7970_s7 = smov [#allocation17]  }
  0xbc   :  { %s233_s17 = sshll.u32 %s7969_s0, 4  ;;  %s256_s10 = sshll.u32 %s7970_s7, 4  ;;  %s234_s17 = int_to_ptr.vmem [resolvable:$true] %s233_s17  ;;  %s257_s10 = int_to_ptr.vmem [resolvable:$true] %s256_s10 }
  0xbd   :  { %s6817_s11 = scalar_lea.hbm %s8064_s3, 6144 }
  0xbe   :  { %p6818_p10 = scmp.ne.s32.totalorder %s8064_s3, %s6817_s11  ;;  %p6821_p11 = scmp.lt.u32.totalorder %s6817_s11, %s8064_s3 }
  0xc0   :  { %p6823_p12 = pnand %p6821_p11, %p6818_p10 }
  0xc2   :  { %6826 = shalt.err (!%p6823_p12)
}
  0xc3   :  { %s6827_s18 = scalar_lea.vmem %s234_s17, 6144  ;;  %p6832_p0 = scmp.lt.s32.totalorder %s234_s17, %s234_s17 }
  0xc4   :  { %p6828_p13 = scmp.ne.s32.totalorder %s234_s17, %s6827_s18  ;;  %p6833_p1 = scmp.lt.s32.totalorder %s6827_s18, %s6827_s18 }
  0xc6   :  { %p6834_p2 = por %p6833_p1, %p6832_p0 }
  0xc8   :  { %p6835_p3 = pnand %p6834_p2, %p6828_p13 }
  0xca   :  { %6838 = shalt.err (!%p6835_p3)
}
  0xcb   :  { %239 = dma.hbm_to_vmem [thread:$0]  %s8064_s3, 6144, %s234_s17, [#allocation15], %s7965_s15, %s7965_s15, %s7966_s16  }
  0xcc   :  { %s6839_s25 = scalar_lea.hbm %s8074_s14, 32 }
  0xcd   :  { %p6840_p4 = scmp.ne.s32.totalorder %s8074_s14, %s6839_s25  ;;  %p6843_p5 = scmp.lt.u32.totalorder %s6839_s25, %s8074_s14 }
  0xcf   :  { %p6845_p6 = pnand %p6843_p5, %p6840_p4 }
  0xd1   :  { %6848 = shalt.err (!%p6845_p6)
}
  0xd2   :  { %s6849_s22 = scalar_lea.vmem %s257_s10, 32  ;;  %p6854_p8 = scmp.lt.s32.totalorder %s257_s10, %s257_s10 }
  0xd3   :  { %p6850_p7 = scmp.ne.s32.totalorder %s257_s10, %s6849_s22  ;;  %p6855_p9 = scmp.lt.s32.totalorder %s6849_s22, %s6849_s22 }
  0xd5   :  { %p6856_p10 = por %p6855_p9, %p6854_p8 }
  0xd7   :  { %p6857_p11 = pnand %p6856_p10, %p6850_p7 }
  0xd9   :  { %6860 = shalt.err (!%p6857_p11)
}
  0xda   :  { %259 = dma.hbm_to_vmem [thread:$0]  %s8074_s14, 32, %s257_s10, [#allocation18]  }
  0xdb   :  { %s7971_s23 = smov [#allocation20]   ;;  %s7972_s26 = smov [#allocation23]  }
  0xdc   :  { %s280_s3 = sshll.u32 %s7971_s23, 4  ;;  %s300_s28 = sshll.u32 %s7972_s26, 4  ;;  %s281_s3 = int_to_ptr.vmem [resolvable:$true] %s280_s3  ;;  %s301_s28 = int_to_ptr.vmem [resolvable:$true] %s300_s28 }
  0xdd   :  { %s6861_s1 = scalar_lea.hbm %s8094_s6, 32 }
  0xde   :  { %p6862_p12 = scmp.ne.s32.totalorder %s8094_s6, %s6861_s1  ;;  %p6865_p13 = scmp.lt.u32.totalorder %s6861_s1, %s8094_s6 }
  0xe0   :  { %p6867_p0 = pnand %p6865_p13, %p6862_p12 }
  0xe2   :  { %6870 = shalt.err (!%p6867_p0)
}
  0xe3   :  { %s6871_s9 = scalar_lea.vmem %s281_s3, 32  ;;  %p6876_p2 = scmp.lt.s32.totalorder %s281_s3, %s281_s3 }
  0xe4   :  { %p6872_p1 = scmp.ne.s32.totalorder %s281_s3, %s6871_s9  ;;  %p6877_p3 = scmp.lt.s32.totalorder %s6871_s9, %s6871_s9 }
  0xe6   :  { %p6878_p4 = por %p6877_p3, %p6876_p2 }
  0xe8   :  { %p6879_p5 = pnand %p6878_p4, %p6872_p1 }
  0xea   :  { %6882 = shalt.err (!%p6879_p5)
}
  0xeb   :  { %283 = dma.hbm_to_vmem [thread:$0]  %s8094_s6, 32, %s281_s3, [#allocation21]  }
  0xec   :  { %s6883_s14 = scalar_lea.hbm %s8104_s20, 32 }
  0xed   :  { %p6884_p6 = scmp.ne.s32.totalorder %s8104_s20, %s6883_s14  ;;  %p6887_p7 = scmp.lt.u32.totalorder %s6883_s14, %s8104_s20 }
  0xef   :  { %p6889_p8 = pnand %p6887_p7, %p6884_p6 }
  0xf1   :  { %6892 = shalt.err (!%p6889_p8)
}
  0xf2   :  { %s6893_s2 = scalar_lea.vmem %s301_s28, 32  ;;  %p6898_p10 = scmp.lt.s32.totalorder %s301_s28, %s301_s28 }
  0xf3   :  { %p6894_p9 = scmp.ne.s32.totalorder %s301_s28, %s6893_s2  ;;  %p6899_p11 = scmp.lt.s32.totalorder %s6893_s2, %s6893_s2 }
  0xf5   :  { %p6900_p12 = por %p6899_p11, %p6898_p10 }
  0xf7   :  { %p6901_p13 = pnand %p6900_p12, %p6894_p9 }
  0xf9   :  { %6904 = shalt.err (!%p6901_p13)
}
  0xfa   :  { %303 = dma.hbm_to_vmem [thread:$0]  %s8104_s20, 32, %s301_s28, [#allocation24]  }
  0xfb   :  { %s7973_s0 = smov [#allocation26]   ;;  %s7974_s17 = smov [#allocation29]  }
  0xfc   :  { %s322_s6 = sshll.u32 %s7973_s0, 4  ;;  %s342_s7 = sshll.u32 %s7974_s17, 4  ;;  %s323_s6 = int_to_ptr.vmem [resolvable:$true] %s322_s6  ;;  %s343_s7 = int_to_ptr.vmem [resolvable:$true] %s342_s7 }
  0xfd   :  { %s6905_s10 = scalar_lea.hbm %s8114_s4, 32 }
  0xfe   :  { %p6906_p0 = scmp.ne.s32.totalorder %s8114_s4, %s6905_s10  ;;  %p6909_p1 = scmp.lt.u32.totalorder %s6905_s10, %s8114_s4 }
 0x100   :  { %p6911_p2 = pnand %p6909_p1, %p6906_p0 }
 0x102   :  { %6914 = shalt.err (!%p6911_p2)
}
 0x103   :  { %s6915_s11 = scalar_lea.vmem %s323_s6, 32  ;;  %p6920_p4 = scmp.lt.s32.totalorder %s323_s6, %s323_s6 }
 0x104   :  { %p6916_p3 = scmp.ne.s32.totalorder %s323_s6, %s6915_s11  ;;  %p6921_p5 = scmp.lt.s32.totalorder %s6915_s11, %s6915_s11 }
 0x106   :  { %p6922_p6 = por %p6921_p5, %p6920_p4 }
 0x108   :  { %p6923_p7 = pnand %p6922_p6, %p6916_p3 }
 0x10a   :  { %6926 = shalt.err (!%p6923_p7)
}
 0x10b   :  { %325 = dma.hbm_to_vmem [thread:$0]  %s8114_s4, 32, %s323_s6, [#allocation27]  }
 0x10c   :  { %s6927_s20 = scalar_lea.hbm %s8124_s24, 32 }
 0x10d   :  { %p6928_p8 = scmp.ne.s32.totalorder %s8124_s24, %s6927_s20  ;;  %p6931_p9 = scmp.lt.u32.totalorder %s6927_s20, %s8124_s24 }
 0x10f   :  { %p6933_p10 = pnand %p6931_p9, %p6928_p8 }
 0x111   :  { %6936 = shalt.err (!%p6933_p10)
}
 0x112   :  { %s6937_s18 = scalar_lea.vmem %s343_s7, 32  ;;  %p6942_p12 = scmp.lt.s32.totalorder %s343_s7, %s343_s7 }
 0x113   :  { %p6938_p11 = scmp.ne.s32.totalorder %s343_s7, %s6937_s18  ;;  %p6943_p13 = scmp.lt.s32.totalorder %s6937_s18, %s6937_s18 }
 0x115   :  { %p6944_p0 = por %p6943_p13, %p6942_p12 }
 0x117   :  { %p6945_p1 = pnand %p6944_p0, %p6938_p11 }
 0x119   :  { %6948 = shalt.err (!%p6945_p1)
}
 0x11a   :  { %345 = dma.hbm_to_vmem [thread:$0]  %s8124_s24, 32, %s343_s7, [#allocation30]  }
 0x11b   :  { %s7975_s25 = smov [#allocation32]   ;;  %s7976_s22 = smov [#allocation35]  }
 0x11c   :  { %s368_s4 = sshll.u32 %s7975_s25, 4  ;;  %s388_s23 = sshll.u32 %s7976_s22, 4  ;;  %s369_s4 = int_to_ptr.vmem [resolvable:$true] %s368_s4  ;;  %s389_s23 = int_to_ptr.vmem [resolvable:$true] %s388_s23 }
 0x11d   :  { %s6949_s3 = scalar_lea.hbm %s8149_s27, 48 }
 0x11e   :  { %p6950_p2 = scmp.ne.s32.totalorder %s8149_s27, %s6949_s3  ;;  %p6953_p3 = scmp.lt.u32.totalorder %s6949_s3, %s8149_s27 }
 0x120   :  { %p6955_p4 = pnand %p6953_p3, %p6950_p2 }
 0x122   :  { %6958 = shalt.err (!%p6955_p4)
}
 0x123   :  { %s6959_s26 = scalar_lea.vmem %s369_s4, 48  ;;  %s6963_s28 = scalar_lea.vmem %s369_s4, 64 }
 0x124   :  { %p6960_p5 = scmp.ne.s32.totalorder %s369_s4, %s6959_s26  ;;  %p6964_p6 = scmp.lt.s32.totalorder %s369_s4, %s369_s4 }
 0x125   :  { %p6965_p7 = scmp.lt.s32.totalorder %s6963_s28, %s6959_s26 }
 0x127   :  { %p6966_p8 = por %p6965_p7, %p6964_p6 }
 0x129   :  { %p6967_p9 = pnand %p6966_p8, %p6960_p5 }
 0x12b   :  { %6970 = shalt.err (!%p6967_p9)
}
 0x12c   :  { %371 = dma.hbm_to_vmem [thread:$0]  %s8149_s27, 48, %s369_s4, [#allocation33]  }
 0x12d   :  { %s6971_s24 = scalar_lea.hbm %s8159_s30, 48 }
 0x12e   :  { %p6972_p10 = scmp.ne.s32.totalorder %s8159_s30, %s6971_s24  ;;  %p6975_p11 = scmp.lt.u32.totalorder %s6971_s24, %s8159_s30 }
 0x130   :  { %p6977_p12 = pnand %p6975_p11, %p6972_p10 }
 0x132   :  { %6980 = shalt.err (!%p6977_p12)
}
 0x133   :  { %s6981_s1 = scalar_lea.vmem %s389_s23, 48  ;;  %s6985_s9 = scalar_lea.vmem %s389_s23, 64 }
 0x134   :  { %p6982_p13 = scmp.ne.s32.totalorder %s389_s23, %s6981_s1  ;;  %p6986_p0 = scmp.lt.s32.totalorder %s389_s23, %s389_s23 }
 0x135   :  { %p6987_p1 = scmp.lt.s32.totalorder %s6985_s9, %s6981_s1 }
 0x137   :  { %p6988_p2 = por %p6987_p1, %p6986_p0 }
 0x139   :  { %p6989_p3 = pnand %p6988_p2, %p6982_p13 }
 0x13b   :  { %6992 = shalt.err (!%p6989_p3)
}
 0x13c   :  { %391 = dma.hbm_to_vmem [thread:$0]  %s8159_s30, 48, %s389_s23, [#allocation36]  }
 0x13d   :  { %s7977_s27 = smov [#allocation38]   ;;  %s7978_s2 = smov [#allocation41]  }
 0x13e   :  { %s410_s14 = sshll.u32 %s7977_s27, 4  ;;  %s432_s0 = sshll.u32 %s7978_s2, 4  ;;  %s411_s14 = int_to_ptr.vmem [resolvable:$true] %s410_s14  ;;  %s433_s0 = int_to_ptr.vmem [resolvable:$true] %s432_s0 }
 0x13f   :  { %s6993_s6 = scalar_lea.hbm %s8174_s12, 48 }
 0x140   :  { %p6994_p4 = scmp.ne.s32.totalorder %s8174_s12, %s6993_s6  ;;  %p6997_p5 = scmp.lt.u32.totalorder %s6993_s6, %s8174_s12 }
 0x142   :  { %p6999_p6 = pnand %p6997_p5, %p6994_p4 }
 0x144   :  { %7002 = shalt.err (!%p6999_p6)
}
 0x145   :  { %s7003_s17 = scalar_lea.vmem %s411_s14, 48  ;;  %s7007_s7 = scalar_lea.vmem %s411_s14, 64 }
 0x146   :  { %p7004_p7 = scmp.ne.s32.totalorder %s411_s14, %s7003_s17  ;;  %p7008_p8 = scmp.lt.s32.totalorder %s411_s14, %s411_s14 }
 0x147   :  { %p7009_p9 = scmp.lt.s32.totalorder %s7007_s7, %s7003_s17 }
 0x149   :  { %p7010_p10 = por %p7009_p9, %p7008_p8 }
 0x14b   :  { %p7011_p11 = pnand %p7010_p10, %p7004_p7 }
 0x14d   :  { %7014 = shalt.err (!%p7011_p11)
}
 0x14e   :  { %413 = dma.hbm_to_vmem [thread:$0]  %s8174_s12, 48, %s411_s14, [#allocation39]  }
 0x14f   :  { %s7015_s30 = scalar_lea.hbm %s8189_s8, 32 }
 0x150   :  { %p7016_p12 = scmp.ne.s32.totalorder %s8189_s8, %s7015_s30  ;;  %p7019_p13 = scmp.lt.u32.totalorder %s7015_s30, %s8189_s8 }
 0x152   :  { %p7021_p0 = pnand %p7019_p13, %p7016_p12 }
 0x154   :  { %7024 = shalt.err (!%p7021_p0)
}
 0x155   :  { %s7025_s10 = scalar_lea.vmem %s433_s0, 32  ;;  %p7030_p2 = scmp.lt.s32.totalorder %s433_s0, %s433_s0 }
 0x156   :  { %p7026_p1 = scmp.ne.s32.totalorder %s433_s0, %s7025_s10  ;;  %p7031_p3 = scmp.lt.s32.totalorder %s7025_s10, %s7025_s10 }
 0x158   :  { %p7032_p4 = por %p7031_p3, %p7030_p2 }
 0x15a   :  { %p7033_p5 = pnand %p7032_p4, %p7026_p1 }
 0x15c   :  { %7036 = shalt.err (!%p7033_p5)
}
 0x15d   :  { %435 = dma.hbm_to_vmem [thread:$0]  %s8189_s8, 32, %s433_s0, [#allocation42]  }
 0x15e   :  { %s7979_s11 = smov [#allocation44]   ;;  %s7980_s20 = smov [#allocation47]  }
 0x15f   :  { %s452_s12 = sshll.u32 %s7979_s11, 4  ;;  %s474_s18 = sshll.u32 %s7980_s20, 4  ;;  %s453_s12 = int_to_ptr.vmem [resolvable:$true] %s452_s12  ;;  %s475_s18 = int_to_ptr.vmem [resolvable:$true] %s474_s18 }
 0x160   :  { %s7037_s25 = scalar_lea.hbm %s8199_s29, 32 }
 0x161   :  { %p7038_p6 = scmp.ne.s32.totalorder %s8199_s29, %s7037_s25  ;;  %p7041_p7 = scmp.lt.u32.totalorder %s7037_s25, %s8199_s29 }
 0x163   :  { %p7043_p8 = pnand %p7041_p7, %p7038_p6 }
 0x165   :  { %7046 = shalt.err (!%p7043_p8)
}
 0x166   :  { %s7047_s4 = scalar_lea.vmem %s453_s12, 32  ;;  %p7052_p10 = scmp.lt.s32.totalorder %s453_s12, %s453_s12 }
 0x167   :  { %p7048_p9 = scmp.ne.s32.totalorder %s453_s12, %s7047_s4  ;;  %p7053_p11 = scmp.lt.s32.totalorder %s7047_s4, %s7047_s4 }
 0x169   :  { %p7054_p12 = por %p7053_p11, %p7052_p10 }
 0x16b   :  { %p7055_p13 = pnand %p7054_p12, %p7048_p9 }
 0x16d   :  { %7058 = shalt.err (!%p7055_p13)
}
 0x16e   :  { %s9955_s22 = sld [smem:[#allocation127_spill]] }
 0x16f   :  { %455 = dma.hbm_to_vmem [thread:$0]  %s8199_s29, 32, %s453_s12, [#allocation45]  }
 0x174   :  { %s7059_s8 = scalar_lea.hbm %s9955_s22, 32 }
 0x175   :  { %p7060_p0 = scmp.ne.s32.totalorder %s9955_s22, %s7059_s8  ;;  %p7063_p1 = scmp.lt.u32.totalorder %s7059_s8, %s9955_s22 }
 0x177   :  { %p7065_p2 = pnand %p7063_p1, %p7060_p0 }
 0x179   :  { %7068 = shalt.err (!%p7065_p2)
}
 0x17a   :  { %s7069_s23 = scalar_lea.vmem %s475_s18, 32  ;;  %p7074_p4 = scmp.lt.s32.totalorder %s475_s18, %s475_s18 }
 0x17b   :  { %p7070_p3 = scmp.ne.s32.totalorder %s475_s18, %s7069_s23  ;;  %p7075_p5 = scmp.lt.s32.totalorder %s7069_s23, %s7069_s23 }
 0x17d   :  { %p7076_p6 = por %p7075_p5, %p7074_p4 }
 0x17f   :  { %p7077_p7 = pnand %p7076_p6, %p7070_p3 }
 0x181   :  { %7080 = shalt.err (!%p7077_p7)
}
 0x182   :  { %s9956_s3 = sld [smem:[#allocation130_spill]]  ;;  %s7981_s26 = smov [#allocation50]  }
 0x183   :  { %477 = dma.hbm_to_vmem [thread:$0]  %s9955_s22, 32, %s475_s18, [#allocation48]  }
 0x184   :  { %s496_s29 = sshll.u32 %s7981_s26, 4  ;;  %s7982_s28 = smov [#allocation53]   ;;  %s497_s29 = int_to_ptr.vmem [resolvable:$true] %s496_s29 }
 0x185   :  { %s520_s24 = sshll.u32 %s7982_s28, 4  ;;  %s521_s24 = int_to_ptr.vmem [resolvable:$true] %s520_s24 }
 0x188   :  { %s7081_s1 = scalar_lea.hbm %s9956_s3, 32 }
 0x189   :  { %p7082_p8 = scmp.ne.s32.totalorder %s9956_s3, %s7081_s1  ;;  %p7085_p9 = scmp.lt.u32.totalorder %s7081_s1, %s9956_s3 }
 0x18b   :  { %p7087_p10 = pnand %p7085_p9, %p7082_p8 }
 0x18d   :  { %7090 = shalt.err (!%p7087_p10)
}
 0x18e   :  { %s7091_s9 = scalar_lea.vmem %s497_s29, 32  ;;  %p7096_p12 = scmp.lt.s32.totalorder %s497_s29, %s497_s29 }
 0x18f   :  { %p7092_p11 = scmp.ne.s32.totalorder %s497_s29, %s7091_s9  ;;  %p7097_p13 = scmp.lt.s32.totalorder %s7091_s9, %s7091_s9 }
 0x191   :  { %p7098_p0 = por %p7097_p13, %p7096_p12 }
 0x193   :  { %p7099_p1 = pnand %p7098_p0, %p7092_p11 }
 0x195   :  { %7102 = shalt.err (!%p7099_p1)
}
 0x196   :  { %s9957_s27 = sld [smem:[#allocation133_spill]] }
 0x197   :  { %499 = dma.hbm_to_vmem [thread:$0]  %s9956_s3, 32, %s497_s29, [#allocation51]  }
 0x19c   :  { %s7103_s14 = scalar_lea.hbm %s9957_s27, 16 }
 0x19d   :  { %p7104_p2 = scmp.ne.s32.totalorder %s9957_s27, %s7103_s14  ;;  %p7107_p3 = scmp.lt.u32.totalorder %s7103_s14, %s9957_s27 }
 0x19f   :  { %p7109_p4 = pnand %p7107_p3, %p7104_p2 }
 0x1a1   :  { %7112 = shalt.err (!%p7109_p4)
}
 0x1a2   :  { %s7113_s2 = scalar_lea.vmem %s521_s24, 16  ;;  %s7117_s0 = scalar_lea.vmem %s521_s24, 32 }
 0x1a3   :  { %p7114_p5 = scmp.ne.s32.totalorder %s521_s24, %s7113_s2  ;;  %p7118_p6 = scmp.lt.s32.totalorder %s521_s24, %s521_s24 }
 0x1a4   :  { %p7119_p7 = scmp.lt.s32.totalorder %s7117_s0, %s7113_s2 }
 0x1a6   :  { %p7120_p8 = por %p7119_p7, %p7118_p6 }
 0x1a8   :  { %p7121_p9 = pnand %p7120_p8, %p7114_p5 }
 0x1aa   :  { %7124 = shalt.err (!%p7121_p9)
}
 0x1ab   :  { %s9958_s6 = sld [smem:[#allocation136_spill]]  ;;  %s7983_s17 = smov [#allocation56]  }
 0x1ac   :  { %523 = dma.hbm_to_vmem [thread:$0]  %s9957_s27, 16, %s521_s24, [#allocation54]  }
 0x1ad   :  { %s542_s7 = sshll.u32 %s7983_s17, 4  ;;  %s7984_s30 = smov [#allocation59]   ;;  %s543_s7 = int_to_ptr.vmem [resolvable:$true] %s542_s7 }
 0x1ae   :  { %s562_s10 = sshll.u32 %s7984_s30, 4  ;;  %s563_s10 = int_to_ptr.vmem [resolvable:$true] %s562_s10 }
 0x1b1   :  { %s7125_s11 = scalar_lea.hbm %s9958_s6, 16 }
 0x1b2   :  { %p7126_p10 = scmp.ne.s32.totalorder %s9958_s6, %s7125_s11  ;;  %p7129_p11 = scmp.lt.u32.totalorder %s7125_s11, %s9958_s6 }
 0x1b4   :  { %p7131_p12 = pnand %p7129_p11, %p7126_p10 }
 0x1b6   :  { %7134 = shalt.err (!%p7131_p12)
}
 0x1b7   :  { %s7135_s12 = scalar_lea.vmem %s543_s7, 16  ;;  %s7139_s20 = scalar_lea.vmem %s543_s7, 32 }
 0x1b8   :  { %p7136_p13 = scmp.ne.s32.totalorder %s543_s7, %s7135_s12  ;;  %p7140_p0 = scmp.lt.s32.totalorder %s543_s7, %s543_s7 }
 0x1b9   :  { %p7141_p1 = scmp.lt.s32.totalorder %s7139_s20, %s7135_s12 }
 0x1bb   :  { %p7142_p2 = por %p7141_p1, %p7140_p0 }
 0x1bd   :  { %p7143_p3 = pnand %p7142_p2, %p7136_p13 }
 0x1bf   :  { %7146 = shalt.err (!%p7143_p3)
}
 0x1c0   :  { %s9959_s18 = sld [smem:[#allocation138_spill]] }
 0x1c1   :  { %545 = dma.hbm_to_vmem [thread:$0]  %s9958_s6, 16, %s543_s7, [#allocation57]  }
 0x1c6   :  { %s7147_s25 = scalar_lea.hbm %s9959_s18, 16 }
 0x1c7   :  { %p7148_p4 = scmp.ne.s32.totalorder %s9959_s18, %s7147_s25  ;;  %p7151_p5 = scmp.lt.u32.totalorder %s7147_s25, %s9959_s18 }
 0x1c9   :  { %p7153_p6 = pnand %p7151_p5, %p7148_p4 }
 0x1cb   :  { %7156 = shalt.err (!%p7153_p6)
}
 0x1cc   :  { %s7157_s4 = scalar_lea.vmem %s563_s10, 16  ;;  %s7161_s22 = scalar_lea.vmem %s563_s10, 32 }
 0x1cd   :  { %p7158_p7 = scmp.ne.s32.totalorder %s563_s10, %s7157_s4  ;;  %p7162_p8 = scmp.lt.s32.totalorder %s563_s10, %s563_s10 }
 0x1ce   :  { %p7163_p9 = scmp.lt.s32.totalorder %s7161_s22, %s7157_s4 }
 0x1d0   :  { %p7164_p10 = por %p7163_p9, %p7162_p8 }
 0x1d2   :  { %p7165_p11 = pnand %p7164_p10, %p7158_p7 }
 0x1d4   :  { %7168 = shalt.err (!%p7165_p11)
}
 0x1d5   :  { %s9960_s8 = sld [smem:[#allocation140_spill]]  ;;  %s7985_s23 = smov [#allocation62]  }
 0x1d6   :  { %565 = dma.hbm_to_vmem [thread:$0]  %s9959_s18, 16, %s563_s10, [#allocation60]  }
 0x1d7   :  { %s584_s3 = sshll.u32 %s7985_s23, 4  ;;  %s7986_s26 = smov [#allocation65]   ;;  %s585_s3 = int_to_ptr.vmem [resolvable:$true] %s584_s3 }
 0x1d8   :  { %s606_s29 = sshll.u32 %s7986_s26, 4  ;;  %s607_s29 = int_to_ptr.vmem [resolvable:$true] %s606_s29 }
 0x1db   :  { %s7169_s28 = scalar_lea.hbm %s9960_s8, 16 }
 0x1dc   :  { %p7170_p12 = scmp.ne.s32.totalorder %s9960_s8, %s7169_s28  ;;  %p7173_p13 = scmp.lt.u32.totalorder %s7169_s28, %s9960_s8 }
 0x1de   :  { %p7175_p0 = pnand %p7173_p13, %p7170_p12 }
 0x1e0   :  { %7178 = shalt.err (!%p7175_p0)
}
 0x1e1   :  { %s7179_s24 = scalar_lea.vmem %s585_s3, 16  ;;  %s7183_s1 = scalar_lea.vmem %s585_s3, 32 }
 0x1e2   :  { %p7180_p1 = scmp.ne.s32.totalorder %s585_s3, %s7179_s24  ;;  %p7184_p2 = scmp.lt.s32.totalorder %s585_s3, %s585_s3 }
 0x1e3   :  { %p7185_p3 = scmp.lt.s32.totalorder %s7183_s1, %s7179_s24 }
 0x1e5   :  { %p7186_p4 = por %p7185_p3, %p7184_p2 }
 0x1e7   :  { %p7187_p5 = pnand %p7186_p4, %p7180_p1 }
 0x1e9   :  { %7190 = shalt.err (!%p7187_p5)
}
 0x1ea   :  { %s9961_s9 = sld [smem:[#allocation142_spill]] }
 0x1eb   :  { %587 = dma.hbm_to_vmem [thread:$0]  %s9960_s8, 16, %s585_s3, [#allocation63]  }
 0x1f0   :  { %s7191_s27 = scalar_lea.hbm %s9961_s9, 16 }
 0x1f1   :  { %p7192_p6 = scmp.ne.s32.totalorder %s9961_s9, %s7191_s27  ;;  %p7195_p7 = scmp.lt.u32.totalorder %s7191_s27, %s9961_s9 }
 0x1f3   :  { %p7197_p8 = pnand %p7195_p7, %p7192_p6 }
 0x1f5   :  { %7200 = shalt.err (!%p7197_p8)
}
 0x1f6   :  { %s7201_s14 = scalar_lea.vmem %s607_s29, 16  ;;  %s7205_s2 = scalar_lea.vmem %s607_s29, 32 }
 0x1f7   :  { %p7202_p9 = scmp.ne.s32.totalorder %s607_s29, %s7201_s14  ;;  %p7206_p10 = scmp.lt.s32.totalorder %s607_s29, %s607_s29 }
 0x1f8   :  { %p7207_p11 = scmp.lt.s32.totalorder %s7205_s2, %s7201_s14 }
 0x1fa   :  { %p7208_p12 = por %p7207_p11, %p7206_p10 }
 0x1fc   :  { %p7209_p13 = pnand %p7208_p12, %p7202_p9 }
 0x1fe   :  { %7212 = shalt.err (!%p7209_p13)
}
 0x1ff   :  { %s9962_s0 = sld [smem:[#allocation144_spill]]  ;;  %s7987_s6 = smov [#allocation68]  }
 0x200   :  { %609 = dma.hbm_to_vmem [thread:$0]  %s9961_s9, 16, %s607_s29, [#allocation66]  }
 0x201   :  { %s626_s17 = sshll.u32 %s7987_s6, 4  ;;  %s7988_s7 = smov [#allocation71]   ;;  %s627_s17 = int_to_ptr.vmem [resolvable:$true] %s626_s17 }
 0x202   :  { %s648_s30 = sshll.u32 %s7988_s7, 4  ;;  %s649_s30 = int_to_ptr.vmem [resolvable:$true] %s648_s30 }
 0x205   :  { %s7213_s10 = scalar_lea.hbm %s9962_s0, 16 }
 0x206   :  { %p7214_p0 = scmp.ne.s32.totalorder %s9962_s0, %s7213_s10  ;;  %p7217_p1 = scmp.lt.u32.totalorder %s7213_s10, %s9962_s0 }
 0x208   :  { %p7219_p2 = pnand %p7217_p1, %p7214_p0 }
 0x20a   :  { %7222 = shalt.err (!%p7219_p2)
}
 0x20b   :  { %s7223_s11 = scalar_lea.vmem %s627_s17, 16  ;;  %s7227_s12 = scalar_lea.vmem %s627_s17, 32 }
 0x20c   :  { %p7224_p3 = scmp.ne.s32.totalorder %s627_s17, %s7223_s11  ;;  %p7228_p4 = scmp.lt.s32.totalorder %s627_s17, %s627_s17 }
 0x20d   :  { %p7229_p5 = scmp.lt.s32.totalorder %s7227_s12, %s7223_s11 }
 0x20f   :  { %p7230_p6 = por %p7229_p5, %p7228_p4 }
 0x211   :  { %p7231_p7 = pnand %p7230_p6, %p7224_p3 }
 0x213   :  { %7234 = shalt.err (!%p7231_p7)
}
 0x214   :  { %s9963_s20 = sld [smem:[#allocation146_spill]] }
 0x215   :  { %629 = dma.hbm_to_vmem [thread:$0]  %s9962_s0, 16, %s627_s17, [#allocation69]  }
 0x21a   :  { %s7235_s18 = scalar_lea.hbm %s9963_s20, 16 }
 0x21b   :  { %p7236_p8 = scmp.ne.s32.totalorder %s9963_s20, %s7235_s18  ;;  %p7239_p9 = scmp.lt.u32.totalorder %s7235_s18, %s9963_s20 }
 0x21d   :  { %p7241_p10 = pnand %p7239_p9, %p7236_p8 }
 0x21f   :  { %7244 = shalt.err (!%p7241_p10)
}
 0x220   :  { %s7245_s25 = scalar_lea.vmem %s649_s30, 16  ;;  %s7249_s4 = scalar_lea.vmem %s649_s30, 32 }
 0x221   :  { %p7246_p11 = scmp.ne.s32.totalorder %s649_s30, %s7245_s25  ;;  %p7250_p12 = scmp.lt.s32.totalorder %s649_s30, %s649_s30 }
 0x222   :  { %p7251_p13 = scmp.lt.s32.totalorder %s7249_s4, %s7245_s25 }
 0x224   :  { %p7252_p0 = por %p7251_p13, %p7250_p12 }
 0x226   :  { %p7253_p1 = pnand %p7252_p0, %p7246_p11 }
 0x228   :  { %7256 = shalt.err (!%p7253_p1)
}
 0x229   :  { %651 = dma.hbm_to_vmem [thread:$0]  %s9963_s20, 16, %s649_s30, [#allocation72]  }
 0x22a   :  { %s7989_s22 = smov [#allocation74]   ;;  %s7990_s23 = smov [#allocation2]  }
 0x22b   :  { %s668_s8 = sshll.u32 %s7989_s22, 4  ;;  %s160_s3 = sshll.u32 %s7990_s23, 4  ;;  %s669_s8 = int_to_ptr.vmem [resolvable:$true] %s668_s8  ;;  %s161_s3 = int_to_ptr.vmem [resolvable:$true] %s160_s3 }
 0x22c   :  { %s7257_s26 = scalar_lea.hbm %s8319_s5, 16 }
 0x22d   :  { %p7258_p2 = scmp.ne.s32.totalorder %s8319_s5, %s7257_s26  ;;  %p7261_p3 = scmp.lt.u32.totalorder %s7257_s26, %s8319_s5 }
 0x22f   :  { %p7263_p4 = pnand %p7261_p3, %p7258_p2 }
 0x231   :  { %7266 = shalt.err (!%p7263_p4)
}
 0x232   :  { %s7267_s29 = scalar_lea.vmem %s669_s8, 16  ;;  %s7271_s28 = scalar_lea.vmem %s669_s8, 32 }
 0x233   :  { %p7268_p5 = scmp.ne.s32.totalorder %s669_s8, %s7267_s29  ;;  %p7272_p6 = scmp.lt.s32.totalorder %s669_s8, %s669_s8 }
 0x234   :  { %p7273_p7 = scmp.lt.s32.totalorder %s7271_s28, %s7267_s29 }
 0x236   :  { %p7274_p8 = por %p7273_p7, %p7272_p6 }
 0x238   :  { %p7275_p9 = pnand %p7274_p8, %p7268_p5 }
 0x23a   :  { %7278 = shalt.err (!%p7275_p9)
}
 0x23b   :  { %s9964_s24 = sld [smem:[#allocation104_spill]] }
 0x23c   :  { %671 = dma.hbm_to_vmem [thread:$0]  %s8319_s5, 16, %s669_s8, [#allocation75]  }
 0x241   :  { %s7279_s1 = scalar_lea.hbm %s9964_s24, 128 }
 0x242   :  { %p7280_p10 = scmp.ne.s32.totalorder %s9964_s24, %s7279_s1  ;;  %p7283_p11 = scmp.lt.u32.totalorder %s7279_s1, %s9964_s24 }
 0x244   :  { %p7285_p12 = pnand %p7283_p11, %p7280_p10 }
 0x246   :  { %7288 = shalt.err (!%p7285_p12)
}
 0x247   :  { %s7289_s9 = scalar_lea.vmem %s161_s3, 128  ;;  %p7294_p0 = scmp.lt.s32.totalorder %s161_s3, %s161_s3 }
 0x248   :  { %p7290_p13 = scmp.ne.s32.totalorder %s161_s3, %s7289_s9  ;;  %p7295_p1 = scmp.lt.s32.totalorder %s7289_s9, %s7289_s9 }
 0x24a   :  { %p7296_p2 = por %p7295_p1, %p7294_p0 }
 0x24c   :  { %p7297_p3 = pnand %p7296_p2, %p7290_p13 }
 0x24e   :  { %7300 = shalt.err (!%p7297_p3)
}
 0x24f   :  { %s9965_s27 = sld [smem:[#allocation105_spill]]  ;;  %s7991_s14 = smov [#allocation7]  }
 0x250   :  { %163 = dma.hbm_to_vmem [thread:$0]  %s9964_s24, 128, %s161_s3, [#allocation3]  }
 0x251   :  { %s182_s5 = sshll.u32 %s7991_s14, 4  ;;  %s7992_s2 = smov [#allocation10]   ;;  %s183_s5 = int_to_ptr.vmem [resolvable:$true] %s182_s5 }
 0x252   :  { %s204_s0 = sshll.u32 %s7992_s2, 4  ;;  %s205_s0 = int_to_ptr.vmem [resolvable:$true] %s204_s0 }
 0x255   :  { %s7301_s6 = scalar_lea.hbm %s9965_s27, 32 }
 0x256   :  { %p7302_p4 = scmp.ne.s32.totalorder %s9965_s27, %s7301_s6  ;;  %p7305_p5 = scmp.lt.u32.totalorder %s7301_s6, %s9965_s27 }
 0x258   :  { %p7307_p6 = pnand %p7305_p5, %p7302_p4 }
 0x25a   :  { %7310 = shalt.err (!%p7307_p6)
}
 0x25b   :  { %s7311_s17 = scalar_lea.vmem %s183_s5, 32  ;;  %p7316_p8 = scmp.lt.s32.totalorder %s183_s5, %s183_s5 }
 0x25c   :  { %p7312_p7 = scmp.ne.s32.totalorder %s183_s5, %s7311_s17  ;;  %p7317_p9 = scmp.lt.s32.totalorder %s7311_s17, %s7311_s17 }
 0x25e   :  { %p7318_p10 = por %p7317_p9, %p7316_p8 }
 0x260   :  { %p7319_p11 = pnand %p7318_p10, %p7312_p7 }
 0x262   :  { %7322 = shalt.err (!%p7319_p11)
}
 0x263   :  { %s9966_s7 = sld [smem:[#allocation106_spill]] }
 0x264   :  { %185 = dma.hbm_to_vmem [thread:$0]  %s9965_s27, 32, %s183_s5, [#allocation6]  }
 0x269   :  { %s7323_s30 = scalar_lea.hbm %s9966_s7, 32 }
 0x26a   :  { %p7324_p12 = scmp.ne.s32.totalorder %s9966_s7, %s7323_s30  ;;  %p7327_p13 = scmp.lt.u32.totalorder %s7323_s30, %s9966_s7 }
 0x26c   :  { %p7329_p0 = pnand %p7327_p13, %p7324_p12 }
 0x26e   :  { %7332 = shalt.err (!%p7329_p0)
}
 0x26f   :  { %s7333_s10 = scalar_lea.vmem %s205_s0, 32  ;;  %p7338_p2 = scmp.lt.s32.totalorder %s205_s0, %s205_s0 }
 0x270   :  { %p7334_p1 = scmp.ne.s32.totalorder %s205_s0, %s7333_s10  ;;  %p7339_p3 = scmp.lt.s32.totalorder %s7333_s10, %s7333_s10 }
 0x272   :  { %p7340_p4 = por %p7339_p3, %p7338_p2 }
 0x274   :  { %p7341_p5 = pnand %p7340_p4, %p7334_p1 }
 0x276   :  { %7344 = shalt.err (!%p7341_p5)
}
 0x277   :  { %s9967_s11 = sld [smem:[#allocation107_spill]]  ;;  %s7993_s12 = smov [#allocation13]  }
 0x278   :  { %207 = dma.hbm_to_vmem [thread:$0]  %s9966_s7, 32, %s205_s0, [#allocation9]  }
 0x279   :  { %s224_s20 = sshll.u32 %s7993_s12, 4  ;;  %s7994_s18 = smov [#allocation16]   ;;  %s225_s20 = int_to_ptr.vmem [resolvable:$true] %s224_s20 }
 0x27a   :  { %s246_s25 = sshll.u32 %s7994_s18, 4  ;;  %s247_s25 = int_to_ptr.vmem [resolvable:$true] %s246_s25 }
 0x27d   :  { %s7345_s4 = scalar_lea.hbm %s9967_s11, 32 }
 0x27e   :  { %p7346_p6 = scmp.ne.s32.totalorder %s9967_s11, %s7345_s4  ;;  %p7349_p7 = scmp.lt.u32.totalorder %s7345_s4, %s9967_s11 }
 0x280   :  { %p7351_p8 = pnand %p7349_p7, %p7346_p6 }
 0x282   :  { %7354 = shalt.err (!%p7351_p8)
}
 0x283   :  { %s7355_s22 = scalar_lea.vmem %s225_s20, 32  ;;  %p7360_p10 = scmp.lt.s32.totalorder %s225_s20, %s225_s20 }
 0x284   :  { %p7356_p9 = scmp.ne.s32.totalorder %s225_s20, %s7355_s22  ;;  %p7361_p11 = scmp.lt.s32.totalorder %s7355_s22, %s7355_s22 }
 0x286   :  { %p7362_p12 = por %p7361_p11, %p7360_p10 }
 0x288   :  { %p7363_p13 = pnand %p7362_p12, %p7356_p9 }
 0x28a   :  { %7366 = shalt.err (!%p7363_p13)
}
 0x28b   :  { %s9968_s8 = sld [smem:[#allocation108_spill]] }
 0x28c   :  { %227 = dma.hbm_to_vmem [thread:$0]  %s9967_s11, 32, %s225_s20, [#allocation12]  }
 0x291   :  { %s7367_s23 = scalar_lea.hbm %s9968_s8, 32 }
 0x292   :  { %p7368_p0 = scmp.ne.s32.totalorder %s9968_s8, %s7367_s23  ;;  %p7371_p1 = scmp.lt.u32.totalorder %s7367_s23, %s9968_s8 }
 0x294   :  { %p7373_p2 = pnand %p7371_p1, %p7368_p0 }
 0x296   :  { %7376 = shalt.err (!%p7373_p2)
}
 0x297   :  { %s7377_s3 = scalar_lea.vmem %s247_s25, 32  ;;  %p7382_p4 = scmp.lt.s32.totalorder %s247_s25, %s247_s25 }
 0x298   :  { %p7378_p3 = scmp.ne.s32.totalorder %s247_s25, %s7377_s3  ;;  %p7383_p5 = scmp.lt.s32.totalorder %s7377_s3, %s7377_s3 }
 0x29a   :  { %p7384_p6 = por %p7383_p5, %p7382_p4 }
 0x29c   :  { %p7385_p7 = pnand %p7384_p6, %p7378_p3 }
 0x29e   :  { %7388 = shalt.err (!%p7385_p7)
}
 0x29f   :  { %s9969_s26 = sld [smem:[#allocation109_spill]]  ;;  %s7995_s29 = smov [#allocation19]  }
 0x2a0   :  { %249 = dma.hbm_to_vmem [thread:$0]  %s9968_s8, 32, %s247_s25, [#allocation15]  }
 0x2a1   :  { %s266_s28 = sshll.u32 %s7995_s29, 4  ;;  %s7996_s24 = smov [#allocation22]   ;;  %s267_s28 = int_to_ptr.vmem [resolvable:$true] %s266_s28 }
 0x2a2   :  { %s290_s1 = sshll.u32 %s7996_s24, 4  ;;  %s291_s1 = int_to_ptr.vmem [resolvable:$true] %s290_s1 }
 0x2a5   :  { %s7389_s9 = scalar_lea.hbm %s9969_s26, 32 }
 0x2a6   :  { %p7390_p8 = scmp.ne.s32.totalorder %s9969_s26, %s7389_s9  ;;  %p7393_p9 = scmp.lt.u32.totalorder %s7389_s9, %s9969_s26 }
 0x2a8   :  { %p7395_p10 = pnand %p7393_p9, %p7390_p8 }
 0x2aa   :  { %7398 = shalt.err (!%p7395_p10)
}
 0x2ab   :  { %s7399_s27 = scalar_lea.vmem %s267_s28, 32  ;;  %p7404_p12 = scmp.lt.s32.totalorder %s267_s28, %s267_s28 }
 0x2ac   :  { %p7400_p11 = scmp.ne.s32.totalorder %s267_s28, %s7399_s27  ;;  %p7405_p13 = scmp.lt.s32.totalorder %s7399_s27, %s7399_s27 }
 0x2ae   :  { %p7406_p0 = por %p7405_p13, %p7404_p12 }
 0x2b0   :  { %p7407_p1 = pnand %p7406_p0, %p7400_p11 }
 0x2b2   :  { %7410 = shalt.err (!%p7407_p1)
}
 0x2b3   :  { %s9970_s14 = sld [smem:[#allocation112_spill]] }
 0x2b4   :  { %269 = dma.hbm_to_vmem [thread:$0]  %s9969_s26, 32, %s267_s28, [#allocation18]  }
 0x2b9   :  { %s7411_s5 = scalar_lea.hbm %s9970_s14, 32 }
 0x2ba   :  { %p7412_p2 = scmp.ne.s32.totalorder %s9970_s14, %s7411_s5  ;;  %p7415_p3 = scmp.lt.u32.totalorder %s7411_s5, %s9970_s14 }
 0x2bc   :  { %p7417_p4 = pnand %p7415_p3, %p7412_p2 }
 0x2be   :  { %7420 = shalt.err (!%p7417_p4)
}
 0x2bf   :  { %s7421_s2 = scalar_lea.vmem %s291_s1, 32  ;;  %p7426_p6 = scmp.lt.s32.totalorder %s291_s1, %s291_s1 }
 0x2c0   :  { %p7422_p5 = scmp.ne.s32.totalorder %s291_s1, %s7421_s2  ;;  %p7427_p7 = scmp.lt.s32.totalorder %s7421_s2, %s7421_s2 }
 0x2c2   :  { %p7428_p8 = por %p7427_p7, %p7426_p6 }
 0x2c4   :  { %p7429_p9 = pnand %p7428_p8, %p7422_p5 }
 0x2c6   :  { %7432 = shalt.err (!%p7429_p9)
}
 0x2c7   :  { %s9971_s0 = sld [smem:[#allocation113_spill]]  ;;  %s7997_s6 = smov [#allocation25]  }
 0x2c8   :  { %293 = dma.hbm_to_vmem [thread:$0]  %s9970_s14, 32, %s291_s1, [#allocation21]  }
 0x2c9   :  { %s309_s17 = sshll.u32 %s7997_s6, 4  ;;  %s7998_s7 = smov [#allocation28]   ;;  %s310_s17 = int_to_ptr.vmem [resolvable:$true] %s309_s17 }
 0x2ca   :  { %s332_s30 = sshll.u32 %s7998_s7, 4  ;;  %s333_s30 = int_to_ptr.vmem [resolvable:$true] %s332_s30 }
 0x2cd   :  { %s7433_s10 = scalar_lea.hbm %s9971_s0, 6144 }
 0x2ce   :  { %p7434_p10 = scmp.ne.s32.totalorder %s9971_s0, %s7433_s10  ;;  %p7437_p11 = scmp.lt.u32.totalorder %s7433_s10, %s9971_s0 }
 0x2d0   :  { %p7439_p12 = pnand %p7437_p11, %p7434_p10 }
 0x2d2   :  { %7442 = shalt.err (!%p7439_p12)
}
 0x2d3   :  { %s7443_s11 = scalar_lea.vmem %s310_s17, 6144  ;;  %p7448_p0 = scmp.lt.s32.totalorder %s310_s17, %s310_s17 }
 0x2d4   :  { %p7444_p13 = scmp.ne.s32.totalorder %s310_s17, %s7443_s11  ;;  %p7449_p1 = scmp.lt.s32.totalorder %s7443_s11, %s7443_s11 }
 0x2d6   :  { %p7450_p2 = por %p7449_p1, %p7448_p0 }
 0x2d8   :  { %p7451_p3 = pnand %p7450_p2, %p7444_p13 }
 0x2da   :  { %7454 = shalt.err (!%p7451_p3)
}
 0x2db   :  { %s9972_s12 = sld [smem:[#allocation114_spill]] }
 0x2dc   :  { %315 = dma.hbm_to_vmem [thread:$0]  %s9971_s0, 6144, %s310_s17, [#allocation24], %s7965_s15, %s7965_s15, %s7966_s16  }
 0x2e1   :  { %s7455_s20 = scalar_lea.hbm %s9972_s12, 32 }
 0x2e2   :  { %p7456_p4 = scmp.ne.s32.totalorder %s9972_s12, %s7455_s20  ;;  %p7459_p5 = scmp.lt.u32.totalorder %s7455_s20, %s9972_s12 }
 0x2e4   :  { %p7461_p6 = pnand %p7459_p5, %p7456_p4 }
 0x2e6   :  { %7464 = shalt.err (!%p7461_p6)
}
 0x2e7   :  { %s7465_s18 = scalar_lea.vmem %s333_s30, 32  ;;  %p7470_p8 = scmp.lt.s32.totalorder %s333_s30, %s333_s30 }
 0x2e8   :  { %p7466_p7 = scmp.ne.s32.totalorder %s333_s30, %s7465_s18  ;;  %p7471_p9 = scmp.lt.s32.totalorder %s7465_s18, %s7465_s18 }
 0x2ea   :  { %p7472_p10 = por %p7471_p9, %p7470_p8 }
 0x2ec   :  { %p7473_p11 = pnand %p7472_p10, %p7466_p7 }
 0x2ee   :  { %7476 = shalt.err (!%p7473_p11)
}
 0x2ef   :  { %s9973_s25 = sld [smem:[#allocation116_spill]]  ;;  %s7999_s4 = smov [#allocation31]  }
 0x2f0   :  { %335 = dma.hbm_to_vmem [thread:$0]  %s9972_s12, 32, %s333_s30, [#allocation27]  }
 0x2f1   :  { %s354_s15 = sshll.u32 %s7999_s4, 4  ;;  %s8000_s16 = smov [#allocation34]   ;;  %s355_s15 = int_to_ptr.vmem [resolvable:$true] %s354_s15 }
 0x2f2   :  { %s378_s22 = sshll.u32 %s8000_s16, 4  ;;  %s379_s22 = int_to_ptr.vmem [resolvable:$true] %s378_s22 }
 0x2f5   :  { %s7477_s8 = scalar_lea.hbm %s9973_s25, 32 }
 0x2f6   :  { %p7478_p12 = scmp.ne.s32.totalorder %s9973_s25, %s7477_s8  ;;  %p7481_p13 = scmp.lt.u32.totalorder %s7477_s8, %s9973_s25 }
 0x2f8   :  { %p7483_p0 = pnand %p7481_p13, %p7478_p12 }
 0x2fa   :  { %7486 = shalt.err (!%p7483_p0)
}
 0x2fb   :  { %s7487_s23 = scalar_lea.vmem %s355_s15, 32  ;;  %p7492_p2 = scmp.lt.s32.totalorder %s355_s15, %s355_s15 }
 0x2fc   :  { %p7488_p1 = scmp.ne.s32.totalorder %s355_s15, %s7487_s23  ;;  %p7493_p3 = scmp.lt.s32.totalorder %s7487_s23, %s7487_s23 }
 0x2fe   :  { %p7494_p4 = por %p7493_p3, %p7492_p2 }
 0x300   :  { %p7495_p5 = pnand %p7494_p4, %p7488_p1 }
 0x302   :  { %7498 = shalt.err (!%p7495_p5)
}
 0x303   :  { %s9974_s3 = sld [smem:[#allocation119_spill]] }
 0x304   :  { %357 = dma.hbm_to_vmem [thread:$0]  %s9973_s25, 32, %s355_s15, [#allocation30]  }
 0x309   :  { %s7499_s26 = scalar_lea.hbm %s9974_s3, 48 }
 0x30a   :  { %p7500_p6 = scmp.ne.s32.totalorder %s9974_s3, %s7499_s26  ;;  %p7503_p7 = scmp.lt.u32.totalorder %s7499_s26, %s9974_s3 }
 0x30c   :  { %p7505_p8 = pnand %p7503_p7, %p7500_p6 }
 0x30e   :  { %7508 = shalt.err (!%p7505_p8)
}
 0x30f   :  { %s7509_s29 = scalar_lea.vmem %s379_s22, 48  ;;  %s7513_s28 = scalar_lea.vmem %s379_s22, 64 }
 0x310   :  { %p7510_p9 = scmp.ne.s32.totalorder %s379_s22, %s7509_s29  ;;  %p7514_p10 = scmp.lt.s32.totalorder %s379_s22, %s379_s22 }
 0x311   :  { %p7515_p11 = scmp.lt.s32.totalorder %s7513_s28, %s7509_s29 }
 0x313   :  { %p7516_p12 = por %p7515_p11, %p7514_p10 }
 0x315   :  { %p7517_p13 = pnand %p7516_p12, %p7510_p9 }
 0x317   :  { %7520 = shalt.err (!%p7517_p13)
}
 0x318   :  { %s9975_s24 = sld [smem:[#allocation121_spill]]  ;;  %s8001_s1 = smov [#allocation37]  }
 0x319   :  { %381 = dma.hbm_to_vmem [thread:$0]  %s9974_s3, 48, %s379_s22, [#allocation33]  }
 0x31a   :  { %s400_s9 = sshll.u32 %s8001_s1, 4  ;;  %s8002_s27 = smov [#allocation40]   ;;  %s401_s9 = int_to_ptr.vmem [resolvable:$true] %s400_s9 }
 0x31b   :  { %s420_s14 = sshll.u32 %s8002_s27, 4  ;;  %s421_s14 = int_to_ptr.vmem [resolvable:$true] %s420_s14 }
 0x31e   :  { %s7521_s5 = scalar_lea.hbm %s9975_s24, 48 }
 0x31f   :  { %p7522_p0 = scmp.ne.s32.totalorder %s9975_s24, %s7521_s5  ;;  %p7525_p1 = scmp.lt.u32.totalorder %s7521_s5, %s9975_s24 }
 0x321   :  { %p7527_p2 = pnand %p7525_p1, %p7522_p0 }
 0x323   :  { %7530 = shalt.err (!%p7527_p2)
}
 0x324   :  { %s7531_s2 = scalar_lea.vmem %s401_s9, 48  ;;  %s7535_s0 = scalar_lea.vmem %s401_s9, 64 }
 0x325   :  { %p7532_p3 = scmp.ne.s32.totalorder %s401_s9, %s7531_s2  ;;  %p7536_p4 = scmp.lt.s32.totalorder %s401_s9, %s401_s9 }
 0x326   :  { %p7537_p5 = scmp.lt.s32.totalorder %s7535_s0, %s7531_s2 }
 0x328   :  { %p7538_p6 = por %p7537_p5, %p7536_p4 }
 0x32a   :  { %p7539_p7 = pnand %p7538_p6, %p7532_p3 }
 0x32c   :  { %7542 = shalt.err (!%p7539_p7)
}
 0x32d   :  { %s9976_s6 = sld [smem:[#allocation122_spill]] }
 0x32e   :  { %403 = dma.hbm_to_vmem [thread:$0]  %s9975_s24, 48, %s401_s9, [#allocation36]  }
 0x333   :  { %s7543_s17 = scalar_lea.hbm %s9976_s6, 48 }
 0x334   :  { %p7544_p8 = scmp.ne.s32.totalorder %s9976_s6, %s7543_s17  ;;  %p7547_p9 = scmp.lt.u32.totalorder %s7543_s17, %s9976_s6 }
 0x336   :  { %p7549_p10 = pnand %p7547_p9, %p7544_p8 }
 0x338   :  { %7552 = shalt.err (!%p7549_p10)
}
 0x339   :  { %s7553_s7 = scalar_lea.vmem %s421_s14, 48  ;;  %s7557_s30 = scalar_lea.vmem %s421_s14, 64 }
 0x33a   :  { %p7554_p11 = scmp.ne.s32.totalorder %s421_s14, %s7553_s7  ;;  %p7558_p12 = scmp.lt.s32.totalorder %s421_s14, %s421_s14 }
 0x33b   :  { %p7559_p13 = scmp.lt.s32.totalorder %s7557_s30, %s7553_s7 }
 0x33d   :  { %p7560_p0 = por %p7559_p13, %p7558_p12 }
 0x33f   :  { %p7561_p1 = pnand %p7560_p0, %p7554_p11 }
 0x341   :  { %7564 = shalt.err (!%p7561_p1)
}
 0x342   :  { %s9977_s10 = sld [smem:[#allocation124_spill]]  ;;  %s8003_s11 = smov [#allocation43]  }
 0x343   :  { %423 = dma.hbm_to_vmem [thread:$0]  %s9976_s6, 48, %s421_s14, [#allocation39]  }
 0x344   :  { %s442_s12 = sshll.u32 %s8003_s11, 4  ;;  %s8004_s20 = smov [#allocation46]   ;;  %s443_s12 = int_to_ptr.vmem [resolvable:$true] %s442_s12 }
 0x345   :  { %s464_s18 = sshll.u32 %s8004_s20, 4  ;;  %s465_s18 = int_to_ptr.vmem [resolvable:$true] %s464_s18 }
 0x348   :  { %s7565_s25 = scalar_lea.hbm %s9977_s10, 32 }
 0x349   :  { %p7566_p2 = scmp.ne.s32.totalorder %s9977_s10, %s7565_s25  ;;  %p7569_p3 = scmp.lt.u32.totalorder %s7565_s25, %s9977_s10 }
 0x34b   :  { %p7571_p4 = pnand %p7569_p3, %p7566_p2 }
 0x34d   :  { %7574 = shalt.err (!%p7571_p4)
}
 0x34e   :  { %s7575_s4 = scalar_lea.vmem %s443_s12, 32  ;;  %p7580_p6 = scmp.lt.s32.totalorder %s443_s12, %s443_s12 }
 0x34f   :  { %p7576_p5 = scmp.ne.s32.totalorder %s443_s12, %s7575_s4  ;;  %p7581_p7 = scmp.lt.s32.totalorder %s7575_s4, %s7575_s4 }
 0x351   :  { %p7582_p8 = por %p7581_p7, %p7580_p6 }
 0x353   :  { %p7583_p9 = pnand %p7582_p8, %p7576_p5 }
 0x355   :  { %7586 = shalt.err (!%p7583_p9)
}
 0x356   :  { %s9978_s15 = sld [smem:[#allocation126_spill]] }
 0x357   :  { %445 = dma.hbm_to_vmem [thread:$0]  %s9977_s10, 32, %s443_s12, [#allocation42]  }
 0x35c   :  { %s7587_s16 = scalar_lea.hbm %s9978_s15, 32 }
 0x35d   :  { %p7588_p10 = scmp.ne.s32.totalorder %s9978_s15, %s7587_s16  ;;  %p7591_p11 = scmp.lt.u32.totalorder %s7587_s16, %s9978_s15 }
 0x35f   :  { %p7593_p12 = pnand %p7591_p11, %p7588_p10 }
 0x361   :  { %7596 = shalt.err (!%p7593_p12)
}
 0x362   :  { %s7597_s22 = scalar_lea.vmem %s465_s18, 32  ;;  %p7602_p0 = scmp.lt.s32.totalorder %s465_s18, %s465_s18 }
 0x363   :  { %p7598_p13 = scmp.ne.s32.totalorder %s465_s18, %s7597_s22  ;;  %p7603_p1 = scmp.lt.s32.totalorder %s7597_s22, %s7597_s22 }
 0x365   :  { %p7604_p2 = por %p7603_p1, %p7602_p0 }
 0x367   :  { %p7605_p3 = pnand %p7604_p2, %p7598_p13 }
 0x369   :  { %7608 = shalt.err (!%p7605_p3)
}
 0x36a   :  { %s9979_s8 = sld [smem:[#allocation128_spill]]  ;;  %s8005_s23 = smov [#allocation49]  }
 0x36b   :  { %467 = dma.hbm_to_vmem [thread:$0]  %s9978_s15, 32, %s465_s18, [#allocation45]  }
 0x36c   :  { %s484_s3 = sshll.u32 %s8005_s23, 4  ;;  %s8006_s26 = smov [#allocation52]   ;;  %s485_s3 = int_to_ptr.vmem [resolvable:$true] %s484_s3 }
 0x36d   :  { %s505_s29 = sshll.u32 %s8006_s26, 4  ;;  %s506_s29 = int_to_ptr.vmem [resolvable:$true] %s505_s29 }
 0x370   :  { %s7609_s28 = scalar_lea.hbm %s9979_s8, 32 }
 0x371   :  { %p7610_p4 = scmp.ne.s32.totalorder %s9979_s8, %s7609_s28  ;;  %p7613_p5 = scmp.lt.u32.totalorder %s7609_s28, %s9979_s8 }
 0x373   :  { %p7615_p6 = pnand %p7613_p5, %p7610_p4 }
 0x375   :  { %7618 = shalt.err (!%p7615_p6)
}
 0x376   :  { %s7619_s24 = scalar_lea.vmem %s485_s3, 32  ;;  %p7624_p8 = scmp.lt.s32.totalorder %s485_s3, %s485_s3 }
 0x377   :  { %p7620_p7 = scmp.ne.s32.totalorder %s485_s3, %s7619_s24  ;;  %p7625_p9 = scmp.lt.s32.totalorder %s7619_s24, %s7619_s24 }
 0x379   :  { %p7626_p10 = por %p7625_p9, %p7624_p8 }
 0x37b   :  { %p7627_p11 = pnand %p7626_p10, %p7620_p7 }
 0x37d   :  { %7630 = shalt.err (!%p7627_p11)
}
 0x37e   :  { %s9980_s1 = sld [smem:[#allocation131_spill]] }
 0x37f   :  { %487 = dma.hbm_to_vmem [thread:$0]  %s9979_s8, 32, %s485_s3, [#allocation48]  }
 0x384   :  { %s7631_s9 = scalar_lea.hbm %s9980_s1, 3072 }
 0x385   :  { %p7632_p12 = scmp.ne.s32.totalorder %s9980_s1, %s7631_s9  ;;  %p7635_p13 = scmp.lt.u32.totalorder %s7631_s9, %s9980_s1 }
 0x387   :  { %p7637_p0 = pnand %p7635_p13, %p7632_p12 }
 0x389   :  { %7640 = shalt.err (!%p7637_p0)
}
 0x38a   :  { %s7641_s27 = scalar_lea.vmem %s506_s29, 3072  ;;  %p7646_p2 = scmp.lt.s32.totalorder %s506_s29, %s506_s29 }
 0x38b   :  { %p7642_p1 = scmp.ne.s32.totalorder %s506_s29, %s7641_s27  ;;  %p7647_p3 = scmp.lt.s32.totalorder %s7641_s27, %s7641_s27 }
 0x38d   :  { %p7648_p4 = por %p7647_p3, %p7646_p2 }
 0x38f   :  { %p7649_p5 = pnand %p7648_p4, %p7642_p1 }
 0x391   :  { %7652 = shalt.err (!%p7649_p5)
}
 0x392   :  { %s8007_s14 = smov 128   ;;  %s9981_s5 = sld [smem:[#allocation134_spill]] }
 0x393   :  { %s8008_s2 = smov 8   ;;  %s8009_s0 = smov [#allocation55]  }
 0x394   :  { %511 = dma.hbm_to_vmem [thread:$0]  %s9980_s1, 3072, %s506_s29, [#allocation51], %s8007_s14, %s8007_s14, %s8008_s2  }
 0x395   :  { %s530_s6 = sshll.u32 %s8009_s0, 4  ;;  %s8010_s17 = smov [#allocation58]   ;;  %s531_s6 = int_to_ptr.vmem [resolvable:$true] %s530_s6 }
 0x396   :  { %s552_s7 = sshll.u32 %s8010_s17, 4  ;;  %s553_s7 = int_to_ptr.vmem [resolvable:$true] %s552_s7 }
 0x398   :  { %s7653_s30 = scalar_lea.hbm %s9981_s5, 16 }
 0x399   :  { %p7654_p6 = scmp.ne.s32.totalorder %s9981_s5, %s7653_s30  ;;  %p7657_p7 = scmp.lt.u32.totalorder %s7653_s30, %s9981_s5 }
 0x39b   :  { %p7659_p8 = pnand %p7657_p7, %p7654_p6 }
 0x39d   :  { %7662 = shalt.err (!%p7659_p8)
}
 0x39e   :  { %s7663_s10 = scalar_lea.vmem %s531_s6, 16  ;;  %s7667_s11 = scalar_lea.vmem %s531_s6, 32 }
 0x39f   :  { %p7664_p9 = scmp.ne.s32.totalorder %s531_s6, %s7663_s10  ;;  %p7668_p10 = scmp.lt.s32.totalorder %s531_s6, %s531_s6 }
 0x3a0   :  { %p7669_p11 = scmp.lt.s32.totalorder %s7667_s11, %s7663_s10 }
 0x3a2   :  { %p7670_p12 = por %p7669_p11, %p7668_p10 }
 0x3a4   :  { %p7671_p13 = pnand %p7670_p12, %p7664_p9 }
 0x3a6   :  { %7674 = shalt.err (!%p7671_p13)
}
 0x3a7   :  { %s9982_s12 = sld [smem:[#allocation137_spill]] }
 0x3a8   :  { %533 = dma.hbm_to_vmem [thread:$0]  %s9981_s5, 16, %s531_s6, [#allocation54]  }
 0x3ad   :  { %s7675_s20 = scalar_lea.hbm %s9982_s12, 16 }
 0x3ae   :  { %p7676_p0 = scmp.ne.s32.totalorder %s9982_s12, %s7675_s20  ;;  %p7679_p1 = scmp.lt.u32.totalorder %s7675_s20, %s9982_s12 }
 0x3b0   :  { %p7681_p2 = pnand %p7679_p1, %p7676_p0 }
 0x3b2   :  { %7684 = shalt.err (!%p7681_p2)
}
 0x3b3   :  { %s7685_s18 = scalar_lea.vmem %s553_s7, 16  ;;  %s7689_s25 = scalar_lea.vmem %s553_s7, 32 }
 0x3b4   :  { %p7686_p3 = scmp.ne.s32.totalorder %s553_s7, %s7685_s18  ;;  %p7690_p4 = scmp.lt.s32.totalorder %s553_s7, %s553_s7 }
 0x3b5   :  { %p7691_p5 = scmp.lt.s32.totalorder %s7689_s25, %s7685_s18 }
 0x3b7   :  { %p7692_p6 = por %p7691_p5, %p7690_p4 }
 0x3b9   :  { %p7693_p7 = pnand %p7692_p6, %p7686_p3 }
 0x3bb   :  { %7696 = shalt.err (!%p7693_p7)
}
 0x3bc   :  { %s9983_s4 = sld [smem:[#allocation139_spill]]  ;;  %s8011_s15 = smov [#allocation61]  }
 0x3bd   :  { %555 = dma.hbm_to_vmem [thread:$0]  %s9982_s12, 16, %s553_s7, [#allocation57]  }
 0x3be   :  { %s571_s16 = sshll.u32 %s8011_s15, 4  ;;  %s8012_s22 = smov [#allocation64]   ;;  %s572_s16 = int_to_ptr.vmem [resolvable:$true] %s571_s16 }
 0x3bf   :  { %s593_s8 = sshll.u32 %s8012_s22, 4  ;;  %s594_s8 = int_to_ptr.vmem [resolvable:$true] %s593_s8 }
 0x3c2   :  { %s7697_s23 = scalar_lea.hbm %s9983_s4, 3072 }
 0x3c3   :  { %p7698_p8 = scmp.ne.s32.totalorder %s9983_s4, %s7697_s23  ;;  %p7701_p9 = scmp.lt.u32.totalorder %s7697_s23, %s9983_s4 }
 0x3c5   :  { %p7703_p10 = pnand %p7701_p9, %p7698_p8 }
 0x3c7   :  { %7706 = shalt.err (!%p7703_p10)
}
 0x3c8   :  { %s7707_s3 = scalar_lea.vmem %s572_s16, 3072  ;;  %p7712_p12 = scmp.lt.s32.totalorder %s572_s16, %s572_s16 }
 0x3c9   :  { %p7708_p11 = scmp.ne.s32.totalorder %s572_s16, %s7707_s3  ;;  %p7713_p13 = scmp.lt.s32.totalorder %s7707_s3, %s7707_s3 }
 0x3cb   :  { %p7714_p0 = por %p7713_p13, %p7712_p12 }
 0x3cd   :  { %p7715_p1 = pnand %p7714_p0, %p7708_p11 }
 0x3cf   :  { %7718 = shalt.err (!%p7715_p1)
}
 0x3d0   :  { %s9984_s26 = sld [smem:[#allocation141_spill]] }
 0x3d1   :  { %577 = dma.hbm_to_vmem [thread:$0]  %s9983_s4, 3072, %s572_s16, [#allocation60], %s8007_s14, %s8007_s14, %s8008_s2  }
 0x3d6   :  { %s7719_s29 = scalar_lea.hbm %s9984_s26, 1536 }
 0x3d7   :  { %p7720_p2 = scmp.ne.s32.totalorder %s9984_s26, %s7719_s29  ;;  %p7723_p3 = scmp.lt.u32.totalorder %s7719_s29, %s9984_s26 }
 0x3d9   :  { %p7725_p4 = pnand %p7723_p3, %p7720_p2 }
 0x3db   :  { %7728 = shalt.err (!%p7725_p4)
}
 0x3dc   :  { %s7729_s28 = scalar_lea.vmem %s594_s8, 1536  ;;  %p7734_p6 = scmp.lt.s32.totalorder %s594_s8, %s594_s8 }
 0x3dd   :  { %p7730_p5 = scmp.ne.s32.totalorder %s594_s8, %s7729_s28  ;;  %p7735_p7 = scmp.lt.s32.totalorder %s7729_s28, %s7729_s28 }
 0x3df   :  { %p7736_p8 = por %p7735_p7, %p7734_p6 }
 0x3e1   :  { %p7737_p9 = pnand %p7736_p8, %p7730_p5 }
 0x3e3   :  { %7740 = shalt.err (!%p7737_p9)
}
 0x3e4   :  { %s9985_s24 = sld [smem:[#allocation143_spill]]  ;;  %s8013_s1 = smov [#allocation67]  }
 0x3e5   :  { %599 = dma.hbm_to_vmem [thread:$0]  %s9984_s26, 1536, %s594_s8, [#allocation63], %s8007_s14, %s8007_s14, %s8008_s2  }
 0x3e6   :  { %s616_s9 = sshll.u32 %s8013_s1, 4  ;;  %s8014_s27 = smov [#allocation70]   ;;  %s617_s9 = int_to_ptr.vmem [resolvable:$true] %s616_s9 }
 0x3e7   :  { %s635_s5 = sshll.u32 %s8014_s27, 4  ;;  %s636_s5 = int_to_ptr.vmem [resolvable:$true] %s635_s5 }
 0x3ea   :  { %s7741_s0 = scalar_lea.hbm %s9985_s24, 16 }
 0x3eb   :  { %p7742_p10 = scmp.ne.s32.totalorder %s9985_s24, %s7741_s0  ;;  %p7745_p11 = scmp.lt.u32.totalorder %s7741_s0, %s9985_s24 }
 0x3ed   :  { %p7747_p12 = pnand %p7745_p11, %p7742_p10 }
 0x3ef   :  { %7750 = shalt.err (!%p7747_p12)
}
 0x3f0   :  { %s7751_s6 = scalar_lea.vmem %s617_s9, 16  ;;  %s7755_s17 = scalar_lea.vmem %s617_s9, 32 }
 0x3f1   :  { %p7752_p13 = scmp.ne.s32.totalorder %s617_s9, %s7751_s6  ;;  %p7756_p0 = scmp.lt.s32.totalorder %s617_s9, %s617_s9 }
 0x3f2   :  { %p7757_p1 = scmp.lt.s32.totalorder %s7755_s17, %s7751_s6 }
 0x3f4   :  { %p7758_p2 = por %p7757_p1, %p7756_p0 }
 0x3f6   :  { %p7759_p3 = pnand %p7758_p2, %p7752_p13 }
 0x3f8   :  { %7762 = shalt.err (!%p7759_p3)
}
 0x3f9   :  { %s9986_s7 = sld [smem:[#allocation145_spill]] }
 0x3fa   :  { %619 = dma.hbm_to_vmem [thread:$0]  %s9985_s24, 16, %s617_s9, [#allocation66]  }
 0x3ff   :  { %s7763_s30 = scalar_lea.hbm %s9986_s7, 1536 }
 0x400   :  { %p7764_p4 = scmp.ne.s32.totalorder %s9986_s7, %s7763_s30  ;;  %p7767_p5 = scmp.lt.u32.totalorder %s7763_s30, %s9986_s7 }
 0x402   :  { %p7769_p6 = pnand %p7767_p5, %p7764_p4 }
 0x404   :  { %7772 = shalt.err (!%p7769_p6)
}
 0x405   :  { %s7773_s10 = scalar_lea.vmem %s636_s5, 1536  ;;  %p7778_p8 = scmp.lt.s32.totalorder %s636_s5, %s636_s5 }
 0x406   :  { %p7774_p7 = scmp.ne.s32.totalorder %s636_s5, %s7773_s10  ;;  %p7779_p9 = scmp.lt.s32.totalorder %s7773_s10, %s7773_s10 }
 0x408   :  { %p7780_p10 = por %p7779_p9, %p7778_p8 }
 0x40a   :  { %p7781_p11 = pnand %p7780_p10, %p7774_p7 }
 0x40c   :  { %7784 = shalt.err (!%p7781_p11)
}
 0x40d   :  { %s9987_s11 = sld [smem:[#allocation147_spill]]  ;;  %s8015_s12 = smov [#allocation73]  }
 0x40e   :  { %641 = dma.hbm_to_vmem [thread:$0]  %s9986_s7, 1536, %s636_s5, [#allocation69], %s8007_s14, %s8007_s14, %s8008_s2  }
 0x40f   :  { %s658_s20 = sshll.u32 %s8015_s12, 4  ;;  %s8016_s18 = smov [#allocation76]   ;;  %s659_s20 = int_to_ptr.vmem [resolvable:$true] %s658_s20 }
 0x410   :  { %s680_s25 = sshll.u32 %s8016_s18, 4  ;;  %s681_s25 = int_to_ptr.vmem [resolvable:$true] %s680_s25 }
 0x413   :  { %s7785_s4 = scalar_lea.hbm %s9987_s11, 16 }
 0x414   :  { %p7786_p12 = scmp.ne.s32.totalorder %s9987_s11, %s7785_s4  ;;  %p7789_p13 = scmp.lt.u32.totalorder %s7785_s4, %s9987_s11 }
 0x416   :  { %p7791_p0 = pnand %p7789_p13, %p7786_p12 }
 0x418   :  { %7794 = shalt.err (!%p7791_p0)
}
 0x419   :  { %s7795_s15 = scalar_lea.vmem %s659_s20, 16  ;;  %s7799_s16 = scalar_lea.vmem %s659_s20, 32 }
 0x41a   :  { %p7796_p1 = scmp.ne.s32.totalorder %s659_s20, %s7795_s15  ;;  %p7800_p2 = scmp.lt.s32.totalorder %s659_s20, %s659_s20 }
 0x41b   :  { %p7801_p3 = scmp.lt.s32.totalorder %s7799_s16, %s7795_s15 }
 0x41d   :  { %p7802_p4 = por %p7801_p3, %p7800_p2 }
 0x41f   :  { %p7803_p5 = pnand %p7802_p4, %p7796_p1 }
 0x421   :  { %7806 = shalt.err (!%p7803_p5)
}
 0x422   :  { %661 = dma.hbm_to_vmem [thread:$0]  %s9987_s11, 16, %s659_s20, [#allocation72]  }
 0x423   :  { %s7807_s14 = scalar_lea.hbm %s8329_s13, 16 }
 0x424   :  { %p7808_p6 = scmp.ne.s32.totalorder %s8329_s13, %s7807_s14  ;;  %p7811_p7 = scmp.lt.u32.totalorder %s7807_s14, %s8329_s13 }
 0x426   :  { %p7813_p8 = pnand %p7811_p7, %p7808_p6 }
 0x428   :  { %7816 = shalt.err (!%p7813_p8)
}
 0x429   :  { %s7817_s2 = scalar_lea.vmem %s681_s25, 16  ;;  %s7821_s22 = scalar_lea.vmem %s681_s25, 32 }
 0x42a   :  { %p7818_p9 = scmp.ne.s32.totalorder %s681_s25, %s7817_s2  ;;  %p7822_p10 = scmp.lt.s32.totalorder %s681_s25, %s681_s25 }
 0x42b   :  { %p7823_p11 = scmp.lt.s32.totalorder %s7821_s22, %s7817_s2 }
 0x42d   :  { %p7824_p12 = por %p7823_p11, %p7822_p10 }
 0x42f   :  { %p7825_p13 = pnand %p7824_p12, %p7818_p9 }
 0x431   :  { %7828 = shalt.err (!%p7825_p13)
}
 0x432   :  { %683 = dma.hbm_to_vmem [thread:$0]  %s8329_s13, 16, %s681_s25, [#allocation75]  }
 0x433   :  { %7851 = dma.done.wait [#allocation3], 128  }
 0x434   :  { %7852 = vsyncadd [#allocation3], 4294967168 }
 0x435   :  { %7853 = dma.done.wait [#allocation6], 544  }
 0x436   :  { %7854 = vsyncadd [#allocation6], 4294966752 }
 0x437   :  { %7855 = dma.done.wait [#allocation9], 6176  }
 0x438   :  { %7856 = vsyncadd [#allocation9], 4294961120 }
 0x439   :  { %7857 = dma.done.wait [#allocation12], 64  }
 0x43a   :  { %7858 = vsyncadd [#allocation12], 4294967232 }
 0x43b   :  { %7859 = dma.done.wait [#allocation15], 6176  }
 0x43c   :  { %7860 = vsyncadd [#allocation15], 4294961120 }
 0x43d   :  { %7861 = dma.done.wait [#allocation18], 64  }
 0x43e   :  { %7862 = vsyncadd [#allocation18], 4294967232 }
 0x43f   :  { %7863 = dma.done.wait [#allocation21], 64  }
 0x440   :  { %7864 = vsyncadd [#allocation21], 4294967232 }
 0x441   :  { %7865 = dma.done.wait [#allocation24], 6176  }
 0x442   :  { %7866 = vsyncadd [#allocation24], 4294961120 }
 0x443   :  { %7867 = dma.done.wait [#allocation27], 64  }
 0x444   :  { %7868 = vsyncadd [#allocation27], 4294967232 }
 0x445   :  { %7869 = dma.done.wait [#allocation30], 64  }
 0x446   :  { %7870 = vsyncadd [#allocation30], 4294967232 }
 0x447   :  { %7871 = dma.done.wait [#allocation33], 96  }
 0x448   :  { %7872 = vsyncadd [#allocation33], 4294967200 }
 0x449   :  { %7873 = dma.done.wait [#allocation36], 96  }
 0x44a   :  { %7874 = vsyncadd [#allocation36], 4294967200 }
 0x44b   :  { %7875 = dma.done.wait [#allocation39], 96  }
 0x44c   :  { %7876 = vsyncadd [#allocation39], 4294967200 }
 0x44d   :  { %7877 = dma.done.wait [#allocation42], 64  }
 0x44e   :  { %7878 = vsyncadd [#allocation42], 4294967232 }
 0x44f   :  { %7879 = dma.done.wait [#allocation45], 64  }
 0x450   :  { %7880 = vsyncadd [#allocation45], 4294967232 }
 0x451   :  { %7881 = dma.done.wait [#allocation48], 64  }
 0x452   :  { %7882 = vsyncadd [#allocation48], 4294967232 }
 0x453   :  { %7883 = dma.done.wait [#allocation51], 3104  }
 0x454   :  { %7884 = vsyncadd [#allocation51], 4294964192 }
 0x455   :  { %7885 = dma.done.wait [#allocation54], 32  }
 0x456   :  { %7886 = vsyncadd [#allocation54], 4294967264 }
 0x457   :  { %7887 = dma.done.wait [#allocation57], 32  }
 0x458   :  { %7888 = vsyncadd [#allocation57], 4294967264 }
 0x459   :  { %7889 = dma.done.wait [#allocation60], 3088  }
 0x45a   :  { %7890 = vsyncadd [#allocation60], 4294964208 }
 0x45b   :  { %7891 = dma.done.wait [#allocation63], 1552  }
 0x45c   :  { %7892 = vsyncadd [#allocation63], 4294965744 }
 0x45d   :  { %7893 = dma.done.wait [#allocation66], 32  }
 0x45e   :  { %7894 = vsyncadd [#allocation66], 4294967264 }
 0x45f   :  { %7895 = dma.done.wait [#allocation69], 1552  }
 0x460   :  { %7896 = vsyncadd [#allocation69], 4294965744 }
 0x461   :  { %7897 = dma.done.wait [#allocation72], 32  }
 0x462   :  { %7898 = vsyncadd [#allocation72], 4294967264 }
 0x463   :  { %7899 = dma.done.wait [#allocation75], 32  }
 0x464   :  { %7900 = vsyncadd [#allocation75], 4294967264  ;;  %v8017_v0 = vmov 0.0   ;;  %v833_v1 = vld [vmem:[#allocation5 + $0x8] sm:$0xff]  ;;  %v835_v2 = vld [vmem:[#allocation5 + $0x18] sm:$0xff]  ;;  %vm848_vm0 = vcmask 130048  }
 0x465   :  { %916 = vmatprep.mubr.f32.mxu1 %v8017_v0  ;;  %v832_v3 = vld [vmem:[#allocation5] sm:$0xff]  ;;  %v5387_v4 = vpack.c.bf16 %v835_v2, %v833_v1  ;;  %v834_v5 = vld [vmem:[#allocation5 + $0x10] sm:$0xff]  ;;  %v831_v14 = vld [vmem:[#allocation2] sm:$0xff]  ;;  %vm1036_vm1 = vcmask 523264   ;;  %s9988_s13 = sld [smem:[#allocation110_spill]]  ;;  %s9989_s8 = sld [smem:[#allocation115_spill]] }
 0x466   :  { %v924_v6 = vld [vmem:[#allocation8 + $0x8] sm:$0xff]  ;;  %v5389_v7 = vpack.c.bf16 %v834_v5, %v832_v3  ;;  %v926_v8 = vld [vmem:[#allocation8 + $0x18] sm:$0xff]  ;;  %v923_v9 = vld [vmem:[#allocation8] sm:$0xff]  ;;  %s9990_s23 = sld [smem:[#allocation111_spill]]  ;;  %s9991_s3 = sld [smem:[#allocation117_spill]]  ;;  %vm8019_vm2 = vmmov 0  }
 0x467   :  { %v925_v10 = vld [vmem:[#allocation8 + $0x10] sm:$0xff]  ;;  %5388 = vmatprep.subr.bf16.mxu1 %v5387_v4  ;;  %v5391_v11 = vpack.c.bf16 %v926_v8, %v924_v6  ;;  %v928_v12 = vld [vmem:[#allocation8 + $0x28] sm:$0xff]  ;;  %v930_v13 = vld [vmem:[#allocation8 + $0x38] sm:$0xff]  ;;  %s9992_s26 = sld [smem:[#allocation118_spill]]  ;;  %s9993_s29 = sld [smem:[#allocation120_spill]]  ;;  %vm4443_vm3 = vcmask 785408  }
 0x468   :  { %5390 = vmatpush1.bf16.msra.mxu1 %v5389_v7  ;;  %v5393_v15 = vpack.c.bf16 %v925_v10, %v923_v9  ;;  %v5395_v16 = vpack.c.bf16 %v930_v13, %v928_v12  ;;  %v927_v17 = vld [vmem:[#allocation8 + $0x20] sm:$0xff]  ;;  %v929_v18 = vld [vmem:[#allocation8 + $0x30] sm:$0xff]  ;;  %v932_v19 = vld [vmem:[#allocation8 + $0x48] sm:$0xff]  ;;  %s9994_s28 = sld [smem:[#allocation129_spill]]  ;;  %s9995_s24 = sld [smem:[#allocation123_spill]]  ;;  %vm4922_vm4 = vcmask 195584  }
 0x469   :  { %5392 = vmatprep.subr.bf16.mxu1 %v5391_v11  ;;  %v934_v20 = vld [vmem:[#allocation8 + $0x58] sm:$0xff]  ;;  %v5397_v21 = vpack.c.bf16 %v929_v18, %v927_v17  ;;  %v931_v23 = vld [vmem:[#allocation8 + $0x40] sm:$0xff]  ;;  %v933_v24 = vld [vmem:[#allocation8 + $0x50] sm:$0xff]  ;;  %v838_v17 = vlaneseq  ;;  %s9996_s1 = sld [smem:[#allocation125_spill]]  ;;  %s9997_s9 = sld [smem:[#allocation132_spill]] }
 0x46a   :  { %v5399_v22 = vpack.c.bf16 %v934_v20, %v932_v19  ;;  %v936_v25 = vld [vmem:[#allocation8 + $0x68] sm:$0xff]  ;;  %v938_v26 = vld [vmem:[#allocation8 + $0x78] sm:$0xff]  ;;  %v5401_v27 = vpack.c.bf16 %v933_v24, %v931_v23  ;;  %v935_v29 = vld [vmem:[#allocation8 + $0x60] sm:$0xff]  ;;  %s9998_s27 = sld [smem:[#allocation135_spill]] }
 0x46b   :  { %5024 = vmatmul.mubr.msk.f32.vlgmr.msra.gmra.mrb[0].mxu1 %vm848_vm0, %v831_v14  ;;  %v5403_v28 = vpack.c.bf16 %v938_v26, %v936_v25  ;;  %v937_v30 = vld [vmem:[#allocation8 + $0x70] sm:$0xff]  ;;  %v940_v31 = vld [vmem:[#allocation8 + $0x88] sm:$0xff]  ;;  %v942_v32 = vld [vmem:[#allocation8 + $0x98] sm:$0xff]  ;;  %v8557_v18 = vshrl.u32 %v838_v17, 7 }
 0x46c   :  { %5394 = vmatpush1.bf16.msra.mxu1 %v5393_v15  ;;  %v5405_v33 = vpack.c.bf16 %v937_v30, %v935_v29  ;;  %v5407_v34 = vpack.c.bf16 %v942_v32, %v940_v31  ;;  %v939_v35 = vld [vmem:[#allocation8 + $0x80] sm:$0xff]  ;;  %v941_v36 = vld [vmem:[#allocation8 + $0x90] sm:$0xff]  ;;  %v944_v37 = vld [vmem:[#allocation8 + $0xa8] sm:$0xff] }
 0x46d   :  { %5396 = vmatprep.subr.bf16.mxu1 %v5395_v16  ;;  %v946_v38 = vld [vmem:[#allocation8 + $0xb8] sm:$0xff]  ;;  %v5409_v39 = vpack.c.bf16 %v941_v36, %v939_v35  ;;  %v943_v41 = vld [vmem:[#allocation8 + $0xa0] sm:$0xff]  ;;  %v945_v42 = vld [vmem:[#allocation8 + $0xb0] sm:$0xff]  ;;  %v8560_v19 = vsub.s32 1, %v8557_v18 }
 0x46e   :  { %v5411_v40 = vpack.c.bf16 %v946_v38, %v944_v37  ;;  %v948_v43 = vld [vmem:[#allocation8 + $0xc8] sm:$0xff]  ;;  %v950_v44 = vld [vmem:[#allocation8 + $0xd8] sm:$0xff]  ;;  %v5413_v45 = vpack.c.bf16 %v945_v42, %v943_v41  ;;  %v947_v47 = vld [vmem:[#allocation8 + $0xc0] sm:$0xff] }
 0x46f   :  { %v5415_v46 = vpack.c.bf16 %v950_v44, %v948_v43  ;;  %v949_v48 = vld [vmem:[#allocation8 + $0xd0] sm:$0xff]  ;;  %v952_v49 = vld [vmem:[#allocation8 + $0xe8] sm:$0xff]  ;;  %v954_v50 = vld [vmem:[#allocation8 + $0xf8] sm:$0xff] }
 0x470   :  { %5398 = vmatpush1.bf16.msra.mxu1 %v5397_v21  ;;  %v5417_v51 = vpack.c.bf16 %v949_v48, %v947_v47  ;;  %v5419_v52 = vpack.c.bf16 %v954_v50, %v952_v49  ;;  %v951_v53 = vld [vmem:[#allocation8 + $0xe0] sm:$0xff]  ;;  %v953_v54 = vld [vmem:[#allocation8 + $0xf0] sm:$0xff]  ;;  %v956_v55 = vld [vmem:[#allocation8 + $0x108] sm:$0xff]  ;;  %v8563_v21 = vsub.s32 0, %v8557_v18 }
 0x471   :  { %5400 = vmatprep.subr.bf16.mxu1 %v5399_v22  ;;  %v958_v56 = vld [vmem:[#allocation8 + $0x118] sm:$0xff]  ;;  %v5421_v57 = vpack.c.bf16 %v953_v54, %v951_v53  ;;  %v955_v59 = vld [vmem:[#allocation8 + $0x100] sm:$0xff]  ;;  %v957_v60 = vld [vmem:[#allocation8 + $0x110] sm:$0xff] }
 0x472   :  { %v5423_v58 = vpack.c.bf16 %v958_v56, %v956_v55  ;;  %v960_v61 = vld [vmem:[#allocation8 + $0x128] sm:$0xff]  ;;  %v962_v62 = vld [vmem:[#allocation8 + $0x138] sm:$0xff]  ;;  %v5425_v63 = vpack.c.bf16 %v957_v60, %v955_v59  ;;  %v959_v2 = vld [vmem:[#allocation8 + $0x120] sm:$0xff] }
 0x473   :  { %v5427_v1 = vpack.c.bf16 %v962_v62, %v960_v61  ;;  %v961_v3 = vld [vmem:[#allocation8 + $0x130] sm:$0xff]  ;;  %v964_v4 = vld [vmem:[#allocation8 + $0x148] sm:$0xff]  ;;  %v966_v5 = vld [vmem:[#allocation8 + $0x158] sm:$0xff] }
 0x474   :  { %5402 = vmatpush1.bf16.msra.mxu1 %v5401_v27  ;;  %v5429_v6 = vpack.c.bf16 %v961_v3, %v959_v2  ;;  %v5431_v7 = vpack.c.bf16 %v966_v5, %v964_v4  ;;  %v963_v8 = vld [vmem:[#allocation8 + $0x140] sm:$0xff]  ;;  %v965_v9 = vld [vmem:[#allocation8 + $0x150] sm:$0xff]  ;;  %v968_v11 = vld [vmem:[#allocation8 + $0x168] sm:$0xff] }
 0x475   :  { %5404 = vmatprep.subr.bf16.mxu1 %v5403_v28  ;;  %v5433_v10 = vpack.c.bf16 %v965_v9, %v963_v8  ;;  %v970_v12 = vld [vmem:[#allocation8 + $0x178] sm:$0xff]  ;;  %v967_v14 = vld [vmem:[#allocation8 + $0x160] sm:$0xff]  ;;  %v969_v15 = vld [vmem:[#allocation8 + $0x170] sm:$0xff] }
 0x476   :  { %v5435_v13 = vpack.c.bf16 %v970_v12, %v968_v11  ;;  %v5437_v16 = vpack.c.bf16 %v969_v15, %v967_v14  ;;  %v836_v20 = vld [vmem:[#allocation7] sm:$0x3]  ;;  %v971_v28 = vld [vmem:[#allocation10] sm:$0x3]  ;;  %v975_v37 = vld [vmem:[#allocation14 + $0x8] sm:$0xff] }
 0x477   :  { %v845_v22 = vrot.slane %v836_v20, %v8560_v19  ;;  %v841_v23 = vrot.slane %v836_v20, %v8563_v21  ;;  %v1033_v29 = vrot.slane %v971_v28, %v8560_v19  ;;  %v1029_v30 = vrot.slane %v971_v28, %v8563_v21  ;;  %v977_v38 = vld [vmem:[#allocation14 + $0x18] sm:$0xff]  ;;  %v976_v41 = vld [vmem:[#allocation14 + $0x10] sm:$0xff]  ;;  %v979_v42 = vld [vmem:[#allocation14 + $0x28] sm:$0xff] }
 0x478   :  { %5406 = vmatpush1.bf16.msra.mxu1 %v5405_v33  ;;  %v981_v43 = vld [vmem:[#allocation14 + $0x38] sm:$0xff]  ;;  %v980_v47 = vld [vmem:[#allocation14 + $0x30] sm:$0xff]  ;;  %v983_v48 = vld [vmem:[#allocation14 + $0x48] sm:$0xff] }
 0x479   :  { %5408 = vmatprep.subr.bf16.mxu1 %v5407_v34  ;;  %v985_v49 = vld [vmem:[#allocation14 + $0x58] sm:$0xff]  ;;  %v984_v53 = vld [vmem:[#allocation14 + $0x50] sm:$0xff]  ;;  %v987_v54 = vld [vmem:[#allocation14 + $0x68] sm:$0xff] }
 0x47a   :  { %v989_v55 = vld [vmem:[#allocation14 + $0x78] sm:$0xff]  ;;  %v988_v59 = vld [vmem:[#allocation14 + $0x70] sm:$0xff]  ;;  %v991_v60 = vld [vmem:[#allocation14 + $0x88] sm:$0xff] }
 0x47b   :  { %v993_v61 = vld [vmem:[#allocation14 + $0x98] sm:$0xff]  ;;  %v992_v2 = vld [vmem:[#allocation14 + $0x90] sm:$0xff]  ;;  %v995_v3 = vld [vmem:[#allocation14 + $0xa8] sm:$0xff] }
 0x47c   :  { %5410 = vmatpush1.bf16.msra.mxu1 %v5409_v39  ;;  %v974_v39 = vld [vmem:[#allocation14] sm:$0xff]  ;;  %v997_v4 = vld [vmem:[#allocation14 + $0xb8] sm:$0xff]  ;;  %v996_v8 = vld [vmem:[#allocation14 + $0xb0] sm:$0xff] }
 0x47d   :  { %5412 = vmatprep.subr.bf16.mxu1 %v5411_v40  ;;  %v5439_v40 = vpack.c.bf16 %v977_v38, %v975_v37  ;;  %v5441_v44 = vpack.c.bf16 %v976_v41, %v974_v39  ;;  %v999_v20 = vld [vmem:[#allocation14 + $0xc8] sm:$0xff]  ;;  %v1006_v37 = vld [vmem:[#allocation14 + $0x100] sm:$0xff]  ;;  %v1008_v38 = vld [vmem:[#allocation14 + $0x110] sm:$0xff] }
 0x47e   :  { %v1013_v41 = vld [vmem:[#allocation14 + $0x138] sm:$0xff] }
 0x47f   :  { %5440 = vmatprep.subr.bf16.mxu0 %v5439_v40  ;;  %v1011_v40 = vld [vmem:[#allocation14 + $0x128] sm:$0xff] }
 0x480   :  { %5414 = vmatpush1.bf16.msra.mxu1 %v5413_v45  ;;  %v5443_v45 = vpack.c.bf16 %v981_v43, %v979_v42  ;;  %5442 = vmatpush1.bf16.msra.mxu0 %v5441_v44  ;;  %v5473_v42 = vpack.c.bf16 %v1008_v38, %v1006_v37  ;;  %v5475_v43 = vpack.c.bf16 %v1013_v41, %v1011_v40  ;;  %v1010_v44 = vld [vmem:[#allocation14 + $0x120] sm:$0xff]  ;;  %v1299_v37 = vld [vmem:[%s9988_s13 + $0x28] sm:$0xff]  ;;  %v1301_v40 = vld [vmem:[%s9988_s13 + $0x38] sm:$0xff] }
 0x481   :  { %5416 = vmatprep.subr.bf16.mxu1 %v5415_v46  ;;  %v978_v46 = vld [vmem:[#allocation14 + $0x20] sm:$0xff] }
 0x482   :  { %v5445_v50 = vpack.c.bf16 %v980_v47, %v978_v46  ;;  %5444 = vmatprep.subr.bf16.mxu0 %v5443_v45  ;;  %v1012_v45 = vld [vmem:[#allocation14 + $0x130] sm:$0xff]  ;;  %v1015_v46 = vld [vmem:[#allocation14 + $0x148] sm:$0xff]  ;;  %v1017_v47 = vld [vmem:[#allocation14 + $0x158] sm:$0xff] }
 0x483   :  { %v1304_v41 = vld [vmem:[%s9988_s13 + $0x50] sm:$0xff] }
 0x484   :  { %5418 = vmatpush1.bf16.msra.mxu1 %v5417_v51  ;;  %v5447_v51 = vpack.c.bf16 %v985_v49, %v983_v48  ;;  %5446 = vmatpush1.bf16.msra.mxu0 %v5445_v50  ;;  %v5477_v48 = vpack.c.bf16 %v1012_v45, %v1010_v44  ;;  %v5479_v49 = vpack.c.bf16 %v1017_v47, %v1015_v46  ;;  %v1014_v50 = vld [vmem:[#allocation14 + $0x140] sm:$0xff]  ;;  %v1303_v44 = vld [vmem:[%s9988_s13 + $0x48] sm:$0xff]  ;;  %v1302_v45 = vld [vmem:[%s9988_s13 + $0x40] sm:$0xff] }
 0x485   :  { %5420 = vmatprep.subr.bf16.mxu1 %v5419_v52  ;;  %v982_v52 = vld [vmem:[#allocation14 + $0x40] sm:$0xff]  ;;  %v1305_v46 = vld [vmem:[%s9988_s13 + $0x58] sm:$0xff] }
 0x486   :  { %v5449_v56 = vpack.c.bf16 %v984_v53, %v982_v52  ;;  %5448 = vmatprep.subr.bf16.mxu0 %v5447_v51  ;;  %v1016_v51 = vld [vmem:[#allocation14 + $0x150] sm:$0xff]  ;;  %v1019_v52 = vld [vmem:[#allocation14 + $0x168] sm:$0xff]  ;;  %v1021_v53 = vld [vmem:[#allocation14 + $0x178] sm:$0xff] }
 0x488   :  { %5422 = vmatpush1.bf16.msra.mxu1 %v5421_v57  ;;  %v5451_v57 = vpack.c.bf16 %v989_v55, %v987_v54  ;;  %5450 = vmatpush1.bf16.msra.mxu0 %v5449_v56  ;;  %v5481_v54 = vpack.c.bf16 %v1016_v51, %v1014_v50  ;;  %v5483_v55 = vpack.c.bf16 %v1021_v53, %v1019_v52  ;;  %v1018_v56 = vld [vmem:[#allocation14 + $0x160] sm:$0xff]  ;;  %v1310_v50 = vld [vmem:[%s9988_s13 + $0x80] sm:$0xff]  ;;  %v1309_v53 = vld [vmem:[%s9988_s13 + $0x78] sm:$0xff] }
 0x489   :  { %5424 = vmatprep.subr.bf16.mxu1 %v5423_v58  ;;  %v986_v58 = vld [vmem:[#allocation14 + $0x60] sm:$0xff]  ;;  %v1306_v51 = vld [vmem:[%s9988_s13 + $0x60] sm:$0xff] }
 0x48a   :  { %v5453_v62 = vpack.c.bf16 %v988_v59, %v986_v58  ;;  %5452 = vmatprep.subr.bf16.mxu0 %v5451_v57  ;;  %v1020_v57 = vld [vmem:[#allocation14 + $0x170] sm:$0xff] }
 0x48b   :  { %v5485_v58 = vpack.c.bf16 %v1020_v57, %v1018_v56  ;;  %v1313_v56 = vld [vmem:[%s9988_s13 + $0x98] sm:$0xff]  ;;  %v1316_v57 = vld [vmem:[%s9988_s13 + $0xb0] sm:$0xff] }
 0x48c   :  { %5426 = vmatpush1.bf16.msra.mxu1 %v5425_v63  ;;  %v5455_v63 = vpack.c.bf16 %v993_v61, %v991_v60  ;;  %5454 = vmatpush1.bf16.msra.mxu0 %v5453_v62  ;;  %v972_v62 = vld [vmem:[#allocation11] sm:$0x3] }
 0x48d   :  { %5428 = vmatprep.subr.bf16.mxu1 %v5427_v1  ;;  %v990_v1 = vld [vmem:[#allocation14 + $0x80] sm:$0xff] }
 0x48e   :  { %v5457_v5 = vpack.c.bf16 %v992_v2, %v990_v1  ;;  %5456 = vmatprep.subr.bf16.mxu0 %v5455_v63  ;;  %v973_v63 = vld [vmem:[#allocation13] sm:$0x3]  ;;  %v1133_v1 = vrot.slane %v972_v62, %v8563_v21  ;;  %v1137_v2 = vrot.slane %v972_v62, %v8560_v19 }
 0x48f   :  { %v1315_v62 = vld [vmem:[%s9988_s13 + $0xa8] sm:$0xff] }
 0x490   :  { %5430 = vmatpush1.bf16.msra.mxu1 %v5429_v6  ;;  %v5459_v6 = vpack.c.bf16 %v997_v4, %v995_v3  ;;  %5458 = vmatpush1.bf16.msra.mxu0 %v5457_v5  ;;  %v1146_v5 = vrot.slane %v973_v63, %v8563_v21 }
 0x491   :  { %5432 = vmatprep.subr.bf16.mxu1 %v5431_v7  ;;  %v994_v7 = vld [vmem:[#allocation14 + $0xa0] sm:$0xff] }
 0x492   :  { %v5461_v9 = vpack.c.bf16 %v996_v8, %v994_v7  ;;  %5460 = vmatprep.subr.bf16.mxu0 %v5459_v6  ;;  %v1150_v6 = vrot.slane %v973_v63, %v8560_v19  ;;  %v1314_v63 = vld [vmem:[%s9988_s13 + $0xa0] sm:$0xff] }
 0x494   :  { %5434 = vmatpush1.bf16.msra.mxu1 %v5433_v10  ;;  %5462 = vmatpush1.bf16.msra.mxu0 %v5461_v9 }
 0x495   :  { %5436 = vmatprep.subr.bf16.mxu1 %v5435_v13 }
 0x498   :  { %5438 = vmatpush1.bf16.msra.mxu1 %v5437_v16 }
 0x53e   :  { %v918_v24 = vpop.f32.mrb[0].mxu1 }
 0x53f   :  { %v920_v25 = vpop.f32.mrb[1].mxu1  ;;  %v8569_v27 = vadd.f32 %v918_v24, %v841_v23  ;;  %v998_v24 = vld [vmem:[#allocation14 + $0xc0] sm:$0xff] }
 0x540   :  { %v8567_v26 = vadd.f32 %v920_v25, %v845_v22  ;;  %v1001_v22 = vld [vmem:[#allocation14 + $0xd8] sm:$0xff]  ;;  %v1000_v25 = vld [vmem:[#allocation14 + $0xd0] sm:$0xff] }
 0x541   :  { %v5463_v23 = vpack.c.bf16 %v1001_v22, %v999_v20  ;;  %v5465_v28 = vpack.c.bf16 %v1000_v25, %v998_v24 }
 0x542   :  { %5025 = vmatprep.mubr.msk.f32.mxu1 %vm1036_vm1, %v8567_v26 }
 0x543   :  { %1105 = vmatmul.mubr.f32.vlgmr.msra.gmra.mrb[2].mxu1 %v8569_v27  ;;  %5464 = vmatprep.subr.bf16.mxu0 %v5463_v23 }
 0x544   :  { %5466 = vmatpush1.bf16.msra.mxu0 %v5465_v28 }
 0x616   :  { %v1106_v31 = vpop.f32.mrb[2].mxu1 }
 0x617   :  { %v1108_v32 = vpop.f32.mrb[3].mxu1  ;;  %v1107_v34 = vadd.f32 %v1106_v31, %v1029_v30  ;;  %v1005_v30 = vld [vmem:[#allocation14 + $0xf8] sm:$0xff] }
 0x618   :  { %v1109_v33 = vadd.f32 %v1108_v32, %v1033_v29  ;;  %v1003_v29 = vld [vmem:[#allocation14 + $0xe8] sm:$0xff]  ;;  %v1002_v32 = vld [vmem:[#allocation14 + $0xe0] sm:$0xff] }
 0x619   :  { %v5467_v31 = vpack.c.bf16 %v1005_v30, %v1003_v29  ;;  %v1295_v30 = vld [vmem:[%s9988_s13 + $0x8] sm:$0xff] }
 0x61a   :  { %v1111_v35 = vsel %vm1036_vm1, %v1109_v33, 0.0 }
 0x61b   :  { %v1112_v36 = vadd.f32 %v1111_v35, %v1107_v34  ;;  %5468 = vmatprep.subr.bf16.mxu0 %v5467_v31  ;;  %v1298_v31 = vld [vmem:[%s9988_s13 + $0x20] sm:$0xff] }
 0x61d   :  { %1113 = vadd.xlane.f32.xlu0 %v1112_v36  ;;  %v1009_v36 = vld [vmem:[#allocation14 + $0x118] sm:$0xff] }
 0x6aa   :  { %v1114_v10 = vpop.xlane.xlu0 %1113 }
 0x6ab   :  { %v1115_v11 = vmul.f32 0.0052083335, %v1114_v10 }
 0x6ad   :  { %v8577_v12 = vsub.f32 %v1107_v34, %v1115_v11  ;;  %v8579_v13 = vsub.f32 %v1109_v33, %v1115_v11  ;;  %v1004_v33 = vld [vmem:[#allocation14 + $0xf0] sm:$0xff]  ;;  %v1007_v34 = vld [vmem:[#allocation14 + $0x108] sm:$0xff] }
 0x6ae   :  { %v5469_v35 = vpack.c.bf16 %v1004_v33, %v1002_v32  ;;  %v5471_v39 = vpack.c.bf16 %v1009_v36, %v1007_v34  ;;  %v1294_v32 = vld [vmem:[%s9988_s13] sm:$0xff]  ;;  %v5487_v33 = vpack.c.bf16 %v1298_v31, %v1295_v30  ;;  %v8018_v34 = vmov 0.0|0.0   ;;  %v1296_v36 = vld [vmem:[%s9988_s13 + $0x10] sm:$0xff]  ;;  %v1327_v30 = vld [vmem:[%s9988_s13 + $0x108] sm:$0xff] }
 0x6af   :  { %v1118_v14 = vmul.f32 %v8577_v12, %v8577_v12  ;;  %v1119_v15 = vmul.f32 %v8579_v13, %v8579_v13  ;;  %v1326_v31 = vld [vmem:[%s9988_s13 + $0x100] sm:$0xff] }
 0x6b0   :  { %5470 = vmatpush1.bf16.msra.mxu0 %v5469_v35  ;;  %v1297_v35 = vld [vmem:[%s9988_s13 + $0x18] sm:$0xff]  ;;  %5488 = vmatprep.subr.bf16.mxu1 %v5487_v33 }
 0x6b1   :  { %v1120_v16 = vsel %vm1036_vm1, %v1119_v15, 0.0  ;;  %5472 = vmatprep.subr.bf16.mxu0 %v5471_v39  ;;  %v5489_v38 = vpack.c.bf16 %v1297_v35, %v1294_v32  ;;  %v5536_v39 = vpack.c.bf16 %v1299_v37, %v1296_v36  ;;  %v1329_v33 = vld [vmem:[%s9988_s13 + $0x118] sm:$0xff]  ;;  %v1331_v36 = vld [vmem:[%s9988_s13 + $0x128] sm:$0xff]  ;;  %v1334_v37 = vld [vmem:[%s9988_s13 + $0x140] sm:$0xff] }
 0x6b2   :  { %v1121_v17 = vadd.f32 %v1120_v16, %v1118_v14  ;;  %v5551_v35 = vpack.c.bf16 %v1329_v33, %v1326_v31  ;;  %v1365_v31 = vld [vmem:[%s9988_s13 + $0x238] sm:$0xff] }
 0x6b3   :  { %5490 = vmatpush1.bf16.msra.mxu1 %v5489_v38  ;;  %v5511_v38 = vpack.c.bf16 %v1334_v37, %v1331_v36  ;;  %v1663_v36 = vld [vmem:[%s9989_s8 + $0x18] sm:$0xff]  ;;  %v1511_v37 = vld [vmem:[%s9990_s23 + $0x8] sm:$0xff] }
 0x6b4   :  { %1122 = vadd.xlane.f32.xlu0 %v1121_v17  ;;  %5474 = vmatpush1.bf16.msra.mxu0 %v5473_v42  ;;  %v1300_v42 = vld [vmem:[%s9988_s13 + $0x30] sm:$0xff] }
 0x6b5   :  { %5476 = vmatprep.subr.bf16.mxu0 %v5475_v43  ;;  %v5491_v43 = vpack.c.bf16 %v1304_v41, %v1301_v40  ;;  %v5493_v47 = vpack.c.bf16 %v1303_v44, %v1300_v42  ;;  %v1333_v40 = vld [vmem:[%s9988_s13 + $0x138] sm:$0xff]  ;;  %v1332_v41 = vld [vmem:[%s9988_s13 + $0x130] sm:$0xff] }
 0x6b7   :  { %5492 = vmatprep.subr.bf16.mxu1 %v5491_v43  ;;  %v1335_v43 = vld [vmem:[%s9988_s13 + $0x148] sm:$0xff] }
 0x6b8   :  { %5478 = vmatpush1.bf16.msra.mxu0 %v5477_v48  ;;  %v5539_v48 = vpack.c.bf16 %v1305_v46, %v1302_v45  ;;  %5494 = vmatpush1.bf16.msra.mxu1 %v5493_v47  ;;  %v5554_v44 = vpack.c.bf16 %v1335_v43, %v1332_v41  ;;  %v1337_v45 = vld [vmem:[%s9988_s13 + $0x158] sm:$0xff]  ;;  %v1340_v46 = vld [vmem:[%s9988_s13 + $0x170] sm:$0xff] }
 0x6b9   :  { %5480 = vmatprep.subr.bf16.mxu0 %v5479_v49  ;;  %v1307_v49 = vld [vmem:[%s9988_s13 + $0x68] sm:$0xff]  ;;  %v5515_v47 = vpack.c.bf16 %v1340_v46, %v1337_v45  ;;  %v1024_v45 = vld [vmem:[#allocation19] sm:$0x3] }
 0x6ba   :  { %v5495_v52 = vpack.c.bf16 %v1310_v50, %v1307_v49  ;;  %v1339_v49 = vld [vmem:[%s9988_s13 + $0x168] sm:$0xff]  ;;  %v1338_v50 = vld [vmem:[%s9988_s13 + $0x160] sm:$0xff] }
 0x6bc   :  { %5482 = vmatpush1.bf16.msra.mxu0 %v5481_v54  ;;  %v1308_v54 = vld [vmem:[%s9988_s13 + $0x70] sm:$0xff]  ;;  %5496 = vmatprep.subr.bf16.mxu1 %v5495_v52  ;;  %v1341_v52 = vld [vmem:[%s9988_s13 + $0x178] sm:$0xff] }
 0x6bd   :  { %5484 = vmatprep.subr.bf16.mxu0 %v5483_v55  ;;  %v1311_v55 = vld [vmem:[%s9988_s13 + $0x88] sm:$0xff] }
 0x6c0   :  { %5486 = vmatpush1.bf16.msra.mxu0 %v5485_v58  ;;  %v5497_v58 = vpack.c.bf16 %v1309_v53, %v1306_v51  ;;  %v5557_v53 = vpack.c.bf16 %v1341_v52, %v1338_v50  ;;  %v1279_v52 = vrot.slane %v1024_v45, %v8563_v21 }
 0x6c1   :  { %5535 = vmatprep.subr.bf16.mxu0 %v8018_v34 }
 0x6c2   :  { %5498 = vmatpush1.bf16.msra.mxu1 %v5497_v58  ;;  %v1345_v58 = vld [vmem:[%s9988_s13 + $0x198] sm:$0xff] }
 0x741   :  { %v1123_v59 = vpop.xlane.xlu0 %1122 }
 0x742   :  { %v1124_v60 = vmul.f32 0.0052083335, %v1123_v59  ;;  %v5542_v59 = vpack.c.bf16 %v1311_v55, %v1308_v54  ;;  %v1343_v54 = vld [vmem:[%s9988_s13 + $0x188] sm:$0xff]  ;;  %v1346_v55 = vld [vmem:[%s9988_s13 + $0x1a0] sm:$0xff] }
 0x744   :  { %v1125_v61 = vadd.f32 1e-05, %v1124_v60  ;;  %v1312_v60 = vld [vmem:[%s9988_s13 + $0x90] sm:$0xff] }
 0x746   :  { %6725 = vrsqrt.f32 %v1125_v61  ;;  %v5499_v61 = vpack.c.bf16 %v1316_v57, %v1313_v56  ;;  %v5519_v56 = vpack.c.bf16 %v1346_v55, %v1343_v54  ;;  %v1342_v57 = vld [vmem:[%s9988_s13 + $0x180] sm:$0xff] }
 0x748   :  { %5500 = vmatprep.subr.bf16.mxu1 %v5499_v61  ;;  %v1347_v61 = vld [vmem:[%s9988_s13 + $0x1a8] sm:$0xff] }
 0x750   :  { %v6726_v3 = vpop.eup %6725 }
 0x751   :  { %v1128_v4 = vmul.f32 %v6726_v3, %v8579_v13  ;;  %v1127_v7 = vmul.f32 %v6726_v3, %v8577_v12  ;;  %v1022_v13 = vld [vmem:[#allocation16] sm:$0x3]  ;;  %v1322_v3 = vld [vmem:[%s9988_s13 + $0xe0] sm:$0xff] }
 0x752   :  { %v1167_v20 = vrot.slane %v1022_v13, %v8560_v19  ;;  %v1163_v12 = vrot.slane %v1022_v13, %v8563_v21 }
 0x753   :  { %v1141_v8 = vmul.f32 %v1137_v2, %v1128_v4  ;;  %v1140_v9 = vmul.f32 %v1133_v1, %v1127_v7  ;;  %v1317_v1 = vld [vmem:[%s9988_s13 + $0xb8] sm:$0xff]  ;;  %v1319_v2 = vld [vmem:[%s9988_s13 + $0xc8] sm:$0xff]  ;;  %v5501_v4 = vpack.c.bf16 %v1315_v62, %v1312_v60  ;;  %v5521_v60 = vpack.c.bf16 %v1345_v58, %v1342_v57 }
 0x754   :  { %v5503_v7 = vpack.c.bf16 %v1322_v3, %v1319_v2  ;;  %v1348_v3 = vld [vmem:[%s9988_s13 + $0x1b0] sm:$0xff] }
 0x755   :  { %v1154_v10 = vadd.f32 %v1150_v6, %v1141_v8  ;;  %v1153_v11 = vadd.f32 %v1146_v5, %v1140_v9  ;;  %v5545_v5 = vpack.c.bf16 %v1317_v1, %v1314_v63  ;;  %v1318_v6 = vld [vmem:[%s9988_s13 + $0xc0] sm:$0xff]  ;;  %v1321_v8 = vld [vmem:[%s9988_s13 + $0xd8] sm:$0xff]  ;;  %v1320_v9 = vld [vmem:[%s9988_s13 + $0xd0] sm:$0xff]  ;;  %5502 = vmatpush1.bf16.msra.mxu1 %v5501_v4 }
 0x756   :  { %5504 = vmatprep.subr.bf16.mxu1 %v5503_v7  ;;  %v1349_v63 = vld [vmem:[%s9988_s13 + $0x1b8] sm:$0xff]  ;;  %v1352_v1 = vld [vmem:[%s9988_s13 + $0x1d0] sm:$0xff]  ;;  %v1351_v4 = vld [vmem:[%s9988_s13 + $0x1c8] sm:$0xff] }
 0x757   :  { %v1156_v14 = vmul.f32 0.2, %v1154_v10  ;;  %v1155_v15 = vmul.f32 0.2, %v1153_v11  ;;  %v5523_v2 = vpack.c.bf16 %v1352_v1, %v1349_v63  ;;  %v1353_v7 = vld [vmem:[%s9988_s13 + $0x1d8] sm:$0xff] }
 0x759   :  { %v1158_v16 = vmax.f32 %v1154_v10, %v1156_v14  ;;  %v1157_v17 = vmax.f32 %v1153_v11, %v1155_v15  ;;  %v1323_v10 = vld [vmem:[%s9988_s13 + $0xe8] sm:$0xff]  ;;  %v5505_v11 = vpack.c.bf16 %v1321_v8, %v1318_v6  ;;  %v5525_v6 = vpack.c.bf16 %v1351_v4, %v1348_v3  ;;  %v1517_v3 = vld [vmem:[%s9990_s23 + $0x38] sm:$0xff] }
 0x75a   :  { %v5548_v14 = vpack.c.bf16 %v1323_v10, %v1320_v9  ;;  %v1355_v8 = vld [vmem:[%s9988_s13 + $0x1e8] sm:$0xff]  ;;  %v1358_v9 = vld [vmem:[%s9988_s13 + $0x200] sm:$0xff] }
 0x75b   :  { %5026 = vmatprep.mubr.msk.f32.mxu0 %vm1036_vm1, %v1158_v16  ;;  %5506 = vmatpush1.bf16.msra.mxu1 %v5505_v11  ;;  %v5527_v11 = vpack.c.bf16 %v1358_v9, %v1355_v8 }
 0x75c   :  { %1238 = vmatmul.mubr.f32.vlgmr.msra.gmra.mrb[0].mxu0 %v1157_v17 }
 0x75d   :  { %5537 = vmatpush1.bf16.msra.mxu0 %v5536_v39  ;;  %v1330_v39 = vld [vmem:[%s9988_s13 + $0x120] sm:$0xff] }
 0x75e   :  { %5538 = vmatprep.subr.bf16.mxu0 %v8018_v34  ;;  %v5513_v42 = vpack.c.bf16 %v1333_v40, %v1330_v39  ;;  %v1513_v39 = vld [vmem:[%s9990_s23 + $0x18] sm:$0xff] }
 0x75f   :  { %v5667_v40 = vpack.c.bf16 %v1513_v39, %v1511_v37  ;;  %v1674_v39 = vld [vmem:[%s9989_s8 + $0x70] sm:$0xff] }
 0x761   :  { %5540 = vmatpush1.bf16.msra.mxu0 %v5539_v48  ;;  %v1336_v48 = vld [vmem:[%s9988_s13 + $0x150] sm:$0xff] }
 0x762   :  { %5541 = vmatprep.subr.bf16.mxu0 %v8018_v34  ;;  %v5517_v51 = vpack.c.bf16 %v1339_v49, %v1336_v48 }
 0x765   :  { %5543 = vmatpush1.bf16.msra.mxu0 %v5542_v59  ;;  %v1344_v59 = vld [vmem:[%s9988_s13 + $0x190] sm:$0xff] }
 0x766   :  { %5544 = vmatprep.subr.bf16.mxu0 %v8018_v34  ;;  %v5560_v62 = vpack.c.bf16 %v1347_v61, %v1344_v59  ;;  %v1660_v59 = vld [vmem:[%s9989_s8] sm:$0xff]  ;;  %v1665_v61 = vld [vmem:[%s9989_s8 + $0x28] sm:$0xff] }
 0x769   :  { %5546 = vmatpush1.bf16.msra.mxu0 %v5545_v5  ;;  %v1350_v5 = vld [vmem:[%s9988_s13 + $0x1c0] sm:$0xff] }
 0x76a   :  { %5547 = vmatprep.subr.bf16.mxu0 %v8018_v34  ;;  %v5563_v10 = vpack.c.bf16 %v1353_v7, %v1350_v5  ;;  %v1666_v7 = vld [vmem:[%s9989_s8 + $0x30] sm:$0xff] }
 0x76d   :  { %5549 = vmatpush1.bf16.msra.mxu0 %v5548_v14  ;;  %v1354_v14 = vld [vmem:[%s9988_s13 + $0x1e0] sm:$0xff] }
 0x76e   :  { %5550 = vmatprep.subr.bf16.mxu0 %v8018_v34 }
 0x771   :  { %5552 = vmatpush1.bf16.msra.mxu0 %v5551_v35  ;;  %v1661_v35 = vld [vmem:[%s9989_s8 + $0x8] sm:$0xff] }
 0x772   :  { %5553 = vmatprep.subr.bf16.mxu0 %v8018_v34 }
 0x775   :  { %5555 = vmatpush1.bf16.msra.mxu0 %v5554_v44  ;;  %v1023_v44 = vld [vmem:[#allocation17] sm:$0x3] }
 0x776   :  { %5556 = vmatprep.subr.bf16.mxu0 %v8018_v34  ;;  %v1270_v46 = vrot.slane %v1023_v44, %v8560_v19 }
 0x779   :  { %5558 = vmatpush1.bf16.msra.mxu0 %v5557_v53 }
 0x77a   :  { %5559 = vmatprep.subr.bf16.mxu0 %v8018_v34 }
 0x77d   :  { %5561 = vmatpush1.bf16.msra.mxu0 %v5560_v62  ;;  %v1667_v62 = vld [vmem:[%s9989_s8 + $0x38] sm:$0xff] }
 0x77e   :  { %5562 = vmatprep.subr.bf16.mxu0 %v8018_v34  ;;  %v5575_v8 = vpack.c.bf16 %v1667_v62, %v1665_v61  ;;  %v1682_v61 = vld [vmem:[%s9989_s8 + $0xb0] sm:$0xff] }
 0x781   :  { %5564 = vmatpush1.bf16.msra.mxu0 %v5563_v10  ;;  %v1514_v10 = vld [vmem:[%s9990_s23 + $0x20] sm:$0xff] }
 0x782   :  { %5565 = vmatprep.subr.bf16.mxu0 %v8018_v34 }
 0x82f   :  { %v1239_v22 = vpop.f32.mrb[0].mxu0 }
 0x830   :  { %v1241_v23 = vpop.f32.mrb[1].mxu0  ;;  %v8597_v25 = vadd.f32 %v1239_v22, %v1163_v12 }
 0x831   :  { %v8595_v24 = vadd.f32 %v1241_v23, %v1167_v20 }
 0x833   :  { %v1244_v28 = vsel %vm1036_vm1, %v8595_v24, 0.0 }
 0x834   :  { %v1245_v29 = vadd.f32 %v1244_v28, %v8597_v25  ;;  %v1325_v28 = vld [vmem:[%s9988_s13 + $0xf8] sm:$0xff] }
 0x836   :  { %1246 = vadd.xlane.f32.xlu1 %v1245_v29 }
 0x8c3   :  { %v1247_v15 = vpop.xlane.xlu1 %1246 }
 0x8c4   :  { %v1248_v16 = vmul.f32 0.0052083335, %v1247_v15  ;;  %v1357_v15 = vld [vmem:[%s9988_s13 + $0x1f8] sm:$0xff] }
 0x8c6   :  { %v8639_v17 = vsub.f32 %v8597_v25, %v1248_v16  ;;  %v8642_v13 = vsub.f32 %v8595_v24, %v1248_v16  ;;  %v1328_v25 = vld [vmem:[%s9988_s13 + $0x110] sm:$0xff] }
 0x8c7   :  { %v5507_v29 = vpack.c.bf16 %v1328_v25, %v1325_v28  ;;  %v1324_v24 = vld [vmem:[%s9988_s13 + $0xf0] sm:$0xff] }
 0x8c8   :  { %v1251_v20 = vmul.f32 %v8639_v17, %v8639_v17  ;;  %v1252_v12 = vmul.f32 %v8642_v13, %v8642_v13  ;;  %v5509_v32 = vpack.c.bf16 %v1327_v30, %v1324_v24  ;;  %v1356_v16 = vld [vmem:[%s9988_s13 + $0x1f0] sm:$0xff]  ;;  %v1363_v24 = vld [vmem:[%s9988_s13 + $0x228] sm:$0xff]  ;;  %v1362_v30 = vld [vmem:[%s9988_s13 + $0x220] sm:$0xff] }
 0x8c9   :  { %5508 = vmatprep.subr.bf16.mxu1 %v5507_v29  ;;  %v1360_v29 = vld [vmem:[%s9988_s13 + $0x210] sm:$0xff]  ;;  %v5569_v33 = vpack.c.bf16 %v1365_v31, %v1362_v30  ;;  %v1673_v31 = vld [vmem:[%s9989_s8 + $0x68] sm:$0xff] }
 0x8ca   :  { %v1253_v22 = vsel %vm1036_vm1, %v1252_v12, 0.0  ;;  %5510 = vmatpush1.bf16.msra.mxu1 %v5509_v32  ;;  %v1359_v12 = vld [vmem:[%s9988_s13 + $0x208] sm:$0xff]  ;;  %v5533_v32 = vpack.c.bf16 %v1363_v24, %v1360_v29  ;;  %v1518_v24 = vld [vmem:[%s9990_s23 + $0x40] sm:$0xff]  ;;  %v1520_v30 = vld [vmem:[%s9990_s23 + $0x50] sm:$0xff] }
 0x8cb   :  { %v1254_v23 = vadd.f32 %v1253_v22, %v1251_v20  ;;  %5512 = vmatprep.subr.bf16.mxu1 %v5511_v38  ;;  %v5529_v20 = vpack.c.bf16 %v1357_v15, %v1354_v14  ;;  %v1361_v22 = vld [vmem:[%s9988_s13 + $0x218] sm:$0xff]  ;;  %v5566_v28 = vpack.c.bf16 %v1359_v12, %v1356_v16  ;;  %v5571_v38 = vpack.c.bf16 %v1663_v36, %v1661_v35  ;;  %v1669_v14 = vld [vmem:[%s9989_s8 + $0x48] sm:$0xff] }
 0x8cc   :  { %v1671_v15 = vld [vmem:[%s9989_s8 + $0x58] sm:$0xff]  ;;  %v1519_v16 = vld [vmem:[%s9990_s23 + $0x48] sm:$0xff]  ;;  %v5677_v37 = vpack.c.bf16 %v1520_v30, %v1518_v24  ;;  %v1538_v30 = vld [vmem:[%s9990_s23 + $0xe0] sm:$0xff] }
 0x8cd   :  { %1255 = vadd.xlane.f32.xlu1 %v1254_v23  ;;  %v1364_v23 = vld [vmem:[%s9988_s13 + $0x230] sm:$0xff]  ;;  %5567 = vmatpush1.bf16.msra.mxu0 %v5566_v28  ;;  %v1525_v35 = vld [vmem:[%s9990_s23 + $0x78] sm:$0xff] }
 0x8ce   :  { %5514 = vmatpush1.bf16.msra.mxu1 %v5513_v42  ;;  %v5531_v25 = vpack.c.bf16 %v1364_v23, %v1361_v22  ;;  %5568 = vmatprep.subr.bf16.mxu0 %v8018_v34  ;;  %v1668_v23 = vld [vmem:[%s9989_s8 + $0x40] sm:$0xff]  ;;  %v1670_v28 = vld [vmem:[%s9989_s8 + $0x50] sm:$0xff] }
 0x8cf   :  { %5516 = vmatprep.subr.bf16.mxu1 %v5515_v47  ;;  %v1266_v47 = vrot.slane %v1023_v44, %v8563_v21  ;;  %v5581_v36 = vpack.c.bf16 %v1670_v28, %v1668_v23  ;;  %v1677_v44 = vld [vmem:[%s9989_s8 + $0x88] sm:$0xff]  ;;  %v1688_v28 = vld [vmem:[%s9989_s8 + $0xe0] sm:$0xff] }
 0x8d1   :  { %5570 = vmatpush1.bf16.msra.mxu0 %v5569_v33  ;;  %v1523_v33 = vld [vmem:[%s9990_s23 + $0x68] sm:$0xff] }
 0x8d2   :  { %5518 = vmatpush1.bf16.msra.mxu1 %v5517_v51  ;;  %5668 = vmatprep.subr.bf16.mxu0 %v5667_v40  ;;  %v1283_v51 = vrot.slane %v1024_v45, %v8560_v19  ;;  %v1679_v45 = vld [vmem:[%s9989_s8 + $0x98] sm:$0xff] }
 0x8d3   :  { %5520 = vmatprep.subr.bf16.mxu1 %v5519_v56 }
 0x8d6   :  { %5522 = vmatpush1.bf16.msra.mxu1 %v5521_v60  ;;  %v1510_v60 = vld [vmem:[%s9990_s23] sm:$0xff] }
 0x8d7   :  { %5524 = vmatprep.subr.bf16.mxu1 %v5523_v2  ;;  %v1515_v2 = vld [vmem:[%s9990_s23 + $0x28] sm:$0xff] }
 0x8d8   :  { %v5671_v9 = vpack.c.bf16 %v1517_v3, %v1515_v2  ;;  %v1532_v2 = vld [vmem:[%s9990_s23 + $0xb0] sm:$0xff]  ;;  %v1685_v3 = vld [vmem:[%s9989_s8 + $0xc8] sm:$0xff] }
 0x8da   :  { %5526 = vmatpush1.bf16.msra.mxu1 %v5525_v6  ;;  %v1664_v6 = vld [vmem:[%s9989_s8 + $0x20] sm:$0xff] }
 0x8db   :  { %5528 = vmatprep.subr.bf16.mxu1 %v5527_v11  ;;  %v1516_v11 = vld [vmem:[%s9990_s23 + $0x30] sm:$0xff]  ;;  %v5577_v12 = vpack.c.bf16 %v1666_v7, %v1664_v6  ;;  %v1684_v7 = vld [vmem:[%s9989_s8 + $0xc0] sm:$0xff] }
 0x8dc   :  { %v5673_v22 = vpack.c.bf16 %v1516_v11, %v1514_v10  ;;  %v1534_v11 = vld [vmem:[%s9990_s23 + $0xc0] sm:$0xff] }
 0x8de   :  { %5530 = vmatpush1.bf16.msra.mxu1 %v5529_v20  ;;  %v1521_v20 = vld [vmem:[%s9990_s23 + $0x58] sm:$0xff] }
 0x8df   :  { %5532 = vmatprep.subr.bf16.mxu1 %v5531_v25  ;;  %v5579_v25 = vpack.c.bf16 %v1671_v15, %v1669_v14  ;;  %v5675_v29 = vpack.c.bf16 %v1521_v20, %v1519_v16  ;;  %v1536_v14 = vld [vmem:[%s9990_s23 + $0xd0] sm:$0xff]  ;;  %v1689_v15 = vld [vmem:[%s9989_s8 + $0xe8] sm:$0xff]  ;;  %v1691_v16 = vld [vmem:[%s9989_s8 + $0xf8] sm:$0xff] }
 0x8e0   :  { %v1539_v20 = vld [vmem:[%s9990_s23 + $0xe8] sm:$0xff]  ;;  %v5693_v23 = vpack.c.bf16 %v1536_v14, %v1534_v11  ;;  %v1554_v14 = vld [vmem:[%s9990_s23 + $0x160] sm:$0xff] }
 0x8e2   :  { %5534 = vmatpush1.bf16.msra.mxu1 %v5533_v32  ;;  %v1675_v32 = vld [vmem:[%s9989_s8 + $0x78] sm:$0xff] }
 0x8e3   :  { %5572 = vmatprep.subr.bf16.mxu1 %v5571_v38  ;;  %v1672_v38 = vld [vmem:[%s9989_s8 + $0x60] sm:$0xff]  ;;  %v5583_v40 = vpack.c.bf16 %v1675_v32, %v1673_v31  ;;  %v1540_v31 = vld [vmem:[%s9990_s23 + $0xf0] sm:$0xff]  ;;  %v1693_v32 = vld [vmem:[%s9989_s8 + $0x108] sm:$0xff] }
 0x95a   :  { %v1256_v41 = vpop.xlane.xlu1 %1255 }
 0x95b   :  { %v1257_v42 = vmul.f32 0.0052083335, %v1256_v41  ;;  %v5679_v41 = vpack.c.bf16 %v1525_v35, %v1523_v33  ;;  %v1695_v33 = vld [vmem:[%s9989_s8 + $0x118] sm:$0xff]  ;;  %v1543_v35 = vld [vmem:[%s9990_s23 + $0x108] sm:$0xff] }
 0x95d   :  { %v1258_v43 = vadd.f32 1e-05, %v1257_v42  ;;  %v1522_v42 = vld [vmem:[%s9990_s23 + $0x60] sm:$0xff] }
 0x95f   :  { %6727 = vrsqrt.f32 %v1258_v43  ;;  %v1524_v43 = vld [vmem:[%s9990_s23 + $0x70] sm:$0xff] }
 0x969   :  { %v6728_v48 = vpop.eup %6727 }
 0x96a   :  { %v1260_v49 = vmul.f32 %v6728_v48, %v8639_v17  ;;  %v1261_v50 = vmul.f32 %v6728_v48, %v8642_v13  ;;  %v1662_v17 = vld [vmem:[%s9989_s8 + $0x10] sm:$0xff]  ;;  %v5585_v48 = vpack.c.bf16 %v1674_v39, %v1672_v38  ;;  %v5697_v38 = vpack.c.bf16 %v1540_v31, %v1538_v30  ;;  %v1692_v39 = vld [vmem:[%s9989_s8 + $0x100] sm:$0xff] }
 0x96b   :  { %v1512_v13 = vld [vmem:[%s9990_s23 + $0x10] sm:$0xff]  ;;  %v1558_v31 = vld [vmem:[%s9990_s23 + $0x180] sm:$0xff] }
 0x96c   :  { %v1274_v53 = vmul.f32 %v1270_v46, %v1261_v50  ;;  %v1273_v54 = vmul.f32 %v1266_v47, %v1260_v49  ;;  %v5669_v5 = vpack.c.bf16 %v1512_v13, %v1510_v60  ;;  %v1527_v46 = vld [vmem:[%s9990_s23 + $0x88] sm:$0xff]  ;;  %v1529_v47 = vld [vmem:[%s9990_s23 + $0x98] sm:$0xff]  ;;  %v5681_v49 = vpack.c.bf16 %v1524_v43, %v1522_v42  ;;  %v1676_v50 = vld [vmem:[%s9989_s8 + $0x80] sm:$0xff] }
 0x96d   :  { %v1680_v13 = vld [vmem:[%s9989_s8 + $0xa0] sm:$0xff] }
 0x96e   :  { %v1287_v55 = vadd.f32 %v1283_v51, %v1274_v53  ;;  %v1286_v56 = vadd.f32 %v1279_v52, %v1273_v54  ;;  %v1678_v51 = vld [vmem:[%s9989_s8 + $0x90] sm:$0xff]  ;;  %v5587_v52 = vpack.c.bf16 %v1679_v45, %v1677_v44  ;;  %v5683_v53 = vpack.c.bf16 %v1529_v47, %v1527_v46  ;;  %v1526_v54 = vld [vmem:[%s9990_s23 + $0x80] sm:$0xff]  ;;  %v1697_v45 = vld [vmem:[%s9989_s8 + $0x128] sm:$0xff] }
 0x96f   :  { %v1542_v43 = vld [vmem:[%s9990_s23 + $0x100] sm:$0xff]  ;;  %v1544_v44 = vld [vmem:[%s9990_s23 + $0x110] sm:$0xff]  ;;  %v1699_v46 = vld [vmem:[%s9989_s8 + $0x138] sm:$0xff] }
 0x970   :  { %v1289_v57 = vadd.f32 %v1287_v55, %v8567_v26  ;;  %v1288_v58 = vadd.f32 %v1286_v56, %v8569_v27  ;;  %v5573_v27 = vpack.c.bf16 %v1662_v17, %v1660_v59  ;;  %v1528_v55 = vld [vmem:[%s9990_s23 + $0x90] sm:$0xff]  ;;  %v1681_v56 = vld [vmem:[%s9989_s8 + $0xa8] sm:$0xff]  ;;  %v1533_v59 = vld [vmem:[%s9990_s23 + $0xb8] sm:$0xff]  ;;  %v5589_v17 = vpack.c.bf16 %v1678_v51, %v1676_v50 }
 0x971   :  { %v5685_v60 = vpack.c.bf16 %v1528_v55, %v1526_v54  ;;  %v1547_v47 = vld [vmem:[%s9990_s23 + $0x128] sm:$0xff]  ;;  %v5701_v50 = vpack.c.bf16 %v1544_v44, %v1542_v43  ;;  %v1696_v51 = vld [vmem:[%s9989_s8 + $0x120] sm:$0xff] }
 0x972   :  { %v1291_v63 = vmul.f32 0.2, %v1289_v57  ;;  %v1290_v1 = vmul.f32 0.2, %v1288_v58  ;;  %v1546_v55 = vld [vmem:[%s9990_s23 + $0x120] sm:$0xff] }
 0x973   :  { %v1562_v44 = vld [vmem:[%s9990_s23 + $0x1a0] sm:$0xff] }
 0x974   :  { %v1293_v26 = vmax.f32 %v1289_v57, %v1291_v63  ;;  %v1292_v4 = vmax.f32 %v1288_v58, %v1290_v1  ;;  %v1683_v57 = vld [vmem:[%s9989_s8 + $0xb8] sm:$0xff]  ;;  %v1531_v58 = vld [vmem:[%s9990_s23 + $0xa8] sm:$0xff]  ;;  %v1530_v1 = vld [vmem:[%s9990_s23 + $0xa0] sm:$0xff] }
 0x975   :  { %v5591_v62 = vpack.c.bf16 %v1683_v57, %v1681_v56  ;;  %v5687_v63 = vpack.c.bf16 %v1533_v59, %v1531_v58  ;;  %v5689_v6 = vpack.c.bf16 %v1532_v2, %v1530_v1  ;;  %v1548_v56 = vld [vmem:[%s9990_s23 + $0x130] sm:$0xff]  ;;  %v1701_v57 = vld [vmem:[%s9989_s8 + $0x148] sm:$0xff]  ;;  %v1703_v58 = vld [vmem:[%s9989_s8 + $0x158] sm:$0xff] }
 0x976   :  { %5027 = vmatprep.mubr.msk.f32.mxu1 %vm1036_vm1, %v1293_v26  ;;  %5028 = vmatprep.mubr.msk.f32.mxu0 %vm1036_vm1, %v1293_v26  ;;  %v1687_v26 = vld [vmem:[%s9989_s8 + $0xd8] sm:$0xff]  ;;  %v1551_v59 = vld [vmem:[%s9990_s23 + $0x148] sm:$0xff]  ;;  %v1550_v2 = vld [vmem:[%s9990_s23 + $0x140] sm:$0xff] }
 0x977   :  { %1434 = vmatmul.mubr.f32.vlgmr.msra.gmra.mrb[4].mxu1 %v1292_v4  ;;  %1505 = vmatmul.mubr.f32.vlgmr.msra.gmra.mrb[2].mxu0 %v1292_v4  ;;  %v1535_v4 = vld [vmem:[%s9990_s23 + $0xc8] sm:$0xff] }
 0x978   :  { %5574 = vmatpush1.bf16.msra.mxu1 %v5573_v27  ;;  %5670 = vmatpush1.bf16.msra.mxu0 %v5669_v5  ;;  %v1537_v27 = vld [vmem:[%s9990_s23 + $0xd8] sm:$0xff]  ;;  %v5593_v5 = vpack.c.bf16 %v1682_v61, %v1680_v13  ;;  %v5705_v13 = vpack.c.bf16 %v1548_v56, %v1546_v55  ;;  %v1700_v61 = vld [vmem:[%s9989_s8 + $0x140] sm:$0xff] }
 0x979   :  { %5576 = vmatprep.subr.bf16.mxu1 %v5575_v8  ;;  %5672 = vmatprep.subr.bf16.mxu0 %v5671_v9  ;;  %v1686_v8 = vld [vmem:[%s9989_s8 + $0xd0] sm:$0xff]  ;;  %v5595_v9 = vpack.c.bf16 %v1687_v26, %v1685_v3  ;;  %v5691_v10 = vpack.c.bf16 %v1537_v27, %v1535_v4  ;;  %v1705_v26 = vld [vmem:[%s9989_s8 + $0x168] sm:$0xff]  ;;  %v1707_v4 = vld [vmem:[%s9989_s8 + $0x178] sm:$0xff] }
 0x97a   :  { %v1552_v3 = vld [vmem:[%s9990_s23 + $0x150] sm:$0xff]  ;;  %v1555_v27 = vld [vmem:[%s9990_s23 + $0x168] sm:$0xff]  ;;  %v1566_v56 = vld [vmem:[%s9990_s23 + $0x1c0] sm:$0xff] }
 0x97c   :  { %5578 = vmatpush1.bf16.msra.mxu1 %v5577_v12  ;;  %5674 = vmatpush1.bf16.msra.mxu0 %v5673_v22  ;;  %v1541_v12 = vld [vmem:[%s9990_s23 + $0xf8] sm:$0xff]  ;;  %v5597_v22 = vpack.c.bf16 %v1686_v8, %v1684_v7  ;;  %v5709_v7 = vpack.c.bf16 %v1552_v3, %v1550_v2  ;;  %v1704_v8 = vld [vmem:[%s9989_s8 + $0x160] sm:$0xff]  ;;  %v1722_v2 = vld [vmem:[%s9989_s8 + $0x1f0] sm:$0xff] }
 0x97d   :  { %5580 = vmatprep.subr.bf16.mxu1 %v5579_v25  ;;  %5676 = vmatprep.subr.bf16.mxu0 %v5675_v29  ;;  %v1690_v25 = vld [vmem:[%s9989_s8 + $0xf0] sm:$0xff]  ;;  %v5599_v29 = vpack.c.bf16 %v1691_v16, %v1689_v15  ;;  %v5695_v24 = vpack.c.bf16 %v1541_v12, %v1539_v20  ;;  %v1709_v16 = vld [vmem:[%s9989_s8 + $0x188] sm:$0xff]  ;;  %v1711_v20 = vld [vmem:[%s9989_s8 + $0x198] sm:$0xff] }
 0x97e   :  { %v1556_v15 = vld [vmem:[%s9990_s23 + $0x170] sm:$0xff]  ;;  %v1559_v12 = vld [vmem:[%s9990_s23 + $0x188] sm:$0xff]  ;;  %v1570_v3 = vld [vmem:[%s9990_s23 + $0x1e0] sm:$0xff] }
 0x980   :  { %5582 = vmatpush1.bf16.msra.mxu1 %v5581_v36  ;;  %5678 = vmatpush1.bf16.msra.mxu0 %v5677_v37  ;;  %v1545_v36 = vld [vmem:[%s9990_s23 + $0x118] sm:$0xff]  ;;  %v5601_v37 = vpack.c.bf16 %v1690_v25, %v1688_v28  ;;  %v5713_v28 = vpack.c.bf16 %v1556_v15, %v1554_v14  ;;  %v1708_v25 = vld [vmem:[%s9989_s8 + $0x180] sm:$0xff]  ;;  %v1726_v14 = vld [vmem:[%s9989_s8 + $0x210] sm:$0xff] }
 0x981   :  { %5584 = vmatprep.subr.bf16.mxu1 %v5583_v40  ;;  %5680 = vmatprep.subr.bf16.mxu0 %v5679_v41  ;;  %v1694_v40 = vld [vmem:[%s9989_s8 + $0x110] sm:$0xff]  ;;  %v5603_v41 = vpack.c.bf16 %v1695_v33, %v1693_v32  ;;  %v5699_v42 = vpack.c.bf16 %v1545_v36, %v1543_v35  ;;  %v1713_v33 = vld [vmem:[%s9989_s8 + $0x1a8] sm:$0xff]  ;;  %v1715_v35 = vld [vmem:[%s9989_s8 + $0x1b8] sm:$0xff] }
 0x982   :  { %v1560_v32 = vld [vmem:[%s9990_s23 + $0x190] sm:$0xff]  ;;  %v1563_v36 = vld [vmem:[%s9990_s23 + $0x1a8] sm:$0xff]  ;;  %v1574_v15 = vld [vmem:[%s9990_s23 + $0x200] sm:$0xff] }
 0x984   :  { %5586 = vmatpush1.bf16.msra.mxu1 %v5585_v48  ;;  %5682 = vmatpush1.bf16.msra.mxu0 %v5681_v49  ;;  %v1549_v48 = vld [vmem:[%s9990_s23 + $0x138] sm:$0xff]  ;;  %v5605_v49 = vpack.c.bf16 %v1694_v40, %v1692_v39  ;;  %v5717_v39 = vpack.c.bf16 %v1560_v32, %v1558_v31  ;;  %v1712_v40 = vld [vmem:[%s9989_s8 + $0x1a0] sm:$0xff]  ;;  %v1730_v31 = vld [vmem:[%s9989_s8 + $0x230] sm:$0xff] }
 0x985   :  { %5588 = vmatprep.subr.bf16.mxu1 %v5587_v52  ;;  %5684 = vmatprep.subr.bf16.mxu0 %v5683_v53  ;;  %v1698_v52 = vld [vmem:[%s9989_s8 + $0x130] sm:$0xff]  ;;  %v5607_v53 = vpack.c.bf16 %v1699_v46, %v1697_v45  ;;  %v5703_v54 = vpack.c.bf16 %v1549_v48, %v1547_v47  ;;  %v1717_v46 = vld [vmem:[%s9989_s8 + $0x1c8] sm:$0xff]  ;;  %v1719_v47 = vld [vmem:[%s9989_s8 + $0x1d8] sm:$0xff] }
 0x986   :  { %v1564_v45 = vld [vmem:[%s9990_s23 + $0x1b0] sm:$0xff]  ;;  %v1567_v48 = vld [vmem:[%s9990_s23 + $0x1c8] sm:$0xff] }
 0x988   :  { %5590 = vmatpush1.bf16.msra.mxu1 %v5589_v17  ;;  %5686 = vmatpush1.bf16.msra.mxu0 %v5685_v60  ;;  %v1553_v17 = vld [vmem:[%s9990_s23 + $0x158] sm:$0xff]  ;;  %v5609_v60 = vpack.c.bf16 %v1698_v52, %v1696_v51  ;;  %v5721_v51 = vpack.c.bf16 %v1564_v45, %v1562_v44  ;;  %v1716_v52 = vld [vmem:[%s9989_s8 + $0x1c0] sm:$0xff] }
 0x989   :  { %5592 = vmatprep.subr.bf16.mxu1 %v5591_v62  ;;  %5688 = vmatprep.subr.bf16.mxu0 %v5687_v63  ;;  %v1702_v62 = vld [vmem:[%s9989_s8 + $0x150] sm:$0xff]  ;;  %v5611_v63 = vpack.c.bf16 %v1703_v58, %v1701_v57  ;;  %v5707_v1 = vpack.c.bf16 %v1553_v17, %v1551_v59  ;;  %v1721_v58 = vld [vmem:[%s9989_s8 + $0x1e8] sm:$0xff]  ;;  %v1723_v59 = vld [vmem:[%s9989_s8 + $0x1f8] sm:$0xff] }
 0x98a   :  { %v1568_v57 = vld [vmem:[%s9990_s23 + $0x1d0] sm:$0xff]  ;;  %v1571_v17 = vld [vmem:[%s9990_s23 + $0x1e8] sm:$0xff]  ;;  %v1732_v45 = vld [vmem:[%s9989_s8 + $0x240] sm:$0xff] }
 0x98c   :  { %5594 = vmatpush1.bf16.msra.mxu1 %v5593_v5  ;;  %5690 = vmatpush1.bf16.msra.mxu0 %v5689_v6  ;;  %v1557_v5 = vld [vmem:[%s9990_s23 + $0x178] sm:$0xff]  ;;  %v5613_v6 = vpack.c.bf16 %v1702_v62, %v1700_v61  ;;  %v5725_v61 = vpack.c.bf16 %v1568_v57, %v1566_v56  ;;  %v1720_v62 = vld [vmem:[%s9989_s8 + $0x1e0] sm:$0xff] }
 0x98d   :  { %5596 = vmatprep.subr.bf16.mxu1 %v5595_v9  ;;  %5692 = vmatprep.subr.bf16.mxu0 %v5691_v10  ;;  %v1706_v9 = vld [vmem:[%s9989_s8 + $0x170] sm:$0xff]  ;;  %v5615_v10 = vpack.c.bf16 %v1707_v4, %v1705_v26  ;;  %v5711_v11 = vpack.c.bf16 %v1557_v5, %v1555_v27  ;;  %v5633_v4 = vpack.c.bf16 %v1722_v2, %v1720_v62  ;;  %v1725_v5 = vld [vmem:[%s9989_s8 + $0x208] sm:$0xff]  ;;  %v1736_v57 = vld [vmem:[%s9989_s8 + $0x260] sm:$0xff] }
 0x98e   :  { %v1572_v26 = vld [vmem:[%s9990_s23 + $0x1f0] sm:$0xff]  ;;  %v1743_v62 = vld [vmem:[%s9989_s8 + $0x298] sm:$0xff] }
 0x98f   :  { %v5729_v27 = vpack.c.bf16 %v1572_v26, %v1570_v3  ;;  %v1740_v26 = vld [vmem:[%s9989_s8 + $0x280] sm:$0xff] }
 0x990   :  { %5598 = vmatpush1.bf16.msra.mxu1 %v5597_v22  ;;  %5694 = vmatpush1.bf16.msra.mxu0 %v5693_v23  ;;  %v1561_v22 = vld [vmem:[%s9990_s23 + $0x198] sm:$0xff]  ;;  %v5617_v23 = vpack.c.bf16 %v1706_v9, %v1704_v8 }
 0x991   :  { %5600 = vmatprep.subr.bf16.mxu1 %v5599_v29  ;;  %5696 = vmatprep.subr.bf16.mxu0 %v5695_v24  ;;  %v1710_v29 = vld [vmem:[%s9989_s8 + $0x190] sm:$0xff]  ;;  %v5619_v24 = vpack.c.bf16 %v1711_v20, %v1709_v16  ;;  %v5715_v30 = vpack.c.bf16 %v1561_v22, %v1559_v12  ;;  %v1577_v9 = vld [vmem:[%s9990_s23 + $0x218] sm:$0xff]  ;;  %v1729_v20 = vld [vmem:[%s9989_s8 + $0x228] sm:$0xff] }
 0x992   :  { %v1576_v16 = vld [vmem:[%s9990_s23 + $0x210] sm:$0xff]  ;;  %v1731_v12 = vld [vmem:[%s9989_s8 + $0x238] sm:$0xff]  ;;  %v1579_v22 = vld [vmem:[%s9990_s23 + $0x228] sm:$0xff] }
 0x994   :  { %5602 = vmatpush1.bf16.msra.mxu1 %v5601_v37  ;;  %5698 = vmatpush1.bf16.msra.mxu0 %v5697_v38  ;;  %v1565_v37 = vld [vmem:[%s9990_s23 + $0x1b8] sm:$0xff]  ;;  %v5621_v38 = vpack.c.bf16 %v1710_v29, %v1708_v25 }
 0x995   :  { %5604 = vmatprep.subr.bf16.mxu1 %v5603_v41  ;;  %5700 = vmatprep.subr.bf16.mxu0 %v5699_v42  ;;  %v1714_v41 = vld [vmem:[%s9989_s8 + $0x1b0] sm:$0xff]  ;;  %v5623_v42 = vpack.c.bf16 %v1715_v35, %v1713_v33  ;;  %v5719_v43 = vpack.c.bf16 %v1565_v37, %v1563_v36  ;;  %v5639_v35 = vpack.c.bf16 %v1731_v12, %v1729_v20  ;;  %v1578_v37 = vld [vmem:[%s9990_s23 + $0x220] sm:$0xff] }
 0x996   :  { %v1746_v20 = vld [vmem:[%s9989_s8 + $0x2b0] sm:$0xff] }
 0x998   :  { %5606 = vmatpush1.bf16.msra.mxu1 %v5605_v49  ;;  %5702 = vmatpush1.bf16.msra.mxu0 %v5701_v50  ;;  %v1569_v49 = vld [vmem:[%s9990_s23 + $0x1d8] sm:$0xff]  ;;  %v5625_v50 = vpack.c.bf16 %v1714_v41, %v1712_v40  ;;  %v1583_v41 = vld [vmem:[%s9990_s23 + $0x248] sm:$0xff] }
 0x999   :  { %5608 = vmatprep.subr.bf16.mxu1 %v5607_v53  ;;  %5704 = vmatprep.subr.bf16.mxu0 %v5703_v54  ;;  %v1718_v53 = vld [vmem:[%s9989_s8 + $0x1d0] sm:$0xff]  ;;  %v5627_v54 = vpack.c.bf16 %v1719_v47, %v1717_v46  ;;  %v5723_v55 = vpack.c.bf16 %v1569_v49, %v1567_v48  ;;  %v1735_v40 = vld [vmem:[%s9989_s8 + $0x258] sm:$0xff]  ;;  %v1582_v49 = vld [vmem:[%s9990_s23 + $0x240] sm:$0xff] }
 0x99a   :  { %v1734_v46 = vld [vmem:[%s9989_s8 + $0x250] sm:$0xff] }
 0x99c   :  { %5610 = vmatpush1.bf16.msra.mxu1 %v5609_v60  ;;  %5706 = vmatpush1.bf16.msra.mxu0 %v5705_v13  ;;  %v1573_v60 = vld [vmem:[%s9990_s23 + $0x1f8] sm:$0xff]  ;;  %v5629_v13 = vpack.c.bf16 %v1718_v53, %v1716_v52  ;;  %v1587_v53 = vld [vmem:[%s9990_s23 + $0x268] sm:$0xff] }
 0x99d   :  { %5612 = vmatprep.subr.bf16.mxu1 %v5611_v63  ;;  %5708 = vmatprep.subr.bf16.mxu0 %v5707_v1  ;;  %v5631_v63 = vpack.c.bf16 %v1723_v59, %v1721_v58  ;;  %v5727_v1 = vpack.c.bf16 %v1573_v60, %v1571_v17  ;;  %v1739_v52 = vld [vmem:[%s9989_s8 + $0x278] sm:$0xff]  ;;  %v1738_v58 = vld [vmem:[%s9989_s8 + $0x270] sm:$0xff]  ;;  %v1586_v60 = vld [vmem:[%s9990_s23 + $0x260] sm:$0xff] }
 0x99e   :  { %v5649_v2 = vpack.c.bf16 %v1738_v58, %v1736_v57 }
 0x9a0   :  { %5614 = vmatpush1.bf16.msra.mxu1 %v5613_v6  ;;  %5710 = vmatpush1.bf16.msra.mxu0 %v5709_v7  ;;  %v1727_v6 = vld [vmem:[%s9989_s8 + $0x218] sm:$0xff]  ;;  %v1575_v7 = vld [vmem:[%s9990_s23 + $0x208] sm:$0xff] }
 0x9a1   :  { %5616 = vmatprep.subr.bf16.mxu1 %v5615_v10  ;;  %5712 = vmatprep.subr.bf16.mxu0 %v5711_v11  ;;  %v5635_v8 = vpack.c.bf16 %v1727_v6, %v1725_v5  ;;  %v5731_v10 = vpack.c.bf16 %v1577_v9, %v1575_v7  ;;  %v1724_v11 = vld [vmem:[%s9989_s8 + $0x200] sm:$0xff]  ;;  %v1592_v7 = vld [vmem:[%s9990_s23 + $0x290] sm:$0xff]  ;;  %v1747_v9 = vld [vmem:[%s9989_s8 + $0x2b8] sm:$0xff] }
 0x9a2   :  { %v5637_v29 = vpack.c.bf16 %v1726_v14, %v1724_v11  ;;  %v1590_v6 = vld [vmem:[%s9990_s23 + $0x280] sm:$0xff]  ;;  %v1597_v11 = vld [vmem:[%s9990_s23 + $0x2b8] sm:$0xff] }
 0x9a4   :  { %5618 = vmatpush1.bf16.msra.mxu1 %v5617_v23  ;;  %5714 = vmatpush1.bf16.msra.mxu0 %v5713_v28  ;;  %v1581_v23 = vld [vmem:[%s9990_s23 + $0x238] sm:$0xff] }
 0x9a5   :  { %5620 = vmatprep.subr.bf16.mxu1 %v5619_v24  ;;  %5716 = vmatprep.subr.bf16.mxu0 %v5715_v30  ;;  %v5733_v24 = vpack.c.bf16 %v1576_v16, %v1574_v15  ;;  %v1728_v30 = vld [vmem:[%s9989_s8 + $0x220] sm:$0xff]  ;;  %v5735_v36 = vpack.c.bf16 %v1581_v23, %v1579_v22  ;;  %v5749_v15 = vpack.c.bf16 %v1592_v7, %v1590_v6 }
 0x9a6   :  { %v1744_v16 = vld [vmem:[%s9989_s8 + $0x2a0] sm:$0xff] }
 0x9a7   :  { %v1594_v23 = vld [vmem:[%s9990_s23 + $0x2a0] sm:$0xff] }
 0x9a8   :  { %5622 = vmatpush1.bf16.msra.mxu1 %v5621_v38  ;;  %5718 = vmatpush1.bf16.msra.mxu0 %v5717_v39  ;;  %v1580_v38 = vld [vmem:[%s9990_s23 + $0x230] sm:$0xff]  ;;  %v1733_v39 = vld [vmem:[%s9989_s8 + $0x248] sm:$0xff]  ;;  %v1613_v7 = vld [vmem:[#allocation25 + $0x20] sm:$0xff] }
 0x9a9   :  { %5624 = vmatprep.subr.bf16.mxu1 %v5623_v42  ;;  %5720 = vmatprep.subr.bf16.mxu0 %v5719_v43  ;;  %v1585_v42 = vld [vmem:[%s9990_s23 + $0x258] sm:$0xff]  ;;  %v5641_v43 = vpack.c.bf16 %v1730_v31, %v1728_v30  ;;  %v5737_v44 = vpack.c.bf16 %v1580_v38, %v1578_v37  ;;  %v5643_v47 = vpack.c.bf16 %v1735_v40, %v1733_v39  ;;  %v1599_v30 = vld [vmem:[%s9990_s23 + $0x2c8] sm:$0xff]  ;;  %v1598_v39 = vld [vmem:[%s9990_s23 + $0x2c0] sm:$0xff] }
 0x9aa   :  { %v5739_v48 = vpack.c.bf16 %v1585_v42, %v1583_v41  ;;  %v1601_v31 = vld [vmem:[%s9990_s23 + $0x2d8] sm:$0xff]  ;;  %v1600_v40 = vld [vmem:[%s9990_s23 + $0x2d0] sm:$0xff]  ;;  %v1753_v41 = vld [vmem:[%s9989_s8 + $0x2e8] sm:$0xff] }
 0x9ab   :  { %v5755_v38 = vpack.c.bf16 %v1601_v31, %v1599_v30  ;;  %v1755_v42 = vld [vmem:[%s9989_s8 + $0x2f8] sm:$0xff] }
 0x9ac   :  { %5626 = vmatpush1.bf16.msra.mxu1 %v5625_v50  ;;  %5722 = vmatpush1.bf16.msra.mxu0 %v5721_v51  ;;  %v1584_v50 = vld [vmem:[%s9990_s23 + $0x250] sm:$0xff]  ;;  %v1737_v51 = vld [vmem:[%s9989_s8 + $0x268] sm:$0xff] }
 0x9ad   :  { %5628 = vmatprep.subr.bf16.mxu1 %v5627_v54  ;;  %5724 = vmatprep.subr.bf16.mxu0 %v5723_v55  ;;  %v1589_v54 = vld [vmem:[%s9990_s23 + $0x278] sm:$0xff]  ;;  %v5645_v55 = vpack.c.bf16 %v1734_v46, %v1732_v45  ;;  %v5741_v56 = vpack.c.bf16 %v1584_v50, %v1582_v49  ;;  %v5647_v59 = vpack.c.bf16 %v1739_v52, %v1737_v51  ;;  %v1754_v50 = vld [vmem:[%s9989_s8 + $0x2f0] sm:$0xff]  ;;  %v1602_v51 = vld [vmem:[%s9990_s23 + $0x2e0] sm:$0xff] }
 0x9ae   :  { %v5743_v17 = vpack.c.bf16 %v1589_v54, %v1587_v53  ;;  %v5757_v46 = vpack.c.bf16 %v1600_v40, %v1598_v39  ;;  %v1604_v52 = vld [vmem:[%s9990_s23 + $0x2f0] sm:$0xff] }
 0x9af   :  { %v5761_v54 = vpack.c.bf16 %v1604_v52, %v1602_v51  ;;  %v1628_v30 = vld [vmem:[#allocation25 + $0x98] sm:$0xff]  ;;  %v1634_v51 = vld [vmem:[#allocation25 + $0xc8] sm:$0xff] }
 0x9b0   :  { %5630 = vmatpush1.bf16.msra.mxu1 %v5629_v13  ;;  %5726 = vmatpush1.bf16.msra.mxu0 %v5725_v61  ;;  %v1588_v13 = vld [vmem:[%s9990_s23 + $0x270] sm:$0xff]  ;;  %v1741_v61 = vld [vmem:[%s9989_s8 + $0x288] sm:$0xff] }
 0x9b1   :  { %5632 = vmatprep.subr.bf16.mxu1 %v5631_v63  ;;  %5728 = vmatprep.subr.bf16.mxu0 %v5727_v1  ;;  %v1591_v63 = vld [vmem:[%s9990_s23 + $0x288] sm:$0xff]  ;;  %v1593_v1 = vld [vmem:[%s9990_s23 + $0x298] sm:$0xff]  ;;  %v5745_v3 = vpack.c.bf16 %v1588_v13, %v1586_v60 }
 0x9b2   :  { %v5747_v5 = vpack.c.bf16 %v1593_v1, %v1591_v63  ;;  %v1610_v1 = vld [vmem:[#allocation25 + $0x8] sm:$0xff]  ;;  %v1636_v52 = vld [vmem:[#allocation25 + $0xd8] sm:$0xff] }
 0x9b4   :  { %5634 = vmatpush1.bf16.msra.mxu1 %v5633_v4  ;;  %5730 = vmatpush1.bf16.msra.mxu0 %v5729_v27  ;;  %v1742_v4 = vld [vmem:[%s9989_s8 + $0x290] sm:$0xff]  ;;  %v5651_v27 = vpack.c.bf16 %v1743_v62, %v1741_v61 }
 0x9b5   :  { %5636 = vmatprep.subr.bf16.mxu1 %v5635_v8  ;;  %5732 = vmatprep.subr.bf16.mxu0 %v5731_v10  ;;  %v1745_v8 = vld [vmem:[%s9989_s8 + $0x2a8] sm:$0xff]  ;;  %v5653_v14 = vpack.c.bf16 %v1742_v4, %v1740_v26 }
 0x9b6   :  { %v1595_v10 = vld [vmem:[%s9990_s23 + $0x2a8] sm:$0xff]  ;;  %v5655_v12 = vpack.c.bf16 %v1747_v9, %v1745_v8 }
 0x9b7   :  { %v5751_v22 = vpack.c.bf16 %v1597_v11, %v1595_v10  ;;  %v1611_v26 = vld [vmem:[#allocation25 + $0x10] sm:$0xff]  ;;  %v1614_v4 = vld [vmem:[#allocation25 + $0x28] sm:$0xff]  ;;  %v1620_v10 = vld [vmem:[#allocation25 + $0x58] sm:$0xff] }
 0x9b8   :  { %v1615_v8 = vld [vmem:[#allocation25 + $0x30] sm:$0xff]  ;;  %v1618_v9 = vld [vmem:[#allocation25 + $0x48] sm:$0xff] }
 0x9b9   :  { %v5769_v11 = vpack.c.bf16 %v1615_v8, %v1613_v7  ;;  %v1647_v7 = vld [vmem:[#allocation25 + $0x130] sm:$0xff] }
 0xa4a   :  { %v1435_v28 = vpop.f32.mrb[4].mxu1  ;;  %v8847_v25 = vpop.f32.mrb[2].mxu0 }
 0xa4b   :  { %v1437_v32 = vpop.f32.mrb[5].mxu1  ;;  %v1508_v33 = vpop.f32.mrb[3].mxu0 }
 0xa4c   :  { %1832 = vmatprep.mubr.f32.mxu1 %v1437_v32  ;;  %1985 = vmatprep.mubr.f32.mxu0 %v1437_v32  ;;  %v5657_v32 = vpack.c.bf16 %v1746_v20, %v1744_v16  ;;  %v1619_v16 = vld [vmem:[#allocation25 + $0x50] sm:$0xff]  ;;  %v1622_v20 = vld [vmem:[#allocation25 + $0x68] sm:$0xff] }
 0xa4d   :  { %1833 = vmatmul.mubr.f32.vlgmr.msra.gmra.mrb[6].mxu1 %v1435_v28  ;;  %1986 = vmatmul.mubr.f32.vlgmr.msra.gmra.mrb[4].mxu0 %v1435_v28  ;;  %v1596_v28 = vld [vmem:[%s9990_s23 + $0x2b0] sm:$0xff] }
 0xa4e   :  { %5638 = vmatpush1.bf16.msra.mxu1 %v5637_v29  ;;  %5734 = vmatpush1.bf16.msra.mxu0 %v5733_v24  ;;  %v1749_v29 = vld [vmem:[%s9989_s8 + $0x2c8] sm:$0xff]  ;;  %v1751_v24 = vld [vmem:[%s9989_s8 + $0x2d8] sm:$0xff]  ;;  %v5753_v33 = vpack.c.bf16 %v1596_v28, %v1594_v23 }
 0xa4f   :  { %5640 = vmatprep.subr.bf16.mxu1 %v5639_v35  ;;  %5736 = vmatprep.subr.bf16.mxu0 %v5735_v36  ;;  %v1748_v35 = vld [vmem:[%s9989_s8 + $0x2c0] sm:$0xff]  ;;  %v1750_v36 = vld [vmem:[%s9989_s8 + $0x2d0] sm:$0xff]  ;;  %v5659_v37 = vpack.c.bf16 %v1751_v24, %v1749_v29 }
 0xa50   :  { %1903 = vmatprep.mubr.f32.mxu1 %v8017_v0  ;;  %2056 = vmatprep.mubr.f32.mxu0 %v8017_v0  ;;  %v5661_v45 = vpack.c.bf16 %v1750_v36, %v1748_v35  ;;  %v1621_v28 = vld [vmem:[#allocation25 + $0x60] sm:$0xff]  ;;  %v1623_v29 = vld [vmem:[#allocation25 + $0x70] sm:$0xff]  ;;  %v1626_v24 = vld [vmem:[#allocation25 + $0x88] sm:$0xff] }
 0xa51   :  { %v5777_v31 = vpack.c.bf16 %v1623_v29, %v1621_v28  ;;  %v1627_v35 = vld [vmem:[#allocation25 + $0x90] sm:$0xff]  ;;  %v1630_v36 = vld [vmem:[#allocation25 + $0xa8] sm:$0xff] }
 0xa52   :  { %5642 = vmatpush1.bf16.msra.mxu1 %v5641_v43  ;;  %5738 = vmatpush1.bf16.msra.mxu0 %v5737_v44  ;;  %v1603_v43 = vld [vmem:[%s9990_s23 + $0x2e8] sm:$0xff]  ;;  %v1605_v44 = vld [vmem:[%s9990_s23 + $0x2f8] sm:$0xff] }
 0xa53   :  { %5644 = vmatprep.subr.bf16.mxu1 %v5643_v47  ;;  %5740 = vmatprep.subr.bf16.mxu0 %v5739_v48  ;;  %v1752_v47 = vld [vmem:[%s9989_s8 + $0x2e0] sm:$0xff]  ;;  %v5663_v48 = vpack.c.bf16 %v1755_v42, %v1753_v41  ;;  %v5759_v49 = vpack.c.bf16 %v1605_v44, %v1603_v43  ;;  %v1655_v28 = vld [vmem:[#allocation25 + $0x170] sm:$0xff] }
 0xa54   :  { %v5665_v53 = vpack.c.bf16 %v1754_v50, %v1752_v47 }
 0xa56   :  { %5646 = vmatpush1.bf16.msra.mxu1 %v5645_v55  ;;  %5742 = vmatpush1.bf16.msra.mxu0 %v5741_v56  ;;  %v1606_v55 = vld [vmem:[#allocation20] sm:$0x3] }
 0xa57   :  { %5648 = vmatprep.subr.bf16.mxu1 %v5647_v59  ;;  %5744 = vmatprep.subr.bf16.mxu0 %v5743_v17  ;;  %v1918_v56 = vrot.slane %v1606_v55, %v8560_v19  ;;  %v1914_v57 = vrot.slane %v1606_v55, %v8563_v21  ;;  %v1635_v55 = vld [vmem:[#allocation25 + $0xd0] sm:$0xff] }
 0xa5a   :  { %5650 = vmatpush1.bf16.msra.mxu1 %v5649_v2  ;;  %5746 = vmatpush1.bf16.msra.mxu0 %v5745_v3  ;;  %v1612_v2 = vld [vmem:[#allocation25 + $0x18] sm:$0xff] }
 0xa5b   :  { %5652 = vmatprep.subr.bf16.mxu1 %v5651_v27  ;;  %5748 = vmatprep.subr.bf16.mxu0 %v5747_v5  ;;  %v5763_v3 = vpack.c.bf16 %v1612_v2, %v1610_v1  ;;  %v1616_v27 = vld [vmem:[#allocation25 + $0x38] sm:$0xff] }
 0xa5c   :  { %v5767_v6 = vpack.c.bf16 %v1616_v27, %v1614_v4  ;;  %v1644_v1 = vld [vmem:[#allocation25 + $0x118] sm:$0xff]  ;;  %v1646_v4 = vld [vmem:[#allocation25 + $0x128] sm:$0xff] }
 0xa5d   :  { %v1648_v27 = vld [vmem:[#allocation25 + $0x138] sm:$0xff] }
 0xa5e   :  { %5654 = vmatpush1.bf16.msra.mxu1 %v5653_v14  ;;  %5750 = vmatpush1.bf16.msra.mxu0 %v5749_v15  ;;  %v5771_v14 = vpack.c.bf16 %v1620_v10, %v1618_v9  ;;  %v1617_v15 = vld [vmem:[#allocation25 + $0x40] sm:$0xff]  ;;  %v1650_v9 = vld [vmem:[#allocation25 + $0x148] sm:$0xff]  ;;  %v1652_v10 = vld [vmem:[#allocation25 + $0x158] sm:$0xff] }
 0xa5f   :  { %5656 = vmatprep.subr.bf16.mxu1 %v5655_v12  ;;  %5752 = vmatprep.subr.bf16.mxu0 %v5751_v22  ;;  %v1624_v12 = vld [vmem:[#allocation25 + $0x78] sm:$0xff]  ;;  %v5773_v22 = vpack.c.bf16 %v1619_v16, %v1617_v15  ;;  %v1651_v15 = vld [vmem:[#allocation25 + $0x150] sm:$0xff]  ;;  %v1654_v16 = vld [vmem:[#allocation25 + $0x168] sm:$0xff] }
 0xa60   :  { %v5775_v23 = vpack.c.bf16 %v1624_v12, %v1622_v20  ;;  %v1656_v20 = vld [vmem:[#allocation25 + $0x178] sm:$0xff] }
 0xa62   :  { %5658 = vmatpush1.bf16.msra.mxu1 %v5657_v32  ;;  %5754 = vmatpush1.bf16.msra.mxu0 %v5753_v33  ;;  %v5779_v32 = vpack.c.bf16 %v1628_v30, %v1626_v24  ;;  %v1625_v33 = vld [vmem:[#allocation25 + $0x80] sm:$0xff] }
 0xa63   :  { %5660 = vmatprep.subr.bf16.mxu1 %v5659_v37  ;;  %5756 = vmatprep.subr.bf16.mxu0 %v5755_v38  ;;  %v1632_v37 = vld [vmem:[#allocation25 + $0xb8] sm:$0xff]  ;;  %v5781_v38 = vpack.c.bf16 %v1627_v35, %v1625_v33 }
 0xa64   :  { %v5783_v39 = vpack.c.bf16 %v1632_v37, %v1630_v36  ;;  %v1608_v33 = vld [vmem:[#allocation23] sm:$0x3] }
 0xa66   :  { %5662 = vmatpush1.bf16.msra.mxu1 %v5661_v45  ;;  %5758 = vmatpush1.bf16.msra.mxu0 %v5757_v46 }
 0xa67   :  { %5664 = vmatprep.subr.bf16.mxu1 %v5663_v48  ;;  %5760 = vmatprep.subr.bf16.mxu0 %v5759_v49  ;;  %v1629_v48 = vld [vmem:[#allocation25 + $0xa0] sm:$0xff]  ;;  %v1631_v49 = vld [vmem:[#allocation25 + $0xb0] sm:$0xff] }
 0xa68   :  { %v5785_v50 = vpack.c.bf16 %v1631_v49, %v1629_v48 }
 0xa6a   :  { %5666 = vmatpush1.bf16.msra.mxu1 %v5665_v53  ;;  %5762 = vmatpush1.bf16.msra.mxu0 %v5761_v54  ;;  %v5787_v53 = vpack.c.bf16 %v1636_v52, %v1634_v51  ;;  %v1633_v54 = vld [vmem:[#allocation25 + $0xc0] sm:$0xff] }
 0xa6b   :  { %5764 = vmatprep.subr.bf16.mxu1 %v5763_v3  ;;  %v1643_v3 = vld [vmem:[#allocation25 + $0x110] sm:$0xff] }
 0xa6d   :  { %1904 = vmatmul.mubr.f32.vlgmr.msra.gmra.mrb[6].mxu1 %v8847_v25  ;;  %2057 = vmatmul.mubr.f32.vlgmr.msra.gmra.mrb[4].mxu0 %v8847_v25  ;;  %v1609_v25 = vld [vmem:[#allocation25] sm:$0xff] }
 0xa6e   :  { %v5765_v5 = vpack.c.bf16 %v1611_v26, %v1609_v25  ;;  %v1641_v25 = vld [vmem:[#allocation25 + $0x100] sm:$0xff] }
 0xa6f   :  { %v5797_v26 = vpack.c.bf16 %v1643_v3, %v1641_v25 }
 0xa70   :  { %5766 = vmatpush1.bf16.msra.mxu1 %v5765_v5  ;;  %v5799_v5 = vpack.c.bf16 %v1648_v27, %v1646_v4  ;;  %v2256_v4 = vld [vmem:[%s9991_s3 + $0x50] sm:$0xff] }
 0xa71   :  { %5768 = vmatprep.subr.bf16.mxu1 %v5767_v6  ;;  %v1645_v6 = vld [vmem:[#allocation25 + $0x120] sm:$0xff]  ;;  %v2252_v27 = vld [vmem:[%s9991_s3 + $0x30] sm:$0xff] }
 0xa72   :  { %v5801_v8 = vpack.c.bf16 %v1647_v7, %v1645_v6  ;;  %v2255_v6 = vld [vmem:[%s9991_s3 + $0x48] sm:$0xff]  ;;  %v2254_v7 = vld [vmem:[%s9991_s3 + $0x40] sm:$0xff] }
 0xa74   :  { %5770 = vmatpush1.bf16.msra.mxu1 %v5769_v11  ;;  %v1649_v11 = vld [vmem:[#allocation25 + $0x140] sm:$0xff] }
 0xa75   :  { %5772 = vmatprep.subr.bf16.mxu1 %v5771_v14  ;;  %v5803_v14 = vpack.c.bf16 %v1652_v10, %v1650_v9  ;;  %v5805_v12 = vpack.c.bf16 %v1651_v15, %v1649_v11  ;;  %v5817_v9 = vpack.c.bf16 %v2255_v6, %v2252_v27  ;;  %v2259_v11 = vld [vmem:[%s9991_s3 + $0x68] sm:$0xff]  ;;  %v2258_v15 = vld [vmem:[%s9991_s3 + $0x60] sm:$0xff] }
 0xa78   :  { %5774 = vmatpush1.bf16.msra.mxu1 %v5773_v22  ;;  %v5807_v22 = vpack.c.bf16 %v1656_v20, %v1654_v16  ;;  %v2261_v20 = vld [vmem:[%s9991_s3 + $0x78] sm:$0xff] }
 0xa79   :  { %5776 = vmatprep.subr.bf16.mxu1 %v5775_v23  ;;  %v1653_v23 = vld [vmem:[#allocation25 + $0x160] sm:$0xff] }
 0xa7a   :  { %v5809_v29 = vpack.c.bf16 %v1655_v28, %v1653_v23  ;;  %v2265_v23 = vld [vmem:[%s9991_s3 + $0x98] sm:$0xff]  ;;  %v2268_v28 = vld [vmem:[%s9991_s3 + $0xb0] sm:$0xff] }
 0xa7c   :  { %5778 = vmatpush1.bf16.msra.mxu1 %v5777_v31 }
 0xa7d   :  { %5780 = vmatprep.subr.bf16.mxu1 %v5779_v32  ;;  %v1607_v32 = vld [vmem:[#allocation22] sm:$0x3] }
 0xa7e   :  { %v2089_v35 = vrot.slane %v1607_v32, %v8560_v19  ;;  %v2085_v36 = vrot.slane %v1607_v32, %v8563_v21  ;;  %v2267_v32 = vld [vmem:[%s9991_s3 + $0xa8] sm:$0xff] }
 0xa80   :  { %5782 = vmatpush1.bf16.msra.mxu1 %v5781_v38 }
 0xa81   :  { %5784 = vmatprep.subr.bf16.mxu1 %v5783_v39 }
 0xa84   :  { %5786 = vmatpush1.bf16.msra.mxu1 %v5785_v50 }
 0xa85   :  { %5788 = vmatprep.subr.bf16.mxu1 %v5787_v53 }
 0xb40   :  { %v8907_v58 = vpop.f32.mrb[6].mxu1  ;;  %v2058_v59 = vpop.f32.mrb[4].mxu0 }
 0xb41   :  { %v8909_v17 = vpop.f32.mrb[7].mxu1  ;;  %v2060_v60 = vpop.f32.mrb[5].mxu0  ;;  %v6585_v61 = vadd.f32 %v2058_v59, %v1914_v57  ;;  %v1638_v57 = vld [vmem:[#allocation25 + $0xe8] sm:$0xff]  ;;  %v1640_v59 = vld [vmem:[#allocation25 + $0xf8] sm:$0xff] }
 0xb42   :  { %v6586_v13 = vadd.f32 %v2060_v60, %v1918_v56  ;;  %v5789_v56 = vpack.c.bf16 %v1635_v55, %v1633_v54  ;;  %v5791_v60 = vpack.c.bf16 %v1640_v59, %v1638_v57 }
 0xb44   :  { %v2063_v62 = vsel %vm1036_vm1, %v6586_v13, 0.0  ;;  %5790 = vmatpush1.bf16.msra.mxu1 %v5789_v56 }
 0xb45   :  { %v2064_v63 = vadd.f32 %v6585_v61, %v2063_v62  ;;  %5792 = vmatprep.subr.bf16.mxu1 %v5791_v60  ;;  %v2247_v60 = vld [vmem:[%s9991_s3 + $0x8] sm:$0xff] }
 0xb47   :  { %2065 = vadd.xlane.f32.xlu0 %v2064_v63  ;;  %v1642_v63 = vld [vmem:[#allocation25 + $0x108] sm:$0xff] }
 0xb48   :  { %v5795_v2 = vpack.c.bf16 %v1644_v1, %v1642_v63  ;;  %v2249_v63 = vld [vmem:[%s9991_s3 + $0x18] sm:$0xff]  ;;  %v2248_v1 = vld [vmem:[%s9991_s3 + $0x10] sm:$0xff] }
 0xbd4   :  { %v2066_v40 = vpop.xlane.xlu0 %2065 }
 0xbd5   :  { %v2067_v41 = vmul.f32 0.0052083335, %v2066_v40  ;;  %v2102_v40 = vrot.slane %v1608_v33, %v8560_v19 }
 0xbd7   :  { %v8912_v42 = vsub.f32 %v6585_v61, %v2067_v41  ;;  %v8914_v43 = vsub.f32 %v6586_v13, %v2067_v41  ;;  %v1637_v13 = vld [vmem:[#allocation25 + $0xe0] sm:$0xff]  ;;  %v1639_v61 = vld [vmem:[#allocation25 + $0xf0] sm:$0xff]  ;;  %v2098_v41 = vrot.slane %v1608_v33, %v8563_v21 }
 0xbd8   :  { %v5793_v62 = vpack.c.bf16 %v1639_v61, %v1637_v13  ;;  %v2250_v13 = vld [vmem:[%s9991_s3 + $0x20] sm:$0xff] }
 0xbd9   :  { %v2070_v44 = vmul.f32 %v8912_v42, %v8912_v42  ;;  %v2071_v45 = vmul.f32 %v8914_v43, %v8914_v43  ;;  %v2246_v61 = vld [vmem:[%s9991_s3] sm:$0xff] }
 0xbda   :  { %5794 = vmatpush1.bf16.msra.mxu1 %v5793_v62  ;;  %v5811_v62 = vpack.c.bf16 %v2250_v13, %v2247_v60  ;;  %v5813_v25 = vpack.c.bf16 %v2249_v63, %v2246_v61  ;;  %v2266_v33 = vld [vmem:[%s9991_s3 + $0xa0] sm:$0xff]  ;;  %v2279_v60 = vld [vmem:[%s9991_s3 + $0x108] sm:$0xff] }
 0xbdb   :  { %v2072_v46 = vsel %vm1036_vm1, %v2071_v45, 0.0  ;;  %5796 = vmatprep.subr.bf16.mxu1 %v5795_v2  ;;  %v2251_v2 = vld [vmem:[%s9991_s3 + $0x28] sm:$0xff]  ;;  %v2278_v13 = vld [vmem:[%s9991_s3 + $0x100] sm:$0xff] }
 0xbdc   :  { %v2073_v47 = vadd.f32 %v2072_v46, %v2070_v44  ;;  %v5860_v3 = vpack.c.bf16 %v2251_v2, %v2248_v1  ;;  %5812 = vmatprep.subr.bf16.mxu0 %v5811_v62  ;;  %v2281_v62 = vld [vmem:[%s9991_s3 + $0x118] sm:$0xff]  ;;  %v2283_v1 = vld [vmem:[%s9991_s3 + $0x128] sm:$0xff]  ;;  %v2286_v2 = vld [vmem:[%s9991_s3 + $0x140] sm:$0xff] }
 0xbdd   :  { %5814 = vmatpush1.bf16.msra.mxu0 %v5813_v25  ;;  %v5875_v63 = vpack.c.bf16 %v2281_v62, %v2278_v13  ;;  %v5835_v25 = vpack.c.bf16 %v2286_v2, %v2283_v1  ;;  %v2317_v13 = vld [vmem:[%s9991_s3 + $0x238] sm:$0xff]  ;;  %v2466_v1 = vld [vmem:[%s9992_s26 + $0x20] sm:$0xff] }
 0xbde   :  { %2074 = vadd.xlane.f32.xlu1 %v2073_v47  ;;  %5798 = vmatpush1.bf16.msra.mxu1 %v5797_v26  ;;  %v2253_v26 = vld [vmem:[%s9991_s3 + $0x38] sm:$0xff] }
 0xbdf   :  { %5800 = vmatprep.subr.bf16.mxu1 %v5799_v5  ;;  %v5815_v5 = vpack.c.bf16 %v2256_v4, %v2253_v26  ;;  %v2285_v26 = vld [vmem:[%s9991_s3 + $0x138] sm:$0xff]  ;;  %v2284_v4 = vld [vmem:[%s9991_s3 + $0x130] sm:$0xff] }
 0xbe1   :  { %5816 = vmatprep.subr.bf16.mxu0 %v5815_v5  ;;  %v2287_v5 = vld [vmem:[%s9991_s3 + $0x148] sm:$0xff] }
 0xbe2   :  { %5802 = vmatpush1.bf16.msra.mxu1 %v5801_v8  ;;  %v2257_v8 = vld [vmem:[%s9991_s3 + $0x58] sm:$0xff]  ;;  %5818 = vmatpush1.bf16.msra.mxu0 %v5817_v9  ;;  %v5878_v6 = vpack.c.bf16 %v2287_v5, %v2284_v4 }
 0xbe3   :  { %5804 = vmatprep.subr.bf16.mxu1 %v5803_v14  ;;  %v5863_v10 = vpack.c.bf16 %v2257_v8, %v2254_v7  ;;  %v2262_v14 = vld [vmem:[%s9991_s3 + $0x80] sm:$0xff]  ;;  %v2289_v7 = vld [vmem:[%s9991_s3 + $0x158] sm:$0xff]  ;;  %v2292_v8 = vld [vmem:[%s9991_s3 + $0x170] sm:$0xff] }
 0xbe4   :  { %v5819_v16 = vpack.c.bf16 %v2262_v14, %v2259_v11  ;;  %v5839_v9 = vpack.c.bf16 %v2292_v8, %v2289_v7  ;;  %v2291_v11 = vld [vmem:[%s9991_s3 + $0x168] sm:$0xff]  ;;  %v2290_v14 = vld [vmem:[%s9991_s3 + $0x160] sm:$0xff] }
 0xbe5   :  { %v1756_v7 = vld [vmem:[#allocation31] sm:$0x3]  ;;  %v1659_v8 = vld [vmem:[#allocation29] sm:$0x3] }
 0xbe6   :  { %5806 = vmatpush1.bf16.msra.mxu1 %v5805_v12  ;;  %v2260_v12 = vld [vmem:[%s9991_s3 + $0x70] sm:$0xff]  ;;  %5820 = vmatprep.subr.bf16.mxu0 %v5819_v16  ;;  %v2293_v16 = vld [vmem:[%s9991_s3 + $0x178] sm:$0xff] }
 0xbe7   :  { %5808 = vmatprep.subr.bf16.mxu1 %v5807_v22  ;;  %v2263_v22 = vld [vmem:[%s9991_s3 + $0x88] sm:$0xff] }
 0xbea   :  { %5810 = vmatpush1.bf16.msra.mxu1 %v5809_v29  ;;  %v5821_v29 = vpack.c.bf16 %v2261_v20, %v2258_v15  ;;  %v5881_v20 = vpack.c.bf16 %v2293_v16, %v2290_v14  ;;  %v1761_v14 = vrot.slane %v1756_v7, %v8563_v21 }
 0xbeb   :  { %5859 = vmatprep.subr.bf16.mxu1 %v8018_v34 }
 0xbec   :  { %5822 = vmatpush1.bf16.msra.mxu0 %v5821_v29  ;;  %v2297_v29 = vld [vmem:[%s9991_s3 + $0x198] sm:$0xff] }
 0xc6b   :  { %v2075_v24 = vpop.xlane.xlu1 %2074 }
 0xc6c   :  { %v2076_v30 = vmul.f32 0.0052083335, %v2075_v24  ;;  %v5866_v24 = vpack.c.bf16 %v2263_v22, %v2260_v12  ;;  %v2295_v12 = vld [vmem:[%s9991_s3 + $0x188] sm:$0xff]  ;;  %v2298_v22 = vld [vmem:[%s9991_s3 + $0x1a0] sm:$0xff] }
 0xc6e   :  { %v2077_v31 = vadd.f32 1e-05, %v2076_v30  ;;  %v2264_v30 = vld [vmem:[%s9991_s3 + $0x90] sm:$0xff] }
 0xc70   :  { %6729 = vrsqrt.f32 %v2077_v31  ;;  %v5823_v31 = vpack.c.bf16 %v2268_v28, %v2265_v23  ;;  %v5843_v23 = vpack.c.bf16 %v2298_v22, %v2295_v12  ;;  %v2294_v28 = vld [vmem:[%s9991_s3 + $0x180] sm:$0xff]  ;;  %v2235_v12 = vrot.slane %v1659_v8, %v8560_v19 }
 0xc71   :  { %v2231_v22 = vrot.slane %v1659_v8, %v8563_v21  ;;  %v2487_v8 = vld [vmem:[%s9992_s26 + $0xc8] sm:$0xff] }
 0xc72   :  { %5824 = vmatprep.subr.bf16.mxu0 %v5823_v31  ;;  %v2299_v31 = vld [vmem:[%s9991_s3 + $0x1a8] sm:$0xff] }
 0xc7a   :  { %v6730_v37 = vpop.eup %6729 }
 0xc7b   :  { %v2079_v38 = vmul.f32 %v6730_v37, %v8912_v42  ;;  %v2080_v39 = vmul.f32 %v6730_v37, %v8914_v43  ;;  %v1657_v42 = vld [vmem:[#allocation26] sm:$0x3]  ;;  %v2274_v37 = vld [vmem:[%s9991_s3 + $0xe0] sm:$0xff] }
 0xc7c   :  { %v2119_v43 = vrot.slane %v1657_v42, %v8560_v19  ;;  %v2115_v52 = vrot.slane %v1657_v42, %v8563_v21 }
 0xc7d   :  { %v2093_v44 = vmul.f32 %v2089_v35, %v2080_v39  ;;  %v2092_v45 = vmul.f32 %v2085_v36, %v2079_v38  ;;  %v2269_v35 = vld [vmem:[%s9991_s3 + $0xb8] sm:$0xff]  ;;  %v2271_v36 = vld [vmem:[%s9991_s3 + $0xc8] sm:$0xff]  ;;  %v5825_v38 = vpack.c.bf16 %v2267_v32, %v2264_v30  ;;  %v5845_v30 = vpack.c.bf16 %v2297_v29, %v2294_v28 }
 0xc7e   :  { %v5869_v39 = vpack.c.bf16 %v2269_v35, %v2266_v33  ;;  %v2301_v33 = vld [vmem:[%s9991_s3 + $0x1b8] sm:$0xff]  ;;  %v2304_v35 = vld [vmem:[%s9991_s3 + $0x1d0] sm:$0xff]  ;;  %v6583_v29 = vadd.f32 %v8907_v58, %v1761_v14  ;;  %v2518_v58 = vld [vmem:[%s9992_s26 + $0x1c0] sm:$0xff] }
 0xc7f   :  { %v2106_v46 = vadd.f32 %v2102_v40, %v2093_v44  ;;  %v2105_v47 = vadd.f32 %v2098_v41, %v2092_v45  ;;  %v2270_v40 = vld [vmem:[%s9991_s3 + $0xc0] sm:$0xff]  ;;  %v5827_v41 = vpack.c.bf16 %v2274_v37, %v2271_v36  ;;  %v2273_v44 = vld [vmem:[%s9991_s3 + $0xd8] sm:$0xff]  ;;  %v2272_v45 = vld [vmem:[%s9991_s3 + $0xd0] sm:$0xff]  ;;  %5826 = vmatpush1.bf16.msra.mxu0 %v5825_v38  ;;  %v5847_v36 = vpack.c.bf16 %v2304_v35, %v2301_v33 }
 0xc80   :  { %v2300_v37 = vld [vmem:[%s9991_s3 + $0x1b0] sm:$0xff]  ;;  %v2303_v38 = vld [vmem:[%s9991_s3 + $0x1c8] sm:$0xff]  ;;  %v2465_v33 = vld [vmem:[%s9992_s26 + $0x18] sm:$0xff] }
 0xc81   :  { %v2108_v48 = vmul.f32 0.2, %v2106_v46  ;;  %v2107_v49 = vmul.f32 0.2, %v2105_v47  ;;  %5828 = vmatprep.subr.bf16.mxu0 %v5827_v41  ;;  %v2305_v41 = vld [vmem:[%s9991_s3 + $0x1d8] sm:$0xff]  ;;  %v2490_v14 = vld [vmem:[%s9992_s26 + $0xe0] sm:$0xff] }
 0xc82   :  { %v2469_v35 = vld [vmem:[%s9992_s26 + $0x38] sm:$0xff] }
 0xc83   :  { %v2110_v50 = vmax.f32 %v2106_v46, %v2108_v48  ;;  %v2109_v51 = vmax.f32 %v2105_v47, %v2107_v49  ;;  %v2275_v46 = vld [vmem:[%s9991_s3 + $0xe8] sm:$0xff]  ;;  %v5829_v47 = vpack.c.bf16 %v2273_v44, %v2270_v40  ;;  %v5849_v40 = vpack.c.bf16 %v2303_v38, %v2300_v37  ;;  %v2464_v37 = vld [vmem:[%s9992_s26 + $0x10] sm:$0xff] }
 0xc84   :  { %v5872_v48 = vpack.c.bf16 %v2275_v46, %v2272_v45  ;;  %v2307_v44 = vld [vmem:[%s9991_s3 + $0x1e8] sm:$0xff]  ;;  %v2310_v45 = vld [vmem:[%s9991_s3 + $0x200] sm:$0xff] }
 0xc85   :  { %5029 = vmatprep.mubr.msk.f32.mxu1 %vm1036_vm1, %v2110_v50  ;;  %5830 = vmatpush1.bf16.msra.mxu0 %v5829_v47  ;;  %v5851_v47 = vpack.c.bf16 %v2310_v45, %v2307_v44  ;;  %v2467_v38 = vld [vmem:[%s9992_s26 + $0x28] sm:$0xff] }
 0xc86   :  { %2190 = vmatmul.mubr.f32.vlgmr.msra.gmra.mrb[8].mxu1 %v2109_v51 }
 0xc87   :  { %5861 = vmatpush1.bf16.msra.mxu1 %v5860_v3  ;;  %v2282_v3 = vld [vmem:[%s9991_s3 + $0x120] sm:$0xff] }
 0xc88   :  { %5862 = vmatprep.subr.bf16.mxu1 %v8018_v34  ;;  %v5837_v27 = vpack.c.bf16 %v2285_v26, %v2282_v3  ;;  %v2515_v3 = vld [vmem:[%s9992_s26 + $0x1a8] sm:$0xff] }
 0xc8b   :  { %5864 = vmatpush1.bf16.msra.mxu1 %v5863_v10  ;;  %v2288_v10 = vld [vmem:[%s9991_s3 + $0x150] sm:$0xff] }
 0xc8c   :  { %5865 = vmatprep.subr.bf16.mxu1 %v8018_v34  ;;  %v5841_v15 = vpack.c.bf16 %v2291_v11, %v2288_v10 }
 0xc8f   :  { %5867 = vmatpush1.bf16.msra.mxu1 %v5866_v24  ;;  %v2296_v24 = vld [vmem:[%s9991_s3 + $0x190] sm:$0xff] }
 0xc90   :  { %5868 = vmatprep.subr.bf16.mxu1 %v8018_v34  ;;  %v5884_v32 = vpack.c.bf16 %v2299_v31, %v2296_v24 }
 0xc93   :  { %5870 = vmatpush1.bf16.msra.mxu1 %v5869_v39  ;;  %v2302_v39 = vld [vmem:[%s9991_s3 + $0x1c0] sm:$0xff] }
 0xc94   :  { %5871 = vmatprep.subr.bf16.mxu1 %v8018_v34  ;;  %v5887_v46 = vpack.c.bf16 %v2305_v41, %v2302_v39 }
 0xc97   :  { %5873 = vmatpush1.bf16.msra.mxu1 %v5872_v48  ;;  %v2306_v48 = vld [vmem:[%s9991_s3 + $0x1e0] sm:$0xff] }
 0xc98   :  { %5874 = vmatprep.subr.bf16.mxu1 %v8018_v34 }
 0xc9b   :  { %5876 = vmatpush1.bf16.msra.mxu1 %v5875_v63  ;;  %v2463_v63 = vld [vmem:[%s9992_s26 + $0x8] sm:$0xff] }
 0xc9c   :  { %5877 = vmatprep.subr.bf16.mxu1 %v8018_v34  ;;  %v5895_v2 = vpack.c.bf16 %v2466_v1, %v2463_v63  ;;  %v2476_v1 = vld [vmem:[%s9992_s26 + $0x70] sm:$0xff] }
 0xc9f   :  { %5879 = vmatpush1.bf16.msra.mxu1 %v5878_v6  ;;  %v1658_v6 = vld [vmem:[#allocation28] sm:$0x3] }
 0xca0   :  { %5880 = vmatprep.subr.bf16.mxu1 %v8018_v34  ;;  %v2218_v10 = vrot.slane %v1658_v6, %v8563_v21 }
 0xca3   :  { %5882 = vmatpush1.bf16.msra.mxu1 %v5881_v20 }
 0xca4   :  { %5883 = vmatprep.subr.bf16.mxu1 %v8018_v34 }
 0xca7   :  { %5885 = vmatpush1.bf16.msra.mxu1 %v5884_v32 }
 0xca8   :  { %5886 = vmatprep.subr.bf16.mxu1 %v8018_v34 }
 0xcab   :  { %5888 = vmatpush1.bf16.msra.mxu1 %v5887_v46  ;;  %v2468_v46 = vld [vmem:[%s9992_s26 + $0x30] sm:$0xff] }
 0xcac   :  { %5889 = vmatprep.subr.bf16.mxu1 %v8018_v34 }
 0xd59   :  { %v2191_v53 = vpop.f32.mrb[8].mxu1 }
 0xd5a   :  { %v2193_v54 = vpop.f32.mrb[9].mxu1  ;;  %v8933_v56 = vadd.f32 %v2191_v53, %v2115_v52 }
 0xd5b   :  { %v8931_v55 = vadd.f32 %v2193_v54, %v2119_v43 }
 0xd5d   :  { %v2196_v57 = vsel %vm1036_vm1, %v8931_v55, 0.0 }
 0xd5e   :  { %v2197_v59 = vadd.f32 %v2196_v57, %v8933_v56  ;;  %v2277_v57 = vld [vmem:[%s9991_s3 + $0xf8] sm:$0xff] }
 0xd60   :  { %2198 = vadd.xlane.f32.xlu0 %v2197_v59 }
 0xded   :  { %v2199_v49 = vpop.xlane.xlu0 %2198 }
 0xdee   :  { %v2200_v50 = vmul.f32 0.0052083335, %v2199_v49  ;;  %v2309_v49 = vld [vmem:[%s9991_s3 + $0x1f8] sm:$0xff] }
 0xdf0   :  { %v8974_v51 = vsub.f32 %v8933_v56, %v2200_v50  ;;  %v8977_v42 = vsub.f32 %v8931_v55, %v2200_v50  ;;  %v2280_v56 = vld [vmem:[%s9991_s3 + $0x110] sm:$0xff] }
 0xdf1   :  { %v5831_v59 = vpack.c.bf16 %v2280_v56, %v2277_v57  ;;  %v2276_v55 = vld [vmem:[%s9991_s3 + $0xf0] sm:$0xff] }
 0xdf2   :  { %v2203_v43 = vmul.f32 %v8974_v51, %v8974_v51  ;;  %v2204_v52 = vmul.f32 %v8977_v42, %v8977_v42  ;;  %v5833_v61 = vpack.c.bf16 %v2279_v60, %v2276_v55  ;;  %v2308_v50 = vld [vmem:[%s9991_s3 + $0x1f0] sm:$0xff]  ;;  %v2315_v55 = vld [vmem:[%s9991_s3 + $0x228] sm:$0xff]  ;;  %v2314_v60 = vld [vmem:[%s9991_s3 + $0x220] sm:$0xff] }
 0xdf3   :  { %5832 = vmatprep.subr.bf16.mxu0 %v5831_v59  ;;  %v2312_v59 = vld [vmem:[%s9991_s3 + $0x210] sm:$0xff]  ;;  %v5893_v62 = vpack.c.bf16 %v2317_v13, %v2314_v60  ;;  %v2477_v60 = vld [vmem:[%s9992_s26 + $0x78] sm:$0xff] }
 0xdf4   :  { %v2205_v53 = vsel %vm1036_vm1, %v2204_v52, 0.0  ;;  %5834 = vmatpush1.bf16.msra.mxu0 %v5833_v61  ;;  %v2311_v52 = vld [vmem:[%s9991_s3 + $0x208] sm:$0xff]  ;;  %v5857_v61 = vpack.c.bf16 %v2315_v55, %v2312_v59  ;;  %v2474_v55 = vld [vmem:[%s9992_s26 + $0x60] sm:$0xff] }
 0xdf5   :  { %v2206_v54 = vadd.f32 %v2205_v53, %v2203_v43  ;;  %5836 = vmatprep.subr.bf16.mxu0 %v5835_v25  ;;  %v5853_v43 = vpack.c.bf16 %v2309_v49, %v2306_v48  ;;  %v2313_v53 = vld [vmem:[%s9991_s3 + $0x218] sm:$0xff]  ;;  %v5890_v57 = vpack.c.bf16 %v2311_v52, %v2308_v50  ;;  %v2512_v25 = vld [vmem:[%s9992_s26 + $0x190] sm:$0xff]  ;;  %v5993_v48 = vpack.c.bf16 %v2467_v38, %v2464_v37  ;;  %v2475_v50 = vld [vmem:[%s9992_s26 + $0x68] sm:$0xff] }
 0xdf6   :  { %v5991_v26 = vpack.c.bf16 %v2515_v3, %v2512_v25  ;;  %v2470_v52 = vld [vmem:[%s9992_s26 + $0x40] sm:$0xff]  ;;  %v2484_v25 = vld [vmem:[%s9992_s26 + $0xb0] sm:$0xff] }
 0xdf7   :  { %2207 = vadd.xlane.f32.xlu1 %v2206_v54  ;;  %v2316_v54 = vld [vmem:[%s9991_s3 + $0x230] sm:$0xff]  ;;  %5891 = vmatpush1.bf16.msra.mxu1 %v5890_v57  ;;  %v2530_v3 = vld [vmem:[%s9992_s26 + $0x220] sm:$0xff] }
 0xdf8   :  { %5838 = vmatpush1.bf16.msra.mxu0 %v5837_v27  ;;  %v5855_v56 = vpack.c.bf16 %v2316_v54, %v2313_v53  ;;  %5892 = vmatprep.subr.bf16.mxu1 %v8018_v34  ;;  %v2473_v53 = vld [vmem:[%s9992_s26 + $0x58] sm:$0xff]  ;;  %v2478_v54 = vld [vmem:[%s9992_s26 + $0x80] sm:$0xff]  ;;  %v2524_v57 = vld [vmem:[%s9992_s26 + $0x1f0] sm:$0xff] }
 0xdf9   :  { %5840 = vmatprep.subr.bf16.mxu0 %v5839_v9  ;;  %v2222_v9 = vrot.slane %v1658_v6, %v8560_v19  ;;  %v5997_v13 = vpack.c.bf16 %v2473_v53, %v2470_v52  ;;  %v2500_v53 = vld [vmem:[%s9992_s26 + $0x130] sm:$0xff] }
 0xdfb   :  { %5894 = vmatpush1.bf16.msra.mxu1 %v5893_v62  ;;  %v2481_v62 = vld [vmem:[%s9992_s26 + $0x98] sm:$0xff] }
 0xdfc   :  { %5842 = vmatpush1.bf16.msra.mxu0 %v5841_v15  ;;  %5992 = vmatprep.subr.bf16.mxu1 %v5991_v26  ;;  %v1765_v15 = vrot.slane %v1756_v7, %v8560_v19  ;;  %v2533_v26 = vld [vmem:[%s9992_s26 + $0x238] sm:$0xff]  ;;  %v5907_v7 = vpack.c.bf16 %v2484_v25, %v2481_v62  ;;  %v2507_v62 = vld [vmem:[%s9992_s26 + $0x168] sm:$0xff] }
 0xdfd   :  { %5844 = vmatprep.subr.bf16.mxu0 %v5843_v23  ;;  %v2511_v25 = vld [vmem:[%s9992_s26 + $0x188] sm:$0xff] }
 0xdfe   :  { %v6584_v24 = vadd.f32 %v8909_v17, %v1765_v15  ;;  %v2521_v17 = vld [vmem:[%s9992_s26 + $0x1d8] sm:$0xff]  ;;  %v2536_v15 = vld [vmem:[%s9992_s26 + $0x250] sm:$0xff] }
 0xe00   :  { %5846 = vmatpush1.bf16.msra.mxu0 %v5845_v30 }
 0xe01   :  { %5848 = vmatprep.subr.bf16.mxu0 %v5847_v36  ;;  %v2472_v36 = vld [vmem:[%s9992_s26 + $0x50] sm:$0xff] }
 0xe02   :  { %v5899_v49 = vpack.c.bf16 %v2472_v36, %v2469_v35  ;;  %v2492_v35 = vld [vmem:[%s9992_s26 + $0xf0] sm:$0xff]  ;;  %v2495_v36 = vld [vmem:[%s9992_s26 + $0x108] sm:$0xff] }
 0xe04   :  { %5850 = vmatpush1.bf16.msra.mxu0 %v5849_v40 }
 0xe05   :  { %5852 = vmatprep.subr.bf16.mxu0 %v5851_v47  ;;  %v2471_v47 = vld [vmem:[%s9992_s26 + $0x48] sm:$0xff] }
 0xe06   :  { %v5901_v59 = vpack.c.bf16 %v2471_v47, %v2468_v46  ;;  %v5917_v46 = vpack.c.bf16 %v2495_v36, %v2492_v35  ;;  %v2498_v47 = vld [vmem:[%s9992_s26 + $0x120] sm:$0xff] }
 0xe07   :  { %v2534_v36 = vld [vmem:[%s9992_s26 + $0x240] sm:$0xff] }
 0xe08   :  { %5854 = vmatpush1.bf16.msra.mxu0 %v5853_v43  ;;  %v5995_v43 = vpack.c.bf16 %v2521_v17, %v2518_v58  ;;  %v2494_v58 = vld [vmem:[%s9992_s26 + $0x100] sm:$0xff]  ;;  %v2497_v17 = vld [vmem:[%s9992_s26 + $0x118] sm:$0xff] }
 0xe09   :  { %5856 = vmatprep.subr.bf16.mxu0 %v5855_v56  ;;  %v2527_v56 = vld [vmem:[%s9992_s26 + $0x208] sm:$0xff] }
 0xe0a   :  { %v5999_v63 = vpack.c.bf16 %v2527_v56, %v2524_v57  ;;  %v2508_v57 = vld [vmem:[%s9992_s26 + $0x170] sm:$0xff]  ;;  %v2554_v56 = vld [vmem:[%s9992_s26 + $0x2e0] sm:$0xff] }
 0xe0c   :  { %5858 = vmatpush1.bf16.msra.mxu0 %v5857_v61  ;;  %v5903_v61 = vpack.c.bf16 %v2478_v54, %v2475_v50  ;;  %v2503_v54 = vld [vmem:[%s9992_s26 + $0x148] sm:$0xff] }
 0xe0d   :  { %5896 = vmatprep.subr.bf16.mxu0 %v5895_v2  ;;  %v2479_v2 = vld [vmem:[%s9992_s26 + $0x88] sm:$0xff] }
 0xe0e   :  { %v6001_v6 = vpack.c.bf16 %v2479_v2, %v2476_v1  ;;  %v2506_v1 = vld [vmem:[%s9992_s26 + $0x160] sm:$0xff]  ;;  %v2509_v2 = vld [vmem:[%s9992_s26 + $0x178] sm:$0xff] }
 0xe84   :  { %v2208_v4 = vpop.xlane.xlu1 %2207 }
 0xe85   :  { %v2209_v27 = vmul.f32 0.0052083335, %v2208_v4  ;;  %v5905_v4 = vpack.c.bf16 %v2477_v60, %v2474_v55  ;;  %v2504_v60 = vld [vmem:[%s9992_s26 + $0x150] sm:$0xff] }
 0xe87   :  { %v2210_v5 = vadd.f32 1e-05, %v2209_v27  ;;  %v2480_v27 = vld [vmem:[%s9992_s26 + $0x90] sm:$0xff] }
 0xe89   :  { %6731 = vrsqrt.f32 %v2210_v5  ;;  %v2483_v5 = vld [vmem:[%s9992_s26 + $0xa8] sm:$0xff] }
 0xe93   :  { %v6732_v11 = vpop.eup %6731 }
 0xe94   :  { %v2212_v16 = vmul.f32 %v6732_v11, %v8974_v51  ;;  %v2213_v20 = vmul.f32 %v6732_v11, %v8977_v42  ;;  %v2462_v42 = vld [vmem:[%s9992_s26] sm:$0xff]  ;;  %v2485_v11 = vld [vmem:[%s9992_s26 + $0xb8] sm:$0xff] }
 0xe95   :  { %v5897_v45 = vpack.c.bf16 %v2465_v33, %v2462_v42  ;;  %v2545_v42 = vld [vmem:[%s9992_s26 + $0x298] sm:$0xff] }
 0xe96   :  { %v2226_v23 = vmul.f32 %v2222_v9, %v2213_v20  ;;  %v2225_v28 = vmul.f32 %v2218_v10, %v2212_v16  ;;  %v6003_v9 = vpack.c.bf16 %v2533_v26, %v2530_v3  ;;  %v2482_v10 = vld [vmem:[%s9992_s26 + $0xa0] sm:$0xff]  ;;  %v2539_v16 = vld [vmem:[%s9992_s26 + $0x268] sm:$0xff]  ;;  %v5909_v20 = vpack.c.bf16 %v2483_v5, %v2480_v27 }
 0xe97   :  { %v2514_v3 = vld [vmem:[%s9992_s26 + $0x1a0] sm:$0xff]  ;;  %v5925_v26 = vpack.c.bf16 %v2507_v62, %v2504_v60  ;;  %v2560_v62 = vld [vmem:[%s9992_s26 + $0x310] sm:$0xff] }
 0xe98   :  { %v2239_v30 = vadd.f32 %v2235_v12, %v2226_v23  ;;  %v2238_v31 = vadd.f32 %v2231_v22, %v2225_v28  ;;  %v2486_v12 = vld [vmem:[%s9992_s26 + $0xc0] sm:$0xff]  ;;  %v2489_v22 = vld [vmem:[%s9992_s26 + $0xd8] sm:$0xff]  ;;  %v6005_v23 = vpack.c.bf16 %v2485_v11, %v2482_v10  ;;  %v5911_v28 = vpack.c.bf16 %v2490_v14, %v2487_v8  ;;  %v2520_v8 = vld [vmem:[%s9992_s26 + $0x1d0] sm:$0xff] }
 0xe99   :  { %v5913_v33 = vpack.c.bf16 %v2489_v22, %v2486_v12  ;;  %v5927_v27 = vpack.c.bf16 %v2514_v3, %v2511_v25  ;;  %v2510_v5 = vld [vmem:[%s9992_s26 + $0x180] sm:$0xff]  ;;  %v2516_v11 = vld [vmem:[%s9992_s26 + $0x1b0] sm:$0xff]  ;;  %v2519_v14 = vld [vmem:[%s9992_s26 + $0x1c8] sm:$0xff] }
 0xe9a   :  { %v2241_v51 = vadd.f32 %v6584_v24, %v2239_v30  ;;  %v2240_v32 = vadd.f32 %v6583_v29, %v2238_v31  ;;  %v2493_v29 = vld [vmem:[%s9992_s26 + $0xf8] sm:$0xff]  ;;  %v6007_v24 = vpack.c.bf16 %v2539_v16, %v2536_v15  ;;  %v2488_v30 = vld [vmem:[%s9992_s26 + $0xd0] sm:$0xff]  ;;  %v2491_v31 = vld [vmem:[%s9992_s26 + $0xe8] sm:$0xff] }
 0xe9b   :  { %v6009_v37 = vpack.c.bf16 %v2491_v31, %v2488_v30  ;;  %v2523_v15 = vld [vmem:[%s9992_s26 + $0x1e8] sm:$0xff]  ;;  %v2526_v16 = vld [vmem:[%s9992_s26 + $0x200] sm:$0xff]  ;;  %v2528_v31 = vld [vmem:[%s9992_s26 + $0x210] sm:$0xff] }
 0xe9c   :  { %v2243_v39 = vmul.f32 0.2, %v2241_v51  ;;  %v2242_v40 = vmul.f32 0.2, %v2240_v32  ;;  %v5935_v12 = vpack.c.bf16 %v2526_v16, %v2523_v15  ;;  %v2522_v22 = vld [vmem:[%s9992_s26 + $0x1e0] sm:$0xff] }
 0xe9e   :  { %v2245_v41 = vmax.f32 %v2241_v51, %v2243_v39  ;;  %v2244_v44 = vmax.f32 %v2240_v32, %v2242_v40  ;;  %v2496_v51 = vld [vmem:[%s9992_s26 + $0x110] sm:$0xff]  ;;  %v2542_v32 = vld [vmem:[%s9992_s26 + $0x280] sm:$0xff]  ;;  %v2499_v39 = vld [vmem:[%s9992_s26 + $0x128] sm:$0xff] }
 0xe9f   :  { %v5915_v38 = vpack.c.bf16 %v2496_v51, %v2493_v29  ;;  %v6011_v40 = vpack.c.bf16 %v2545_v42, %v2542_v32  ;;  %v2532_v29 = vld [vmem:[%s9992_s26 + $0x230] sm:$0xff]  ;;  %v2531_v51 = vld [vmem:[%s9992_s26 + $0x228] sm:$0xff]  ;;  %v2538_v42 = vld [vmem:[%s9992_s26 + $0x260] sm:$0xff] }
 0xea0   :  { %5030 = vmatprep.mubr.msk.f32.mxu0 %vm1036_vm1, %v2245_v41  ;;  %5031 = vmatprep.mubr.msk.f32.mxu1 %vm1036_vm1, %v2245_v41  ;;  %v2502_v41 = vld [vmem:[%s9992_s26 + $0x140] sm:$0xff]  ;;  %v2535_v32 = vld [vmem:[%s9992_s26 + $0x248] sm:$0xff] }
 0xea1   :  { %2386 = vmatmul.mubr.f32.vlgmr.msra.gmra.mrb[6].mxu0 %v2244_v44  ;;  %2457 = vmatmul.mubr.f32.vlgmr.msra.gmra.mrb[10].mxu1 %v2244_v44  ;;  %v2548_v44 = vld [vmem:[%s9992_s26 + $0x2b0] sm:$0xff]  ;;  %v5919_v50 = vpack.c.bf16 %v2502_v41, %v2499_v39  ;;  %v5943_v35 = vpack.c.bf16 %v2538_v42, %v2535_v32  ;;  %v2543_v41 = vld [vmem:[%s9992_s26 + $0x288] sm:$0xff] }
 0xea2   :  { %5898 = vmatpush1.bf16.msra.mxu0 %v5897_v45  ;;  %5994 = vmatpush3.bf16.msra.mxu1 %v5993_v48  ;;  %v2551_v45 = vld [vmem:[%s9992_s26 + $0x2c8] sm:$0xff]  ;;  %v2501_v48 = vld [vmem:[%s9992_s26 + $0x138] sm:$0xff]  ;;  %v2544_v39 = vld [vmem:[%s9992_s26 + $0x290] sm:$0xff] }
 0xea3   :  { %5900 = vmatprep.subr.bf16.mxu0 %v5899_v49  ;;  %5996 = vmatprep.subr.bf16.mxu1 %v5995_v43  ;;  %v6013_v49 = vpack.c.bf16 %v2497_v17, %v2494_v58  ;;  %v2505_v43 = vld [vmem:[%s9992_s26 + $0x158] sm:$0xff]  ;;  %v6015_v52 = vpack.c.bf16 %v2551_v45, %v2548_v44  ;;  %v5921_v55 = vpack.c.bf16 %v2501_v48, %v2498_v47  ;;  %v2540_v17 = vld [vmem:[%s9992_s26 + $0x270] sm:$0xff]  ;;  %v2547_v44 = vld [vmem:[%s9992_s26 + $0x2a8] sm:$0xff] }
 0xea4   :  { %v2550_v45 = vld [vmem:[%s9992_s26 + $0x2c0] sm:$0xff]  ;;  %v2579_v42 = vld [vmem:[%s9992_s26 + $0x3a8] sm:$0xff] }
 0xea5   :  { %v5951_v47 = vpack.c.bf16 %v2550_v45, %v2547_v44  ;;  %v2546_v48 = vld [vmem:[%s9992_s26 + $0x2a0] sm:$0xff]  ;;  %v2587_v44 = vld [vmem:[%s9992_s26 + $0x3e8] sm:$0xff]  ;;  %v2589_v45 = vld [vmem:[%s9992_s26 + $0x3f8] sm:$0xff] }
 0xea6   :  { %5902 = vmatpush1.bf16.msra.mxu0 %v5901_v59  ;;  %5998 = vmatpush3.bf16.msra.mxu1 %v5997_v13  ;;  %v2557_v59 = vld [vmem:[%s9992_s26 + $0x2f8] sm:$0xff]  ;;  %v6017_v13 = vpack.c.bf16 %v2503_v54, %v2500_v53  ;;  %v2552_v54 = vld [vmem:[%s9992_s26 + $0x2d0] sm:$0xff] }
 0xea7   :  { %5904 = vmatprep.subr.bf16.mxu0 %v5903_v61  ;;  %6000 = vmatprep.subr.bf16.mxu1 %v5999_v63  ;;  %v5923_v61 = vpack.c.bf16 %v2508_v57, %v2505_v43  ;;  %v6019_v63 = vpack.c.bf16 %v2557_v59, %v2554_v56  ;;  %v2556_v43 = vld [vmem:[%s9992_s26 + $0x2f0] sm:$0xff]  ;;  %v2555_v57 = vld [vmem:[%s9992_s26 + $0x2e8] sm:$0xff] }
 0xea8   :  { %v5957_v56 = vpack.c.bf16 %v2555_v57, %v2552_v54  ;;  %v2559_v59 = vld [vmem:[%s9992_s26 + $0x308] sm:$0xff]  ;;  %v2598_v57 = vld [vmem:[%s9992_s26 + $0x440] sm:$0xff] }
 0xea9   :  { %v2595_v54 = vld [vmem:[%s9992_s26 + $0x428] sm:$0xff] }
 0xeaa   :  { %5906 = vmatpush1.bf16.msra.mxu0 %v5905_v4  ;;  %6002 = vmatpush3.bf16.msra.mxu1 %v6001_v6  ;;  %v6021_v4 = vpack.c.bf16 %v2509_v2, %v2506_v1  ;;  %v2513_v6 = vld [vmem:[%s9992_s26 + $0x198] sm:$0xff]  ;;  %v2568_v2 = vld [vmem:[%s9992_s26 + $0x350] sm:$0xff] }
 0xeab   :  { %5908 = vmatprep.subr.bf16.mxu0 %v5907_v7  ;;  %6004 = vmatprep.subr.bf16.mxu1 %v6003_v9  ;;  %v2517_v7 = vld [vmem:[%s9992_s26 + $0x1b8] sm:$0xff]  ;;  %v5929_v9 = vpack.c.bf16 %v2513_v6, %v2510_v5 }
 0xeac   :  { %v5931_v10 = vpack.c.bf16 %v2520_v8, %v2517_v7  ;;  %v2565_v1 = vld [vmem:[%s9992_s26 + $0x338] sm:$0xff]  ;;  %v2567_v8 = vld [vmem:[%s9992_s26 + $0x348] sm:$0xff] }
 0xead   :  { %v5963_v7 = vpack.c.bf16 %v2568_v2, %v2565_v1  ;;  %v2604_v1 = vld [vmem:[%s9992_s26 + $0x470] sm:$0xff] }
 0xeae   :  { %5910 = vmatpush1.bf16.msra.mxu0 %v5909_v20  ;;  %6006 = vmatpush3.bf16.msra.mxu1 %v6005_v23  ;;  %v5933_v20 = vpack.c.bf16 %v2519_v14, %v2516_v11  ;;  %v2525_v23 = vld [vmem:[%s9992_s26 + $0x1f8] sm:$0xff]  ;;  %v2571_v11 = vld [vmem:[%s9992_s26 + $0x368] sm:$0xff]  ;;  %v2574_v14 = vld [vmem:[%s9992_s26 + $0x380] sm:$0xff] }
 0xeaf   :  { %5912 = vmatprep.subr.bf16.mxu0 %v5911_v28  ;;  %6008 = vmatprep.subr.bf16.mxu1 %v6007_v24  ;;  %v2529_v28 = vld [vmem:[%s9992_s26 + $0x218] sm:$0xff]  ;;  %v5937_v24 = vpack.c.bf16 %v2525_v23, %v2522_v22  ;;  %v2572_v23 = vld [vmem:[%s9992_s26 + $0x370] sm:$0xff] }
 0xeb0   :  { %v5939_v30 = vpack.c.bf16 %v2532_v29, %v2529_v28  ;;  %v2573_v22 = vld [vmem:[%s9992_s26 + $0x378] sm:$0xff]  ;;  %v2575_v28 = vld [vmem:[%s9992_s26 + $0x388] sm:$0xff] }
 0xeb1   :  { %v2577_v29 = vld [vmem:[%s9992_s26 + $0x398] sm:$0xff] }
 0xeb2   :  { %5914 = vmatpush1.bf16.msra.mxu0 %v5913_v33  ;;  %6010 = vmatpush3.bf16.msra.mxu1 %v6009_v37  ;;  %v5941_v33 = vpack.c.bf16 %v2531_v51, %v2528_v31  ;;  %v2537_v37 = vld [vmem:[%s9992_s26 + $0x258] sm:$0xff]  ;;  %v6030_v31 = vpack.c.bf16 %v2575_v28, %v2572_v23  ;;  %v2576_v51 = vld [vmem:[%s9992_s26 + $0x390] sm:$0xff] }
 0xeb3   :  { %5916 = vmatprep.subr.bf16.mxu0 %v5915_v38  ;;  %6012 = vmatprep.subr.bf16.mxu1 %v6011_v40  ;;  %v2541_v38 = vld [vmem:[%s9992_s26 + $0x278] sm:$0xff]  ;;  %v5945_v40 = vpack.c.bf16 %v2537_v37, %v2534_v36  ;;  %v2583_v36 = vld [vmem:[%s9992_s26 + $0x3c8] sm:$0xff]  ;;  %v2586_v37 = vld [vmem:[%s9992_s26 + $0x3e0] sm:$0xff] }
 0xeb4   :  { %v5947_v58 = vpack.c.bf16 %v2544_v39, %v2541_v38  ;;  %v5973_v38 = vpack.c.bf16 %v2579_v42, %v2576_v51 }
 0xeb6   :  { %5918 = vmatpush1.bf16.msra.mxu0 %v5917_v46  ;;  %6014 = vmatpush3.bf16.msra.mxu1 %v6013_v49  ;;  %v5949_v46 = vpack.c.bf16 %v2543_v41, %v2540_v17  ;;  %v2549_v49 = vld [vmem:[%s9992_s26 + $0x2b8] sm:$0xff]  ;;  %v2584_v41 = vld [vmem:[%s9992_s26 + $0x3d0] sm:$0xff] }
 0xeb7   :  { %5920 = vmatprep.subr.bf16.mxu0 %v5919_v50  ;;  %6016 = vmatprep.subr.bf16.mxu1 %v6015_v52  ;;  %v2553_v50 = vld [vmem:[%s9992_s26 + $0x2d8] sm:$0xff]  ;;  %v5953_v52 = vpack.c.bf16 %v2549_v49, %v2546_v48  ;;  %v6036_v48 = vpack.c.bf16 %v2587_v44, %v2584_v41  ;;  %v2588_v49 = vld [vmem:[%s9992_s26 + $0x3f0] sm:$0xff] }
 0xeb8   :  { %v5955_v53 = vpack.c.bf16 %v2556_v43, %v2553_v50  ;;  %v2585_v17 = vld [vmem:[%s9992_s26 + $0x3d8] sm:$0xff]  ;;  %v2591_v43 = vld [vmem:[%s9992_s26 + $0x408] sm:$0xff]  ;;  %v2615_v44 = vld [vmem:[%s9993_s29 + $0x30] sm:$0xff] }
 0xeba   :  { %5922 = vmatpush1.bf16.msra.mxu0 %v5921_v55  ;;  %6018 = vmatpush3.bf16.msra.mxu1 %v6017_v13  ;;  %v2562_v55 = vld [vmem:[%s9992_s26 + $0x320] sm:$0xff] }
 0xebb   :  { %5924 = vmatprep.subr.bf16.mxu0 %v5923_v61  ;;  %6020 = vmatprep.subr.bf16.mxu1 %v6019_v63  ;;  %v5959_v60 = vpack.c.bf16 %v2562_v55, %v2559_v59  ;;  %v2558_v13 = vld [vmem:[%s9992_s26 + $0x300] sm:$0xff]  ;;  %v2561_v61 = vld [vmem:[%s9992_s26 + $0x318] sm:$0xff]  ;;  %v2563_v63 = vld [vmem:[%s9992_s26 + $0x328] sm:$0xff] }
 0xebc   :  { %v2594_v55 = vld [vmem:[%s9992_s26 + $0x420] sm:$0xff] }
 0xebe   :  { %5926 = vmatpush1.bf16.msra.mxu0 %v5925_v26  ;;  %6022 = vmatpush3.bf16.msra.mxu1 %v6021_v4  ;;  %v5961_v26 = vpack.c.bf16 %v2561_v61, %v2558_v13  ;;  %v6024_v4 = vpack.c.bf16 %v2563_v63, %v2560_v62  ;;  %v2597_v13 = vld [vmem:[%s9992_s26 + $0x438] sm:$0xff]  ;;  %v2596_v61 = vld [vmem:[%s9992_s26 + $0x430] sm:$0xff]  ;;  %v2599_v62 = vld [vmem:[%s9992_s26 + $0x448] sm:$0xff] }
 0xebf   :  { %5928 = vmatprep.subr.bf16.mxu0 %v5927_v27  ;;  %6023 = vmatprep.subr.bf16.mxu1 %v8018_v34  ;;  %v2564_v27 = vld [vmem:[%s9992_s26 + $0x330] sm:$0xff]  ;;  %v2601_v63 = vld [vmem:[%s9992_s26 + $0x458] sm:$0xff]  ;;  %v5985_v2 = vpack.c.bf16 %v2597_v13, %v2594_v55  ;;  %v2634_v55 = vld [vmem:[%s9993_s29 + $0xc8] sm:$0xff] }
 0xec0   :  { %v5965_v15 = vpack.c.bf16 %v2567_v8, %v2564_v27  ;;  %v5987_v27 = vpack.c.bf16 %v2604_v1, %v2601_v63  ;;  %v2605_v8 = vld [vmem:[%s9992_s26 + $0x478] sm:$0xff]  ;;  %v2659_v13 = vld [vmem:[%s9993_s29 + $0x190] sm:$0xff]  ;;  %v2633_v63 = vld [vmem:[%s9993_s29 + $0xc0] sm:$0xff] }
 0xec2   :  { %5930 = vmatpush1.bf16.msra.mxu0 %v5929_v9  ;;  %v2566_v9 = vld [vmem:[%s9992_s26 + $0x340] sm:$0xff] }
 0xec3   :  { %5932 = vmatprep.subr.bf16.mxu0 %v5931_v10  ;;  %v2569_v10 = vld [vmem:[%s9992_s26 + $0x358] sm:$0xff] }
 0xec4   :  { %v6027_v16 = vpack.c.bf16 %v2569_v10, %v2566_v9 }
 0xec6   :  { %5934 = vmatpush1.bf16.msra.mxu0 %v5933_v20  ;;  %v2570_v20 = vld [vmem:[%s9992_s26 + $0x360] sm:$0xff] }
 0xec7   :  { %5936 = vmatprep.subr.bf16.mxu0 %v5935_v12  ;;  %v5967_v12 = vpack.c.bf16 %v2574_v14, %v2571_v11 }
 0xeca   :  { %5938 = vmatpush1.bf16.msra.mxu0 %v5937_v24  ;;  %v2580_v24 = vld [vmem:[%s9992_s26 + $0x3b0] sm:$0xff] }
 0xecb   :  { %5940 = vmatprep.subr.bf16.mxu0 %v5939_v30  ;;  %v5969_v30 = vpack.c.bf16 %v2573_v22, %v2570_v20  ;;  %v5971_v32 = vpack.c.bf16 %v2580_v24, %v2577_v29  ;;  %v2606_v20 = vld [vmem:[#allocation32] sm:$0x7] }
 0xecc   :  { %v2760_v22 = vrot.slane %v2606_v20, %v8563_v21  ;;  %v2764_v23 = vrot.slane %v2606_v20, %v8560_v19 }
 0xece   :  { %5942 = vmatpush1.bf16.msra.mxu0 %v5941_v33  ;;  %v2578_v33 = vld [vmem:[%s9992_s26 + $0x3a0] sm:$0xff] }
 0xecf   :  { %5944 = vmatprep.subr.bf16.mxu0 %v5943_v35  ;;  %v2581_v35 = vld [vmem:[%s9992_s26 + $0x3b8] sm:$0xff] }
 0xed0   :  { %v6033_v39 = vpack.c.bf16 %v2581_v35, %v2578_v33  ;;  %v2610_v35 = vld [vmem:[%s9993_s29 + $0x8] sm:$0xff] }
 0xed2   :  { %5946 = vmatpush1.bf16.msra.mxu0 %v5945_v40  ;;  %v2582_v40 = vld [vmem:[%s9992_s26 + $0x3c0] sm:$0xff] }
 0xed3   :  { %5948 = vmatprep.subr.bf16.mxu0 %v5947_v58  ;;  %v5975_v58 = vpack.c.bf16 %v2586_v37, %v2583_v36  ;;  %v2613_v36 = vld [vmem:[%s9993_s29 + $0x20] sm:$0xff] }
 0xed4   :  { %v2609_v37 = vld [vmem:[%s9993_s29] sm:$0xff] }
 0xed6   :  { %5950 = vmatpush1.bf16.msra.mxu0 %v5949_v46  ;;  %v2592_v46 = vld [vmem:[%s9992_s26 + $0x410] sm:$0xff] }
 0xed7   :  { %5952 = vmatprep.subr.bf16.mxu0 %v5951_v47  ;;  %v5977_v47 = vpack.c.bf16 %v2585_v17, %v2582_v40  ;;  %v5979_v50 = vpack.c.bf16 %v2592_v46, %v2589_v45  ;;  %v2616_v40 = vld [vmem:[%s9993_s29 + $0x38] sm:$0xff]  ;;  %v2618_v45 = vld [vmem:[%s9993_s29 + $0x48] sm:$0xff] }
 0xed8   :  { %v2622_v46 = vld [vmem:[%s9993_s29 + $0x68] sm:$0xff] }
 0xeda   :  { %5954 = vmatpush1.bf16.msra.mxu0 %v5953_v52  ;;  %v2590_v52 = vld [vmem:[%s9992_s26 + $0x400] sm:$0xff] }
 0xedb   :  { %5956 = vmatprep.subr.bf16.mxu0 %v5955_v53  ;;  %v2593_v53 = vld [vmem:[%s9992_s26 + $0x418] sm:$0xff] }
 0xedc   :  { %v6039_v59 = vpack.c.bf16 %v2593_v53, %v2590_v52  ;;  %v2628_v52 = vld [vmem:[%s9993_s29 + $0x98] sm:$0xff]  ;;  %v2631_v53 = vld [vmem:[%s9993_s29 + $0xb0] sm:$0xff] }
 0xede   :  { %5958 = vmatpush1.bf16.msra.mxu0 %v5957_v56  ;;  %v5981_v56 = vpack.c.bf16 %v2591_v43, %v2588_v49  ;;  %v2624_v43 = vld [vmem:[%s9993_s29 + $0x78] sm:$0xff] }
 0xedf   :  { %5960 = vmatprep.subr.bf16.mxu0 %v5959_v60  ;;  %v5983_v60 = vpack.c.bf16 %v2598_v57, %v2595_v54  ;;  %v6059_v57 = vpack.c.bf16 %v2631_v53, %v2628_v52  ;;  %v2666_v52 = vld [vmem:[%s9993_s29 + $0x1c8] sm:$0xff] }
 0xf74   :  { %v9149_v25 = vpop.f32.mrb[6].mxu0  ;;  %v9151_v3 = vpop.f32.mrb[10].mxu1 }
 0xf75   :  { %v9154_v5 = vpop.f32.mrb[7].mxu0  ;;  %v2460_v6 = vpop.f32.mrb[11].mxu1 }
 0xf76   :  { %2836 = vmatprep.mubr.f32.mxu0 %v9154_v5  ;;  %2978 = vmatprep.mubr.f32.mxu1 %v9154_v5  ;;  %v2603_v6 = vld [vmem:[%s9992_s26 + $0x468] sm:$0xff] }
 0xf77   :  { %2837 = vmatmul.mubr.f32.vlgmr.msra.gmra.mrb[8].mxu0 %v9149_v25  ;;  %2979 = vmatmul.mubr.f32.vlgmr.msra.gmra.mrb[12].mxu1 %v9149_v25 }
 0xf78   :  { %5962 = vmatpush1.bf16.msra.mxu0 %v5961_v26  ;;  %6025 = vmatpush3.bf16.msra.mxu1 %v6024_v4  ;;  %v6042_v26 = vpack.c.bf16 %v2599_v62, %v2596_v61  ;;  %v2600_v4 = vld [vmem:[%s9992_s26 + $0x450] sm:$0xff]  ;;  %v2662_v61 = vld [vmem:[%s9993_s29 + $0x1a8] sm:$0xff] }
 0xf79   :  { %5964 = vmatprep.subr.bf16.mxu0 %v5963_v7  ;;  %6026 = vmatprep.subr.bf16.mxu1 %v8018_v34  ;;  %v2602_v7 = vld [vmem:[%s9992_s26 + $0x460] sm:$0xff]  ;;  %v5989_v9 = vpack.c.bf16 %v2603_v6, %v2600_v4  ;;  %v6143_v1 = vpack.c.bf16 %v2662_v61, %v2659_v13  ;;  %v2636_v4 = vld [vmem:[%s9993_s29 + $0xd8] sm:$0xff]  ;;  %v2614_v6 = vld [vmem:[%s9993_s29 + $0x28] sm:$0xff] }
 0xf7a   :  { %2907 = vmatprep.mubr.f32.mxu0 %v8017_v0  ;;  %5241 = vmatprep.mubr.msk.f32.mxu1 %vm8019_vm2, %v8017_v0  ;;  %v6045_v10 = vpack.c.bf16 %v2605_v8, %v2602_v7  ;;  %v2643_v7 = vld [vmem:[%s9993_s29 + $0x110] sm:$0xff] }
 0xf7c   :  { %5966 = vmatpush1.bf16.msra.mxu0 %v5965_v15  ;;  %6028 = vmatpush3.bf16.msra.mxu1 %v6027_v16  ;;  %v9212_v16 = vsub.s32 2, %v8557_v18 }
 0xf7d   :  { %5968 = vmatprep.subr.bf16.mxu0 %v5967_v12  ;;  %6029 = vmatprep.subr.bf16.mxu1 %v8018_v34 }
 0xf7e   :  { %v2768_v12 = vrot.slane %v2606_v20, %v9212_v16  ;;  %v6065_v20 = vpack.c.bf16 %v2636_v4, %v2633_v63  ;;  %v2673_v63 = vld [vmem:[%s9993_s29 + $0x200] sm:$0xff]  ;;  %v2672_v4 = vld [vmem:[%s9993_s29 + $0x1f8] sm:$0xff] }
 0xf80   :  { %5970 = vmatpush1.bf16.msra.mxu0 %v5969_v30  ;;  %6031 = vmatpush3.bf16.msra.mxu1 %v6030_v31 }
 0xf81   :  { %5972 = vmatprep.subr.bf16.mxu0 %v5971_v32  ;;  %6032 = vmatprep.subr.bf16.mxu1 %v8018_v34 }
 0xf84   :  { %5974 = vmatpush1.bf16.msra.mxu0 %v5973_v38  ;;  %6034 = vmatpush3.bf16.msra.mxu1 %v6033_v39  ;;  %v6047_v38 = vpack.c.bf16 %v2613_v36, %v2610_v35  ;;  %v2612_v39 = vld [vmem:[%s9993_s29 + $0x18] sm:$0xff]  ;;  %v2655_v36 = vld [vmem:[%s9993_s29 + $0x170] sm:$0xff] }
 0xf85   :  { %5976 = vmatprep.subr.bf16.mxu0 %v5975_v58  ;;  %6035 = vmatprep.subr.bf16.mxu1 %v8018_v34  ;;  %v2619_v58 = vld [vmem:[%s9993_s29 + $0x50] sm:$0xff]  ;;  %v6049_v17 = vpack.c.bf16 %v2612_v39, %v2609_v37  ;;  %v2652_v35 = vld [vmem:[%s9993_s29 + $0x158] sm:$0xff] }
 0xf86   :  { %v6051_v41 = vpack.c.bf16 %v2619_v58, %v2616_v40  ;;  %v2651_v39 = vld [vmem:[%s9993_s29 + $0x150] sm:$0xff]  ;;  %v2654_v40 = vld [vmem:[%s9993_s29 + $0x168] sm:$0xff] }
 0xf87   :  { %v2658_v58 = vld [vmem:[%s9993_s29 + $0x188] sm:$0xff] }
 0xf88   :  { %5978 = vmatpush1.bf16.msra.mxu0 %v5977_v47  ;;  %6037 = vmatpush3.bf16.msra.mxu1 %v6036_v48  ;;  %v2625_v47 = vld [vmem:[%s9993_s29 + $0x80] sm:$0xff]  ;;  %v6053_v48 = vpack.c.bf16 %v2618_v45, %v2615_v44 }
 0xf89   :  { %5980 = vmatprep.subr.bf16.mxu0 %v5979_v50  ;;  %6038 = vmatprep.subr.bf16.mxu1 %v8018_v34  ;;  %v6055_v49 = vpack.c.bf16 %v2625_v47, %v2622_v46  ;;  %v2621_v50 = vld [vmem:[%s9993_s29 + $0x60] sm:$0xff]  ;;  %v2660_v46 = vld [vmem:[%s9993_s29 + $0x198] sm:$0xff] }
 0xf8a   :  { %v6057_v54 = vpack.c.bf16 %v2624_v43, %v2621_v50  ;;  %v2657_v45 = vld [vmem:[%s9993_s29 + $0x180] sm:$0xff]  ;;  %v2664_v47 = vld [vmem:[%s9993_s29 + $0x1b8] sm:$0xff]  ;;  %v2663_v43 = vld [vmem:[%s9993_s29 + $0x1b0] sm:$0xff] }
 0xf8b   :  { %v6085_v53 = vpack.c.bf16 %v2666_v52, %v2663_v43  ;;  %v2690_v43 = vld [vmem:[%s9993_s29 + $0x288] sm:$0xff]  ;;  %v2641_v52 = vld [vmem:[%s9993_s29 + $0x100] sm:$0xff] }
 0xf8c   :  { %5982 = vmatpush1.bf16.msra.mxu0 %v5981_v56  ;;  %6040 = vmatpush3.bf16.msra.mxu1 %v6039_v59  ;;  %v2627_v56 = vld [vmem:[%s9993_s29 + $0x90] sm:$0xff]  ;;  %v2630_v59 = vld [vmem:[%s9993_s29 + $0xa8] sm:$0xff] }
 0xf8d   :  { %5984 = vmatprep.subr.bf16.mxu0 %v5983_v60  ;;  %6041 = vmatprep.subr.bf16.mxu1 %v8018_v34  ;;  %v2637_v60 = vld [vmem:[%s9993_s29 + $0xe0] sm:$0xff]  ;;  %v6061_v62 = vpack.c.bf16 %v2630_v59, %v2627_v56 }
 0xf90   :  { %5986 = vmatpush1.bf16.msra.mxu0 %v5985_v2  ;;  %6043 = vmatpush3.bf16.msra.mxu1 %v6042_v26  ;;  %v2611_v2 = vld [vmem:[%s9993_s29 + $0x10] sm:$0xff]  ;;  %v6063_v26 = vpack.c.bf16 %v2637_v60, %v2634_v55 }
 0xf91   :  { %5988 = vmatprep.subr.bf16.mxu0 %v5987_v27  ;;  %6044 = vmatprep.subr.bf16.mxu1 %v8018_v34  ;;  %v2640_v27 = vld [vmem:[%s9993_s29 + $0xf8] sm:$0xff]  ;;  %v6145_v8 = vpack.c.bf16 %v2614_v6, %v2611_v2  ;;  %v2674_v2 = vld [vmem:[%s9993_s29 + $0x208] sm:$0xff] }
 0xf94   :  { %5990 = vmatpush1.bf16.msra.mxu0 %v5989_v9  ;;  %6046 = vmatpush3.bf16.msra.mxu1 %v6045_v10  ;;  %v2665_v9 = vld [vmem:[%s9993_s29 + $0x1c0] sm:$0xff]  ;;  %v2668_v10 = vld [vmem:[%s9993_s29 + $0x1d8] sm:$0xff] }
 0xf95   :  { %6048 = vmatprep.subr.bf16.mxu0 %v6047_v38  ;;  %6144 = vmatprep.subr.bf16.mxu1 %v6143_v1  ;;  %v6075_v38 = vpack.c.bf16 %v2655_v36, %v2652_v35  ;;  %v2686_v35 = vld [vmem:[%s9993_s29 + $0x268] sm:$0xff] }
 0xf97   :  { %2908 = vmatmul.mubr.f32.vlgmr.msra.gmra.mrb[8].mxu0 %v9151_v3  ;;  %5242 = vmatmul.mubr.f32.vlgmr.msra.gmra.mrb[14].mxu1 %v9151_v3 }
 0xf98   :  { %6050 = vmatpush1.bf16.msra.mxu0 %v6049_v17  ;;  %6146 = vmatpush3.bf16.msra.mxu1 %v6145_v8  ;;  %v2661_v17 = vld [vmem:[%s9993_s29 + $0x1a0] sm:$0xff]  ;;  %v2626_v8 = vld [vmem:[%s9993_s29 + $0x88] sm:$0xff] }
 0xf99   :  { %6052 = vmatprep.subr.bf16.mxu0 %v6051_v41  ;;  %v6077_v41 = vpack.c.bf16 %v2654_v40, %v2651_v39  ;;  %v6079_v44 = vpack.c.bf16 %v2661_v17, %v2658_v58  ;;  %v2684_v39 = vld [vmem:[%s9993_s29 + $0x258] sm:$0xff]  ;;  %v2635_v40 = vld [vmem:[%s9993_s29 + $0xd0] sm:$0xff]  ;;  %v2638_v17 = vld [vmem:[%s9993_s29 + $0xe8] sm:$0xff] }
 0xf9c   :  { %6054 = vmatpush1.bf16.msra.mxu0 %v6053_v48  ;;  %v2667_v48 = vld [vmem:[%s9993_s29 + $0x1d0] sm:$0xff] }
 0xf9d   :  { %6056 = vmatprep.subr.bf16.mxu0 %v6055_v49  ;;  %v6081_v49 = vpack.c.bf16 %v2660_v46, %v2657_v45  ;;  %v6083_v50 = vpack.c.bf16 %v2667_v48, %v2664_v47  ;;  %v6161_v45 = vpack.c.bf16 %v2638_v17, %v2635_v40  ;;  %v2689_v47 = vld [vmem:[%s9993_s29 + $0x280] sm:$0xff]  ;;  %v2692_v48 = vld [vmem:[%s9993_s29 + $0x298] sm:$0xff] }
 0xfa0   :  { %6058 = vmatpush1.bf16.msra.mxu0 %v6057_v54 }
 0xfa1   :  { %6060 = vmatprep.subr.bf16.mxu0 %v6059_v57 }
 0xfa4   :  { %6062 = vmatpush1.bf16.msra.mxu0 %v6061_v62 }
 0xfa5   :  { %6064 = vmatprep.subr.bf16.mxu0 %v6063_v26  ;;  %v2669_v26 = vld [vmem:[%s9993_s29 + $0x1e0] sm:$0xff] }
 0xfa6   :  { %v6089_v6 = vpack.c.bf16 %v2672_v4, %v2669_v26  ;;  %v2700_v26 = vld [vmem:[%s9993_s29 + $0x2d8] sm:$0xff]  ;;  %v2703_v4 = vld [vmem:[%s9993_s29 + $0x2f0] sm:$0xff] }
 0xfa8   :  { %6066 = vmatpush1.bf16.msra.mxu0 %v6065_v20  ;;  %v2680_v20 = vld [vmem:[%s9993_s29 + $0x238] sm:$0xff] }
0x104a   :  { %v5085_v11 = vpop.f32.mrb[12].mxu1 }
0x104b   :  { %v5086_v14 = vpop.f32.mrb[13].mxu1 }
0x104c   :  { %v5087_v15 = vadd.f32 %v5086_v14, %v5085_v11  ;;  %v6147_v11 = vpack.c.bf16 %v2668_v10, %v2665_v9  ;;  %v2617_v14 = vld [vmem:[%s9993_s29 + $0x40] sm:$0xff]  ;;  %v2676_v10 = vld [vmem:[%s9993_s29 + $0x218] sm:$0xff] }
0x104e   :  { %v2981_v28 = vadd.f32 %v5087_v15, %v2768_v12  ;;  %v2620_v15 = vld [vmem:[%s9993_s29 + $0x58] sm:$0xff]  ;;  %6148 = vmatprep.subr.bf16.mxu1 %v6147_v11  ;;  %v2679_v11 = vld [vmem:[%s9993_s29 + $0x230] sm:$0xff] }
0x104f   :  { %v6149_v12 = vpack.c.bf16 %v2620_v15, %v2617_v14  ;;  %v2677_v14 = vld [vmem:[%s9993_s29 + $0x220] sm:$0xff]  ;;  %v6091_v15 = vpack.c.bf16 %v2679_v11, %v2676_v10  ;;  %v2699_v10 = vld [vmem:[%s9993_s29 + $0x2d0] sm:$0xff]  ;;  %v2702_v11 = vld [vmem:[%s9993_s29 + $0x2e8] sm:$0xff] }
0x1051   :  { %6150 = vmatpush3.bf16.msra.mxu1 %v6149_v12  ;;  %v2675_v12 = vld [vmem:[%s9993_s29 + $0x210] sm:$0xff] }
0x106a   :  { %v2909_v29 = vpop.f32.mrb[8].mxu0  ;;  %v3050_v24 = vpop.f32.mrb[14].mxu1 }
0x106b   :  { %v9217_v30 = vadd.f32 %v2909_v29, %v2760_v22  ;;  %v9219_v18 = vadd.f32 %v3050_v24, %v2981_v28  ;;  %v2911_v31 = vpop.f32.mrb[9].mxu0  ;;  %v5243_v51 = vpop.f32.mrb[15].mxu1  ;;  %v6067_v22 = vpack.c.bf16 %v2643_v7, %v2640_v27  ;;  %v2642_v28 = vld [vmem:[%s9993_s29 + $0x108] sm:$0xff]  ;;  %v2649_v24 = vld [vmem:[%s9993_s29 + $0x140] sm:$0xff]  ;;  %v2623_v7 = vld [vmem:[%s9993_s29 + $0x70] sm:$0xff] }
0x106c   :  { %v9221_v32 = vadd.f32 %v2911_v31, %v2764_v23  ;;  %v2639_v23 = vld [vmem:[%s9993_s29 + $0xf0] sm:$0xff]  ;;  %v2646_v29 = vld [vmem:[%s9993_s29 + $0x128] sm:$0xff]  ;;  %v6153_v9 = vpack.c.bf16 %v2626_v8, %v2623_v7 }
0x106d   :  { %v6069_v31 = vpack.c.bf16 %v2642_v28, %v2639_v23  ;;  %6068 = vmatprep.subr.bf16.mxu0 %v6067_v22  ;;  %v6071_v51 = vpack.c.bf16 %v2649_v24, %v2646_v29  ;;  %v2678_v22 = vld [vmem:[%s9993_s29 + $0x228] sm:$0xff]  ;;  %v6155_v23 = vpack.c.bf16 %v2680_v20, %v2677_v14  ;;  %v2629_v29 = vld [vmem:[%s9993_s29 + $0xa0] sm:$0xff]  ;;  %v2632_v24 = vld [vmem:[%s9993_s29 + $0xb8] sm:$0xff] }
0x106e   :  { %v3054_v42 = vadd.f32 %v9221_v32, %v9217_v30  ;;  %v6093_v28 = vpack.c.bf16 %v2678_v22, %v2675_v12  ;;  %v2656_v20 = vld [vmem:[%s9993_s29 + $0x178] sm:$0xff]  ;;  %v6109_v12 = vpack.c.bf16 %v2702_v11, %v2699_v10  ;;  %v2723_v11 = vld [vmem:[%s9993_s29 + $0x390] sm:$0xff] }
0x106f   :  { %6070 = vmatpush1.bf16.msra.mxu0 %v6069_v31  ;;  %v2682_v31 = vld [vmem:[%s9993_s29 + $0x248] sm:$0xff] }
0x1070   :  { %v3055_v33 = vadd.f32 %v3054_v42, %v9219_v18  ;;  %v2645_v42 = vld [vmem:[%s9993_s29 + $0x120] sm:$0xff]  ;;  %6072 = vmatprep.subr.bf16.mxu0 %v6071_v51  ;;  %v6157_v51 = vpack.c.bf16 %v2632_v24, %v2629_v29 }
0x1072   :  { %3056 = vadd.xlane.f32.xlu0 %v3055_v33  ;;  %v2648_v33 = vld [vmem:[%s9993_s29 + $0x138] sm:$0xff] }
0x1073   :  { %v6073_v37 = vpack.c.bf16 %v2648_v33, %v2645_v42  ;;  %v2685_v42 = vld [vmem:[%s9993_s29 + $0x260] sm:$0xff]  ;;  %v2683_v33 = vld [vmem:[%s9993_s29 + $0x250] sm:$0xff] }
0x1074   :  { %v6095_v36 = vpack.c.bf16 %v2685_v42, %v2682_v31  ;;  %v9340_v42 = vld [vmem:[#allocation34] sm:$0x7] }
0x1075   :  { %6074 = vmatpush1.bf16.msra.mxu0 %v6073_v37  ;;  %v6159_v37 = vpack.c.bf16 %v2686_v35, %v2683_v33  ;;  %v9342_v33 = vld [vmem:[#allocation35] sm:$0x7]  ;;  %v3083_v35 = vrot.slane %v9340_v42, %v8560_v19 }
0x1076   :  { %6076 = vmatprep.subr.bf16.mxu0 %v6075_v38  ;;  %v2681_v38 = vld [vmem:[%s9993_s29 + $0x240] sm:$0xff] }
0x1077   :  { %v6097_v58 = vpack.c.bf16 %v2684_v39, %v2681_v38  ;;  %v3102_v39 = vrot.slane %v9342_v33, %v8560_v19 }
0x1079   :  { %6078 = vmatpush1.bf16.msra.mxu0 %v6077_v41  ;;  %v2688_v41 = vld [vmem:[%s9993_s29 + $0x278] sm:$0xff] }
0x107a   :  { %6080 = vmatprep.subr.bf16.mxu0 %v6079_v44  ;;  %v2691_v44 = vld [vmem:[%s9993_s29 + $0x290] sm:$0xff] }
0x107b   :  { %v6099_v46 = vpack.c.bf16 %v2691_v44, %v2688_v41 }
0x107d   :  { %6082 = vmatpush1.bf16.msra.mxu0 %v6081_v49  ;;  %v2687_v49 = vld [vmem:[%s9993_s29 + $0x270] sm:$0xff] }
0x107e   :  { %6084 = vmatprep.subr.bf16.mxu0 %v6083_v50  ;;  %v6163_v50 = vpack.c.bf16 %v2692_v48, %v2689_v47  ;;  %v2708_v47 = vld [vmem:[%s9993_s29 + $0x318] sm:$0xff]  ;;  %v2710_v48 = vld [vmem:[%s9993_s29 + $0x328] sm:$0xff] }
0x1081   :  { %6086 = vmatpush1.bf16.msra.mxu0 %v6085_v53  ;;  %v2644_v53 = vld [vmem:[%s9993_s29 + $0x118] sm:$0xff] }
0x10ff   :  { %v3057_v54 = vpop.xlane.xlu0 %3056 }
0x1100   :  { %v3058_v57 = vmul.f32 0.0026041667, %v3057_v54  ;;  %v6101_v54 = vpack.c.bf16 %v2690_v43, %v2687_v49  ;;  %v2715_v43 = vld [vmem:[%s9993_s29 + $0x350] sm:$0xff] }
0x1102   :  { %v9275_v56 = vsub.f32 %v9217_v30, %v3058_v57  ;;  %v9278_v59 = vsub.f32 %v9221_v32, %v3058_v57  ;;  %v9281_v55 = vsub.f32 %v9219_v18, %v3058_v57  ;;  %v2670_v32 = vld [vmem:[%s9993_s29 + $0x1e8] sm:$0xff]  ;;  %v2671_v18 = vld [vmem:[%s9993_s29 + $0x1f0] sm:$0xff] }
0x1103   :  { %v6087_v1 = vpack.c.bf16 %v2673_v63, %v2670_v32  ;;  %v6151_v27 = vpack.c.bf16 %v2674_v2, %v2671_v18  ;;  %v2694_v57 = vld [vmem:[%s9993_s29 + $0x2a8] sm:$0xff]  ;;  %v2693_v32 = vld [vmem:[%s9993_s29 + $0x2a0] sm:$0xff]  ;;  %v2696_v63 = vld [vmem:[%s9993_s29 + $0x2b8] sm:$0xff] }
0x1104   :  { %v3062_v60 = vmul.f32 %v9275_v56, %v9275_v56  ;;  %v3063_v13 = vmul.f32 %v9278_v59, %v9278_v59  ;;  %v3064_v61 = vmul.f32 %v9281_v55, %v9281_v55  ;;  %v2650_v2 = vld [vmem:[%s9993_s29 + $0x148] sm:$0xff]  ;;  %v6105_v7 = vpack.c.bf16 %v2696_v63, %v2693_v32  ;;  %v2721_v63 = vld [vmem:[%s9993_s29 + $0x380] sm:$0xff] }
0x1105   :  { %6088 = vmatprep.subr.bf16.mxu0 %v6087_v1  ;;  %6152 = vmatprep.subr.bf16.mxu1 %v6151_v27  ;;  %v2647_v1 = vld [vmem:[%s9993_s29 + $0x130] sm:$0xff]  ;;  %v2701_v27 = vld [vmem:[%s9993_s29 + $0x2e0] sm:$0xff]  ;;  %v2718_v32 = vld [vmem:[%s9993_s29 + $0x368] sm:$0xff] }
0x1106   :  { %v3065_v62 = vadd.f32 %v3063_v13, %v3062_v60  ;;  %6090 = vmatpush1.bf16.msra.mxu0 %v6089_v6  ;;  %6154 = vmatpush3.bf16.msra.mxu1 %v6153_v9  ;;  %v2697_v60 = vld [vmem:[%s9993_s29 + $0x2c0] sm:$0xff]  ;;  %v2695_v13 = vld [vmem:[%s9993_s29 + $0x2b0] sm:$0xff]  ;;  %v2704_v6 = vld [vmem:[%s9993_s29 + $0x2f8] sm:$0xff]  ;;  %v6169_v8 = vpack.c.bf16 %v2650_v2, %v2647_v1  ;;  %v6107_v9 = vpack.c.bf16 %v2703_v4, %v2700_v26 }
0x1107   :  { %6092 = vmatprep.subr.bf16.mxu0 %v6091_v15  ;;  %6156 = vmatprep.subr.bf16.mxu1 %v6155_v23  ;;  %v6171_v14 = vpack.c.bf16 %v2704_v6, %v2701_v27  ;;  %v2653_v15 = vld [vmem:[%s9993_s29 + $0x160] sm:$0xff]  ;;  %v2706_v23 = vld [vmem:[%s9993_s29 + $0x308] sm:$0xff]  ;;  %v6119_v26 = vpack.c.bf16 %v2721_v63, %v2718_v32  ;;  %v2720_v4 = vld [vmem:[%s9993_s29 + $0x378] sm:$0xff] }
0x1108   :  { %v3066_v30 = vadd.f32 %v3065_v62, %v3064_v61  ;;  %v6165_v61 = vpack.c.bf16 %v2644_v53, %v2641_v52  ;;  %v6103_v62 = vpack.c.bf16 %v2697_v60, %v2694_v57  ;;  %v6173_v22 = vpack.c.bf16 %v2656_v20, %v2653_v15  ;;  %v2711_v60 = vld [vmem:[%s9993_s29 + $0x330] sm:$0xff]  ;;  %v2717_v2 = vld [vmem:[%s9993_s29 + $0x360] sm:$0xff]  ;;  %v2722_v6 = vld [vmem:[%s9993_s29 + $0x388] sm:$0xff] }
0x1109   :  { %v2719_v27 = vld [vmem:[%s9993_s29 + $0x370] sm:$0xff]  ;;  %v2726_v15 = vld [vmem:[%s9993_s29 + $0x3a8] sm:$0xff]  ;;  %v2725_v20 = vld [vmem:[%s9993_s29 + $0x3a0] sm:$0xff] }
0x110a   :  { %3067 = vadd.xlane.f32.xlu1 %v3066_v30  ;;  %6094 = vmatpush1.bf16.msra.mxu0 %v6093_v28  ;;  %v2698_v30 = vld [vmem:[%s9993_s29 + $0x2c8] sm:$0xff]  ;;  %v2709_v28 = vld [vmem:[%s9993_s29 + $0x320] sm:$0xff]  ;;  %v6182_v10 = vpack.c.bf16 %v2722_v6, %v2719_v27 }
0x110b   :  { %6158 = vmatpush3.bf16.msra.mxu1 %v6157_v51  ;;  %6096 = vmatprep.subr.bf16.mxu0 %v6095_v36  ;;  %v6167_v18 = vpack.c.bf16 %v2698_v30, %v2695_v13  ;;  %v6111_v29 = vpack.c.bf16 %v2709_v28, %v2706_v23  ;;  %v3079_v36 = vrot.slane %v9340_v42, %v8563_v21  ;;  %v2716_v30 = vld [vmem:[%s9993_s29 + $0x358] sm:$0xff]  ;;  %v2733_v23 = vld [vmem:[%s9993_s29 + $0x3e0] sm:$0xff]  ;;  %v2750_v32 = vld [vmem:[%s9993_s29 + $0x468] sm:$0xff] }
0x110c   :  { %6160 = vmatprep.subr.bf16.mxu1 %v6159_v37  ;;  %v6125_v28 = vpack.c.bf16 %v2726_v15, %v2723_v11  ;;  %v2749_v63 = vld [vmem:[%s9993_s29 + $0x460] sm:$0xff] }
0x110e   :  { %6098 = vmatpush1.bf16.msra.mxu0 %v6097_v58  ;;  %v3098_v58 = vrot.slane %v9342_v33, %v8563_v21 }
0x110f   :  { %6162 = vmatpush3.bf16.msra.mxu1 %v6161_v45  ;;  %6100 = vmatprep.subr.bf16.mxu0 %v6099_v46  ;;  %v2705_v46 = vld [vmem:[%s9993_s29 + $0x300] sm:$0xff] }
0x1110   :  { %6164 = vmatprep.subr.bf16.mxu1 %v6163_v50 }
0x1112   :  { %6102 = vmatpush1.bf16.msra.mxu0 %v6101_v54  ;;  %v6113_v54 = vpack.c.bf16 %v2708_v47, %v2705_v46  ;;  %v2740_v46 = vld [vmem:[%s9993_s29 + $0x418] sm:$0xff] }
0x1113   :  { %6166 = vmatpush3.bf16.msra.mxu1 %v6165_v61  ;;  %6104 = vmatprep.subr.bf16.mxu0 %v6103_v62  ;;  %v2714_v61 = vld [vmem:[%s9993_s29 + $0x348] sm:$0xff]  ;;  %v2713_v62 = vld [vmem:[%s9993_s29 + $0x340] sm:$0xff] }
0x1114   :  { %6168 = vmatprep.subr.bf16.mxu1 %v6167_v18  ;;  %v6117_v18 = vpack.c.bf16 %v2714_v61, %v2711_v60  ;;  %v6179_v1 = vpack.c.bf16 %v2716_v30, %v2713_v62  ;;  %v2751_v60 = vld [vmem:[%s9993_s29 + $0x470] sm:$0xff] }
0x1115   :  { %v2747_v62 = vld [vmem:[%s9993_s29 + $0x450] sm:$0xff] }
0x1116   :  { %6106 = vmatpush1.bf16.msra.mxu0 %v6105_v7  ;;  %v2724_v7 = vld [vmem:[%s9993_s29 + $0x398] sm:$0xff] }
0x1117   :  { %6170 = vmatpush3.bf16.msra.mxu1 %v6169_v8  ;;  %6108 = vmatprep.subr.bf16.mxu0 %v6107_v9  ;;  %v2727_v8 = vld [vmem:[%s9993_s29 + $0x3b0] sm:$0xff]  ;;  %v6121_v9 = vpack.c.bf16 %v2720_v4, %v2717_v2  ;;  %v6141_v2 = vpack.c.bf16 %v2750_v32, %v2747_v62  ;;  %v3643_v62 = vld [vmem:[%s9994_s28 + $0x40] sm:$0xff] }
0x1118   :  { %6172 = vmatprep.subr.bf16.mxu1 %v6171_v14  ;;  %v6123_v14 = vpack.c.bf16 %v2727_v8, %v2724_v7  ;;  %v2753_v8 = vld [vmem:[#allocation37] sm:$0x7] }
0x1119   :  { %v3127_v11 = vrot.slane %v2753_v8, %v8560_v19  ;;  %v3645_v32 = vld [vmem:[%s9994_s28 + $0x50] sm:$0xff] }
0x111a   :  { %6110 = vmatpush1.bf16.msra.mxu0 %v6109_v12  ;;  %v2728_v12 = vld [vmem:[%s9993_s29 + $0x3b8] sm:$0xff] }
0x111b   :  { %6174 = vmatpush3.bf16.msra.mxu1 %v6173_v22  ;;  %6112 = vmatprep.subr.bf16.mxu0 %v6111_v29  ;;  %v2730_v22 = vld [vmem:[%s9993_s29 + $0x3c8] sm:$0xff]  ;;  %v6185_v29 = vpack.c.bf16 %v2728_v12, %v2725_v20 }
0x111c   :  { %6175 = vmatprep.subr.bf16.mxu1 %v8018_v34 }
0x1197   :  { %v3068_v24 = vpop.xlane.xlu1 %3067 }
0x1198   :  { %v3069_v31 = vmul.f32 0.0026041667, %v3068_v24  ;;  %v2729_v24 = vld [vmem:[%s9993_s29 + $0x3c0] sm:$0xff] }
0x119a   :  { %v3070_v51 = vadd.f32 1e-05, %v3069_v31  ;;  %v6127_v31 = vpack.c.bf16 %v2733_v23, %v2730_v22 }
0x119c   :  { %6733 = vrsqrt.f32 %v3070_v51  ;;  %v2732_v51 = vld [vmem:[%s9993_s29 + $0x3d8] sm:$0xff] }
0x11a6   :  { %v9348_v37 = vpop.eup %6733 }
0x11a7   :  { %v3073_v38 = vmul.f32 %v9348_v37, %v9278_v59  ;;  %v3072_v40 = vmul.f32 %v9348_v37, %v9275_v56  ;;  %v2707_v59 = vld [vmem:[%s9993_s29 + $0x310] sm:$0xff]  ;;  %v2712_v56 = vld [vmem:[%s9993_s29 + $0x338] sm:$0xff]  ;;  %v3074_v47 = vmul.f32 %v9348_v37, %v9281_v55 }
0x11a8   :  { %v6176_v57 = vpack.c.bf16 %v2710_v48, %v2707_v59  ;;  %v6115_v13 = vpack.c.bf16 %v2715_v43, %v2712_v56  ;;  %v3087_v59 = vrot.slane %v9340_v42, %v9212_v16  ;;  %v2742_v48 = vld [vmem:[%s9993_s29 + $0x428] sm:$0xff]  ;;  %v2741_v43 = vld [vmem:[%s9993_s29 + $0x420] sm:$0xff]  ;;  %v2743_v55 = vld [vmem:[%s9993_s29 + $0x430] sm:$0xff] }
0x11a9   :  { %v3092_v17 = vmul.f32 %v3083_v35, %v3073_v38  ;;  %v3091_v41 = vmul.f32 %v3079_v36, %v3072_v40  ;;  %v2731_v35 = vld [vmem:[%s9993_s29 + $0x3d0] sm:$0xff]  ;;  %v2734_v36 = vld [vmem:[%s9993_s29 + $0x3e8] sm:$0xff]  ;;  %v2736_v38 = vld [vmem:[%s9993_s29 + $0x3f8] sm:$0xff]  ;;  %v6129_v40 = vpack.c.bf16 %v2732_v51, %v2729_v24 }
0x11aa   :  { %v2746_v42 = vld [vmem:[%s9993_s29 + $0x448] sm:$0xff]  ;;  %v3093_v37 = vmul.f32 %v3087_v59, %v3074_v47  ;;  %v3642_v59 = vld [vmem:[%s9994_s28 + $0x38] sm:$0xff] }
0x11ab   :  { %v3111_v44 = vadd.f32 %v3102_v39, %v3092_v17  ;;  %v3110_v45 = vadd.f32 %v3098_v58, %v3091_v41  ;;  %v2739_v39 = vld [vmem:[%s9993_s29 + $0x410] sm:$0xff]  ;;  %v6188_v58 = vpack.c.bf16 %v2734_v36, %v2731_v35  ;;  %v6194_v61 = vpack.c.bf16 %v2746_v42, %v2743_v55  ;;  %v3636_v51 = vld [vmem:[%s9994_s28 + $0x8] sm:$0xff]  ;;  %v3638_v35 = vld [vmem:[%s9994_s28 + $0x18] sm:$0xff] }
0x11ac   :  { %v2735_v17 = vld [vmem:[%s9993_s29 + $0x3f0] sm:$0xff]  ;;  %v6131_v41 = vpack.c.bf16 %v2739_v39, %v2736_v38  ;;  %v3486_v36 = vld [vmem:[%s9995_s24 + $0x8] sm:$0xff]  ;;  %v6199_v38 = vpack.c.bf16 %v3638_v35, %v3636_v51  ;;  %v3488_v39 = vld [vmem:[%s9995_s24 + $0x18] sm:$0xff] }
0x11ad   :  { %v3114_v49 = vmul.f32 0.2, %v3111_v44  ;;  %v3113_v50 = vmul.f32 0.2, %v3110_v45  ;;  %v3491_v42 = vld [vmem:[%s9995_s24 + $0x30] sm:$0xff]  ;;  %v3651_v51 = vld [vmem:[%s9994_s28 + $0x80] sm:$0xff] }
0x11ae   :  { %v3653_v35 = vld [vmem:[%s9994_s28 + $0x90] sm:$0xff] }
0x11af   :  { %v3117_v52 = vmax.f32 %v3111_v44, %v3114_v49  ;;  %v3116_v53 = vmax.f32 %v3110_v45, %v3113_v50  ;;  %v2738_v44 = vld [vmem:[%s9993_s29 + $0x408] sm:$0xff]  ;;  %v2737_v45 = vld [vmem:[%s9993_s29 + $0x400] sm:$0xff] }
0x11b0   :  { %v2745_v49 = vld [vmem:[%s9993_s29 + $0x440] sm:$0xff]  ;;  %v6133_v50 = vpack.c.bf16 %v2738_v44, %v2735_v17  ;;  %v6191_v56 = vpack.c.bf16 %v2740_v46, %v2737_v45  ;;  %v6295_v17 = vpack.c.bf16 %v3488_v39, %v3486_v36  ;;  %v3487_v45 = vld [vmem:[%s9995_s24 + $0x10] sm:$0xff]  ;;  %v3640_v46 = vld [vmem:[%s9994_s28 + $0x28] sm:$0xff] }
0x11b1   :  { %3199 = vmatprep.mubr.f32.mxu0 %v3117_v52  ;;  %3341 = vmatprep.mubr.f32.mxu1 %v3117_v52  ;;  %v6135_v52 = vpack.c.bf16 %v2745_v49, %v2742_v48  ;;  %v3485_v44 = vld [vmem:[%s9995_s24] sm:$0xff]  ;;  %v3490_v48 = vld [vmem:[%s9995_s24 + $0x28] sm:$0xff]  ;;  %v3492_v49 = vld [vmem:[%s9995_s24 + $0x38] sm:$0xff] }
0x11b2   :  { %3200 = vmatmul.mubr.f32.vlgmr.msra.gmra.mrb[10].mxu0 %v3116_v53  ;;  %3342 = vmatmul.mubr.f32.vlgmr.msra.gmra.mrb[16].mxu1 %v3116_v53  ;;  %v2744_v53 = vld [vmem:[%s9993_s29 + $0x438] sm:$0xff]  ;;  %v6297_v47 = vpack.c.bf16 %v3487_v45, %v3485_v44  ;;  %v3501_v36 = vld [vmem:[%s9995_s24 + $0x80] sm:$0xff]  ;;  %v3503_v39 = vld [vmem:[%s9995_s24 + $0x90] sm:$0xff]  ;;  %v6217_v44 = vpack.c.bf16 %v3653_v35, %v3651_v51 }
0x11b3   :  { %6114 = vmatpush1.bf16.msra.mxu0 %v6113_v54  ;;  %6177 = vmatpush3.bf16.msra.mxu1 %v6176_v57  ;;  %v3106_v54 = vrot.slane %v9342_v33, %v9212_v16  ;;  %v2748_v57 = vld [vmem:[%s9993_s29 + $0x458] sm:$0xff]  ;;  %v6313_v45 = vpack.c.bf16 %v3503_v39, %v3501_v36  ;;  %v3672_v51 = vld [vmem:[%s9994_s28 + $0x128] sm:$0xff] }
0x11b4   :  { %6116 = vmatprep.subr.bf16.mxu0 %v6115_v13  ;;  %6178 = vmatprep.subr.bf16.mxu1 %v8018_v34  ;;  %v6137_v13 = vpack.c.bf16 %v2744_v53, %v2741_v43  ;;  %v6139_v30 = vpack.c.bf16 %v2751_v60, %v2748_v57  ;;  %v3639_v43 = vld [vmem:[%s9994_s28 + $0x20] sm:$0xff]  ;;  %v3674_v35 = vld [vmem:[%s9994_s28 + $0x138] sm:$0xff]  ;;  %v3522_v36 = vld [vmem:[%s9995_s24 + $0x128] sm:$0xff] }
0x11b5   :  { %3270 = vmatprep.mubr.f32.mxu0 %v8017_v0  ;;  %5276 = vmatprep.mubr.msk.f32.mxu1 %vm8019_vm2, %v8017_v0  ;;  %v3489_v53 = vld [vmem:[%s9995_s24 + $0x20] sm:$0xff] }
0x11b6   :  { %v6301_v57 = vpack.c.bf16 %v3491_v42, %v3489_v53  ;;  %v3512_v53 = vld [vmem:[%s9995_s24 + $0xd8] sm:$0xff] }
0x11b7   :  { %6118 = vmatpush1.bf16.msra.mxu0 %v6117_v18  ;;  %6180 = vmatpush3.bf16.msra.mxu1 %v6179_v1  ;;  %v2752_v18 = vld [vmem:[%s9993_s29 + $0x478] sm:$0xff]  ;;  %v3112_v1 = vadd.f32 %v3106_v54, %v3093_v37  ;;  %v3644_v37 = vld [vmem:[%s9994_s28 + $0x48] sm:$0xff] }
0x11b8   :  { %6120 = vmatprep.subr.bf16.mxu0 %v6119_v26  ;;  %6181 = vmatprep.subr.bf16.mxu1 %v8018_v34  ;;  %v6197_v26 = vpack.c.bf16 %v2752_v18, %v2749_v63  ;;  %v3646_v54 = vld [vmem:[%s9994_s28 + $0x58] sm:$0xff]  ;;  %v3493_v63 = vld [vmem:[%s9995_s24 + $0x40] sm:$0xff]  ;;  %v3495_v18 = vld [vmem:[%s9995_s24 + $0x50] sm:$0xff] }
0x11b9   :  { %v3115_v33 = vmul.f32 0.2, %v3112_v1  ;;  %v6207_v60 = vpack.c.bf16 %v3646_v54, %v3644_v37  ;;  %v3659_v54 = vld [vmem:[%s9994_s28 + $0xc0] sm:$0xff] }
0x11bb   :  { %6122 = vmatpush1.bf16.msra.mxu0 %v6121_v9  ;;  %6183 = vmatpush3.bf16.msra.mxu1 %v6182_v10  ;;  %v3118_v4 = vmax.f32 %v3112_v1, %v3115_v33  ;;  %v3131_v9 = vrot.slane %v2753_v8, %v9212_v16  ;;  %v3123_v10 = vrot.slane %v2753_v8, %v8563_v21  ;;  %v3498_v33 = vld [vmem:[%s9995_s24 + $0x68] sm:$0xff]  ;;  %v3649_v8 = vld [vmem:[%s9994_s28 + $0x70] sm:$0xff] }
0x11bc   :  { %6124 = vmatprep.subr.bf16.mxu0 %v6123_v14  ;;  %6184 = vmatprep.subr.bf16.mxu1 %v8018_v34  ;;  %v6209_v1 = vpack.c.bf16 %v3645_v32, %v3643_v62  ;;  %v3664_v62 = vld [vmem:[%s9994_s28 + $0xe8] sm:$0xff] }
0x11bd   :  { %v3514_v32 = vld [vmem:[%s9995_s24 + $0xe8] sm:$0xff] }
0x11bf   :  { %6126 = vmatpush1.bf16.msra.mxu0 %v6125_v28  ;;  %6186 = vmatpush3.bf16.msra.mxu1 %v6185_v29 }
0x11c0   :  { %6128 = vmatprep.subr.bf16.mxu0 %v6127_v31  ;;  %6187 = vmatprep.subr.bf16.mxu1 %v8018_v34 }
0x11c3   :  { %6130 = vmatpush1.bf16.msra.mxu0 %v6129_v40  ;;  %6189 = vmatpush3.bf16.msra.mxu1 %v6188_v58  ;;  %v3635_v40 = vld [vmem:[%s9994_s28] sm:$0xff]  ;;  %v3637_v58 = vld [vmem:[%s9994_s28 + $0x10] sm:$0xff] }
0x11c4   :  { %6132 = vmatprep.subr.bf16.mxu0 %v6131_v41  ;;  %6190 = vmatprep.subr.bf16.mxu1 %v8018_v34  ;;  %v6201_v41 = vpack.c.bf16 %v3637_v58, %v3635_v40  ;;  %v3656_v40 = vld [vmem:[%s9994_s28 + $0xa8] sm:$0xff]  ;;  %v3658_v58 = vld [vmem:[%s9994_s28 + $0xb8] sm:$0xff] }
0x11c7   :  { %6134 = vmatpush1.bf16.msra.mxu0 %v6133_v50  ;;  %6192 = vmatpush3.bf16.msra.mxu1 %v6191_v56  ;;  %v6203_v50 = vpack.c.bf16 %v3642_v59, %v3640_v46  ;;  %v6299_v56 = vpack.c.bf16 %v3492_v49, %v3490_v48  ;;  %v6219_v46 = vpack.c.bf16 %v3658_v58, %v3656_v40  ;;  %v3657_v59 = vld [vmem:[%s9994_s28 + $0xb0] sm:$0xff]  ;;  %v3505_v48 = vld [vmem:[%s9995_s24 + $0xa0] sm:$0xff] }
0x11c8   :  { %6136 = vmatprep.subr.bf16.mxu0 %v6135_v52  ;;  %6193 = vmatprep.subr.bf16.mxu1 %v8018_v34  ;;  %v3641_v52 = vld [vmem:[%s9994_s28 + $0x30] sm:$0xff]  ;;  %v6235_v58 = vpack.c.bf16 %v3674_v35, %v3672_v51  ;;  %v3533_v51 = vld [vmem:[%s9995_s24 + $0x180] sm:$0xff] }
0x11c9   :  { %v6205_v55 = vpack.c.bf16 %v3641_v52, %v3639_v43  ;;  %v3662_v43 = vld [vmem:[%s9994_s28 + $0xd8] sm:$0xff]  ;;  %v3510_v52 = vld [vmem:[%s9995_s24 + $0xc8] sm:$0xff] }
0x11cb   :  { %6138 = vmatpush1.bf16.msra.mxu0 %v6137_v13  ;;  %6195 = vmatpush3.bf16.msra.mxu1 %v6194_v61  ;;  %v3494_v13 = vld [vmem:[%s9995_s24 + $0x48] sm:$0xff]  ;;  %v3496_v61 = vld [vmem:[%s9995_s24 + $0x58] sm:$0xff] }
0x11cc   :  { %6140 = vmatprep.subr.bf16.mxu0 %v6139_v30  ;;  %6196 = vmatprep.subr.bf16.mxu1 %v8018_v34  ;;  %v6303_v30 = vpack.c.bf16 %v3496_v61, %v3494_v13  ;;  %v6319_v13 = vpack.c.bf16 %v3512_v53, %v3510_v52  ;;  %v3511_v61 = vld [vmem:[%s9995_s24 + $0xd0] sm:$0xff] }
0x11cd   :  { %v3523_v52 = vld [vmem:[%s9995_s24 + $0x130] sm:$0xff] }
0x11cf   :  { %6142 = vmatpush1.bf16.msra.mxu0 %v6141_v2  ;;  %6198 = vmatpush3.bf16.msra.mxu1 %v6197_v26  ;;  %v3648_v2 = vld [vmem:[%s9994_s28 + $0x68] sm:$0xff]  ;;  %v3650_v26 = vld [vmem:[%s9994_s28 + $0x78] sm:$0xff] }
0x11d0   :  { %6200 = vmatprep.subr.bf16.mxu1 %v6199_v38  ;;  %6296 = vmatprep.subr.bf16.mxu0 %v6295_v17  ;;  %v3506_v17 = vld [vmem:[%s9995_s24 + $0xa8] sm:$0xff] }
0x11d2   :  { %3271 = vmatmul.mubr.f32.vlgmr.msra.gmra.mrb[10].mxu0 %v3118_v4  ;;  %5277 = vmatmul.mubr.f32.vlgmr.msra.gmra.mrb[18].mxu1 %v3118_v4  ;;  %v6305_v4 = vpack.c.bf16 %v3495_v18, %v3493_v63  ;;  %v3516_v63 = vld [vmem:[%s9995_s24 + $0xf8] sm:$0xff] }
0x11d3   :  { %6202 = vmatpush1.bf16.msra.mxu1 %v6201_v41  ;;  %6298 = vmatpush1.bf16.msra.mxu0 %v6297_v47  ;;  %v3508_v41 = vld [vmem:[%s9995_s24 + $0xb8] sm:$0xff]  ;;  %v3655_v47 = vld [vmem:[%s9994_s28 + $0xa0] sm:$0xff] }
0x11d4   :  { %6204 = vmatprep.subr.bf16.mxu1 %v6203_v50  ;;  %6300 = vmatprep.subr.bf16.mxu0 %v6299_v56  ;;  %v6315_v49 = vpack.c.bf16 %v3508_v41, %v3506_v17  ;;  %v3507_v50 = vld [vmem:[%s9995_s24 + $0xb0] sm:$0xff]  ;;  %v3660_v56 = vld [vmem:[%s9994_s28 + $0xc8] sm:$0xff] }
0x11d5   :  { %v6317_v42 = vpack.c.bf16 %v3507_v50, %v3505_v48  ;;  %v6223_v37 = vpack.c.bf16 %v3662_v43, %v3660_v56  ;;  %v3673_v56 = vld [vmem:[%s9994_s28 + $0x130] sm:$0xff] }
0x11d7   :  { %6206 = vmatpush1.bf16.msra.mxu1 %v6205_v55  ;;  %6302 = vmatpush1.bf16.msra.mxu0 %v6301_v57  ;;  %v6221_v55 = vpack.c.bf16 %v3657_v59, %v3655_v47  ;;  %v3661_v57 = vld [vmem:[%s9994_s28 + $0xd0] sm:$0xff] }
0x11d8   :  { %6208 = vmatprep.subr.bf16.mxu1 %v6207_v60  ;;  %6304 = vmatprep.subr.bf16.mxu0 %v6303_v30  ;;  %v3509_v60 = vld [vmem:[%s9995_s24 + $0xc0] sm:$0xff]  ;;  %v3666_v30 = vld [vmem:[%s9994_s28 + $0xf8] sm:$0xff]  ;;  %v6225_v18 = vpack.c.bf16 %v3661_v57, %v3659_v54 }
0x11d9   :  { %v3528_v57 = vld [vmem:[%s9995_s24 + $0x158] sm:$0xff] }
0x11db   :  { %6210 = vmatpush1.bf16.msra.mxu1 %v6209_v1  ;;  %6306 = vmatpush1.bf16.msra.mxu0 %v6305_v4  ;;  %v6321_v1 = vpack.c.bf16 %v3511_v61, %v3509_v60  ;;  %v3513_v4 = vld [vmem:[%s9995_s24 + $0xe0] sm:$0xff] }
0x11dc   :  { %v3675_v60 = vld [vmem:[%s9994_s28 + $0x140] sm:$0xff] }
0x1285   :  { %v5137_v27 = vpop.f32.mrb[16].mxu1 }
0x1286   :  { %v5138_v6 = vpop.f32.mrb[17].mxu1 }
0x1287   :  { %v5139_v7 = vadd.f32 %v5138_v6, %v5137_v27  ;;  %v6211_v27 = vpack.c.bf16 %v3650_v26, %v3648_v2  ;;  %v3500_v6 = vld [vmem:[%s9995_s24 + $0x78] sm:$0xff]  ;;  %v6227_v2 = vpack.c.bf16 %v3666_v30, %v3664_v62  ;;  %v3663_v26 = vld [vmem:[%s9994_s28 + $0xe0] sm:$0xff] }
0x1288   :  { %v3525_v30 = vld [vmem:[%s9995_s24 + $0x140] sm:$0xff] }
0x1289   :  { %v3344_v14 = vadd.f32 %v5139_v7, %v3131_v9  ;;  %v3647_v7 = vld [vmem:[%s9994_s28 + $0x60] sm:$0xff]  ;;  %v6307_v9 = vpack.c.bf16 %v3500_v6, %v3498_v33  ;;  %6212 = vmatprep.subr.bf16.mxu1 %v6211_v27  ;;  %v3665_v33 = vld [vmem:[%s9994_s28 + $0xf0] sm:$0xff]  ;;  %v6323_v27 = vpack.c.bf16 %v3516_v63, %v3514_v32 }
0x128a   :  { %v3515_v6 = vld [vmem:[%s9995_s24 + $0xf0] sm:$0xff] }
0x128b   :  { %6308 = vmatprep.subr.bf16.mxu0 %v6307_v9  ;;  %v3518_v9 = vld [vmem:[%s9995_s24 + $0x108] sm:$0xff]  ;;  %v3527_v32 = vld [vmem:[%s9995_s24 + $0x150] sm:$0xff] }
0x128c   :  { %v6337_v63 = vpack.c.bf16 %v3527_v32, %v3525_v30 }
0x12a5   :  { %v3272_v15 = vpop.f32.mrb[10].mxu0  ;;  %v3413_v20 = vpop.f32.mrb[18].mxu1 }
0x12a6   :  { %v9423_v12 = vadd.f32 %v3272_v15, %v3123_v10  ;;  %v9425_v22 = vadd.f32 %v3413_v20, %v3344_v14  ;;  %v3274_v23 = vpop.f32.mrb[11].mxu0  ;;  %v5278_v28 = vpop.f32.mrb[19].mxu1  ;;  %v3497_v10 = vld [vmem:[%s9995_s24 + $0x60] sm:$0xff]  ;;  %v3652_v14 = vld [vmem:[%s9994_s28 + $0x88] sm:$0xff]  ;;  %v3654_v15 = vld [vmem:[%s9994_s28 + $0x98] sm:$0xff] }
0x12a7   :  { %v9427_v29 = vadd.f32 %v3274_v23, %v3127_v11  ;;  %v3499_v11 = vld [vmem:[%s9995_s24 + $0x70] sm:$0xff]  ;;  %v3502_v20 = vld [vmem:[%s9995_s24 + $0x88] sm:$0xff]  ;;  %v3504_v23 = vld [vmem:[%s9995_s24 + $0x98] sm:$0xff]  ;;  %v6213_v28 = vpack.c.bf16 %v3649_v8, %v3647_v7 }
0x12a8   :  { %v6311_v38 = vpack.c.bf16 %v3504_v23, %v3502_v20  ;;  %v3668_v7 = vld [vmem:[%s9994_s28 + $0x108] sm:$0xff]  ;;  %v3670_v8 = vld [vmem:[%s9994_s28 + $0x118] sm:$0xff]  ;;  %v3667_v20 = vld [vmem:[%s9994_s28 + $0x100] sm:$0xff] }
0x12a9   :  { %v3417_v24 = vadd.f32 %v9427_v29, %v9423_v12  ;;  %6214 = vmatpush1.bf16.msra.mxu1 %v6213_v28  ;;  %v3669_v23 = vld [vmem:[%s9994_s28 + $0x110] sm:$0xff]  ;;  %v3517_v28 = vld [vmem:[%s9995_s24 + $0x100] sm:$0xff] }
0x12aa   :  { %v6233_v39 = vpack.c.bf16 %v3669_v23, %v3667_v20  ;;  %v3536_v20 = vld [vmem:[%s9995_s24 + $0x198] sm:$0xff] }
0x12ab   :  { %v3418_v31 = vadd.f32 %v3417_v24, %v9425_v22  ;;  %v6309_v24 = vpack.c.bf16 %v3499_v11, %v3497_v10  ;;  %v3520_v10 = vld [vmem:[%s9995_s24 + $0x118] sm:$0xff]  ;;  %v6229_v11 = vpack.c.bf16 %v3665_v33, %v3663_v26 }
0x12ac   :  { %v3532_v33 = vld [vmem:[%s9995_s24 + $0x178] sm:$0xff] }
0x12ad   :  { %3419 = vadd.xlane.f32.xlu0 %v3418_v31  ;;  %v6215_v31 = vpack.c.bf16 %v3654_v15, %v3652_v14  ;;  %6310 = vmatpush1.bf16.msra.mxu0 %v6309_v24  ;;  %v6325_v14 = vpack.c.bf16 %v3515_v6, %v3513_v4  ;;  %v6231_v15 = vpack.c.bf16 %v3670_v8, %v3668_v7  ;;  %v3679_v4 = vld [vmem:[%s9994_s28 + $0x160] sm:$0xff] }
0x12ae   :  { %6312 = vmatprep.subr.bf16.mxu0 %v6311_v38  ;;  %v6327_v24 = vpack.c.bf16 %v3520_v10, %v3518_v9  ;;  %v3524_v38 = vld [vmem:[%s9995_s24 + $0x138] sm:$0xff]  ;;  %v3529_v8 = vld [vmem:[%s9995_s24 + $0x160] sm:$0xff]  ;;  %v3531_v9 = vld [vmem:[%s9995_s24 + $0x170] sm:$0xff] }
0x12af   :  { %6216 = vmatprep.subr.bf16.mxu1 %v6215_v31  ;;  %v3519_v31 = vld [vmem:[%s9995_s24 + $0x110] sm:$0xff]  ;;  %v6331_v17 = vpack.c.bf16 %v3524_v38, %v3522_v36  ;;  %v3684_v10 = vld [vmem:[%s9994_s28 + $0x188] sm:$0xff] }
0x12b0   :  { %6218 = vmatpush1.bf16.msra.mxu1 %v6217_v44  ;;  %v6329_v40 = vpack.c.bf16 %v3519_v31, %v3517_v28  ;;  %v3685_v31 = vld [vmem:[%s9994_s28 + $0x190] sm:$0xff]  ;;  %v3688_v38 = vld [vmem:[%s9994_s28 + $0x1a8] sm:$0xff] }
0x12b1   :  { %6314 = vmatpush1.bf16.msra.mxu0 %v6313_v45  ;;  %6220 = vmatprep.subr.bf16.mxu1 %v6219_v46  ;;  %v3535_v36 = vld [vmem:[%s9995_s24 + $0x190] sm:$0xff] }
0x12b2   :  { %6316 = vmatprep.subr.bf16.mxu0 %v6315_v49 }
0x12b4   :  { %6222 = vmatpush1.bf16.msra.mxu1 %v6221_v55  ;;  %v3676_v55 = vld [vmem:[%s9994_s28 + $0x148] sm:$0xff] }
0x12b5   :  { %6318 = vmatpush1.bf16.msra.mxu0 %v6317_v42  ;;  %6224 = vmatprep.subr.bf16.mxu1 %v6223_v37  ;;  %v3678_v42 = vld [vmem:[%s9994_s28 + $0x158] sm:$0xff]  ;;  %v3526_v37 = vld [vmem:[%s9995_s24 + $0x148] sm:$0xff] }
0x12b6   :  { %6320 = vmatprep.subr.bf16.mxu0 %v6319_v13  ;;  %v6239_v54 = vpack.c.bf16 %v3678_v42, %v3676_v55  ;;  %v3677_v13 = vld [vmem:[%s9994_s28 + $0x150] sm:$0xff]  ;;  %v6335_v61 = vpack.c.bf16 %v3528_v57, %v3526_v37  ;;  %v3691_v55 = vld [vmem:[%s9994_s28 + $0x1c0] sm:$0xff] }
0x12b7   :  { %v6241_v62 = vpack.c.bf16 %v3677_v13, %v3675_v60  ;;  %v3693_v42 = vld [vmem:[%s9994_s28 + $0x1d0] sm:$0xff]  ;;  %v3696_v60 = vld [vmem:[%s9994_s28 + $0x1e8] sm:$0xff]  ;;  %v3698_v13 = vld [vmem:[%s9994_s28 + $0x1f8] sm:$0xff] }
0x12b8   :  { %6226 = vmatpush1.bf16.msra.mxu1 %v6225_v18  ;;  %v3680_v18 = vld [vmem:[%s9994_s28 + $0x168] sm:$0xff]  ;;  %v3543_v57 = vld [vmem:[%s9995_s24 + $0x1d0] sm:$0xff]  ;;  %v6257_v30 = vpack.c.bf16 %v3693_v42, %v3691_v55  ;;  %v3703_v55 = vld [vmem:[%s9994_s28 + $0x220] sm:$0xff] }
0x12b9   :  { %6322 = vmatpush1.bf16.msra.mxu0 %v6321_v1  ;;  %6228 = vmatprep.subr.bf16.mxu1 %v6227_v2  ;;  %v3682_v1 = vld [vmem:[%s9994_s28 + $0x178] sm:$0xff]  ;;  %v3530_v2 = vld [vmem:[%s9995_s24 + $0x168] sm:$0xff]  ;;  %v3705_v42 = vld [vmem:[%s9994_s28 + $0x230] sm:$0xff] }
0x12ba   :  { %6324 = vmatprep.subr.bf16.mxu0 %v6323_v27  ;;  %v6243_v26 = vpack.c.bf16 %v3682_v1, %v3680_v18  ;;  %v3681_v27 = vld [vmem:[%s9994_s28 + $0x170] sm:$0xff]  ;;  %v6339_v6 = vpack.c.bf16 %v3532_v33, %v3530_v2  ;;  %v3695_v18 = vld [vmem:[%s9994_s28 + $0x1e0] sm:$0xff] }
0x12bb   :  { %v6245_v7 = vpack.c.bf16 %v3681_v27, %v3679_v4  ;;  %v3697_v1 = vld [vmem:[%s9994_s28 + $0x1f0] sm:$0xff] }
0x12bc   :  { %6230 = vmatpush1.bf16.msra.mxu1 %v6229_v11  ;;  %v6341_v11 = vpack.c.bf16 %v3531_v9, %v3529_v8  ;;  %v3547_v33 = vld [vmem:[%s9995_s24 + $0x1f0] sm:$0xff]  ;;  %v6261_v4 = vpack.c.bf16 %v3697_v1, %v3695_v18  ;;  %v3550_v8 = vld [vmem:[%s9995_s24 + $0x208] sm:$0xff]  ;;  %v3707_v18 = vld [vmem:[%s9994_s28 + $0x240] sm:$0xff] }
0x12bd   :  { %6326 = vmatpush1.bf16.msra.mxu0 %v6325_v14  ;;  %6232 = vmatprep.subr.bf16.mxu1 %v6231_v15  ;;  %v3686_v14 = vld [vmem:[%s9994_s28 + $0x198] sm:$0xff]  ;;  %v3534_v15 = vld [vmem:[%s9995_s24 + $0x188] sm:$0xff]  ;;  %v3709_v1 = vld [vmem:[%s9994_s28 + $0x250] sm:$0xff] }
0x12be   :  { %6328 = vmatprep.subr.bf16.mxu0 %v6327_v24  ;;  %v6247_v23 = vpack.c.bf16 %v3686_v14, %v3684_v10  ;;  %v6343_v28 = vpack.c.bf16 %v3536_v20, %v3534_v15  ;;  %v3683_v24 = vld [vmem:[%s9994_s28 + $0x180] sm:$0xff]  ;;  %v3552_v10 = vld [vmem:[%s9995_s24 + $0x218] sm:$0xff] }
0x12bf   :  { %v6249_v35 = vpack.c.bf16 %v3685_v31, %v3683_v24 }
0x12c0   :  { %6234 = vmatpush1.bf16.msra.mxu1 %v6233_v39  ;;  %v3690_v39 = vld [vmem:[%s9994_s28 + $0x1b8] sm:$0xff] }
0x12c1   :  { %6330 = vmatpush1.bf16.msra.mxu0 %v6329_v40  ;;  %6236 = vmatprep.subr.bf16.mxu1 %v6235_v58  ;;  %v6345_v40 = vpack.c.bf16 %v3535_v36, %v3533_v51  ;;  %v6251_v58 = vpack.c.bf16 %v3690_v39, %v3688_v38 }
0x12c2   :  { %6332 = vmatprep.subr.bf16.mxu0 %v6331_v17  ;;  %v3538_v17 = vld [vmem:[%s9995_s24 + $0x1a8] sm:$0xff] }
0x133a   :  { %v3420_v41 = vpop.xlane.xlu0 %3419 }
0x133b   :  { %v3421_v44 = vmul.f32 0.0026041667, %v3420_v41  ;;  %v3540_v41 = vld [vmem:[%s9995_s24 + $0x1b8] sm:$0xff] }
0x133d   :  { %v9509_v45 = vsub.f32 %v9423_v12, %v3421_v44  ;;  %v9512_v46 = vsub.f32 %v9427_v29, %v3421_v44  ;;  %v9515_v47 = vsub.f32 %v9425_v22, %v3421_v44  ;;  %v3671_v29 = vld [vmem:[%s9994_s28 + $0x120] sm:$0xff] }
0x133e   :  { %v3521_v22 = vld [vmem:[%s9995_s24 + $0x120] sm:$0xff]  ;;  %v6237_v43 = vpack.c.bf16 %v3673_v56, %v3671_v29  ;;  %v3692_v29 = vld [vmem:[%s9994_s28 + $0x1c8] sm:$0xff]  ;;  %v3694_v56 = vld [vmem:[%s9994_s28 + $0x1d8] sm:$0xff] }
0x133f   :  { %v3425_v59 = vmul.f32 %v9509_v45, %v9509_v45  ;;  %v3426_v48 = vmul.f32 %v9512_v46, %v9512_v46  ;;  %v3427_v49 = vmul.f32 %v9515_v47, %v9515_v47  ;;  %v6333_v53 = vpack.c.bf16 %v3523_v52, %v3521_v22  ;;  %v3687_v44 = vld [vmem:[%s9994_s28 + $0x1a0] sm:$0xff]  ;;  %v3542_v22 = vld [vmem:[%s9995_s24 + $0x1c8] sm:$0xff] }
0x1340   :  { %6238 = vmatpush1.bf16.msra.mxu1 %v6237_v43  ;;  %v6255_v52 = vpack.c.bf16 %v3694_v56, %v3692_v29 }
0x1341   :  { %v3428_v12 = vadd.f32 %v3426_v48, %v3425_v59  ;;  %6334 = vmatpush1.bf16.msra.mxu0 %v6333_v53  ;;  %6240 = vmatprep.subr.bf16.mxu1 %v6239_v54  ;;  %v6347_v59 = vpack.c.bf16 %v3540_v41, %v3538_v17  ;;  %v3689_v48 = vld [vmem:[%s9994_s28 + $0x1b0] sm:$0xff]  ;;  %v3544_v53 = vld [vmem:[%s9995_s24 + $0x1d8] sm:$0xff]  ;;  %v3541_v54 = vld [vmem:[%s9995_s24 + $0x1c0] sm:$0xff] }
0x1342   :  { %6336 = vmatprep.subr.bf16.mxu0 %v6335_v61  ;;  %v6351_v37 = vpack.c.bf16 %v3544_v53, %v3542_v22  ;;  %v3546_v61 = vld [vmem:[%s9995_s24 + $0x1e8] sm:$0xff]  ;;  %v6353_v32 = vpack.c.bf16 %v3543_v57, %v3541_v54  ;;  %v3553_v57 = vld [vmem:[%s9995_s24 + $0x220] sm:$0xff] }
0x1343   :  { %v3429_v50 = vadd.f32 %v3428_v12, %v3427_v49  ;;  %v3537_v49 = vld [vmem:[%s9995_s24 + $0x1a0] sm:$0xff]  ;;  %v3539_v12 = vld [vmem:[%s9995_s24 + $0x1b0] sm:$0xff]  ;;  %v3554_v22 = vld [vmem:[%s9995_s24 + $0x228] sm:$0xff] }
0x1344   :  { %6242 = vmatpush1.bf16.msra.mxu1 %v6241_v62  ;;  %v6349_v43 = vpack.c.bf16 %v3539_v12, %v3537_v49  ;;  %v3548_v62 = vld [vmem:[%s9995_s24 + $0x1f8] sm:$0xff]  ;;  %v3549_v49 = vld [vmem:[%s9995_s24 + $0x200] sm:$0xff]  ;;  %v3704_v12 = vld [vmem:[%s9994_s28 + $0x228] sm:$0xff] }
0x1345   :  { %3430 = vadd.xlane.f32.xlu1 %v3429_v50  ;;  %6338 = vmatpush1.bf16.msra.mxu0 %v6337_v63  ;;  %v6253_v50 = vpack.c.bf16 %v3689_v48, %v3687_v44  ;;  %v6259_v63 = vpack.c.bf16 %v3698_v13, %v3696_v60  ;;  %v6355_v2 = vpack.c.bf16 %v3548_v62, %v3546_v61  ;;  %v3701_v48 = vld [vmem:[%s9994_s28 + $0x210] sm:$0xff]  ;;  %v3708_v13 = vld [vmem:[%s9994_s28 + $0x248] sm:$0xff]  ;;  %v3710_v61 = vld [vmem:[%s9994_s28 + $0x258] sm:$0xff] }
0x1346   :  { %6244 = vmatprep.subr.bf16.mxu1 %v6243_v26  ;;  %6340 = vmatprep.subr.bf16.mxu0 %v6339_v6  ;;  %v3545_v26 = vld [vmem:[%s9995_s24 + $0x1e0] sm:$0xff]  ;;  %v3700_v6 = vld [vmem:[%s9994_s28 + $0x208] sm:$0xff]  ;;  %v3555_v60 = vld [vmem:[%s9995_s24 + $0x230] sm:$0xff] }
0x1347   :  { %v6357_v27 = vpack.c.bf16 %v3547_v33, %v3545_v26  ;;  %v3558_v62 = vld [vmem:[%s9995_s24 + $0x248] sm:$0xff]  ;;  %v3557_v33 = vld [vmem:[%s9995_s24 + $0x240] sm:$0xff] }
0x1348   :  { %6246 = vmatpush1.bf16.msra.mxu1 %v6245_v7  ;;  %v3702_v7 = vld [vmem:[%s9994_s28 + $0x218] sm:$0xff] }
0x1349   :  { %6342 = vmatpush1.bf16.msra.mxu0 %v6341_v11  ;;  %6248 = vmatprep.subr.bf16.mxu1 %v6247_v23  ;;  %v6263_v9 = vpack.c.bf16 %v3702_v7, %v3700_v6  ;;  %v6359_v11 = vpack.c.bf16 %v3552_v10, %v3550_v8  ;;  %v9579_v23 = vld [vmem:[#allocation38] sm:$0x7]  ;;  %v3714_v6 = vld [vmem:[%s9994_s28 + $0x278] sm:$0xff]  ;;  %v3562_v7 = vld [vmem:[%s9995_s24 + $0x268] sm:$0xff] }
0x134a   :  { %6344 = vmatprep.subr.bf16.mxu0 %v6343_v28  ;;  %v9581_v28 = vld [vmem:[#allocation40] sm:$0x7]  ;;  %v3446_v24 = vrot.slane %v9579_v23, %v8560_v19  ;;  %v3442_v31 = vrot.slane %v9579_v23, %v8563_v21 }
0x134b   :  { %v3465_v36 = vrot.slane %v9581_v28, %v8560_v19  ;;  %v3461_v39 = vrot.slane %v9581_v28, %v8563_v21  ;;  %v3564_v8 = vld [vmem:[%s9995_s24 + $0x278] sm:$0xff] }
0x134c   :  { %6250 = vmatpush1.bf16.msra.mxu1 %v6249_v35 }
0x134d   :  { %6346 = vmatpush1.bf16.msra.mxu0 %v6345_v40  ;;  %6252 = vmatprep.subr.bf16.mxu1 %v6251_v58 }
0x134e   :  { %6348 = vmatprep.subr.bf16.mxu0 %v6347_v59  ;;  %v3699_v59 = vld [vmem:[%s9994_s28 + $0x200] sm:$0xff] }
0x1350   :  { %6254 = vmatpush1.bf16.msra.mxu1 %v6253_v50  ;;  %v3706_v50 = vld [vmem:[%s9994_s28 + $0x238] sm:$0xff] }
0x1351   :  { %6350 = vmatpush1.bf16.msra.mxu0 %v6349_v43  ;;  %6256 = vmatprep.subr.bf16.mxu1 %v6255_v52  ;;  %v3556_v43 = vld [vmem:[%s9995_s24 + $0x238] sm:$0xff] }
0x1352   :  { %6352 = vmatprep.subr.bf16.mxu0 %v6351_v37  ;;  %v6267_v37 = vpack.c.bf16 %v3706_v50, %v3704_v12  ;;  %v6363_v54 = vpack.c.bf16 %v3556_v43, %v3554_v22  ;;  %v3722_v50 = vld [vmem:[%s9994_s28 + $0x2b8] sm:$0xff]  ;;  %v3719_v43 = vld [vmem:[%s9994_s28 + $0x2a0] sm:$0xff] }
0x1354   :  { %6258 = vmatpush1.bf16.msra.mxu1 %v6257_v30  ;;  %v3560_v30 = vld [vmem:[%s9995_s24 + $0x258] sm:$0xff] }
0x1355   :  { %6354 = vmatpush1.bf16.msra.mxu0 %v6353_v32  ;;  %6260 = vmatprep.subr.bf16.mxu1 %v6259_v63  ;;  %v6269_v32 = vpack.c.bf16 %v3705_v42, %v3703_v55  ;;  %v6365_v63 = vpack.c.bf16 %v3555_v60, %v3553_v57  ;;  %v6367_v26 = vpack.c.bf16 %v3560_v30, %v3558_v62  ;;  %v3724_v55 = vld [vmem:[%s9994_s28 + $0x2c8] sm:$0xff]  ;;  %v3576_v57 = vld [vmem:[%s9995_s24 + $0x2d8] sm:$0xff]  ;;  %v3723_v60 = vld [vmem:[%s9994_s28 + $0x2c0] sm:$0xff] }
0x1356   :  { %6356 = vmatprep.subr.bf16.mxu0 %v6355_v2  ;;  %v6271_v2 = vpack.c.bf16 %v3710_v61, %v3708_v13  ;;  %v3725_v13 = vld [vmem:[%s9994_s28 + $0x2d0] sm:$0xff]  ;;  %v3573_v30 = vld [vmem:[%s9995_s24 + $0x2c0] sm:$0xff] }
0x1358   :  { %6262 = vmatpush1.bf16.msra.mxu1 %v6261_v4  ;;  %v3559_v4 = vld [vmem:[%s9995_s24 + $0x250] sm:$0xff] }
0x1359   :  { %6358 = vmatpush1.bf16.msra.mxu0 %v6357_v27  ;;  %6264 = vmatprep.subr.bf16.mxu1 %v6263_v9  ;;  %v3712_v27 = vld [vmem:[%s9994_s28 + $0x268] sm:$0xff]  ;;  %v6273_v9 = vpack.c.bf16 %v3709_v1, %v3707_v18  ;;  %v6369_v10 = vpack.c.bf16 %v3559_v4, %v3557_v33  ;;  %v3730_v1 = vld [vmem:[%s9994_s28 + $0x2f8] sm:$0xff]  ;;  %v6289_v33 = vpack.c.bf16 %v3725_v13, %v3723_v60 }
0x135a   :  { %6360 = vmatprep.subr.bf16.mxu0 %v6359_v11  ;;  %v3711_v11 = vld [vmem:[%s9994_s28 + $0x260] sm:$0xff] }
0x13d2   :  { %v3431_v14 = vpop.xlane.xlu1 %3430 }
0x13d3   :  { %v3432_v15 = vmul.f32 0.0026041667, %v3431_v14  ;;  %v3713_v14 = vld [vmem:[%s9994_s28 + $0x270] sm:$0xff] }
0x13d5   :  { %v3433_v20 = vadd.f32 1e-05, %v3432_v15  ;;  %v6275_v15 = vpack.c.bf16 %v3714_v6, %v3712_v27  ;;  %v3727_v27 = vld [vmem:[%s9994_s28 + $0x2e0] sm:$0xff] }
0x13d7   :  { %6735 = vrsqrt.f32 %v3433_v20  ;;  %v6371_v20 = vpack.c.bf16 %v3564_v8, %v3562_v7  ;;  %v3729_v8 = vld [vmem:[%s9994_s28 + $0x2f0] sm:$0xff] }
0x13e1   :  { %v9587_v51 = vpop.eup %6735 }
0x13e2   :  { %v3436_v35 = vmul.f32 %v9587_v51, %v9512_v46  ;;  %v3435_v38 = vmul.f32 %v9587_v51, %v9509_v45  ;;  %v3551_v45 = vld [vmem:[%s9995_s24 + $0x210] sm:$0xff]  ;;  %v3437_v12 = vmul.f32 %v9587_v51, %v9515_v47 }
0x13e3   :  { %v6361_v53 = vpack.c.bf16 %v3551_v45, %v3549_v49  ;;  %v3567_v49 = vld [vmem:[%s9995_s24 + $0x290] sm:$0xff]  ;;  %v3720_v45 = vld [vmem:[%s9994_s28 + $0x2a8] sm:$0xff] }
0x13e4   :  { %v3455_v40 = vmul.f32 %v3446_v24, %v3436_v35  ;;  %v3454_v58 = vmul.f32 %v3442_v31, %v3435_v38  ;;  %v3561_v24 = vld [vmem:[%s9995_s24 + $0x260] sm:$0xff]  ;;  %v3563_v31 = vld [vmem:[%s9995_s24 + $0x270] sm:$0xff]  ;;  %v3716_v35 = vld [vmem:[%s9994_s28 + $0x288] sm:$0xff]  ;;  %v6283_v47 = vpack.c.bf16 %v3722_v50, %v3720_v45 }
0x13e5   :  { %v3566_v38 = vld [vmem:[%s9995_s24 + $0x288] sm:$0xff]  ;;  %v3586_v45 = vld [vmem:[%s9996_s1 + $0x10] sm:$0xff]  ;;  %v3591_v50 = vld [vmem:[%s9996_s1 + $0x38] sm:$0xff] }
0x13e6   :  { %v3474_v17 = vadd.f32 %v3465_v36, %v3455_v40  ;;  %v3473_v41 = vadd.f32 %v3461_v39, %v3454_v58  ;;  %v3718_v36 = vld [vmem:[%s9994_s28 + $0x298] sm:$0xff]  ;;  %v6277_v40 = vpack.c.bf16 %v3713_v14, %v3711_v11  ;;  %v6373_v58 = vpack.c.bf16 %v3563_v31, %v3561_v24 }
0x13e7   :  { %v3568_v39 = vld [vmem:[%s9995_s24 + $0x298] sm:$0xff]  ;;  %v6293_v14 = vpack.c.bf16 %v3729_v8, %v3727_v27  ;;  %v3604_v8 = vld [vmem:[%s9996_s1 + $0xa0] sm:$0xff] }
0x13e8   :  { %v3477_v44 = vadd.f32 %v3474_v17, %v9154_v5  ;;  %v3476_v46 = vadd.f32 %v3473_v41, %v9149_v25  ;;  %v6265_v25 = vpack.c.bf16 %v3701_v48, %v3699_v59  ;;  %v3715_v17 = vld [vmem:[%s9994_s28 + $0x280] sm:$0xff]  ;;  %v3717_v41 = vld [vmem:[%s9994_s28 + $0x290] sm:$0xff]  ;;  %v6375_v59 = vpack.c.bf16 %v3568_v39, %v3566_v38  ;;  %v3581_v31 = vld [vmem:[#allocation41] sm:$0x3] }
0x13e9   :  { %v3565_v48 = vld [vmem:[%s9995_s24 + $0x280] sm:$0xff] }
0x13ea   :  { %v3480_v29 = vmul.f32 0.2, %v3477_v44  ;;  %v3479_v56 = vmul.f32 0.2, %v3476_v46  ;;  %v6377_v22 = vpack.c.bf16 %v3567_v49, %v3565_v48  ;;  %v3584_v48 = vld [vmem:[%s9996_s1] sm:$0xff] }
0x13ec   :  { %v3483_v5 = vmax.f32 %v3477_v44, %v3480_v29  ;;  %v3482_v52 = vmax.f32 %v3476_v46, %v3479_v56  ;;  %v3450_v44 = vrot.slane %v9579_v23, %v9212_v16  ;;  %v6279_v46 = vpack.c.bf16 %v3718_v36, %v3716_v35  ;;  %v3570_v29 = vld [vmem:[%s9995_s24 + $0x2a8] sm:$0xff]  ;;  %v3572_v56 = vld [vmem:[%s9995_s24 + $0x2b8] sm:$0xff] }
0x13ed   :  { %v6281_v23 = vpack.c.bf16 %v3717_v41, %v3715_v17  ;;  %v6379_v51 = vpack.c.bf16 %v3572_v56, %v3570_v29  ;;  %v3889_v35 = vrot.slane %v3581_v31, %v8563_v21  ;;  %v6393_v29 = vpack.c.bf16 %v3586_v45, %v3584_v48  ;;  %v3618_v48 = vld [vmem:[%s9996_s1 + $0x110] sm:$0xff]  ;;  %v3621_v45 = vld [vmem:[%s9996_s1 + $0x128] sm:$0xff] }
0x13ee   :  { %3807 = vmatprep.mubr.f32.mxu1 %v3483_v5  ;;  %3960 = vmatprep.mubr.f32.mxu0 %v3483_v5  ;;  %v3721_v5 = vld [vmem:[%s9994_s28 + $0x2b0] sm:$0xff]  ;;  %v3456_v42 = vmul.f32 %v3450_v44, %v3437_v12  ;;  %v3589_v12 = vld [vmem:[%s9996_s1 + $0x28] sm:$0xff] }
0x13ef   :  { %3808 = vmatmul.mubr.f32.vlgmr.msra.gmra.mrb[20].mxu1 %v3482_v52  ;;  %3961 = vmatmul.mubr.f32.vlgmr.msra.gmra.mrb[12].mxu0 %v3482_v52  ;;  %v3469_v52 = vrot.slane %v9581_v28, %v9212_v16  ;;  %v6285_v16 = vpack.c.bf16 %v3721_v5, %v3719_v43  ;;  %v6395_v56 = vpack.c.bf16 %v3591_v50, %v3589_v12  ;;  %v3593_v43 = vld [vmem:[%s9996_s1 + $0x48] sm:$0xff]  ;;  %v3595_v5 = vld [vmem:[%s9996_s1 + $0x58] sm:$0xff] }
0x13f0   :  { %6266 = vmatpush1.bf16.msra.mxu1 %v6265_v25  ;;  %6362 = vmatpush1.bf16.msra.mxu0 %v6361_v53  ;;  %v3569_v25 = vld [vmem:[%s9995_s24 + $0x2a0] sm:$0xff]  ;;  %v3571_v53 = vld [vmem:[%s9995_s24 + $0x2b0] sm:$0xff]  ;;  %v3623_v12 = vld [vmem:[%s9996_s1 + $0x138] sm:$0xff] }
0x13f1   :  { %6268 = vmatprep.subr.bf16.mxu1 %v6267_v37  ;;  %6364 = vmatprep.subr.bf16.mxu0 %v6363_v54  ;;  %v3726_v37 = vld [vmem:[%s9994_s28 + $0x2d8] sm:$0xff]  ;;  %v3574_v54 = vld [vmem:[%s9995_s24 + $0x2c8] sm:$0xff]  ;;  %v6381_v28 = vpack.c.bf16 %v3571_v53, %v3569_v25  ;;  %v3475_v18 = vadd.f32 %v3469_v52, %v3456_v42  ;;  %v3594_v25 = vld [vmem:[%s9996_s1 + $0x50] sm:$0xff]  ;;  %v6427_v50 = vpack.c.bf16 %v3623_v12, %v3621_v45 }
0x13f2   :  { %3878 = vmatprep.mubr.f32.mxu1 %v8017_v0  ;;  %4031 = vmatprep.mubr.f32.mxu0 %v8017_v0  ;;  %v6287_v61 = vpack.c.bf16 %v3726_v37, %v3724_v55  ;;  %v6383_v62 = vpack.c.bf16 %v3576_v57, %v3574_v54  ;;  %v3597_v53 = vld [vmem:[%s9996_s1 + $0x68] sm:$0xff]  ;;  %v3599_v55 = vld [vmem:[%s9996_s1 + $0x78] sm:$0xff]  ;;  %v3596_v54 = vld [vmem:[%s9996_s1 + $0x60] sm:$0xff] }
0x13f3   :  { %v3478_v11 = vadd.f32 %v3475_v18, %v9151_v3  ;;  %v3893_v3 = vrot.slane %v3581_v31, %v8560_v19  ;;  %v6403_v37 = vpack.c.bf16 %v3599_v55, %v3597_v53  ;;  %v3598_v57 = vld [vmem:[%s9996_s1 + $0x70] sm:$0xff] }
0x13f4   :  { %6270 = vmatpush1.bf16.msra.mxu1 %v6269_v32  ;;  %6366 = vmatpush1.bf16.msra.mxu0 %v6365_v63  ;;  %v3575_v32 = vld [vmem:[%s9995_s24 + $0x2d0] sm:$0xff]  ;;  %v3728_v63 = vld [vmem:[%s9994_s28 + $0x2e8] sm:$0xff]  ;;  %v6405_v60 = vpack.c.bf16 %v3598_v57, %v3596_v54 }
0x13f5   :  { %6272 = vmatprep.subr.bf16.mxu1 %v6271_v2  ;;  %6368 = vmatprep.subr.bf16.mxu0 %v6367_v26  ;;  %v3578_v2 = vld [vmem:[%s9995_s24 + $0x2e8] sm:$0xff]  ;;  %v3580_v26 = vld [vmem:[%s9995_s24 + $0x2f8] sm:$0xff]  ;;  %v6385_v4 = vpack.c.bf16 %v3575_v32, %v3573_v30  ;;  %v6291_v6 = vpack.c.bf16 %v3730_v1, %v3728_v63 }
0x13f6   :  { %v6387_v7 = vpack.c.bf16 %v3580_v26, %v3578_v2  ;;  %v3605_v30 = vld [vmem:[%s9996_s1 + $0xa8] sm:$0xff]  ;;  %v3607_v32 = vld [vmem:[%s9996_s1 + $0xb8] sm:$0xff] }
0x13f7   :  { %v6411_v18 = vpack.c.bf16 %v3607_v32, %v3605_v30  ;;  %v4267_v12 = vld [vmem:[#allocation61 + $0x20] sm:$0xff] }
0x13f8   :  { %6274 = vmatpush1.bf16.msra.mxu1 %v6273_v9  ;;  %6370 = vmatpush1.bf16.msra.mxu0 %v6369_v10  ;;  %v3577_v9 = vld [vmem:[%s9995_s24 + $0x2e0] sm:$0xff]  ;;  %v3579_v10 = vld [vmem:[%s9995_s24 + $0x2f0] sm:$0xff] }
0x13f9   :  { %6276 = vmatprep.subr.bf16.mxu1 %v6275_v15  ;;  %6372 = vmatprep.subr.bf16.mxu0 %v6371_v20  ;;  %v6389_v15 = vpack.c.bf16 %v3579_v10, %v3577_v9  ;;  %v3481_v20 = vmul.f32 0.2, %v3478_v11  ;;  %v3606_v9 = vld [vmem:[%s9996_s1 + $0xb0] sm:$0xff] }
0x13fa   :  { %v6413_v10 = vpack.c.bf16 %v3606_v9, %v3604_v8 }
0x13fb   :  { %v3484_v24 = vmax.f32 %v3478_v11, %v3481_v20  ;;  %v3609_v11 = vld [vmem:[%s9996_s1 + $0xc8] sm:$0xff]  ;;  %v3608_v20 = vld [vmem:[%s9996_s1 + $0xc0] sm:$0xff] }
0x13fc   :  { %6278 = vmatpush1.bf16.msra.mxu1 %v6277_v40  ;;  %6374 = vmatpush1.bf16.msra.mxu0 %v6373_v58 }
0x13fd   :  { %6280 = vmatprep.subr.bf16.mxu1 %v6279_v46  ;;  %6376 = vmatprep.subr.bf16.mxu0 %v6375_v59  ;;  %v3585_v46 = vld [vmem:[%s9996_s1 + $0x8] sm:$0xff]  ;;  %v3587_v59 = vld [vmem:[%s9996_s1 + $0x18] sm:$0xff] }
0x13fe   :  { %v6391_v49 = vpack.c.bf16 %v3587_v59, %v3585_v46  ;;  %v3616_v59 = vld [vmem:[%s9996_s1 + $0x100] sm:$0xff] }
0x1400   :  { %6282 = vmatpush1.bf16.msra.mxu1 %v6281_v23  ;;  %6378 = vmatpush1.bf16.msra.mxu0 %v6377_v22  ;;  %v3588_v23 = vld [vmem:[%s9996_s1 + $0x20] sm:$0xff]  ;;  %v3590_v22 = vld [vmem:[%s9996_s1 + $0x30] sm:$0xff] }
0x1401   :  { %6284 = vmatprep.subr.bf16.mxu1 %v6283_v47  ;;  %6380 = vmatprep.subr.bf16.mxu0 %v6379_v51  ;;  %v6397_v52 = vpack.c.bf16 %v3590_v22, %v3588_v23  ;;  %v6399_v47 = vpack.c.bf16 %v3595_v5, %v3593_v43  ;;  %v3592_v51 = vld [vmem:[%s9996_s1 + $0x40] sm:$0xff]  ;;  %v3625_v22 = vld [vmem:[%s9996_s1 + $0x148] sm:$0xff]  ;;  %v3627_v43 = vld [vmem:[%s9996_s1 + $0x158] sm:$0xff] }
0x1402   :  { %v6401_v42 = vpack.c.bf16 %v3594_v25, %v3592_v51  ;;  %v3624_v5 = vld [vmem:[%s9996_s1 + $0x140] sm:$0xff]  ;;  %v3629_v51 = vld [vmem:[%s9996_s1 + $0x168] sm:$0xff]  ;;  %v3631_v25 = vld [vmem:[%s9996_s1 + $0x178] sm:$0xff] }
0x1403   :  { %v6435_v55 = vpack.c.bf16 %v3631_v25, %v3629_v51 }
0x1404   :  { %6286 = vmatpush1.bf16.msra.mxu1 %v6285_v16  ;;  %6382 = vmatpush1.bf16.msra.mxu0 %v6381_v28  ;;  %v3601_v16 = vld [vmem:[%s9996_s1 + $0x88] sm:$0xff]  ;;  %v3603_v28 = vld [vmem:[%s9996_s1 + $0x98] sm:$0xff] }
0x1405   :  { %6288 = vmatprep.subr.bf16.mxu1 %v6287_v61  ;;  %6384 = vmatprep.subr.bf16.mxu0 %v6383_v62  ;;  %v6407_v13 = vpack.c.bf16 %v3603_v28, %v3601_v16  ;;  %v3600_v61 = vld [vmem:[%s9996_s1 + $0x80] sm:$0xff]  ;;  %v3602_v62 = vld [vmem:[%s9996_s1 + $0x90] sm:$0xff] }
0x1406   :  { %v6409_v63 = vpack.c.bf16 %v3602_v62, %v3600_v61 }
0x1408   :  { %6290 = vmatpush1.bf16.msra.mxu1 %v6289_v33  ;;  %6386 = vmatpush1.bf16.msra.mxu0 %v6385_v4 }
0x1409   :  { %6292 = vmatprep.subr.bf16.mxu1 %v6291_v6  ;;  %6388 = vmatprep.subr.bf16.mxu0 %v6387_v7 }
0x140c   :  { %6294 = vmatpush1.bf16.msra.mxu1 %v6293_v14  ;;  %6390 = vmatpush1.bf16.msra.mxu0 %v6389_v15  ;;  %v3611_v14 = vld [vmem:[%s9996_s1 + $0xd8] sm:$0xff] }
0x140d   :  { %6439 = vmatprep.subr.bf16.mxu0 %v8018_v34  ;;  %6392 = vmatprep.subr.bf16.mxu1 %v6391_v49  ;;  %v6415_v15 = vpack.c.bf16 %v3611_v14, %v3609_v11  ;;  %v6425_v49 = vpack.c.bf16 %v3618_v48, %v3616_v59  ;;  %v3632_v11 = vld [vmem:[#allocation46] sm:$0x3]  ;;  %v4223_v59 = vld [vmem:[#allocation52 + $0x10] sm:$0xff] }
0x140e   :  { %v4224_v48 = vld [vmem:[#allocation52 + $0x18] sm:$0xff] }
0x140f   :  { %3879 = vmatmul.mubr.f32.vlgmr.msra.gmra.mrb[20].mxu1 %v3484_v24  ;;  %4032 = vmatmul.mubr.f32.vlgmr.msra.gmra.mrb[12].mxu0 %v3484_v24  ;;  %v3610_v24 = vld [vmem:[%s9996_s1 + $0xd0] sm:$0xff]  ;;  %v6479_v45 = vpack.c.bf16 %v4224_v48, %v4223_v59  ;;  %v4240_v59 = vld [vmem:[#allocation52 + $0x98] sm:$0xff] }
0x1410   :  { %6394 = vmatpush1.bf16.msra.mxu1 %v6393_v29  ;;  %v6417_v31 = vpack.c.bf16 %v3610_v24, %v3608_v20  ;;  %v3620_v29 = vld [vmem:[%s9996_s1 + $0x120] sm:$0xff]  ;;  %v4283_v48 = vld [vmem:[#allocation61 + $0xa0] sm:$0xff] }
0x1411   :  { %6396 = vmatprep.subr.bf16.mxu1 %v6395_v56  ;;  %v3622_v56 = vld [vmem:[%s9996_s1 + $0x130] sm:$0xff] }
0x1412   :  { %v6429_v23 = vpack.c.bf16 %v3622_v56, %v3620_v29  ;;  %v4225_v29 = vld [vmem:[#allocation52 + $0x20] sm:$0xff]  ;;  %v4226_v56 = vld [vmem:[#allocation52 + $0x28] sm:$0xff] }
0x1414   :  { %6398 = vmatpush1.bf16.msra.mxu1 %v6397_v52  ;;  %v6431_v52 = vpack.c.bf16 %v3627_v43, %v3625_v22  ;;  %v6482_v22 = vpack.c.bf16 %v4226_v56, %v4225_v29  ;;  %v4269_v43 = vld [vmem:[#allocation61 + $0x30] sm:$0xff] }
0x1415   :  { %6400 = vmatprep.subr.bf16.mxu1 %v6399_v47  ;;  %v3626_v47 = vld [vmem:[%s9996_s1 + $0x150] sm:$0xff] }
0x1416   :  { %v6433_v53 = vpack.c.bf16 %v3626_v47, %v3624_v5  ;;  %v4270_v5 = vld [vmem:[#allocation61 + $0x38] sm:$0xff]  ;;  %v4228_v47 = vld [vmem:[#allocation52 + $0x38] sm:$0xff] }
0x1417   :  { %v6449_v51 = vpack.c.bf16 %v4270_v5, %v4269_v43  ;;  %v4243_v43 = vld [vmem:[#allocation52 + $0xb0] sm:$0xff]  ;;  %v4244_v5 = vld [vmem:[#allocation52 + $0xb8] sm:$0xff] }
0x1418   :  { %6402 = vmatpush1.bf16.msra.mxu1 %v6401_v42  ;;  %v3628_v42 = vld [vmem:[%s9996_s1 + $0x160] sm:$0xff] }
0x1419   :  { %6404 = vmatprep.subr.bf16.mxu1 %v6403_v37  ;;  %v3630_v37 = vld [vmem:[%s9996_s1 + $0x170] sm:$0xff] }
0x141a   :  { %v6437_v54 = vpack.c.bf16 %v3630_v37, %v3628_v42  ;;  %v4229_v42 = vld [vmem:[#allocation52 + $0x40] sm:$0xff]  ;;  %v4230_v37 = vld [vmem:[#allocation52 + $0x48] sm:$0xff] }
0x141c   :  { %6406 = vmatpush1.bf16.msra.mxu1 %v6405_v60  ;;  %v3582_v60 = vld [vmem:[#allocation43] sm:$0x3] }
0x141d   :  { %6408 = vmatprep.subr.bf16.mxu1 %v6407_v13  ;;  %v3583_v13 = vld [vmem:[#allocation44] sm:$0x3]  ;;  %v4064_v61 = vrot.slane %v3582_v60, %v8560_v19  ;;  %v4060_v62 = vrot.slane %v3582_v60, %v8563_v21 }
0x1420   :  { %6410 = vmatpush1.bf16.msra.mxu1 %v6409_v63 }
0x1421   :  { %6412 = vmatprep.subr.bf16.mxu1 %v6411_v18  ;;  %v4077_v18 = vrot.slane %v3583_v13, %v8560_v19 }
0x1424   :  { %6414 = vmatpush1.bf16.msra.mxu1 %v6413_v10 }
0x1425   :  { %6416 = vmatprep.subr.bf16.mxu1 %v6415_v15 }
0x1428   :  { %6418 = vmatpush1.bf16.msra.mxu1 %v6417_v31 }
0x14e2   :  { %v9671_v36 = vpop.f32.mrb[20].mxu1  ;;  %v4033_v38 = vpop.f32.mrb[12].mxu0 }
0x14e3   :  { %v9673_v39 = vpop.f32.mrb[21].mxu1  ;;  %v4035_v40 = vpop.f32.mrb[13].mxu0  ;;  %v6593_v17 = vadd.f32 %v4033_v38, %v3889_v35  ;;  %v3615_v35 = vld [vmem:[%s9996_s1 + $0xf8] sm:$0xff] }
0x14e4   :  { %v6594_v58 = vadd.f32 %v4035_v40, %v3893_v3  ;;  %v3613_v3 = vld [vmem:[%s9996_s1 + $0xe8] sm:$0xff]  ;;  %v3612_v40 = vld [vmem:[%s9996_s1 + $0xe0] sm:$0xff] }
0x14e5   :  { %v6419_v38 = vpack.c.bf16 %v3615_v35, %v3613_v3  ;;  %v4263_v35 = vld [vmem:[#allocation61] sm:$0xff] }
0x14e6   :  { %v4038_v41 = vsel %vm1036_vm1, %v6594_v58, 0.0 }
0x14e7   :  { %v4039_v44 = vadd.f32 %v6593_v17, %v4038_v41  ;;  %6420 = vmatprep.subr.bf16.mxu1 %v6419_v38  ;;  %v3617_v41 = vld [vmem:[%s9996_s1 + $0x108] sm:$0xff]  ;;  %v4264_v38 = vld [vmem:[#allocation61 + $0x8] sm:$0xff] }
0x14e9   :  { %4040 = vadd.xlane.f32.xlu0 %v4039_v44  ;;  %v3619_v44 = vld [vmem:[%s9996_s1 + $0x118] sm:$0xff] }
0x14ea   :  { %v6423_v46 = vpack.c.bf16 %v3619_v44, %v3617_v41  ;;  %v4265_v41 = vld [vmem:[#allocation61 + $0x10] sm:$0xff]  ;;  %v4266_v44 = vld [vmem:[#allocation61 + $0x18] sm:$0xff] }
0x1576   :  { %v4041_v1 = vpop.xlane.xlu0 %4040 }
0x1577   :  { %v4042_v2 = vmul.f32 0.0052083335, %v4041_v1  ;;  %v4073_v1 = vrot.slane %v3583_v13, %v8563_v21 }
0x1579   :  { %v9698_v26 = vsub.f32 %v6593_v17, %v4042_v2  ;;  %v9700_v33 = vsub.f32 %v6594_v58, %v4042_v2  ;;  %v3614_v58 = vld [vmem:[%s9996_s1 + $0xf0] sm:$0xff] }
0x157a   :  { %v6421_v17 = vpack.c.bf16 %v3614_v58, %v3612_v40  ;;  %v4221_v40 = vld [vmem:[#allocation52] sm:$0xff]  ;;  %v6440_v58 = vpack.c.bf16 %v4264_v38, %v4263_v35 }
0x157b   :  { %v4045_v4 = vmul.f32 %v9698_v26, %v9698_v26  ;;  %v4046_v27 = vmul.f32 %v9700_v33, %v9700_v33  ;;  %v4237_v35 = vld [vmem:[#allocation52 + $0x80] sm:$0xff] }
0x157c   :  { %6422 = vmatpush1.bf16.msra.mxu1 %v6421_v17  ;;  %v4222_v17 = vld [vmem:[#allocation52 + $0x8] sm:$0xff]  ;;  %6441 = vmatpush1.bf16.msra.mxu0 %v6440_v58 }
0x157d   :  { %v4047_v6 = vsel %vm1036_vm1, %v4046_v27, 0.0  ;;  %6424 = vmatprep.subr.bf16.mxu1 %v6423_v46  ;;  %v6476_v46 = vpack.c.bf16 %v4222_v17, %v4221_v40  ;;  %6442 = vmatprep.subr.bf16.mxu0 %v8018_v34  ;;  %v4238_v40 = vld [vmem:[#allocation52 + $0x88] sm:$0xff]  ;;  %v4281_v17 = vld [vmem:[#allocation61 + $0x90] sm:$0xff] }
0x157e   :  { %v4048_v7 = vadd.f32 %v4047_v6, %v4045_v4  ;;  %v6500_v58 = vpack.c.bf16 %v4238_v40, %v4237_v35  ;;  %v4249_v35 = vld [vmem:[%s9998_s27 + $0x8] sm:$0xff]  ;;  %v4250_v40 = vld [vmem:[%s9998_s27 + $0x10] sm:$0xff] }
0x1580   :  { %4049 = vadd.xlane.f32.xlu1 %v4048_v7  ;;  %6426 = vmatpush1.bf16.msra.mxu1 %v6425_v49  ;;  %v6443_v49 = vpack.c.bf16 %v4266_v44, %v4265_v41  ;;  %v4282_v41 = vld [vmem:[#allocation61 + $0x98] sm:$0xff]  ;;  %v4239_v44 = vld [vmem:[#allocation52 + $0x90] sm:$0xff] }
0x1581   :  { %6428 = vmatprep.subr.bf16.mxu1 %v6427_v50  ;;  %v4268_v50 = vld [vmem:[#allocation61 + $0x28] sm:$0xff] }
0x1582   :  { %6444 = vmatpush1.bf16.msra.mxu0 %v6443_v49  ;;  %v4284_v49 = vld [vmem:[#allocation61 + $0xa8] sm:$0xff] }
0x1583   :  { %6445 = vmatprep.subr.bf16.mxu0 %v8018_v34  ;;  %v6470_v29 = vpack.c.bf16 %v4284_v49, %v4283_v48  ;;  %v4255_v48 = vld [vmem:[%s9998_s27 + $0x38] sm:$0xff] }
0x1584   :  { %6430 = vmatpush1.bf16.msra.mxu1 %v6429_v23  ;;  %v6446_v23 = vpack.c.bf16 %v4268_v50, %v4267_v12  ;;  %v4241_v12 = vld [vmem:[#allocation52 + $0xa0] sm:$0xff]  ;;  %v4242_v50 = vld [vmem:[#allocation52 + $0xa8] sm:$0xff] }
0x1585   :  { %6432 = vmatprep.subr.bf16.mxu1 %v6431_v52  ;;  %v4227_v52 = vld [vmem:[#allocation52 + $0x30] sm:$0xff]  ;;  %v6506_v56 = vpack.c.bf16 %v4242_v50, %v4241_v12  ;;  %v4257_v12 = vld [vmem:[%s9998_s27 + $0x48] sm:$0xff] }
0x1586   :  { %6447 = vmatpush1.bf16.msra.mxu0 %v6446_v23  ;;  %v6485_v25 = vpack.c.bf16 %v4228_v47, %v4227_v52  ;;  %v4285_v23 = vld [vmem:[#allocation61 + $0xb0] sm:$0xff]  ;;  %v6509_v47 = vpack.c.bf16 %v4244_v5, %v4243_v43 }
0x1587   :  { %6448 = vmatprep.subr.bf16.mxu0 %v8018_v34 }
0x1588   :  { %6434 = vmatpush1.bf16.msra.mxu1 %v6433_v53  ;;  %v4271_v53 = vld [vmem:[#allocation61 + $0x40] sm:$0xff] }
0x1589   :  { %6436 = vmatprep.subr.bf16.mxu1 %v6435_v55  ;;  %v4272_v55 = vld [vmem:[#allocation61 + $0x48] sm:$0xff] }
0x158a   :  { %6450 = vmatpush1.bf16.msra.mxu0 %v6449_v51 }
0x158b   :  { %6451 = vmatprep.subr.bf16.mxu0 %v8018_v34 }
0x158c   :  { %6438 = vmatpush1.bf16.msra.mxu1 %v6437_v54  ;;  %v6452_v54 = vpack.c.bf16 %v4272_v55, %v4271_v53  ;;  %v3633_v55 = vld [vmem:[#allocation47] sm:$0x3] }
0x158d   :  { %6475 = vmatprep.subr.bf16.mxu1 %v8018_v34 }
0x158e   :  { %6453 = vmatpush1.bf16.msra.mxu0 %v6452_v54  ;;  %v4197_v54 = vrot.slane %v3633_v55, %v8560_v19 }
0x158f   :  { %6454 = vmatprep.subr.bf16.mxu0 %v8018_v34 }
0x160d   :  { %v4050_v57 = vpop.xlane.xlu1 %4049 }
0x160e   :  { %v4051_v16 = vmul.f32 0.0052083335, %v4050_v57  ;;  %v6488_v57 = vpack.c.bf16 %v4230_v37, %v4229_v42  ;;  %v3731_v42 = vld [vmem:[#allocation50] sm:$0x3]  ;;  %v3634_v37 = vld [vmem:[#allocation49] sm:$0x3] }
0x1610   :  { %v4052_v28 = vadd.f32 1e-05, %v4051_v16 }
0x1612   :  { %6737 = vrsqrt.f32 %v4052_v28 }
0x161c   :  { %v6738_v30 = vpop.eup %6737 }
0x161d   :  { %v4054_v32 = vmul.f32 %v6738_v30, %v9698_v26  ;;  %v4055_v63 = vmul.f32 %v6738_v30, %v9700_v33  ;;  %v4094_v26 = vrot.slane %v3632_v11, %v8560_v19  ;;  %v4090_v33 = vrot.slane %v3632_v11, %v8563_v21 }
0x161f   :  { %v4068_v2 = vmul.f32 %v4064_v61, %v4055_v63  ;;  %v4067_v4 = vmul.f32 %v4060_v62, %v4054_v32  ;;  %v4273_v63 = vld [vmem:[#allocation61 + $0x50] sm:$0xff] }
0x1621   :  { %v4081_v27 = vadd.f32 %v4077_v18, %v4068_v2  ;;  %v4080_v6 = vadd.f32 %v4073_v1, %v4067_v4  ;;  %v4274_v18 = vld [vmem:[#allocation61 + $0x58] sm:$0xff]  ;;  %v4231_v1 = vld [vmem:[#allocation52 + $0x50] sm:$0xff]  ;;  %v4232_v4 = vld [vmem:[#allocation52 + $0x58] sm:$0xff] }
0x1622   :  { %v6455_v2 = vpack.c.bf16 %v4274_v18, %v4273_v63  ;;  %v4206_v63 = vrot.slane %v3634_v37, %v8563_v21 }
0x1623   :  { %v4083_v7 = vmul.f32 0.2, %v4081_v27  ;;  %v4082_v8 = vmul.f32 0.2, %v4080_v6 }
0x1624   :  { %6456 = vmatpush1.bf16.msra.mxu0 %v6455_v2 }
0x1625   :  { %v4085_v9 = vmax.f32 %v4081_v27, %v4083_v7  ;;  %v4084_v10 = vmax.f32 %v4080_v6, %v4082_v8  ;;  %v6491_v27 = vpack.c.bf16 %v4232_v4, %v4231_v1  ;;  %6457 = vmatprep.subr.bf16.mxu0 %v8018_v34  ;;  %v4275_v6 = vld [vmem:[#allocation61 + $0x60] sm:$0xff]  ;;  %v4276_v7 = vld [vmem:[#allocation61 + $0x68] sm:$0xff]  ;;  %v4233_v8 = vld [vmem:[#allocation52 + $0x60] sm:$0xff] }
0x1627   :  { %5032 = vmatprep.mubr.msk.f32.mxu1 %vm1036_vm1, %v4085_v9  ;;  %v6458_v9 = vpack.c.bf16 %v4276_v7, %v4275_v6 }
0x1628   :  { %4165 = vmatmul.mubr.f32.vlgmr.msra.gmra.mrb[22].mxu1 %v4084_v10  ;;  %v4234_v10 = vld [vmem:[#allocation52 + $0x68] sm:$0xff] }
0x1629   :  { %6477 = vmatpush1.bf16.msra.mxu1 %v6476_v46  ;;  %v6494_v11 = vpack.c.bf16 %v4234_v10, %v4233_v8  ;;  %6459 = vmatpush1.bf16.msra.mxu0 %v6458_v9  ;;  %v6467_v46 = vpack.c.bf16 %v4282_v41, %v4281_v17  ;;  %v4252_v41 = vld [vmem:[%s9998_s27 + $0x20] sm:$0xff] }
0x162a   :  { %6478 = vmatprep.subr.bf16.mxu1 %v8018_v34  ;;  %6460 = vmatprep.subr.bf16.mxu0 %v8018_v34 }
0x162d   :  { %6480 = vmatpush1.bf16.msra.mxu1 %v6479_v45  ;;  %v6503_v45 = vpack.c.bf16 %v4240_v59, %v4239_v44  ;;  %v4253_v44 = vld [vmem:[%s9998_s27 + $0x28] sm:$0xff]  ;;  %v4254_v59 = vld [vmem:[%s9998_s27 + $0x30] sm:$0xff] }
0x162e   :  { %6481 = vmatprep.subr.bf16.mxu1 %v8018_v34  ;;  %v6521_v49 = vpack.c.bf16 %v4255_v48, %v4254_v59  ;;  %v5043_v48 = vld [vmem:[#allocation65] ss:$0 sm:$0xff] }
0x1631   :  { %6483 = vmatpush1.bf16.msra.mxu1 %v6482_v22  ;;  %v4286_v22 = vld [vmem:[#allocation61 + $0xb8] sm:$0xff] }
0x1632   :  { %6484 = vmatprep.subr.bf16.mxu1 %v8018_v34  ;;  %v6473_v52 = vpack.c.bf16 %v4286_v22, %v4285_v23 }
0x1635   :  { %6486 = vmatpush1.bf16.msra.mxu1 %v6485_v25 }
0x1636   :  { %6487 = vmatprep.subr.bf16.mxu1 %v8018_v34 }
0x1639   :  { %6489 = vmatpush1.bf16.msra.mxu1 %v6488_v57  ;;  %v4193_v57 = vrot.slane %v3633_v55, %v8563_v21 }
0x163a   :  { %6490 = vmatprep.subr.bf16.mxu1 %v8018_v34 }
0x163d   :  { %6492 = vmatpush1.bf16.msra.mxu1 %v6491_v27 }
0x163e   :  { %6493 = vmatprep.subr.bf16.mxu1 %v8018_v34 }
0x1641   :  { %6495 = vmatpush1.bf16.msra.mxu1 %v6494_v11 }
0x1642   :  { %6496 = vmatprep.subr.bf16.mxu1 %v8018_v34 }
0x16fb   :  { %v4166_v14 = vpop.f32.mrb[22].mxu1 }
0x16fc   :  { %v4168_v15 = vpop.f32.mrb[23].mxu1  ;;  %v4167_v24 = vadd.f32 %v4166_v14, %v4090_v33  ;;  %v4278_v33 = vld [vmem:[#allocation61 + $0x78] sm:$0xff]  ;;  %v4235_v14 = vld [vmem:[#allocation52 + $0x70] sm:$0xff] }
0x16fd   :  { %v4169_v20 = vadd.f32 %v4168_v15, %v4094_v26  ;;  %v4277_v26 = vld [vmem:[#allocation61 + $0x70] sm:$0xff] }
0x16fe   :  { %v6461_v15 = vpack.c.bf16 %v4278_v33, %v4277_v26 }
0x16ff   :  { %v4171_v31 = vsel %vm1036_vm1, %v4169_v20, 0.0 }
0x1700   :  { %v4172_v3 = vadd.f32 %v4171_v31, %v4167_v24  ;;  %6462 = vmatpush1.bf16.msra.mxu0 %v6461_v15  ;;  %v4279_v31 = vld [vmem:[#allocation61 + $0x80] sm:$0xff] }
0x1701   :  { %6463 = vmatprep.subr.bf16.mxu0 %v8018_v34 }
0x1702   :  { %4173 = vadd.xlane.f32.xlu0 %v4172_v3  ;;  %v4280_v3 = vld [vmem:[#allocation61 + $0x88] sm:$0xff] }
0x1703   :  { %v6464_v38 = vpack.c.bf16 %v4280_v3, %v4279_v31  ;;  %v4248_v3 = vld [vmem:[%s9998_s27] sm:$0xff] }
0x1705   :  { %6465 = vmatpush1.bf16.msra.mxu0 %v6464_v38  ;;  %v6512_v38 = vpack.c.bf16 %v4249_v35, %v4248_v3  ;;  %v5041_v3 = vld [vmem:[#allocation58] ss:$0 sm:$0xff] }
0x1706   :  { %6466 = vmatprep.subr.bf16.mxu0 %v8018_v34 }
0x1709   :  { %6468 = vmatpush1.bf16.msra.mxu0 %v6467_v46  ;;  %v6518_v46 = vpack.c.bf16 %v4253_v44, %v4252_v41 }
0x170a   :  { %6469 = vmatprep.subr.bf16.mxu0 %v8018_v34 }
0x170d   :  { %6471 = vmatpush1.bf16.msra.mxu0 %v6470_v29  ;;  %v4258_v29 = vld [vmem:[%s9998_s27 + $0x50] sm:$0xff] }
0x170e   :  { %6472 = vmatprep.subr.bf16.mxu0 %v8018_v34 }
0x1711   :  { %6474 = vmatpush1.bf16.msra.mxu0 %v6473_v52 }
0x1712   :  { %6511 = vmatprep.subr.bf16.mxu0 %v8018_v34 }
0x178f   :  { %v4174_v16 = vpop.xlane.xlu0 %4173 }
0x1790   :  { %v4175_v28 = vmul.f32 0.0052083335, %v4174_v16 }
0x1792   :  { %v9754_v60 = vsub.f32 %v4167_v24, %v4175_v28  ;;  %v9756_v13 = vsub.f32 %v4169_v20, %v4175_v28  ;;  %v4236_v20 = vld [vmem:[#allocation52 + $0x78] sm:$0xff]  ;;  %v3736_v28 = vrot.slane %v3731_v42, %v8563_v21 }
0x1793   :  { %v6497_v24 = vpack.c.bf16 %v4236_v20, %v4235_v14 }
0x1794   :  { %v4178_v61 = vmul.f32 %v9754_v60, %v9754_v60  ;;  %v4179_v62 = vmul.f32 %v9756_v13, %v9756_v13  ;;  %v6591_v2 = vadd.f32 %v9671_v36, %v3736_v28 }
0x1795   :  { %6498 = vmatpush1.bf16.msra.mxu1 %v6497_v24 }
0x1796   :  { %v4180_v30 = vsel %vm1036_vm1, %v4179_v62, 0.0  ;;  %6499 = vmatprep.subr.bf16.mxu1 %v8018_v34 }
0x1797   :  { %v4181_v32 = vadd.f32 %v4180_v30, %v4178_v61  ;;  %v3740_v61 = vrot.slane %v3731_v42, %v8560_v19 }
0x1799   :  { %4182 = vadd.xlane.f32.xlu1 %v4181_v32  ;;  %6501 = vmatpush1.bf16.msra.mxu1 %v6500_v58  ;;  %v4210_v32 = vrot.slane %v3634_v37, %v8560_v19  ;;  %v6592_v4 = vadd.f32 %v9673_v39, %v3740_v61  ;;  %v5035_v19 = vld [vmem:[%s9997_s9] ss:$0 sm:$0xff]  ;;  %v4251_v58 = vld [vmem:[%s9998_s27 + $0x18] sm:$0xff] }
0x179a   :  { %6502 = vmatprep.subr.bf16.mxu1 %v8018_v34  ;;  %v6515_v17 = vpack.c.bf16 %v4251_v58, %v4250_v40  ;;  %v5042_v40 = vld [vmem:[#allocation59] ss:$0 sm:$0xff] }
0x179d   :  { %6504 = vmatpush1.bf16.msra.mxu1 %v6503_v45  ;;  %v4256_v45 = vld [vmem:[%s9998_s27 + $0x40] sm:$0xff] }
0x179e   :  { %6505 = vmatprep.subr.bf16.mxu1 %v8018_v34  ;;  %v6524_v50 = vpack.c.bf16 %v4257_v12, %v4256_v45 }
0x17a1   :  { %6507 = vmatpush1.bf16.msra.mxu1 %v6506_v56  ;;  %v4259_v56 = vld [vmem:[%s9998_s27 + $0x58] sm:$0xff] }
0x17a2   :  { %6508 = vmatprep.subr.bf16.mxu1 %v8018_v34  ;;  %v6527_v23 = vpack.c.bf16 %v4259_v56, %v4258_v29 }
0x17a5   :  { %6510 = vmatpush1.bf16.msra.mxu1 %v6509_v47  ;;  %v5037_v47 = vld [vmem:[#allocation53] ss:$0 sm:$0xff] }
0x17a6   :  { %6547 = vmatprep.subr.bf16.mxu1 %v8018_v34 }
0x1826   :  { %v4183_v51 = vpop.xlane.xlu1 %4182 }
0x1827   :  { %v4184_v25 = vmul.f32 0.0052083335, %v4183_v51 }
0x1829   :  { %v4185_v53 = vadd.f32 1e-05, %v4184_v25  ;;  %v5038_v25 = vld [vmem:[#allocation55] ss:$0 sm:$0xff] }
0x182b   :  { %6739 = vrsqrt.f32 %v4185_v53 }
0x1835   :  { %v6740_v16 = vpop.eup %6739 }
0x1836   :  { %v4187_v62 = vmul.f32 %v6740_v16, %v9754_v60  ;;  %v4188_v30 = vmul.f32 %v6740_v16, %v9756_v13 }
0x1838   :  { %v4201_v18 = vmul.f32 %v4197_v54, %v4188_v30  ;;  %v4200_v1 = vmul.f32 %v4193_v57, %v4187_v62  ;;  %v5039_v54 = vld [vmem:[#allocation56] ss:$0 sm:$0xff] }
0x183a   :  { %v4214_v27 = vadd.f32 %v4210_v32, %v4201_v18  ;;  %v4213_v6 = vadd.f32 %v4206_v63, %v4200_v1  ;;  %v4582_v1 = vld [vmem:[#allocation64] sm:$0xff] }
0x183c   :  { %v4216_v7 = vadd.f32 %v6592_v4, %v4214_v27  ;;  %v4215_v8 = vadd.f32 %v6591_v2, %v4213_v6  ;;  %v4583_v2 = vld [vmem:[#allocation64 + $0x8] sm:$0xff]  ;;  %v4584_v27 = vld [vmem:[#allocation64 + $0x10] sm:$0xff]  ;;  %v4585_v6 = vld [vmem:[#allocation64 + $0x18] sm:$0xff] }
0x183d   :  { %v6530_v4 = vpack.c.bf16 %v4583_v2, %v4582_v1  ;;  %v5045_v2 = vld [vmem:[#allocation67] ss:$0 sm:$0xff] }
0x183e   :  { %v4218_v9 = vmul.f32 0.2, %v4216_v7  ;;  %v4217_v10 = vmul.f32 0.2, %v4215_v8 }
0x1840   :  { %v4220_v60 = vmax.f32 %v4216_v7, %v4218_v9  ;;  %v4219_v11 = vmax.f32 %v4215_v8, %v4217_v10  ;;  %v6533_v7 = vpack.c.bf16 %v4585_v6, %v4584_v27  ;;  %v4586_v8 = vld [vmem:[#allocation64 + $0x20] sm:$0xff]  ;;  %v4587_v9 = vld [vmem:[#allocation64 + $0x28] sm:$0xff] }
0x1841   :  { %v6536_v10 = vpack.c.bf16 %v4587_v9, %v4586_v8  ;;  %v5046_v27 = vld [vmem:[#allocation68] ss:$0 sm:$0xff] }
0x1842   :  { %5034 = vmatprep.mubr.msk.f32.mxu0 %vm1036_vm1, %v4220_v60  ;;  %5036 = vmatprep.mubr.msk.f32.mxu1 %vm1036_vm1, %v4220_v60  ;;  %v4588_v60 = vld [vmem:[#allocation64 + $0x30] sm:$0xff] }
0x1843   :  { %4362 = vmatmul.mubr.f32.vlgmr.msra.gmra.mrb[14].mxu0 %v4219_v11  ;;  %4438 = vmatmul.mubr.f32.vlgmr.msra.gmra.mrb[24].mxu1 %v4219_v11  ;;  %v4589_v11 = vld [vmem:[#allocation64 + $0x38] sm:$0xff] }
0x1844   :  { %5303 = vmatprep.mubr.msk.f32.mxu0 %vm8019_vm2, %v8017_v0  ;;  %5357 = vmatprep.mubr.msk.f32.mxu1 %vm8019_vm2, %v8017_v0 }
0x1845   :  { %6513 = vmatpush3.bf16.msra.mxu0 %v6512_v38  ;;  %v5033_v38 = vld [vmem:[#allocation62] ss:$0 sm:$0xff] }
0x1846   :  { %6514 = vmatprep.subr.bf16.mxu0 %v8018_v34 }
0x1849   :  { %6516 = vmatpush3.bf16.msra.mxu0 %v6515_v17 }
0x184a   :  { %6517 = vmatprep.subr.bf16.mxu0 %v8018_v34 }
0x184d   :  { %6519 = vmatpush3.bf16.msra.mxu0 %v6518_v46 }
0x184e   :  { %6520 = vmatprep.subr.bf16.mxu0 %v8018_v34 }
0x1851   :  { %6522 = vmatpush3.bf16.msra.mxu0 %v6521_v49 }
0x1852   :  { %6523 = vmatprep.subr.bf16.mxu0 %v8018_v34 }
0x1855   :  { %6525 = vmatpush3.bf16.msra.mxu0 %v6524_v50 }
0x1856   :  { %6526 = vmatprep.subr.bf16.mxu0 %v8018_v34 }
0x1859   :  { %6528 = vmatpush3.bf16.msra.mxu0 %v6527_v23 }
0x185a   :  { %6529 = vmatprep.subr.bf16.mxu0 %v8018_v34 }
0x1916   :  { %v9794_v21 = vpop.f32.mrb[14].mxu0  ;;  %v4439_v36 = vpop.f32.mrb[24].mxu1 }
0x1917   :  { %v4440_v39 = vadd.f32 %v5035_v19, %v4439_v36  ;;  %v4365_v13 = vpop.f32.mrb[15].mxu0  ;;  %v4441_v26 = vpop.f32.mrb[25].mxu1  ;;  %v6539_v19 = vpack.c.bf16 %v4589_v11, %v4588_v60  ;;  %v4590_v36 = vld [vmem:[#allocation64 + $0x40] sm:$0xff]  ;;  %v4364_v17 = vadd.f32 %v5033_v38, %v9794_v21  ;;  %v4833_v38 = vld [vmem:[%s8324_s19 + $0x20] sm:$0xff] }
0x1918   :  { %v4592_v13 = vld [vmem:[#allocation64 + $0x50] sm:$0xff] }
0x1919   :  { %v4444_v33 = vsel %vm4443_vm3, %v4440_v39, 0.0 }
0x191a   :  { %4445 = vadd.xlane.f32.xlu0 %v4444_v33  ;;  %v4593_v33 = vld [vmem:[#allocation64 + $0x58] sm:$0xff] }
0x19a7   :  { %v4446_v14 = vpop.xlane.xlu0 %4445 }
0x19a8   :  { %v4447_v15 = vmul.f32 0.010416667, %v4446_v14  ;;  %v6545_v14 = vpack.c.bf16 %v4593_v33, %v4592_v13 }
0x19aa   :  { %v4448_v20 = vsub.f32 %v4440_v39, %v4447_v15  ;;  %v4591_v39 = vld [vmem:[#allocation64 + $0x48] sm:$0xff] }
0x19ab   :  { %v6542_v26 = vpack.c.bf16 %v4591_v39, %v4590_v36 }
0x19ac   :  { %v4449_v24 = vmul.f32 %v4448_v20, %v4448_v20 }
0x19ae   :  { %v4450_v31 = vsel %vm4443_vm3, %v4449_v24, 0.0 }
0x19af   :  { %4451 = vadd.xlane.f32.xlu1 %v4450_v31 }
0x1a3c   :  { %v4452_v22 = vpop.xlane.xlu1 %4451 }
0x1a3d   :  { %v4453_v43 = vmul.f32 0.010416667, %v4452_v22 }
0x1a3f   :  { %v4454_v5 = vadd.f32 1e-05, %v4453_v43  ;;  %v4597_v43 = vld [vmem:[#allocation70] sm:$0xff] }
0x1a41   :  { %6741 = vrsqrt.f32 %v4454_v5  ;;  %v4598_v5 = vld [vmem:[#allocation70 + $0x8] sm:$0xff] }
0x1a4b   :  { %v6742_v52 = vpop.eup %6741 }
0x1a4c   :  { %v4456_v51 = vmul.f32 %v6742_v52, %v4448_v20  ;;  %v6548_v52 = vpack.c.bf16 %v4598_v5, %v4597_v43  ;;  %v5050_v5 = vld [vmem:[#allocation74] ss:$0 sm:$0xff] }
0x1a4e   :  { %v4463_v53 = vmul.f32 %v5037_v47, %v4456_v51  ;;  %6549 = vmatpush3.bf16.msra.mxu1 %v6548_v52  ;;  %v4600_v47 = vld [vmem:[#allocation70 + $0x18] sm:$0xff] }
0x1a4f   :  { %6550 = vmatprep.subr.bf16.mxu1 %v8018_v34 }
0x1a50   :  { %v4470_v55 = vadd.f32 %v5038_v25, %v4463_v53  ;;  %v4601_v25 = vld [vmem:[#allocation70 + $0x20] sm:$0xff]  ;;  %v4602_v53 = vld [vmem:[#allocation70 + $0x28] sm:$0xff] }
0x1a52   :  { %v4471_v42 = vmul.f32 0.2, %v4470_v55 }
0x1a54   :  { %v4472_v37 = vmax.f32 %v4470_v55, %v4471_v42  ;;  %v6554_v55 = vpack.c.bf16 %v4602_v53, %v4601_v25  ;;  %v4603_v42 = vld [vmem:[#allocation70 + $0x30] sm:$0xff]  ;;  %v5051_v53 = vld [vmem:[#allocation76] ss:$0 sm:$0xff] }
0x1a56   :  { %5304 = vmatmul.mubr.msk.f32.vlgmr.msra.gmra.mrb[16].mxu0 %vm4443_vm3, %v4472_v37  ;;  %v4604_v37 = vld [vmem:[#allocation70 + $0x38] sm:$0xff] }
0x1a57   :  { %5330 = vmatprep.mubr.msk.f32.mxu0 %vm8019_vm2, %v8017_v0  ;;  %6531 = vmatpush3.bf16.msra.mxu0 %v6530_v4 }
0x1a58   :  { %6532 = vmatprep.subr.bf16.mxu0 %v8018_v34 }
0x1a5b   :  { %6534 = vmatpush3.bf16.msra.mxu0 %v6533_v7 }
0x1a5c   :  { %6535 = vmatprep.subr.bf16.mxu0 %v8018_v34 }
0x1a5f   :  { %6537 = vmatpush3.bf16.msra.mxu0 %v6536_v10  ;;  %v5047_v10 = vld [vmem:[#allocation71] ss:$0 sm:$0xff] }
0x1a60   :  { %6538 = vmatprep.subr.bf16.mxu0 %v8018_v34 }
0x1a63   :  { %6540 = vmatpush3.bf16.msra.mxu0 %v6539_v19 }
0x1a64   :  { %6541 = vmatprep.subr.bf16.mxu0 %v8018_v34 }
0x1a67   :  { %6543 = vmatpush3.bf16.msra.mxu0 %v6542_v26 }
0x1a68   :  { %6544 = vmatprep.subr.bf16.mxu0 %v8018_v34 }
0x1a6b   :  { %6546 = vmatpush3.bf16.msra.mxu0 %v6545_v14 }
0x1a6c   :  { %6565 = vmatprep.subr.bf16.mxu0 %v8018_v34 }
0x1b29   :  { %v4548_v57 = vpop.f32.mrb[16].mxu0 }
0x1b2a   :  { %v4549_v16 = vadd.f32 %v5039_v54, %v4548_v57  ;;  %v5305_v28 = vpop.f32.mrb[17].mxu0  ;;  %v6557_v54 = vpack.c.bf16 %v4604_v37, %v4603_v42  ;;  %v4605_v57 = vld [vmem:[#allocation70 + $0x40] sm:$0xff] }
0x1b2c   :  { %v4552_v61 = vsel %vm4443_vm3, %v4549_v16, 0.0 }
0x1b2d   :  { %4553 = vadd.xlane.f32.xlu0 %v4552_v61  ;;  %v4607_v61 = vld [vmem:[#allocation70 + $0x50] sm:$0xff] }
0x1bba   :  { %v4554_v62 = vpop.xlane.xlu0 %4553 }
0x1bbb   :  { %v4555_v30 = vmul.f32 0.010416667, %v4554_v62  ;;  %v4608_v62 = vld [vmem:[#allocation70 + $0x58] sm:$0xff] }
0x1bbd   :  { %v4556_v32 = vsub.f32 %v4549_v16, %v4555_v30  ;;  %v4606_v16 = vld [vmem:[#allocation70 + $0x48] sm:$0xff]  ;;  %v6563_v30 = vpack.c.bf16 %v4608_v62, %v4607_v61 }
0x1bbe   :  { %v6560_v28 = vpack.c.bf16 %v4606_v16, %v4605_v57 }
0x1bbf   :  { %v4557_v63 = vmul.f32 %v4556_v32, %v4556_v32 }
0x1bc1   :  { %v4558_v18 = vsel %vm4443_vm3, %v4557_v63, 0.0 }
0x1bc2   :  { %4559 = vadd.xlane.f32.xlu1 %v4558_v18 }
0x1c4f   :  { %v4560_v15 = vpop.xlane.xlu1 %4559 }
0x1c50   :  { %v4561_v20 = vmul.f32 0.010416667, %v4560_v15  ;;  %v4829_v15 = vld [vmem:[%s8324_s19] sm:$0xff] }
0x1c52   :  { %v4562_v24 = vadd.f32 1e-05, %v4561_v20  ;;  %v4830_v20 = vld [vmem:[%s8324_s19 + $0x8] sm:$0xff] }
0x1c54   :  { %6743 = vrsqrt.f32 %v4562_v24  ;;  %v6566_v24 = vpack.c.bf16 %v4830_v20, %v4829_v15 }
0x1c5e   :  { %v6744_v31 = vpop.eup %6743 }
0x1c5f   :  { %v4564_v35 = vmul.f32 %v6744_v31, %v4556_v32  ;;  %v4831_v31 = vld [vmem:[%s8324_s19 + $0x10] sm:$0xff] }
0x1c61   :  { %v4571_v58 = vmul.f32 %v5041_v3, %v4564_v35  ;;  %v4832_v3 = vld [vmem:[%s8324_s19 + $0x18] sm:$0xff] }
0x1c62   :  { %v6569_v35 = vpack.c.bf16 %v4832_v3, %v4831_v31 }
0x1c63   :  { %v4578_v41 = vadd.f32 %v5042_v40, %v4571_v58  ;;  %v4834_v40 = vld [vmem:[%s8324_s19 + $0x28] sm:$0xff] }
0x1c64   :  { %v6572_v58 = vpack.c.bf16 %v4834_v40, %v4833_v38 }
0x1c65   :  { %v4579_v44 = vadd.f32 %v4578_v41, %v4364_v17  ;;  %v4835_v17 = vld [vmem:[%s8324_s19 + $0x30] sm:$0xff]  ;;  %v4836_v41 = vld [vmem:[%s8324_s19 + $0x38] sm:$0xff] }
0x1c67   :  { %v4580_v46 = vmul.f32 0.2, %v4579_v44 }
0x1c69   :  { %v9828_v59 = vmax.f32 %v4579_v44, %v4580_v46  ;;  %v6575_v44 = vpack.c.bf16 %v4836_v41, %v4835_v17  ;;  %v4837_v46 = vld [vmem:[%s8324_s19 + $0x40] sm:$0xff] }
0x1c6b   :  { %5331 = vmatmul.mubr.msk.f32.vlgmr.msra.gmra.mrb[18].mxu0 %vm4443_vm3, %v9828_v59 }
0x1c6c   :  { %5384 = vmatprep.mubr.msk.f32.mxu0 %vm8019_vm2, %v8017_v0  ;;  %v4599_v0 = vld [vmem:[#allocation70 + $0x10] sm:$0xff]  ;;  %6567 = vmatpush3.bf16.msra.mxu0 %v6566_v24 }
0x1c6d   :  { %v6551_v51 = vpack.c.bf16 %v4600_v47, %v4599_v0  ;;  %6568 = vmatprep.subr.bf16.mxu0 %v8018_v34 }
0x1c6f   :  { %6552 = vmatpush3.bf16.msra.mxu1 %v6551_v51 }
0x1c70   :  { %6553 = vmatprep.subr.bf16.mxu1 %v8018_v34  ;;  %6570 = vmatpush3.bf16.msra.mxu0 %v6569_v35 }
0x1c71   :  { %6571 = vmatprep.subr.bf16.mxu0 %v8018_v34 }
0x1c73   :  { %6555 = vmatpush3.bf16.msra.mxu1 %v6554_v55 }
0x1c74   :  { %6556 = vmatprep.subr.bf16.mxu1 %v8018_v34  ;;  %6573 = vmatpush3.bf16.msra.mxu0 %v6572_v58 }
0x1c75   :  { %6574 = vmatprep.subr.bf16.mxu0 %v8018_v34 }
0x1c77   :  { %6558 = vmatpush3.bf16.msra.mxu1 %v6557_v54 }
0x1c78   :  { %6559 = vmatprep.subr.bf16.mxu1 %v8018_v34  ;;  %6576 = vmatpush3.bf16.msra.mxu0 %v6575_v44 }
0x1c79   :  { %6577 = vmatprep.subr.bf16.mxu0 %v8018_v34 }
0x1c7b   :  { %6561 = vmatpush3.bf16.msra.mxu1 %v6560_v28 }
0x1c7c   :  { %6562 = vmatprep.subr.bf16.mxu1 %v8018_v34 }
0x1c7f   :  { %6564 = vmatpush3.bf16.msra.mxu1 %v6563_v30 }
0x1d3e   :  { %v4687_v49 = vpop.f32.mrb[18].mxu0 }
0x1d3f   :  { %v4688_v45 = vadd.f32 %v5043_v48, %v4687_v49  ;;  %v5332_v12 = vpop.f32.mrb[19].mxu0  ;;  %v4838_v48 = vld [vmem:[%s8324_s19 + $0x48] sm:$0xff] }
0x1d40   :  { %v6578_v49 = vpack.c.bf16 %v4838_v48, %v4837_v46  ;;  %v4840_v12 = vld [vmem:[%s8324_s19 + $0x58] sm:$0xff] }
0x1d41   :  { %v4691_v50 = vsel %vm4443_vm3, %v4688_v45, 0.0 }
0x1d42   :  { %4692 = vadd.xlane.f32.xlu0 %v4691_v50  ;;  %6579 = vmatpush3.bf16.msra.mxu0 %v6578_v49 }
0x1d43   :  { %6580 = vmatprep.subr.bf16.mxu0 %v8018_v34 }
0x1dcf   :  { %v4693_v29 = vpop.xlane.xlu0 %4692 }
0x1dd0   :  { %v4694_v21 = vmul.f32 0.010416667, %v4693_v29 }
0x1dd2   :  { %v4695_v56 = vsub.f32 %v4688_v45, %v4694_v21  ;;  %v4839_v45 = vld [vmem:[%s8324_s19 + $0x50] sm:$0xff]  ;;  %s8020_s19 = smov [#allocation77]  }
0x1dd3   :  { %v6581_v50 = vpack.c.bf16 %v4840_v12, %v4839_v45  ;;  %s4930_s5 = sshll.u32 %s8020_s19, 4  ;;  %s4931_s5 = int_to_ptr.vmem [resolvable:$true] %s4930_s5 }
0x1dd4   :  { %v4696_v23 = vmul.f32 %v4695_v56, %v4695_v56  ;;  %s7829_s0 = scalar_lea.vmem %s4931_s5, 128  ;;  %p7834_p1 = scmp.lt.s32.totalorder %s4931_s5, %s4931_s5 }
0x1dd5   :  { %6582 = vmatpush3.bf16.msra.mxu0 %v6581_v50  ;;  %p7830_p0 = scmp.ne.s32.totalorder %s4931_s5, %s7829_s0  ;;  %p7835_p2 = scmp.lt.s32.totalorder %s7829_s0, %s7829_s0 }
0x1dd6   :  { %v4697_v22 = vsel %vm4443_vm3, %v4696_v23, 0.0 }
0x1dd7   :  { %4698 = vadd.xlane.f32.xlu1 %v4697_v22  ;;  %v5049_v22 = vld [vmem:[#allocation73] ss:$0 sm:$0xff]  ;;  %p7836_p3 = por %p7835_p2, %p7834_p1 }
0x1dd9   :  { %p7837_p4 = pnand %p7836_p3, %p7830_p0 }
0x1e64   :  { %v4699_v32 = vpop.xlane.xlu1 %4698 }
0x1e65   :  { %v4700_v63 = vmul.f32 0.010416667, %v4699_v32 }
0x1e67   :  { %v4701_v18 = vadd.f32 1e-05, %v4700_v63 }
0x1e69   :  { %6745 = vrsqrt.f32 %v4701_v18 }
0x1e73   :  { %v6746_v1 = vpop.eup %6745 }
0x1e74   :  { %v4703_v4 = vmul.f32 %v6746_v1, %v4695_v56 }
0x1e76   :  { %v4710_v6 = vmul.f32 %v5045_v2, %v4703_v4 }
0x1e78   :  { %v4717_v7 = vadd.f32 %v5046_v27, %v4710_v6 }
0x1e7a   :  { %v4718_v8 = vmul.f32 0.2, %v4717_v7 }
0x1e7c   :  { %v4719_v9 = vmax.f32 %v4717_v7, %v4718_v8 }
0x1e7e   :  { %5358 = vmatmul.mubr.msk.f32.vlgmr.msra.gmra.mrb[26].mxu1 %vm4443_vm3, %v4719_v9 }
0x1f51   :  { %v4795_v60 = vpop.f32.mrb[26].mxu1 }
0x1f52   :  { %v4796_v11 = vadd.f32 %v5047_v10, %v4795_v60  ;;  %v5359_v19 = vpop.f32.mrb[27].mxu1 }
0x1f54   :  { %v4799_v36 = vsel %vm4443_vm3, %v4796_v11, 0.0 }
0x1f55   :  { %4800 = vadd.xlane.f32.xlu0 %v4799_v36 }
0x1fe2   :  { %v4801_v39 = vpop.xlane.xlu0 %4800 }
0x1fe3   :  { %v4802_v13 = vmul.f32 0.010416667, %v4801_v39 }
0x1fe5   :  { %v4803_v26 = vsub.f32 %v4796_v11, %v4802_v13 }
0x1fe7   :  { %v4804_v33 = vmul.f32 %v4803_v26, %v4803_v26 }
0x1fe9   :  { %v4805_v14 = vsel %vm4443_vm3, %v4804_v33, 0.0 }
0x1fea   :  { %4806 = vadd.xlane.f32.xlu1 %v4805_v14 }
0x2077   :  { %v4807_v29 = vpop.xlane.xlu1 %4806 }
0x2078   :  { %v4808_v21 = vmul.f32 0.010416667, %v4807_v29 }
0x207a   :  { %v4809_v56 = vadd.f32 1e-05, %v4808_v21 }
0x207c   :  { %6747 = vrsqrt.f32 %v4809_v56 }
0x2086   :  { %v6748_v23 = vpop.eup %6747 }
0x2087   :  { %v4811_v43 = vmul.f32 %v6748_v23, %v4803_v26 }
0x2089   :  { %v4818_v52 = vmul.f32 %v5049_v22, %v4811_v43 }
0x208b   :  { %v4825_v0 = vadd.f32 %v5050_v5, %v4818_v52 }
0x208d   :  { %v4826_v47 = vadd.f32 %v4825_v0, %v9828_v59 }
0x208f   :  { %v4827_v51 = vmul.f32 0.2, %v4826_v47 }
0x2091   :  { %v4828_v25 = vmax.f32 %v4826_v47, %v4827_v51 }
0x2093   :  { %5385 = vmatmul.mubr.msk.f32.vlgmr.msra.gmra.mrb[20].mxu0 %vm4443_vm3, %v4828_v25 }
0x2166   :  { %v4917_v55 = vpop.f32.mrb[20].mxu0 }
0x2167   :  { %v4918_v34 = vadd.f32 %v5051_v53, %v4917_v55  ;;  %v5386_v42 = vpop.f32.mrb[21].mxu0 }
0x2169   :  { %6749 = vtanh.f32 %v4918_v34 }
0x2173   :  { %v6750_v37 = vpop.eup %6749 }
0x2174   :  { %4923 = vst.msk [vmem:[#allocation77] sm:$0xff] %vm4922_vm4, %v6750_v37 }
0x2175   :  { %7840 = shalt.err (!%p7837_p4)
}
0x2176   :  { %s7841_s6 = scalar_lea.hbm %s8334_s21, 128 }
0x2177   :  { %p7842_p5 = scmp.ne.s32.totalorder %s8334_s21, %s7841_s6  ;;  %p7845_p6 = scmp.lt.u32.totalorder %s7841_s6, %s8334_s21 }
0x2179   :  { %p7847_p7 = pnand %p7845_p6, %p7842_p5 }
0x217b   :  { %7850 = shalt.err (!%p7847_p7)
}
0x217c   :  { %4933 = dma.vmem_to_hbm [thread:$0]  %s4931_s5, 128, %s8334_s21, [#allocation4]  }
0x217d   :  { %7901 = dma.done.wait [#allocation4], 128  }
0x217e   :  { %7902 = vsyncadd [#allocation4], 4294967168 }
0x217f   :  { %4937 = vsyncpa [#allocation3], 1 }
0x2180   :  { %4938 = vsyncpa [#allocation6], 1 }
0x2181   :  { %4939 = vsyncpa [#allocation9], 1 }
0x2182   :  { %4940 = vsyncpa [#allocation12], 1 }
0x2183   :  { %4941 = vsyncpa [#allocation15], 1 }
0x2184   :  { %4942 = vsyncpa [#allocation18], 1 }
0x2185   :  { %4943 = vsyncpa [#allocation21], 1 }
0x2186   :  { %4944 = vsyncpa [#allocation24], 1 }
0x2187   :  { %4945 = vsyncpa [#allocation27], 1 }
0x2188   :  { %4946 = vsyncpa [#allocation30], 1 }
0x2189   :  { %4947 = vsyncpa [#allocation33], 1 }
0x218a   :  { %4948 = vsyncpa [#allocation36], 1 }
0x218b   :  { %4949 = vsyncpa [#allocation39], 1 }
0x218c   :  { %4950 = vsyncpa [#allocation42], 1 }
0x218d   :  { %4951 = vsyncpa [#allocation45], 1 }
0x218e   :  { %4952 = vsyncpa [#allocation48], 1 }
0x218f   :  { %4953 = vsyncpa [#allocation51], 1 }
0x2190   :  { %4954 = vsyncpa [#allocation54], 1 }
0x2191   :  { %4955 = vsyncpa [#allocation57], 1 }
0x2192   :  { %4956 = vsyncpa [#allocation60], 1 }
0x2193   :  { %4957 = vsyncpa [#allocation63], 1 }
0x2194   :  { %4958 = vsyncpa [#allocation66], 1 }
0x2195   :  { %4959 = vsyncpa [#allocation69], 1 }
0x2196   :  { %4960 = vsyncpa [#allocation72], 1 }
0x2197   :  { %4961 = vsyncpa [#allocation75], 1 }
0x2198   :  { %4962 = vsyncpa [#allocation4], 1 }

</bundles_post_ra>
